<compile_context>
chip_gen: v6e
topology: v6e:2x2x1
jax: 0.10.0
libtpu: 0.0.40
codegen_flags: <defaults>
</compile_context>

<pallas_src>
import functools

import numpy as np
import jax
import jax.numpy as jnp
from jax import lax
from jax.experimental import pallas as pl
from jax.experimental.pallas import tpu as pltpu


# --------------------------------------------------------------------------
# In-kernel helpers (channel-minor layout: activations are (C, H*W))
# --------------------------------------------------------------------------
def _conv3x3_cm(x, w_t, b, width, relu):
    """3x3 'same' conv in channel-minor layout as ONE im2col MXU matmul.

    x:     (Cin, H*W)    bf16, spatially flattened row-major (row len = width)
    w_t:   (Cout, 9*Cin) bf16, rows ordered (ky, kx, cin), transposed
    b:     (Cout, 1)     f32 bias
    ->     (Cout, H*W)   f32 (ReLU applied when relu=True)
    """
    cin, hw = x.shape
    # Zero-pad (width+1) lanes on each side: the +-width row shifts and +-1
    # column shifts all become static lane-axis slices of one padded slab.
    pad = jnp.zeros((cin, width + 1), x.dtype)
    xp = jnp.concatenate([pad, x, pad], axis=1)            # (Cin, HW+2W+2)

    col = lax.broadcasted_iota(jnp.int32, (1, hw), 1) % width
    mask_l = col != 0             # valid output columns for the dx=-1 taps
    mask_r = col != (width - 1)   # valid output columns for the dx=+1 taps

    rows = []
    for dy in (-1, 0, 1):
        for dx in (-1, 0, 1):
            off = (width + 1) + dy * width + dx
            sl = lax.slice_in_dim(xp, off, off + hw, axis=1)
            if dx == -1:
                sl = jnp.where(mask_l, sl, 0)
            elif dx == 1:
                sl = jnp.where(mask_r, sl, 0)
            rows.append(sl)
    patch = jnp.concatenate(rows, axis=0)                  # (9*Cin, HW)

    acc = jnp.dot(w_t, patch, preferred_element_type=jnp.float32) + b
    if relu:
        acc = jnp.maximum(acc, 0.0)
    return acc


def _decoder_block(prev, skip, upmat, w1_t, b1, w2_t, b2, width):
    """One DecoderBlock: upsample(prev) ++ skip -> conv+relu -> conv+relu.

    prev:  (Cp, hw)      bf16 (previous level, flattened)
    skip:  (Cs, 4*hw)    bf16
    upmat: (hw, 4*hw)    bf16 0/1 nearest-upsample selection matrix
    ->     (Cout, 4*hw)  bf16
    """
    up = jnp.dot(prev, upmat, preferred_element_type=jnp.float32)
    up = up.astype(jnp.bfloat16)                           # exact (0/1 matrix)
    cat = jnp.concatenate([up, skip], axis=0)              # channel concat
    h = _conv3x3_cm(cat, w1_t, b1, width, relu=True).astype(jnp.bfloat16)
    h = _conv3x3_cm(h, w2_t, b2, width, relu=True).astype(jnp.bfloat16)
    return h


def _decoder_kernel(x_ref, s3_ref, s2_ref, s1_ref, u1_ref, u2_ref, u3_ref,
                    w1a_ref, b1a_ref, w1b_ref, b1b_ref,
                    w2a_ref, b2a_ref, w2b_ref, b2b_ref,
                    w3a_ref, b3a_ref, w3b_ref, b3b_ref,
                    wo_ref, bo_ref, o_ref, *, widths, nb):
    wd1, wd2, wd3 = widths
    for b in range(nb):
        h = _decoder_block(x_ref[b], s3_ref[b], u1_ref[...],
                           w1a_ref[...], b1a_ref[...],
                           w1b_ref[...], b1b_ref[...], wd1)
        h = _decoder_block(h, s2_ref[b], u2_ref[...],
                           w2a_ref[...], b2a_ref[...],
                           w2b_ref[...], b2b_ref[...], wd2)
        h = _decoder_block(h, s1_ref[b], u3_ref[...],
                           w3a_ref[...], b3a_ref[...],
                           w3b_ref[...], b3b_ref[...], wd3)
        # final 3x3 conv + Softmax2d over classes, kept class-major/lane-dense
        logits = _conv3x3_cm(h, wo_ref[...], bo_ref[...], wd3, relu=False)
        m = jnp.max(logits, axis=0, keepdims=True)
        e = jnp.exp(logits - m)
        p = e / jnp.sum(e, axis=0, keepdims=True)          # exact softmax
        o_ref[b] = p.astype(o_ref.dtype)


# --------------------------------------------------------------------------
# Wrapper
# --------------------------------------------------------------------------
def _upsample_matrix(h, w):
    """(hw, 4hw) 0/1 matrix: right-multiplied 2x nearest upsample on (C, hw)."""
    q = np.arange(4 * h * w)
    qy, qx = q // (2 * w), q % (2 * w)
    src = (qy // 2) * w + (qx // 2)
    s = np.zeros((h * w, 4 * h * w), np.float32)
    s[src, q] = 1.0
    return s


def decoder_forward(params, inputs, skip_1, skip_2, skip_3):
    """Fused Pallas decoder.  All tensors NCHW (PyTorch layout), f32."""
    n, _, h0, w0 = inputs.shape
    hf, wf = skip_1.shape[2], skip_1.shape[3]
    n_classes = params["out"][0].shape[-1]

    bf16 = lambda t: t.astype(jnp.bfloat16)
    flat = lambda t: t.reshape(t.shape[0], t.shape[1], -1)   # (N, C, H*W), free

    x = bf16(flat(inputs))
    s3, s2, s1 = bf16(flat(skip_3)), bf16(flat(skip_2)), bf16(flat(skip_1))

    u1 = jnp.asarray(_upsample_matrix(h0, w0), jnp.bfloat16)
    u2 = jnp.asarray(_upsample_matrix(2 * h0, 2 * w0), jnp.bfloat16)
    u3 = jnp.asarray(_upsample_matrix(4 * h0, 4 * w0), jnp.bfloat16)

    def wmat(w):   # HWIO (3,3,cin,cout) -> (cout, 9*cin) bf16, (ky,kx,cin) rows
        cin, cout = w.shape[2], w.shape[3]
        return jnp.transpose(w.reshape(9 * cin, cout)).astype(jnp.bfloat16)

    def bcol(b):   # (cout,) -> (cout, 1) f32 (broadcast along lanes in-kernel)
        return b.reshape(-1, 1).astype(jnp.float32)

    (w1a, b1a), (w1b, b1b) = params["b1c1"], params["b1c2"]
    (w2a, b2a), (w2b, b2b) = params["b2c1"], params["b2c2"]
    (w3a, b3a), (w3b, b3b) = params["b3c1"], params["b3c2"]
    wo, bo = params["out"]

    wargs = [wmat(w1a), bcol(b1a), wmat(w1b), bcol(b1b),
             wmat(w2a), bcol(b2a), wmat(w2b), bcol(b2b),
             wmat(w3a), bcol(b3a), wmat(w3b), bcol(b3b),
             wmat(wo), bcol(bo)]

    # Batch tiling: >=2 "parallel" grid steps when the batch allows it (keeps
    # both v7x TensorCores busy); at most 2 images per step so the in-kernel
    # unroll stays small.  On single-TC v5e/v6e this is a very short loop.
    if n >= 2 and n % 2 == 0:
        n_steps = max(2, n // 2)
    else:
        n_steps = n
    nb = n // n_steps

    def batch_spec(shape):
        nrest = len(shape) - 1
        return pl.BlockSpec((nb,) + tuple(shape[1:]),
                            lambda i, _r=nrest: (i,) + (0,) * _r)

    def full_spec(shape):
        zeros = (0,) * len(shape)
        return pl.BlockSpec(tuple(shape), lambda i, _z=zeros: _z)

    data = [x, s3, s2, s1, u1, u2, u3] + wargs
    in_specs = ([batch_spec(a.shape) for a in data[:4]]
                + [full_spec(a.shape) for a in data[4:]])

    kernel = functools.partial(_decoder_kernel,
                               widths=(2 * w0, 4 * w0, 8 * w0), nb=nb)

    out = pl.pallas_call(
        kernel,
        out_shape=jax.ShapeDtypeStruct((n, n_classes, hf * wf), jnp.float32),
        grid=(n_steps,),
        in_specs=in_specs,
        out_specs=pl.BlockSpec((nb, n_classes, hf * wf), lambda i: (i, 0, 0)),
        compiler_params=pltpu.CompilerParams(
            dimension_semantics=("parallel",),
            vmem_limit_bytes=8 * 1024 * 1024),
    )(*data)
    # class-major (N, n_classes, Hf*Wf) -> NCHW is a free reshape
    return out.reshape(n, n_classes, hf, wf)


# --------------------------------------------------------------------------
# Pure-JAX reference (mirrors the bf16 MXU inputs of the kernel)
# --------------------------------------------------------------------------
def _conv3x3_ref(x, w, b, relu=False, softmax=False):
    out = lax.conv_general_dilated(
        x.astype(jnp.bfloat16), w.astype(jnp.bfloat16), (1, 1), "SAME",
        dimension_numbers=("NHWC", "HWIO", "NHWC"),
        preferred_element_type=jnp.float32)
    out = out + b.reshape(1, 1, 1, -1)
    if relu:
        out = jnp.maximum(out, 0.0)
    if softmax:
        out = jax.nn.softmax(out, axis=-1)
    return out


def _upsample_ref(x):
    x = jnp.repeat(x, 2, axis=1)
    return jnp.repeat(x, 2, axis=2)


def decoder_forward_ref(params, inputs, skip_1, skip_2, skip_3):
    to_nhwc = lambda t: jnp.transpose(t, (0, 2, 3, 1))
    x = to_nhwc(inputs)
    s1, s2, s3 = map(to_nhwc, (skip_1, skip_2, skip_3))

    def block(h, skip, ca, cb):
        m = jnp.concatenate([_upsample_ref(h), skip], axis=-1)
        m = _conv3x3_ref(m, ca[0], ca[1], relu=True)
        m = _conv3x3_ref(m, cb[0], cb[1], relu=True)
        return m

    x = block(x, s3, params["b1c1"], params["b1c2"])
    x = block(x, s2, params["b2c1"], params["b2c2"])
    x = block(x, s1, params["b3c1"], params["b3c2"])
    x = _conv3x3_ref(x, params["out"][0], params["out"][1], softmax=True)
    return jnp.transpose(x, (0, 3, 1, 2))


# --------------------------------------------------------------------------
# Deterministic parameter init (PyTorch-like uniform fan-in scaling), HWIO
# --------------------------------------------------------------------------
def init_conv(key, cin, cout):
    kw, kb = jax.random.split(key)
    scale = 1.0 / np.sqrt(cin * 9)
    w = jax.random.uniform(kw, (3, 3, cin, cout), jnp.float32, -scale, scale)
    b = jax.random.uniform(kb, (cout,), jnp.float32, -scale, scale)
    return (w, b)


def init_decoder_params(key, n_classes, channels):
    c0, c1, c2, c3 = channels
    keys = jax.random.split(key, 7)
    return {
        "b1c1": init_conv(keys[0], c3 + c2, c2),
        "b1c2": init_conv(keys[1], c2, c2),
        "b2c1": init_conv(keys[2], c2 + c1, c1),
        "b2c2": init_conv(keys[3], c1, c1),
        "b3c1": init_conv(keys[4], c1 + c0, c0),
        "b3c2": init_conv(keys[5], c0, c0),
        "out":  init_conv(keys[6], c0, n_classes),
    }


# --------------------------------------------------------------------------
if __name__ == "__main__":
    key = jax.random.PRNGKey(0)
    channels = [4, 8, 16, 32]                 # [c0, c1, c2, c3]
    n_classes = 5
    N, H, W = 2, 4, 4                         # bottleneck spatial size

    k_in, k_s1, k_s2, k_s3, k_p = jax.random.split(key, 5)
    inputs = jax.random.normal(k_in, (N, channels[3], H, W), jnp.float32)
    skip_3 = jax.random.normal(k_s3, (N, channels[2], 2 * H, 2 * W), jnp.float32)
    skip_2 = jax.random.normal(k_s2, (N, channels[1], 4 * H, 4 * W), jnp.float32)
    skip_1 = jax.random.normal(k_s1, (N, channels[0], 8 * H, 8 * W), jnp.float32)
    params = init_decoder_params(k_p, n_classes, channels)

    out = jax.jit(decoder_forward)(params, inputs, skip_1, skip_2, skip_3)
    out = jax.block_until_ready(out)
    assert out.shape == (N, n_classes, 8 * H, 8 * W), out.shape

    # correctness check against a pure-JAX reference with matching bf16
    # matmul-input quantization (differences are only f32-accumulation order).
    ref = jax.jit(decoder_forward_ref)(params, inputs, skip_1, skip_2, skip_3)
    np.testing.assert_allclose(np.asarray(out), np.asarray(ref),
                               atol=2e-2, rtol=2e-2)
    print("KERNEL_OK")
</pallas_src>

<mosaic_0001>
module attributes {stable_mosaic.version = 11 : i64} {
  func.func @_decoder_kernel(%arg0: i32, %arg1: memref<1x32x16xbf16, #tpu.memory_space<vmem>>, %arg2: memref<1x16x64xbf16, #tpu.memory_space<vmem>>, %arg3: memref<1x8x256xbf16, #tpu.memory_space<vmem>>, %arg4: memref<1x4x1024xbf16, #tpu.memory_space<vmem>>, %arg5: memref<16x64xbf16, #tpu.memory_space<vmem>>, %arg6: memref<64x256xbf16, #tpu.memory_space<vmem>>, %arg7: memref<256x1024xbf16, #tpu.memory_space<vmem>>, %arg8: memref<16x432xbf16, #tpu.memory_space<vmem>>, %arg9: memref<16x1xf32, #tpu.memory_space<vmem>>, %arg10: memref<16x144xbf16, #tpu.memory_space<vmem>>, %arg11: memref<16x1xf32, #tpu.memory_space<vmem>>, %arg12: memref<8x216xbf16, #tpu.memory_space<vmem>>, %arg13: memref<8x1xf32, #tpu.memory_space<vmem>>, %arg14: memref<8x72xbf16, #tpu.memory_space<vmem>>, %arg15: memref<8x1xf32, #tpu.memory_space<vmem>>, %arg16: memref<4x108xbf16, #tpu.memory_space<vmem>>, %arg17: memref<4x1xf32, #tpu.memory_space<vmem>>, %arg18: memref<4x36xbf16, #tpu.memory_space<vmem>>, %arg19: memref<4x1xf32, #tpu.memory_space<vmem>>, %arg20: memref<5x36xbf16, #tpu.memory_space<vmem>>, %arg21: memref<5x1xf32, #tpu.memory_space<vmem>>, %arg22: memref<1x5x1024xf32, #tpu.memory_space<vmem>>) attributes {dimension_semantics = [#tpu.dimension_semantics<parallel>], iteration_bounds = array<i64: 2>, scalar_prefetch = 0 : i64, scratch_operands = 0 : i64, tpu.core_type = #tpu.core_type<tc>, window_params = [{transform_indices = @transform_0, window_bounds = array<i64: 1, 32, 16>}, {transform_indices = @transform_1, window_bounds = array<i64: 1, 16, 64>}, {transform_indices = @transform_2, window_bounds = array<i64: 1, 8, 256>}, {transform_indices = @transform_3, window_bounds = array<i64: 1, 4, 1024>}, {pipeline_mode = #tpu.pipeline_mode<synchronous>, transform_indices = @transform_4, window_bounds = array<i64: 16, 64>}, {pipeline_mode = #tpu.pipeline_mode<synchronous>, transform_indices = @transform_5, window_bounds = array<i64: 64, 256>}, {pipeline_mode = #tpu.pipeline_mode<synchronous>, transform_indices = @transform_6, window_bounds = array<i64: 256, 1024>}, {pipeline_mode = #tpu.pipeline_mode<synchronous>, transform_indices = @transform_7, window_bounds = array<i64: 16, 432>}, {pipeline_mode = #tpu.pipeline_mode<synchronous>, transform_indices = @transform_8, window_bounds = array<i64: 16, 1>}, {pipeline_mode = #tpu.pipeline_mode<synchronous>, transform_indices = @transform_9, window_bounds = array<i64: 16, 144>}, {pipeline_mode = #tpu.pipeline_mode<synchronous>, transform_indices = @transform_10, window_bounds = array<i64: 16, 1>}, {pipeline_mode = #tpu.pipeline_mode<synchronous>, transform_indices = @transform_11, window_bounds = array<i64: 8, 216>}, {pipeline_mode = #tpu.pipeline_mode<synchronous>, transform_indices = @transform_12, window_bounds = array<i64: 8, 1>}, {pipeline_mode = #tpu.pipeline_mode<synchronous>, transform_indices = @transform_13, window_bounds = array<i64: 8, 72>}, {pipeline_mode = #tpu.pipeline_mode<synchronous>, transform_indices = @transform_14, window_bounds = array<i64: 8, 1>}, {pipeline_mode = #tpu.pipeline_mode<synchronous>, transform_indices = @transform_15, window_bounds = array<i64: 4, 108>}, {pipeline_mode = #tpu.pipeline_mode<synchronous>, transform_indices = @transform_16, window_bounds = array<i64: 4, 1>}, {pipeline_mode = #tpu.pipeline_mode<synchronous>, transform_indices = @transform_17, window_bounds = array<i64: 4, 36>}, {pipeline_mode = #tpu.pipeline_mode<synchronous>, transform_indices = @transform_18, window_bounds = array<i64: 4, 1>}, {pipeline_mode = #tpu.pipeline_mode<synchronous>, transform_indices = @transform_19, window_bounds = array<i64: 5, 36>}, {pipeline_mode = #tpu.pipeline_mode<synchronous>, transform_indices = @transform_20, window_bounds = array<i64: 5, 1>}, {transform_indices = @transform_21, window_bounds = array<i64: 1, 5, 1024>}]} {
    %c0 = arith.constant 0 : index
    %c0_0 = arith.constant 0 : index
    %c0_1 = arith.constant 0 : index
    %0 = vector.load %arg1[%c0, %c0_0, %c0_1] : memref<1x32x16xbf16, #tpu.memory_space<vmem>>, vector<1x32x16xbf16>
    %1 = vector.shape_cast %0 : vector<1x32x16xbf16> to vector<32x16xbf16>
    %c0_2 = arith.constant 0 : index
    %c0_3 = arith.constant 0 : index
    %c0_4 = arith.constant 0 : index
    %2 = vector.load %arg2[%c0_2, %c0_3, %c0_4] : memref<1x16x64xbf16, #tpu.memory_space<vmem>>, vector<1x16x64xbf16>
    %3 = vector.shape_cast %2 : vector<1x16x64xbf16> to vector<16x64xbf16>
    %c0_5 = arith.constant 0 : index
    %c0_6 = arith.constant 0 : index
    %4 = vector.load %arg5[%c0_5, %c0_6] : memref<16x64xbf16, #tpu.memory_space<vmem>>, vector<16x64xbf16>
    %c0_7 = arith.constant 0 : index
    %c0_8 = arith.constant 0 : index
    %5 = vector.load %arg8[%c0_7, %c0_8] : memref<16x432xbf16, #tpu.memory_space<vmem>>, vector<16x432xbf16>
    %c0_9 = arith.constant 0 : index
    %c0_10 = arith.constant 0 : index
    %6 = vector.load %arg9[%c0_9, %c0_10] : memref<16x1xf32, #tpu.memory_space<vmem>>, vector<16x1xf32>
    %c0_11 = arith.constant 0 : index
    %c0_12 = arith.constant 0 : index
    %7 = vector.load %arg10[%c0_11, %c0_12] : memref<16x144xbf16, #tpu.memory_space<vmem>>, vector<16x144xbf16>
    %c0_13 = arith.constant 0 : index
    %c0_14 = arith.constant 0 : index
    %8 = vector.load %arg11[%c0_13, %c0_14] : memref<16x1xf32, #tpu.memory_space<vmem>>, vector<16x1xf32>
    %cst = arith.constant dense<0.000000e+00> : vector<32x64xf32>
    %9 = tpu.matmul %1, %4, %cst {dimension_numbers = #tpu.dot_dimension_numbers<[1], [0], [0], [1], [0, 0, 1, 1], [], []>} : vector<32x16xbf16>, vector<16x64xbf16>, vector<32x64xf32> -> vector<32x64xf32>
    %10 = arith.truncf %9 : vector<32x64xf32> to vector<32x64xbf16>
    %11 = tpu.concatenate %10, %3 in 0 : vector<32x64xbf16>, vector<16x64xbf16> -> vector<48x64xbf16>
    %cst_15 = arith.constant 0.000000e+00 : bf16
    %12 = vector.broadcast %cst_15 : bf16 to vector<48x9xbf16>
    %13 = tpu.concatenate %12, %11, %12 in 1 : vector<48x9xbf16>, vector<48x64xbf16>, vector<48x9xbf16> -> vector<48x82xbf16>
    %14 = tpu.iota {dimensions = array<i32: 1>} : vector<1x64xi32>
    %c8_i32 = arith.constant 8 : i32
    %c0_i32 = arith.constant 0 : i32
    %15 = arith.cmpi eq, %c8_i32, %c0_i32 : i32
    %c1_i32 = arith.constant 1 : i32
    %16 = arith.select %15, %c1_i32, %c8_i32 : i32
    %17 = vector.broadcast %16 : i32 to vector<1x64xi32>
    %18 = arith.remsi %14, %17 : vector<1x64xi32>
    %c0_i32_16 = arith.constant 0 : i32
    %19 = vector.broadcast %c0_i32_16 : i32 to vector<1x64xi32>
    %20 = arith.cmpi ne, %18, %19 : vector<1x64xi32>
    %c0_i32_17 = arith.constant 0 : i32
    %21 = vector.broadcast %c0_i32_17 : i32 to vector<1x64xi32>
    %22 = arith.cmpi slt, %18, %21 : vector<1x64xi32>
    %c0_i32_18 = arith.constant 0 : i32
    %23 = arith.cmpi slt, %16, %c0_i32_18 : i32
    %24 = vector.broadcast %23 : i1 to vector<1x64xi1>
    %25 = vector.broadcast %24 : vector<1x64xi1> to vector<1x64xi1>
    %26 = arith.xori %22, %25 : vector<1x64xi1>
    %27 = arith.andi %26, %20 : vector<1x64xi1>
    %28 = vector.broadcast %16 : i32 to vector<1x64xi32>
    %29 = arith.addi %18, %28 : vector<1x64xi32>
    %30 = arith.select %27, %29, %18 : vector<1x64xi1>, vector<1x64xi32>
    %c0_i32_19 = arith.constant 0 : i32
    %31 = vector.broadcast %c0_i32_19 : i32 to vector<1x64xi32>
    %32 = arith.cmpi ne, %30, %31 : vector<1x64xi32>
    %c7_i32 = arith.constant 7 : i32
    %33 = vector.broadcast %c7_i32 : i32 to vector<1x64xi32>
    %34 = arith.cmpi ne, %30, %33 : vector<1x64xi32>
    %35 = vector.extract_strided_slice %13 {offsets = [0, 0], sizes = [48, 64], strides = [1, 1]} : vector<48x82xbf16> to vector<48x64xbf16>
    %c0_i32_20 = arith.constant 0 : i32
    %36 = arith.sitofp %c0_i32_20 : i32 to bf16
    %37 = vector.shape_cast %32 : vector<1x64xi1> to vector<1x64xi1>
    %38 = vector.broadcast %37 : vector<1x64xi1> to vector<48x64xi1>
    %39 = vector.broadcast %36 : bf16 to vector<48x64xbf16>
    %40 = arith.select %38, %35, %39 : vector<48x64xi1>, vector<48x64xbf16>
    %41 = vector.extract_strided_slice %13 {offsets = [0, 1], sizes = [48, 64], strides = [1, 1]} : vector<48x82xbf16> to vector<48x64xbf16>
    %42 = vector.extract_strided_slice %13 {offsets = [0, 2], sizes = [48, 64], strides = [1, 1]} : vector<48x82xbf16> to vector<48x64xbf16>
    %c0_i32_21 = arith.constant 0 : i32
    %43 = arith.sitofp %c0_i32_21 : i32 to bf16
    %44 = vector.shape_cast %34 : vector<1x64xi1> to vector<1x64xi1>
    %45 = vector.broadcast %44 : vector<1x64xi1> to vector<48x64xi1>
    %46 = vector.broadcast %43 : bf16 to vector<48x64xbf16>
    %47 = arith.select %45, %42, %46 : vector<48x64xi1>, vector<48x64xbf16>
    %48 = vector.extract_strided_slice %13 {offsets = [0, 8], sizes = [48, 64], strides = [1, 1]} : vector<48x82xbf16> to vector<48x64xbf16>
    %c0_i32_22 = arith.constant 0 : i32
    %49 = arith.sitofp %c0_i32_22 : i32 to bf16
    %50 = vector.shape_cast %32 : vector<1x64xi1> to vector<1x64xi1>
    %51 = vector.broadcast %50 : vector<1x64xi1> to vector<48x64xi1>
    %52 = vector.broadcast %49 : bf16 to vector<48x64xbf16>
    %53 = arith.select %51, %48, %52 : vector<48x64xi1>, vector<48x64xbf16>
    %54 = vector.extract_strided_slice %13 {offsets = [0, 9], sizes = [48, 64], strides = [1, 1]} : vector<48x82xbf16> to vector<48x64xbf16>
    %55 = vector.extract_strided_slice %13 {offsets = [0, 10], sizes = [48, 64], strides = [1, 1]} : vector<48x82xbf16> to vector<48x64xbf16>
    %c0_i32_23 = arith.constant 0 : i32
    %56 = arith.sitofp %c0_i32_23 : i32 to bf16
    %57 = vector.shape_cast %34 : vector<1x64xi1> to vector<1x64xi1>
    %58 = vector.broadcast %57 : vector<1x64xi1> to vector<48x64xi1>
    %59 = vector.broadcast %56 : bf16 to vector<48x64xbf16>
    %60 = arith.select %58, %55, %59 : vector<48x64xi1>, vector<48x64xbf16>
    %61 = vector.extract_strided_slice %13 {offsets = [0, 16], sizes = [48, 64], strides = [1, 1]} : vector<48x82xbf16> to vector<48x64xbf16>
    %c0_i32_24 = arith.constant 0 : i32
    %62 = arith.sitofp %c0_i32_24 : i32 to bf16
    %63 = vector.shape_cast %32 : vector<1x64xi1> to vector<1x64xi1>
    %64 = vector.broadcast %63 : vector<1x64xi1> to vector<48x64xi1>
    %65 = vector.broadcast %62 : bf16 to vector<48x64xbf16>
    %66 = arith.select %64, %61, %65 : vector<48x64xi1>, vector<48x64xbf16>
    %67 = vector.extract_strided_slice %13 {offsets = [0, 17], sizes = [48, 64], strides = [1, 1]} : vector<48x82xbf16> to vector<48x64xbf16>
    %68 = vector.extract_strided_slice %13 {offsets = [0, 18], sizes = [48, 64], strides = [1, 1]} : vector<48x82xbf16> to vector<48x64xbf16>
    %c0_i32_25 = arith.constant 0 : i32
    %69 = arith.sitofp %c0_i32_25 : i32 to bf16
    %70 = vector.shape_cast %34 : vector<1x64xi1> to vector<1x64xi1>
    %71 = vector.broadcast %70 : vector<1x64xi1> to vector<48x64xi1>
    %72 = vector.broadcast %69 : bf16 to vector<48x64xbf16>
    %73 = arith.select %71, %68, %72 : vector<48x64xi1>, vector<48x64xbf16>
    %74 = tpu.concatenate %40, %41, %47, %53, %54, %60, %66, %67, %73 in 0 : vector<48x64xbf16>, vector<48x64xbf16>, vector<48x64xbf16>, vector<48x64xbf16>, vector<48x64xbf16>, vector<48x64xbf16>, vector<48x64xbf16>, vector<48x64xbf16>, vector<48x64xbf16> -> vector<432x64xbf16>
    %cst_26 = arith.constant dense<0.000000e+00> : vector<16x64xf32>
    %75 = tpu.matmul %5, %74, %cst_26 {dimension_numbers = #tpu.dot_dimension_numbers<[1], [0], [0], [1], [0, 0, 1, 1], [], []>} : vector<16x432xbf16>, vector<432x64xbf16>, vector<16x64xf32> -> vector<16x64xf32>
    %76 = vector.broadcast %6 : vector<16x1xf32> to vector<16x64xf32>
    %77 = arith.addf %75, %76 : vector<16x64xf32>
    %cst_27 = arith.constant 0.000000e+00 : f32
    %78 = vector.broadcast %cst_27 : f32 to vector<16x64xf32>
    %79 = arith.maximumf %77, %78 : vector<16x64xf32>
    %80 = arith.truncf %79 : vector<16x64xf32> to vector<16x64xbf16>
    %cst_28 = arith.constant 0.000000e+00 : bf16
    %81 = vector.broadcast %cst_28 : bf16 to vector<16x9xbf16>
    %82 = tpu.concatenate %81, %80, %81 in 1 : vector<16x9xbf16>, vector<16x64xbf16>, vector<16x9xbf16> -> vector<16x82xbf16>
    %83 = tpu.iota {dimensions = array<i32: 1>} : vector<1x64xi32>
    %c8_i32_29 = arith.constant 8 : i32
    %c0_i32_30 = arith.constant 0 : i32
    %84 = arith.cmpi eq, %c8_i32_29, %c0_i32_30 : i32
    %c1_i32_31 = arith.constant 1 : i32
    %85 = arith.select %84, %c1_i32_31, %c8_i32_29 : i32
    %86 = vector.broadcast %85 : i32 to vector<1x64xi32>
    %87 = arith.remsi %83, %86 : vector<1x64xi32>
    %c0_i32_32 = arith.constant 0 : i32
    %88 = vector.broadcast %c0_i32_32 : i32 to vector<1x64xi32>
    %89 = arith.cmpi ne, %87, %88 : vector<1x64xi32>
    %c0_i32_33 = arith.constant 0 : i32
    %90 = vector.broadcast %c0_i32_33 : i32 to vector<1x64xi32>
    %91 = arith.cmpi slt, %87, %90 : vector<1x64xi32>
    %c0_i32_34 = arith.constant 0 : i32
    %92 = arith.cmpi slt, %85, %c0_i32_34 : i32
    %93 = vector.broadcast %92 : i1 to vector<1x64xi1>
    %94 = vector.broadcast %93 : vector<1x64xi1> to vector<1x64xi1>
    %95 = arith.xori %91, %94 : vector<1x64xi1>
    %96 = arith.andi %95, %89 : vector<1x64xi1>
    %97 = vector.broadcast %85 : i32 to vector<1x64xi32>
    %98 = arith.addi %87, %97 : vector<1x64xi32>
    %99 = arith.select %96, %98, %87 : vector<1x64xi1>, vector<1x64xi32>
    %c0_i32_35 = arith.constant 0 : i32
    %100 = vector.broadcast %c0_i32_35 : i32 to vector<1x64xi32>
    %101 = arith.cmpi ne, %99, %100 : vector<1x64xi32>
    %c7_i32_36 = arith.constant 7 : i32
    %102 = vector.broadcast %c7_i32_36 : i32 to vector<1x64xi32>
    %103 = arith.cmpi ne, %99, %102 : vector<1x64xi32>
    %104 = vector.extract_strided_slice %82 {offsets = [0, 0], sizes = [16, 64], strides = [1, 1]} : vector<16x82xbf16> to vector<16x64xbf16>
    %c0_i32_37 = arith.constant 0 : i32
    %105 = arith.sitofp %c0_i32_37 : i32 to bf16
    %106 = vector.shape_cast %101 : vector<1x64xi1> to vector<1x64xi1>
    %107 = vector.broadcast %106 : vector<1x64xi1> to vector<16x64xi1>
    %108 = vector.broadcast %105 : bf16 to vector<16x64xbf16>
    %109 = arith.select %107, %104, %108 : vector<16x64xi1>, vector<16x64xbf16>
    %110 = vector.extract_strided_slice %82 {offsets = [0, 1], sizes = [16, 64], strides = [1, 1]} : vector<16x82xbf16> to vector<16x64xbf16>
    %111 = vector.extract_strided_slice %82 {offsets = [0, 2], sizes = [16, 64], strides = [1, 1]} : vector<16x82xbf16> to vector<16x64xbf16>
    %c0_i32_38 = arith.constant 0 : i32
    %112 = arith.sitofp %c0_i32_38 : i32 to bf16
    %113 = vector.shape_cast %103 : vector<1x64xi1> to vector<1x64xi1>
    %114 = vector.broadcast %113 : vector<1x64xi1> to vector<16x64xi1>
    %115 = vector.broadcast %112 : bf16 to vector<16x64xbf16>
    %116 = arith.select %114, %111, %115 : vector<16x64xi1>, vector<16x64xbf16>
    %117 = vector.extract_strided_slice %82 {offsets = [0, 8], sizes = [16, 64], strides = [1, 1]} : vector<16x82xbf16> to vector<16x64xbf16>
    %c0_i32_39 = arith.constant 0 : i32
    %118 = arith.sitofp %c0_i32_39 : i32 to bf16
    %119 = vector.shape_cast %101 : vector<1x64xi1> to vector<1x64xi1>
    %120 = vector.broadcast %119 : vector<1x64xi1> to vector<16x64xi1>
    %121 = vector.broadcast %118 : bf16 to vector<16x64xbf16>
    %122 = arith.select %120, %117, %121 : vector<16x64xi1>, vector<16x64xbf16>
    %123 = vector.extract_strided_slice %82 {offsets = [0, 9], sizes = [16, 64], strides = [1, 1]} : vector<16x82xbf16> to vector<16x64xbf16>
    %124 = vector.extract_strided_slice %82 {offsets = [0, 10], sizes = [16, 64], strides = [1, 1]} : vector<16x82xbf16> to vector<16x64xbf16>
    %c0_i32_40 = arith.constant 0 : i32
    %125 = arith.sitofp %c0_i32_40 : i32 to bf16
    %126 = vector.shape_cast %103 : vector<1x64xi1> to vector<1x64xi1>
    %127 = vector.broadcast %126 : vector<1x64xi1> to vector<16x64xi1>
    %128 = vector.broadcast %125 : bf16 to vector<16x64xbf16>
    %129 = arith.select %127, %124, %128 : vector<16x64xi1>, vector<16x64xbf16>
    %130 = vector.extract_strided_slice %82 {offsets = [0, 16], sizes = [16, 64], strides = [1, 1]} : vector<16x82xbf16> to vector<16x64xbf16>
    %c0_i32_41 = arith.constant 0 : i32
    %131 = arith.sitofp %c0_i32_41 : i32 to bf16
    %132 = vector.shape_cast %101 : vector<1x64xi1> to vector<1x64xi1>
    %133 = vector.broadcast %132 : vector<1x64xi1> to vector<16x64xi1>
    %134 = vector.broadcast %131 : bf16 to vector<16x64xbf16>
    %135 = arith.select %133, %130, %134 : vector<16x64xi1>, vector<16x64xbf16>
    %136 = vector.extract_strided_slice %82 {offsets = [0, 17], sizes = [16, 64], strides = [1, 1]} : vector<16x82xbf16> to vector<16x64xbf16>
    %137 = vector.extract_strided_slice %82 {offsets = [0, 18], sizes = [16, 64], strides = [1, 1]} : vector<16x82xbf16> to vector<16x64xbf16>
    %c0_i32_42 = arith.constant 0 : i32
    %138 = arith.sitofp %c0_i32_42 : i32 to bf16
    %139 = vector.shape_cast %103 : vector<1x64xi1> to vector<1x64xi1>
    %140 = vector.broadcast %139 : vector<1x64xi1> to vector<16x64xi1>
    %141 = vector.broadcast %138 : bf16 to vector<16x64xbf16>
    %142 = arith.select %140, %137, %141 : vector<16x64xi1>, vector<16x64xbf16>
    %143 = tpu.concatenate %109, %110, %116, %122, %123, %129, %135, %136, %142 in 0 : vector<16x64xbf16>, vector<16x64xbf16>, vector<16x64xbf16>, vector<16x64xbf16>, vector<16x64xbf16>, vector<16x64xbf16>, vector<16x64xbf16>, vector<16x64xbf16>, vector<16x64xbf16> -> vector<144x64xbf16>
    %cst_43 = arith.constant dense<0.000000e+00> : vector<16x64xf32>
    %144 = tpu.matmul %7, %143, %cst_43 {dimension_numbers = #tpu.dot_dimension_numbers<[1], [0], [0], [1], [0, 0, 1, 1], [], []>} : vector<16x144xbf16>, vector<144x64xbf16>, vector<16x64xf32> -> vector<16x64xf32>
    %145 = vector.broadcast %8 : vector<16x1xf32> to vector<16x64xf32>
    %146 = arith.addf %144, %145 : vector<16x64xf32>
    %cst_44 = arith.constant 0.000000e+00 : f32
    %147 = vector.broadcast %cst_44 : f32 to vector<16x64xf32>
    %148 = arith.maximumf %146, %147 : vector<16x64xf32>
    %149 = arith.truncf %148 : vector<16x64xf32> to vector<16x64xbf16>
    %c0_45 = arith.constant 0 : index
    %c0_46 = arith.constant 0 : index
    %c0_47 = arith.constant 0 : index
    %150 = vector.load %arg3[%c0_45, %c0_46, %c0_47] : memref<1x8x256xbf16, #tpu.memory_space<vmem>>, vector<1x8x256xbf16>
    %151 = vector.shape_cast %150 : vector<1x8x256xbf16> to vector<8x256xbf16>
    %c0_48 = arith.constant 0 : index
    %c0_49 = arith.constant 0 : index
    %152 = vector.load %arg6[%c0_48, %c0_49] : memref<64x256xbf16, #tpu.memory_space<vmem>>, vector<64x256xbf16>
    %c0_50 = arith.constant 0 : index
    %c0_51 = arith.constant 0 : index
    %153 = vector.load %arg12[%c0_50, %c0_51] : memref<8x216xbf16, #tpu.memory_space<vmem>>, vector<8x216xbf16>
    %c0_52 = arith.constant 0 : index
    %c0_53 = arith.constant 0 : index
    %154 = vector.load %arg13[%c0_52, %c0_53] : memref<8x1xf32, #tpu.memory_space<vmem>>, vector<8x1xf32>
    %c0_54 = arith.constant 0 : index
    %c0_55 = arith.constant 0 : index
    %155 = vector.load %arg14[%c0_54, %c0_55] : memref<8x72xbf16, #tpu.memory_space<vmem>>, vector<8x72xbf16>
    %c0_56 = arith.constant 0 : index
    %c0_57 = arith.constant 0 : index
    %156 = vector.load %arg15[%c0_56, %c0_57] : memref<8x1xf32, #tpu.memory_space<vmem>>, vector<8x1xf32>
    %cst_58 = arith.constant dense<0.000000e+00> : vector<16x256xf32>
    %157 = tpu.matmul %149, %152, %cst_58 {dimension_numbers = #tpu.dot_dimension_numbers<[1], [0], [0], [1], [0, 0, 1, 1], [], []>} : vector<16x64xbf16>, vector<64x256xbf16>, vector<16x256xf32> -> vector<16x256xf32>
    %158 = arith.truncf %157 : vector<16x256xf32> to vector<16x256xbf16>
    %159 = tpu.concatenate %158, %151 in 0 : vector<16x256xbf16>, vector<8x256xbf16> -> vector<24x256xbf16>
    %cst_59 = arith.constant 0.000000e+00 : bf16
    %160 = vector.broadcast %cst_59 : bf16 to vector<24x17xbf16>
    %161 = tpu.concatenate %160, %159, %160 in 1 : vector<24x17xbf16>, vector<24x256xbf16>, vector<24x17xbf16> -> vector<24x290xbf16>
    %162 = tpu.iota {dimensions = array<i32: 1>} : vector<1x256xi32>
    %c16_i32 = arith.constant 16 : i32
    %c0_i32_60 = arith.constant 0 : i32
    %163 = arith.cmpi eq, %c16_i32, %c0_i32_60 : i32
    %c1_i32_61 = arith.constant 1 : i32
    %164 = arith.select %163, %c1_i32_61, %c16_i32 : i32
    %165 = vector.broadcast %164 : i32 to vector<1x256xi32>
    %166 = arith.remsi %162, %165 : vector<1x256xi32>
    %c0_i32_62 = arith.constant 0 : i32
    %167 = vector.broadcast %c0_i32_62 : i32 to vector<1x256xi32>
    %168 = arith.cmpi ne, %166, %167 : vector<1x256xi32>
    %c0_i32_63 = arith.constant 0 : i32
    %169 = vector.broadcast %c0_i32_63 : i32 to vector<1x256xi32>
    %170 = arith.cmpi slt, %166, %169 : vector<1x256xi32>
    %c0_i32_64 = arith.constant 0 : i32
    %171 = arith.cmpi slt, %164, %c0_i32_64 : i32
    %172 = vector.broadcast %171 : i1 to vector<1x256xi1>
    %173 = vector.broadcast %172 : vector<1x256xi1> to vector<1x256xi1>
    %174 = arith.xori %170, %173 : vector<1x256xi1>
    %175 = arith.andi %174, %168 : vector<1x256xi1>
    %176 = vector.broadcast %164 : i32 to vector<1x256xi32>
    %177 = arith.addi %166, %176 : vector<1x256xi32>
    %178 = arith.select %175, %177, %166 : vector<1x256xi1>, vector<1x256xi32>
    %c0_i32_65 = arith.constant 0 : i32
    %179 = vector.broadcast %c0_i32_65 : i32 to vector<1x256xi32>
    %180 = arith.cmpi ne, %178, %179 : vector<1x256xi32>
    %c15_i32 = arith.constant 15 : i32
    %181 = vector.broadcast %c15_i32 : i32 to vector<1x256xi32>
    %182 = arith.cmpi ne, %178, %181 : vector<1x256xi32>
    %183 = vector.extract_strided_slice %161 {offsets = [0, 0], sizes = [24, 256], strides = [1, 1]} : vector<24x290xbf16> to vector<24x256xbf16>
    %c0_i32_66 = arith.constant 0 : i32
    %184 = arith.sitofp %c0_i32_66 : i32 to bf16
    %185 = vector.shape_cast %180 : vector<1x256xi1> to vector<1x256xi1>
    %186 = vector.broadcast %185 : vector<1x256xi1> to vector<24x256xi1>
    %187 = vector.broadcast %184 : bf16 to vector<24x256xbf16>
    %188 = arith.select %186, %183, %187 : vector<24x256xi1>, vector<24x256xbf16>
    %189 = vector.extract_strided_slice %161 {offsets = [0, 1], sizes = [24, 256], strides = [1, 1]} : vector<24x290xbf16> to vector<24x256xbf16>
    %190 = vector.extract_strided_slice %161 {offsets = [0, 2], sizes = [24, 256], strides = [1, 1]} : vector<24x290xbf16> to vector<24x256xbf16>
    %c0_i32_67 = arith.constant 0 : i32
    %191 = arith.sitofp %c0_i32_67 : i32 to bf16
    %192 = vector.shape_cast %182 : vector<1x256xi1> to vector<1x256xi1>
    %193 = vector.broadcast %192 : vector<1x256xi1> to vector<24x256xi1>
    %194 = vector.broadcast %191 : bf16 to vector<24x256xbf16>
    %195 = arith.select %193, %190, %194 : vector<24x256xi1>, vector<24x256xbf16>
    %196 = vector.extract_strided_slice %161 {offsets = [0, 16], sizes = [24, 256], strides = [1, 1]} : vector<24x290xbf16> to vector<24x256xbf16>
    %c0_i32_68 = arith.constant 0 : i32
    %197 = arith.sitofp %c0_i32_68 : i32 to bf16
    %198 = vector.shape_cast %180 : vector<1x256xi1> to vector<1x256xi1>
    %199 = vector.broadcast %198 : vector<1x256xi1> to vector<24x256xi1>
    %200 = vector.broadcast %197 : bf16 to vector<24x256xbf16>
    %201 = arith.select %199, %196, %200 : vector<24x256xi1>, vector<24x256xbf16>
    %202 = vector.extract_strided_slice %161 {offsets = [0, 17], sizes = [24, 256], strides = [1, 1]} : vector<24x290xbf16> to vector<24x256xbf16>
    %203 = vector.extract_strided_slice %161 {offsets = [0, 18], sizes = [24, 256], strides = [1, 1]} : vector<24x290xbf16> to vector<24x256xbf16>
    %c0_i32_69 = arith.constant 0 : i32
    %204 = arith.sitofp %c0_i32_69 : i32 to bf16
    %205 = vector.shape_cast %182 : vector<1x256xi1> to vector<1x256xi1>
    %206 = vector.broadcast %205 : vector<1x256xi1> to vector<24x256xi1>
    %207 = vector.broadcast %204 : bf16 to vector<24x256xbf16>
    %208 = arith.select %206, %203, %207 : vector<24x256xi1>, vector<24x256xbf16>
    %209 = vector.extract_strided_slice %161 {offsets = [0, 32], sizes = [24, 256], strides = [1, 1]} : vector<24x290xbf16> to vector<24x256xbf16>
    %c0_i32_70 = arith.constant 0 : i32
    %210 = arith.sitofp %c0_i32_70 : i32 to bf16
    %211 = vector.shape_cast %180 : vector<1x256xi1> to vector<1x256xi1>
    %212 = vector.broadcast %211 : vector<1x256xi1> to vector<24x256xi1>
    %213 = vector.broadcast %210 : bf16 to vector<24x256xbf16>
    %214 = arith.select %212, %209, %213 : vector<24x256xi1>, vector<24x256xbf16>
    %215 = vector.extract_strided_slice %161 {offsets = [0, 33], sizes = [24, 256], strides = [1, 1]} : vector<24x290xbf16> to vector<24x256xbf16>
    %216 = vector.extract_strided_slice %161 {offsets = [0, 34], sizes = [24, 256], strides = [1, 1]} : vector<24x290xbf16> to vector<24x256xbf16>
    %c0_i32_71 = arith.constant 0 : i32
    %217 = arith.sitofp %c0_i32_71 : i32 to bf16
    %218 = vector.shape_cast %182 : vector<1x256xi1> to vector<1x256xi1>
    %219 = vector.broadcast %218 : vector<1x256xi1> to vector<24x256xi1>
    %220 = vector.broadcast %217 : bf16 to vector<24x256xbf16>
    %221 = arith.select %219, %216, %220 : vector<24x256xi1>, vector<24x256xbf16>
    %222 = tpu.concatenate %188, %189, %195, %201, %202, %208, %214, %215, %221 in 0 : vector<24x256xbf16>, vector<24x256xbf16>, vector<24x256xbf16>, vector<24x256xbf16>, vector<24x256xbf16>, vector<24x256xbf16>, vector<24x256xbf16>, vector<24x256xbf16>, vector<24x256xbf16> -> vector<216x256xbf16>
    %cst_72 = arith.constant dense<0.000000e+00> : vector<8x256xf32>
    %223 = tpu.matmul %153, %222, %cst_72 {dimension_numbers = #tpu.dot_dimension_numbers<[1], [0], [0], [1], [0, 0, 1, 1], [], []>} : vector<8x216xbf16>, vector<216x256xbf16>, vector<8x256xf32> -> vector<8x256xf32>
    %224 = vector.broadcast %154 : vector<8x1xf32> to vector<8x256xf32>
    %225 = arith.addf %223, %224 : vector<8x256xf32>
    %cst_73 = arith.constant 0.000000e+00 : f32
    %226 = vector.broadcast %cst_73 : f32 to vector<8x256xf32>
    %227 = arith.maximumf %225, %226 : vector<8x256xf32>
    %228 = arith.truncf %227 : vector<8x256xf32> to vector<8x256xbf16>
    %cst_74 = arith.constant 0.000000e+00 : bf16
    %229 = vector.broadcast %cst_74 : bf16 to vector<8x17xbf16>
    %230 = tpu.concatenate %229, %228, %229 in 1 : vector<8x17xbf16>, vector<8x256xbf16>, vector<8x17xbf16> -> vector<8x290xbf16>
    %231 = tpu.iota {dimensions = array<i32: 1>} : vector<1x256xi32>
    %c16_i32_75 = arith.constant 16 : i32
    %c0_i32_76 = arith.constant 0 : i32
    %232 = arith.cmpi eq, %c16_i32_75, %c0_i32_76 : i32
    %c1_i32_77 = arith.constant 1 : i32
    %233 = arith.select %232, %c1_i32_77, %c16_i32_75 : i32
    %234 = vector.broadcast %233 : i32 to vector<1x256xi32>
    %235 = arith.remsi %231, %234 : vector<1x256xi32>
    %c0_i32_78 = arith.constant 0 : i32
    %236 = vector.broadcast %c0_i32_78 : i32 to vector<1x256xi32>
    %237 = arith.cmpi ne, %235, %236 : vector<1x256xi32>
    %c0_i32_79 = arith.constant 0 : i32
    %238 = vector.broadcast %c0_i32_79 : i32 to vector<1x256xi32>
    %239 = arith.cmpi slt, %235, %238 : vector<1x256xi32>
    %c0_i32_80 = arith.constant 0 : i32
    %240 = arith.cmpi slt, %233, %c0_i32_80 : i32
    %241 = vector.broadcast %240 : i1 to vector<1x256xi1>
    %242 = vector.broadcast %241 : vector<1x256xi1> to vector<1x256xi1>
    %243 = arith.xori %239, %242 : vector<1x256xi1>
    %244 = arith.andi %243, %237 : vector<1x256xi1>
    %245 = vector.broadcast %233 : i32 to vector<1x256xi32>
    %246 = arith.addi %235, %245 : vector<1x256xi32>
    %247 = arith.select %244, %246, %235 : vector<1x256xi1>, vector<1x256xi32>
    %c0_i32_81 = arith.constant 0 : i32
    %248 = vector.broadcast %c0_i32_81 : i32 to vector<1x256xi32>
    %249 = arith.cmpi ne, %247, %248 : vector<1x256xi32>
    %c15_i32_82 = arith.constant 15 : i32
    %250 = vector.broadcast %c15_i32_82 : i32 to vector<1x256xi32>
    %251 = arith.cmpi ne, %247, %250 : vector<1x256xi32>
    %252 = vector.extract_strided_slice %230 {offsets = [0, 0], sizes = [8, 256], strides = [1, 1]} : vector<8x290xbf16> to vector<8x256xbf16>
    %c0_i32_83 = arith.constant 0 : i32
    %253 = arith.sitofp %c0_i32_83 : i32 to bf16
    %254 = vector.shape_cast %249 : vector<1x256xi1> to vector<1x256xi1>
    %255 = vector.broadcast %254 : vector<1x256xi1> to vector<8x256xi1>
    %256 = vector.broadcast %253 : bf16 to vector<8x256xbf16>
    %257 = arith.select %255, %252, %256 : vector<8x256xi1>, vector<8x256xbf16>
    %258 = vector.extract_strided_slice %230 {offsets = [0, 1], sizes = [8, 256], strides = [1, 1]} : vector<8x290xbf16> to vector<8x256xbf16>
    %259 = vector.extract_strided_slice %230 {offsets = [0, 2], sizes = [8, 256], strides = [1, 1]} : vector<8x290xbf16> to vector<8x256xbf16>
    %c0_i32_84 = arith.constant 0 : i32
    %260 = arith.sitofp %c0_i32_84 : i32 to bf16
    %261 = vector.shape_cast %251 : vector<1x256xi1> to vector<1x256xi1>
    %262 = vector.broadcast %261 : vector<1x256xi1> to vector<8x256xi1>
    %263 = vector.broadcast %260 : bf16 to vector<8x256xbf16>
    %264 = arith.select %262, %259, %263 : vector<8x256xi1>, vector<8x256xbf16>
    %265 = vector.extract_strided_slice %230 {offsets = [0, 16], sizes = [8, 256], strides = [1, 1]} : vector<8x290xbf16> to vector<8x256xbf16>
    %c0_i32_85 = arith.constant 0 : i32
    %266 = arith.sitofp %c0_i32_85 : i32 to bf16
    %267 = vector.shape_cast %249 : vector<1x256xi1> to vector<1x256xi1>
    %268 = vector.broadcast %267 : vector<1x256xi1> to vector<8x256xi1>
    %269 = vector.broadcast %266 : bf16 to vector<8x256xbf16>
    %270 = arith.select %268, %265, %269 : vector<8x256xi1>, vector<8x256xbf16>
    %271 = vector.extract_strided_slice %230 {offsets = [0, 17], sizes = [8, 256], strides = [1, 1]} : vector<8x290xbf16> to vector<8x256xbf16>
    %272 = vector.extract_strided_slice %230 {offsets = [0, 18], sizes = [8, 256], strides = [1, 1]} : vector<8x290xbf16> to vector<8x256xbf16>
    %c0_i32_86 = arith.constant 0 : i32
    %273 = arith.sitofp %c0_i32_86 : i32 to bf16
    %274 = vector.shape_cast %251 : vector<1x256xi1> to vector<1x256xi1>
    %275 = vector.broadcast %274 : vector<1x256xi1> to vector<8x256xi1>
    %276 = vector.broadcast %273 : bf16 to vector<8x256xbf16>
    %277 = arith.select %275, %272, %276 : vector<8x256xi1>, vector<8x256xbf16>
    %278 = vector.extract_strided_slice %230 {offsets = [0, 32], sizes = [8, 256], strides = [1, 1]} : vector<8x290xbf16> to vector<8x256xbf16>
    %c0_i32_87 = arith.constant 0 : i32
    %279 = arith.sitofp %c0_i32_87 : i32 to bf16
    %280 = vector.shape_cast %249 : vector<1x256xi1> to vector<1x256xi1>
    %281 = vector.broadcast %280 : vector<1x256xi1> to vector<8x256xi1>
    %282 = vector.broadcast %279 : bf16 to vector<8x256xbf16>
    %283 = arith.select %281, %278, %282 : vector<8x256xi1>, vector<8x256xbf16>
    %284 = vector.extract_strided_slice %230 {offsets = [0, 33], sizes = [8, 256], strides = [1, 1]} : vector<8x290xbf16> to vector<8x256xbf16>
    %285 = vector.extract_strided_slice %230 {offsets = [0, 34], sizes = [8, 256], strides = [1, 1]} : vector<8x290xbf16> to vector<8x256xbf16>
    %c0_i32_88 = arith.constant 0 : i32
    %286 = arith.sitofp %c0_i32_88 : i32 to bf16
    %287 = vector.shape_cast %251 : vector<1x256xi1> to vector<1x256xi1>
    %288 = vector.broadcast %287 : vector<1x256xi1> to vector<8x256xi1>
    %289 = vector.broadcast %286 : bf16 to vector<8x256xbf16>
    %290 = arith.select %288, %285, %289 : vector<8x256xi1>, vector<8x256xbf16>
    %291 = tpu.concatenate %257, %258, %264, %270, %271, %277, %283, %284, %290 in 0 : vector<8x256xbf16>, vector<8x256xbf16>, vector<8x256xbf16>, vector<8x256xbf16>, vector<8x256xbf16>, vector<8x256xbf16>, vector<8x256xbf16>, vector<8x256xbf16>, vector<8x256xbf16> -> vector<72x256xbf16>
    %cst_89 = arith.constant dense<0.000000e+00> : vector<8x256xf32>
    %292 = tpu.matmul %155, %291, %cst_89 {dimension_numbers = #tpu.dot_dimension_numbers<[1], [0], [0], [1], [0, 0, 1, 1], [], []>} : vector<8x72xbf16>, vector<72x256xbf16>, vector<8x256xf32> -> vector<8x256xf32>
    %293 = vector.broadcast %156 : vector<8x1xf32> to vector<8x256xf32>
    %294 = arith.addf %292, %293 : vector<8x256xf32>
    %cst_90 = arith.constant 0.000000e+00 : f32
    %295 = vector.broadcast %cst_90 : f32 to vector<8x256xf32>
    %296 = arith.maximumf %294, %295 : vector<8x256xf32>
    %297 = arith.truncf %296 : vector<8x256xf32> to vector<8x256xbf16>
    %c0_91 = arith.constant 0 : index
    %c0_92 = arith.constant 0 : index
    %c0_93 = arith.constant 0 : index
    %298 = vector.load %arg4[%c0_91, %c0_92, %c0_93] : memref<1x4x1024xbf16, #tpu.memory_space<vmem>>, vector<1x4x1024xbf16>
    %299 = vector.shape_cast %298 : vector<1x4x1024xbf16> to vector<4x1024xbf16>
    %c0_94 = arith.constant 0 : index
    %c0_95 = arith.constant 0 : index
    %300 = vector.load %arg7[%c0_94, %c0_95] : memref<256x1024xbf16, #tpu.memory_space<vmem>>, vector<256x1024xbf16>
    %c0_96 = arith.constant 0 : index
    %c0_97 = arith.constant 0 : index
    %301 = vector.load %arg16[%c0_96, %c0_97] : memref<4x108xbf16, #tpu.memory_space<vmem>>, vector<4x108xbf16>
    %c0_98 = arith.constant 0 : index
    %c0_99 = arith.constant 0 : index
    %302 = vector.load %arg17[%c0_98, %c0_99] : memref<4x1xf32, #tpu.memory_space<vmem>>, vector<4x1xf32>
    %c0_100 = arith.constant 0 : index
    %c0_101 = arith.constant 0 : index
    %303 = vector.load %arg18[%c0_100, %c0_101] : memref<4x36xbf16, #tpu.memory_space<vmem>>, vector<4x36xbf16>
    %c0_102 = arith.constant 0 : index
    %c0_103 = arith.constant 0 : index
    %304 = vector.load %arg19[%c0_102, %c0_103] : memref<4x1xf32, #tpu.memory_space<vmem>>, vector<4x1xf32>
    %cst_104 = arith.constant dense<0.000000e+00> : vector<8x1024xf32>
    %305 = tpu.matmul %297, %300, %cst_104 {dimension_numbers = #tpu.dot_dimension_numbers<[1], [0], [0], [1], [0, 0, 1, 1], [], []>} : vector<8x256xbf16>, vector<256x1024xbf16>, vector<8x1024xf32> -> vector<8x1024xf32>
    %306 = arith.truncf %305 : vector<8x1024xf32> to vector<8x1024xbf16>
    %307 = tpu.concatenate %306, %299 in 0 : vector<8x1024xbf16>, vector<4x1024xbf16> -> vector<12x1024xbf16>
    %cst_105 = arith.constant 0.000000e+00 : bf16
    %308 = vector.broadcast %cst_105 : bf16 to vector<12x33xbf16>
    %309 = tpu.concatenate %308, %307, %308 in 1 : vector<12x33xbf16>, vector<12x1024xbf16>, vector<12x33xbf16> -> vector<12x1090xbf16>
    %310 = tpu.iota {dimensions = array<i32: 1>} : vector<1x1024xi32>
    %c32_i32 = arith.constant 32 : i32
    %c0_i32_106 = arith.constant 0 : i32
    %311 = arith.cmpi eq, %c32_i32, %c0_i32_106 : i32
    %c1_i32_107 = arith.constant 1 : i32
    %312 = arith.select %311, %c1_i32_107, %c32_i32 : i32
    %313 = vector.broadcast %312 : i32 to vector<1x1024xi32>
    %314 = arith.remsi %310, %313 : vector<1x1024xi32>
    %c0_i32_108 = arith.constant 0 : i32
    %315 = vector.broadcast %c0_i32_108 : i32 to vector<1x1024xi32>
    %316 = arith.cmpi ne, %314, %315 : vector<1x1024xi32>
    %c0_i32_109 = arith.constant 0 : i32
    %317 = vector.broadcast %c0_i32_109 : i32 to vector<1x1024xi32>
    %318 = arith.cmpi slt, %314, %317 : vector<1x1024xi32>
    %c0_i32_110 = arith.constant 0 : i32
    %319 = arith.cmpi slt, %312, %c0_i32_110 : i32
    %320 = vector.broadcast %319 : i1 to vector<1x1024xi1>
    %321 = vector.broadcast %320 : vector<1x1024xi1> to vector<1x1024xi1>
    %322 = arith.xori %318, %321 : vector<1x1024xi1>
    %323 = arith.andi %322, %316 : vector<1x1024xi1>
    %324 = vector.broadcast %312 : i32 to vector<1x1024xi32>
    %325 = arith.addi %314, %324 : vector<1x1024xi32>
    %326 = arith.select %323, %325, %314 : vector<1x1024xi1>, vector<1x1024xi32>
    %c0_i32_111 = arith.constant 0 : i32
    %327 = vector.broadcast %c0_i32_111 : i32 to vector<1x1024xi32>
    %328 = arith.cmpi ne, %326, %327 : vector<1x1024xi32>
    %c31_i32 = arith.constant 31 : i32
    %329 = vector.broadcast %c31_i32 : i32 to vector<1x1024xi32>
    %330 = arith.cmpi ne, %326, %329 : vector<1x1024xi32>
    %331 = vector.extract_strided_slice %309 {offsets = [0, 0], sizes = [12, 1024], strides = [1, 1]} : vector<12x1090xbf16> to vector<12x1024xbf16>
    %c0_i32_112 = arith.constant 0 : i32
    %332 = arith.sitofp %c0_i32_112 : i32 to bf16
    %333 = vector.shape_cast %328 : vector<1x1024xi1> to vector<1x1024xi1>
    %334 = vector.broadcast %333 : vector<1x1024xi1> to vector<12x1024xi1>
    %335 = vector.broadcast %332 : bf16 to vector<12x1024xbf16>
    %336 = arith.select %334, %331, %335 : vector<12x1024xi1>, vector<12x1024xbf16>
    %337 = vector.extract_strided_slice %309 {offsets = [0, 1], sizes = [12, 1024], strides = [1, 1]} : vector<12x1090xbf16> to vector<12x1024xbf16>
    %338 = vector.extract_strided_slice %309 {offsets = [0, 2], sizes = [12, 1024], strides = [1, 1]} : vector<12x1090xbf16> to vector<12x1024xbf16>
    %c0_i32_113 = arith.constant 0 : i32
    %339 = arith.sitofp %c0_i32_113 : i32 to bf16
    %340 = vector.shape_cast %330 : vector<1x1024xi1> to vector<1x1024xi1>
    %341 = vector.broadcast %340 : vector<1x1024xi1> to vector<12x1024xi1>
    %342 = vector.broadcast %339 : bf16 to vector<12x1024xbf16>
    %343 = arith.select %341, %338, %342 : vector<12x1024xi1>, vector<12x1024xbf16>
    %344 = vector.extract_strided_slice %309 {offsets = [0, 32], sizes = [12, 1024], strides = [1, 1]} : vector<12x1090xbf16> to vector<12x1024xbf16>
    %c0_i32_114 = arith.constant 0 : i32
    %345 = arith.sitofp %c0_i32_114 : i32 to bf16
    %346 = vector.shape_cast %328 : vector<1x1024xi1> to vector<1x1024xi1>
    %347 = vector.broadcast %346 : vector<1x1024xi1> to vector<12x1024xi1>
    %348 = vector.broadcast %345 : bf16 to vector<12x1024xbf16>
    %349 = arith.select %347, %344, %348 : vector<12x1024xi1>, vector<12x1024xbf16>
    %350 = vector.extract_strided_slice %309 {offsets = [0, 33], sizes = [12, 1024], strides = [1, 1]} : vector<12x1090xbf16> to vector<12x1024xbf16>
    %351 = vector.extract_strided_slice %309 {offsets = [0, 34], sizes = [12, 1024], strides = [1, 1]} : vector<12x1090xbf16> to vector<12x1024xbf16>
    %c0_i32_115 = arith.constant 0 : i32
    %352 = arith.sitofp %c0_i32_115 : i32 to bf16
    %353 = vector.shape_cast %330 : vector<1x1024xi1> to vector<1x1024xi1>
    %354 = vector.broadcast %353 : vector<1x1024xi1> to vector<12x1024xi1>
    %355 = vector.broadcast %352 : bf16 to vector<12x1024xbf16>
    %356 = arith.select %354, %351, %355 : vector<12x1024xi1>, vector<12x1024xbf16>
    %357 = vector.extract_strided_slice %309 {offsets = [0, 64], sizes = [12, 1024], strides = [1, 1]} : vector<12x1090xbf16> to vector<12x1024xbf16>
    %c0_i32_116 = arith.constant 0 : i32
    %358 = arith.sitofp %c0_i32_116 : i32 to bf16
    %359 = vector.shape_cast %328 : vector<1x1024xi1> to vector<1x1024xi1>
    %360 = vector.broadcast %359 : vector<1x1024xi1> to vector<12x1024xi1>
    %361 = vector.broadcast %358 : bf16 to vector<12x1024xbf16>
    %362 = arith.select %360, %357, %361 : vector<12x1024xi1>, vector<12x1024xbf16>
    %363 = vector.extract_strided_slice %309 {offsets = [0, 65], sizes = [12, 1024], strides = [1, 1]} : vector<12x1090xbf16> to vector<12x1024xbf16>
    %364 = vector.extract_strided_slice %309 {offsets = [0, 66], sizes = [12, 1024], strides = [1, 1]} : vector<12x1090xbf16> to vector<12x1024xbf16>
    %c0_i32_117 = arith.constant 0 : i32
    %365 = arith.sitofp %c0_i32_117 : i32 to bf16
    %366 = vector.shape_cast %330 : vector<1x1024xi1> to vector<1x1024xi1>
    %367 = vector.broadcast %366 : vector<1x1024xi1> to vector<12x1024xi1>
    %368 = vector.broadcast %365 : bf16 to vector<12x1024xbf16>
    %369 = arith.select %367, %364, %368 : vector<12x1024xi1>, vector<12x1024xbf16>
    %370 = tpu.concatenate %336, %337, %343, %349, %350, %356, %362, %363, %369 in 0 : vector<12x1024xbf16>, vector<12x1024xbf16>, vector<12x1024xbf16>, vector<12x1024xbf16>, vector<12x1024xbf16>, vector<12x1024xbf16>, vector<12x1024xbf16>, vector<12x1024xbf16>, vector<12x1024xbf16> -> vector<108x1024xbf16>
    %cst_118 = arith.constant dense<0.000000e+00> : vector<4x1024xf32>
    %371 = tpu.matmul %301, %370, %cst_118 {dimension_numbers = #tpu.dot_dimension_numbers<[1], [0], [0], [1], [0, 0, 1, 1], [], []>} : vector<4x108xbf16>, vector<108x1024xbf16>, vector<4x1024xf32> -> vector<4x1024xf32>
    %372 = vector.broadcast %302 : vector<4x1xf32> to vector<4x1024xf32>
    %373 = arith.addf %371, %372 : vector<4x1024xf32>
    %cst_119 = arith.constant 0.000000e+00 : f32
    %374 = vector.broadcast %cst_119 : f32 to vector<4x1024xf32>
    %375 = arith.maximumf %373, %374 : vector<4x1024xf32>
    %376 = arith.truncf %375 : vector<4x1024xf32> to vector<4x1024xbf16>
    %cst_120 = arith.constant 0.000000e+00 : bf16
    %377 = vector.broadcast %cst_120 : bf16 to vector<4x33xbf16>
    %378 = tpu.concatenate %377, %376, %377 in 1 : vector<4x33xbf16>, vector<4x1024xbf16>, vector<4x33xbf16> -> vector<4x1090xbf16>
    %379 = tpu.iota {dimensions = array<i32: 1>} : vector<1x1024xi32>
    %c32_i32_121 = arith.constant 32 : i32
    %c0_i32_122 = arith.constant 0 : i32
    %380 = arith.cmpi eq, %c32_i32_121, %c0_i32_122 : i32
    %c1_i32_123 = arith.constant 1 : i32
    %381 = arith.select %380, %c1_i32_123, %c32_i32_121 : i32
    %382 = vector.broadcast %381 : i32 to vector<1x1024xi32>
    %383 = arith.remsi %379, %382 : vector<1x1024xi32>
    %c0_i32_124 = arith.constant 0 : i32
    %384 = vector.broadcast %c0_i32_124 : i32 to vector<1x1024xi32>
    %385 = arith.cmpi ne, %383, %384 : vector<1x1024xi32>
    %c0_i32_125 = arith.constant 0 : i32
    %386 = vector.broadcast %c0_i32_125 : i32 to vector<1x1024xi32>
    %387 = arith.cmpi slt, %383, %386 : vector<1x1024xi32>
    %c0_i32_126 = arith.constant 0 : i32
    %388 = arith.cmpi slt, %381, %c0_i32_126 : i32
    %389 = vector.broadcast %388 : i1 to vector<1x1024xi1>
    %390 = vector.broadcast %389 : vector<1x1024xi1> to vector<1x1024xi1>
    %391 = arith.xori %387, %390 : vector<1x1024xi1>
    %392 = arith.andi %391, %385 : vector<1x1024xi1>
    %393 = vector.broadcast %381 : i32 to vector<1x1024xi32>
    %394 = arith.addi %383, %393 : vector<1x1024xi32>
    %395 = arith.select %392, %394, %383 : vector<1x1024xi1>, vector<1x1024xi32>
    %c0_i32_127 = arith.constant 0 : i32
    %396 = vector.broadcast %c0_i32_127 : i32 to vector<1x1024xi32>
    %397 = arith.cmpi ne, %395, %396 : vector<1x1024xi32>
    %c31_i32_128 = arith.constant 31 : i32
    %398 = vector.broadcast %c31_i32_128 : i32 to vector<1x1024xi32>
    %399 = arith.cmpi ne, %395, %398 : vector<1x1024xi32>
    %400 = vector.extract_strided_slice %378 {offsets = [0, 0], sizes = [4, 1024], strides = [1, 1]} : vector<4x1090xbf16> to vector<4x1024xbf16>
    %c0_i32_129 = arith.constant 0 : i32
    %401 = arith.sitofp %c0_i32_129 : i32 to bf16
    %402 = vector.shape_cast %397 : vector<1x1024xi1> to vector<1x1024xi1>
    %403 = vector.broadcast %402 : vector<1x1024xi1> to vector<4x1024xi1>
    %404 = vector.broadcast %401 : bf16 to vector<4x1024xbf16>
    %405 = arith.select %403, %400, %404 : vector<4x1024xi1>, vector<4x1024xbf16>
    %406 = vector.extract_strided_slice %378 {offsets = [0, 1], sizes = [4, 1024], strides = [1, 1]} : vector<4x1090xbf16> to vector<4x1024xbf16>
    %407 = vector.extract_strided_slice %378 {offsets = [0, 2], sizes = [4, 1024], strides = [1, 1]} : vector<4x1090xbf16> to vector<4x1024xbf16>
    %c0_i32_130 = arith.constant 0 : i32
    %408 = arith.sitofp %c0_i32_130 : i32 to bf16
    %409 = vector.shape_cast %399 : vector<1x1024xi1> to vector<1x1024xi1>
    %410 = vector.broadcast %409 : vector<1x1024xi1> to vector<4x1024xi1>
    %411 = vector.broadcast %408 : bf16 to vector<4x1024xbf16>
    %412 = arith.select %410, %407, %411 : vector<4x1024xi1>, vector<4x1024xbf16>
    %413 = vector.extract_strided_slice %378 {offsets = [0, 32], sizes = [4, 1024], strides = [1, 1]} : vector<4x1090xbf16> to vector<4x1024xbf16>
    %c0_i32_131 = arith.constant 0 : i32
    %414 = arith.sitofp %c0_i32_131 : i32 to bf16
    %415 = vector.shape_cast %397 : vector<1x1024xi1> to vector<1x1024xi1>
    %416 = vector.broadcast %415 : vector<1x1024xi1> to vector<4x1024xi1>
    %417 = vector.broadcast %414 : bf16 to vector<4x1024xbf16>
    %418 = arith.select %416, %413, %417 : vector<4x1024xi1>, vector<4x1024xbf16>
    %419 = vector.extract_strided_slice %378 {offsets = [0, 33], sizes = [4, 1024], strides = [1, 1]} : vector<4x1090xbf16> to vector<4x1024xbf16>
    %420 = vector.extract_strided_slice %378 {offsets = [0, 34], sizes = [4, 1024], strides = [1, 1]} : vector<4x1090xbf16> to vector<4x1024xbf16>
    %c0_i32_132 = arith.constant 0 : i32
    %421 = arith.sitofp %c0_i32_132 : i32 to bf16
    %422 = vector.shape_cast %399 : vector<1x1024xi1> to vector<1x1024xi1>
    %423 = vector.broadcast %422 : vector<1x1024xi1> to vector<4x1024xi1>
    %424 = vector.broadcast %421 : bf16 to vector<4x1024xbf16>
    %425 = arith.select %423, %420, %424 : vector<4x1024xi1>, vector<4x1024xbf16>
    %426 = vector.extract_strided_slice %378 {offsets = [0, 64], sizes = [4, 1024], strides = [1, 1]} : vector<4x1090xbf16> to vector<4x1024xbf16>
    %c0_i32_133 = arith.constant 0 : i32
    %427 = arith.sitofp %c0_i32_133 : i32 to bf16
    %428 = vector.shape_cast %397 : vector<1x1024xi1> to vector<1x1024xi1>
    %429 = vector.broadcast %428 : vector<1x1024xi1> to vector<4x1024xi1>
    %430 = vector.broadcast %427 : bf16 to vector<4x1024xbf16>
    %431 = arith.select %429, %426, %430 : vector<4x1024xi1>, vector<4x1024xbf16>
    %432 = vector.extract_strided_slice %378 {offsets = [0, 65], sizes = [4, 1024], strides = [1, 1]} : vector<4x1090xbf16> to vector<4x1024xbf16>
    %433 = vector.extract_strided_slice %378 {offsets = [0, 66], sizes = [4, 1024], strides = [1, 1]} : vector<4x1090xbf16> to vector<4x1024xbf16>
    %c0_i32_134 = arith.constant 0 : i32
    %434 = arith.sitofp %c0_i32_134 : i32 to bf16
    %435 = vector.shape_cast %399 : vector<1x1024xi1> to vector<1x1024xi1>
    %436 = vector.broadcast %435 : vector<1x1024xi1> to vector<4x1024xi1>
    %437 = vector.broadcast %434 : bf16 to vector<4x1024xbf16>
    %438 = arith.select %436, %433, %437 : vector<4x1024xi1>, vector<4x1024xbf16>
    %439 = tpu.concatenate %405, %406, %412, %418, %419, %425, %431, %432, %438 in 0 : vector<4x1024xbf16>, vector<4x1024xbf16>, vector<4x1024xbf16>, vector<4x1024xbf16>, vector<4x1024xbf16>, vector<4x1024xbf16>, vector<4x1024xbf16>, vector<4x1024xbf16>, vector<4x1024xbf16> -> vector<36x1024xbf16>
    %cst_135 = arith.constant dense<0.000000e+00> : vector<4x1024xf32>
    %440 = tpu.matmul %303, %439, %cst_135 {dimension_numbers = #tpu.dot_dimension_numbers<[1], [0], [0], [1], [0, 0, 1, 1], [], []>} : vector<4x36xbf16>, vector<36x1024xbf16>, vector<4x1024xf32> -> vector<4x1024xf32>
    %441 = vector.broadcast %304 : vector<4x1xf32> to vector<4x1024xf32>
    %442 = arith.addf %440, %441 : vector<4x1024xf32>
    %cst_136 = arith.constant 0.000000e+00 : f32
    %443 = vector.broadcast %cst_136 : f32 to vector<4x1024xf32>
    %444 = arith.maximumf %442, %443 : vector<4x1024xf32>
    %445 = arith.truncf %444 : vector<4x1024xf32> to vector<4x1024xbf16>
    %c0_137 = arith.constant 0 : index
    %c0_138 = arith.constant 0 : index
    %446 = vector.load %arg20[%c0_137, %c0_138] : memref<5x36xbf16, #tpu.memory_space<vmem>>, vector<5x36xbf16>
    %c0_139 = arith.constant 0 : index
    %c0_140 = arith.constant 0 : index
    %447 = vector.load %arg21[%c0_139, %c0_140] : memref<5x1xf32, #tpu.memory_space<vmem>>, vector<5x1xf32>
    %cst_141 = arith.constant 0.000000e+00 : bf16
    %448 = vector.broadcast %cst_141 : bf16 to vector<4x33xbf16>
    %449 = tpu.concatenate %448, %445, %448 in 1 : vector<4x33xbf16>, vector<4x1024xbf16>, vector<4x33xbf16> -> vector<4x1090xbf16>
    %450 = tpu.iota {dimensions = array<i32: 1>} : vector<1x1024xi32>
    %c32_i32_142 = arith.constant 32 : i32
    %c0_i32_143 = arith.constant 0 : i32
    %451 = arith.cmpi eq, %c32_i32_142, %c0_i32_143 : i32
    %c1_i32_144 = arith.constant 1 : i32
    %452 = arith.select %451, %c1_i32_144, %c32_i32_142 : i32
    %453 = vector.broadcast %452 : i32 to vector<1x1024xi32>
    %454 = arith.remsi %450, %453 : vector<1x1024xi32>
    %c0_i32_145 = arith.constant 0 : i32
    %455 = vector.broadcast %c0_i32_145 : i32 to vector<1x1024xi32>
    %456 = arith.cmpi ne, %454, %455 : vector<1x1024xi32>
    %c0_i32_146 = arith.constant 0 : i32
    %457 = vector.broadcast %c0_i32_146 : i32 to vector<1x1024xi32>
    %458 = arith.cmpi slt, %454, %457 : vector<1x1024xi32>
    %c0_i32_147 = arith.constant 0 : i32
    %459 = arith.cmpi slt, %452, %c0_i32_147 : i32
    %460 = vector.broadcast %459 : i1 to vector<1x1024xi1>
    %461 = vector.broadcast %460 : vector<1x1024xi1> to vector<1x1024xi1>
    %462 = arith.xori %458, %461 : vector<1x1024xi1>
    %463 = arith.andi %462, %456 : vector<1x1024xi1>
    %464 = vector.broadcast %452 : i32 to vector<1x1024xi32>
    %465 = arith.addi %454, %464 : vector<1x1024xi32>
    %466 = arith.select %463, %465, %454 : vector<1x1024xi1>, vector<1x1024xi32>
    %c0_i32_148 = arith.constant 0 : i32
    %467 = vector.broadcast %c0_i32_148 : i32 to vector<1x1024xi32>
    %468 = arith.cmpi ne, %466, %467 : vector<1x1024xi32>
    %c31_i32_149 = arith.constant 31 : i32
    %469 = vector.broadcast %c31_i32_149 : i32 to vector<1x1024xi32>
    %470 = arith.cmpi ne, %466, %469 : vector<1x1024xi32>
    %471 = vector.extract_strided_slice %449 {offsets = [0, 0], sizes = [4, 1024], strides = [1, 1]} : vector<4x1090xbf16> to vector<4x1024xbf16>
    %c0_i32_150 = arith.constant 0 : i32
    %472 = arith.sitofp %c0_i32_150 : i32 to bf16
    %473 = vector.shape_cast %468 : vector<1x1024xi1> to vector<1x1024xi1>
    %474 = vector.broadcast %473 : vector<1x1024xi1> to vector<4x1024xi1>
    %475 = vector.broadcast %472 : bf16 to vector<4x1024xbf16>
    %476 = arith.select %474, %471, %475 : vector<4x1024xi1>, vector<4x1024xbf16>
    %477 = vector.extract_strided_slice %449 {offsets = [0, 1], sizes = [4, 1024], strides = [1, 1]} : vector<4x1090xbf16> to vector<4x1024xbf16>
    %478 = vector.extract_strided_slice %449 {offsets = [0, 2], sizes = [4, 1024], strides = [1, 1]} : vector<4x1090xbf16> to vector<4x1024xbf16>
    %c0_i32_151 = arith.constant 0 : i32
    %479 = arith.sitofp %c0_i32_151 : i32 to bf16
    %480 = vector.shape_cast %470 : vector<1x1024xi1> to vector<1x1024xi1>
    %481 = vector.broadcast %480 : vector<1x1024xi1> to vector<4x1024xi1>
    %482 = vector.broadcast %479 : bf16 to vector<4x1024xbf16>
    %483 = arith.select %481, %478, %482 : vector<4x1024xi1>, vector<4x1024xbf16>
    %484 = vector.extract_strided_slice %449 {offsets = [0, 32], sizes = [4, 1024], strides = [1, 1]} : vector<4x1090xbf16> to vector<4x1024xbf16>
    %c0_i32_152 = arith.constant 0 : i32
    %485 = arith.sitofp %c0_i32_152 : i32 to bf16
    %486 = vector.shape_cast %468 : vector<1x1024xi1> to vector<1x1024xi1>
    %487 = vector.broadcast %486 : vector<1x1024xi1> to vector<4x1024xi1>
    %488 = vector.broadcast %485 : bf16 to vector<4x1024xbf16>
    %489 = arith.select %487, %484, %488 : vector<4x1024xi1>, vector<4x1024xbf16>
    %490 = vector.extract_strided_slice %449 {offsets = [0, 33], sizes = [4, 1024], strides = [1, 1]} : vector<4x1090xbf16> to vector<4x1024xbf16>
    %491 = vector.extract_strided_slice %449 {offsets = [0, 34], sizes = [4, 1024], strides = [1, 1]} : vector<4x1090xbf16> to vector<4x1024xbf16>
    %c0_i32_153 = arith.constant 0 : i32
    %492 = arith.sitofp %c0_i32_153 : i32 to bf16
    %493 = vector.shape_cast %470 : vector<1x1024xi1> to vector<1x1024xi1>
    %494 = vector.broadcast %493 : vector<1x1024xi1> to vector<4x1024xi1>
    %495 = vector.broadcast %492 : bf16 to vector<4x1024xbf16>
    %496 = arith.select %494, %491, %495 : vector<4x1024xi1>, vector<4x1024xbf16>
    %497 = vector.extract_strided_slice %449 {offsets = [0, 64], sizes = [4, 1024], strides = [1, 1]} : vector<4x1090xbf16> to vector<4x1024xbf16>
    %c0_i32_154 = arith.constant 0 : i32
    %498 = arith.sitofp %c0_i32_154 : i32 to bf16
    %499 = vector.shape_cast %468 : vector<1x1024xi1> to vector<1x1024xi1>
    %500 = vector.broadcast %499 : vector<1x1024xi1> to vector<4x1024xi1>
    %501 = vector.broadcast %498 : bf16 to vector<4x1024xbf16>
    %502 = arith.select %500, %497, %501 : vector<4x1024xi1>, vector<4x1024xbf16>
    %503 = vector.extract_strided_slice %449 {offsets = [0, 65], sizes = [4, 1024], strides = [1, 1]} : vector<4x1090xbf16> to vector<4x1024xbf16>
    %504 = vector.extract_strided_slice %449 {offsets = [0, 66], sizes = [4, 1024], strides = [1, 1]} : vector<4x1090xbf16> to vector<4x1024xbf16>
    %c0_i32_155 = arith.constant 0 : i32
    %505 = arith.sitofp %c0_i32_155 : i32 to bf16
    %506 = vector.shape_cast %470 : vector<1x1024xi1> to vector<1x1024xi1>
    %507 = vector.broadcast %506 : vector<1x1024xi1> to vector<4x1024xi1>
    %508 = vector.broadcast %505 : bf16 to vector<4x1024xbf16>
    %509 = arith.select %507, %504, %508 : vector<4x1024xi1>, vector<4x1024xbf16>
    %510 = tpu.concatenate %476, %477, %483, %489, %490, %496, %502, %503, %509 in 0 : vector<4x1024xbf16>, vector<4x1024xbf16>, vector<4x1024xbf16>, vector<4x1024xbf16>, vector<4x1024xbf16>, vector<4x1024xbf16>, vector<4x1024xbf16>, vector<4x1024xbf16>, vector<4x1024xbf16> -> vector<36x1024xbf16>
    %cst_156 = arith.constant dense<0.000000e+00> : vector<5x1024xf32>
    %511 = tpu.matmul %446, %510, %cst_156 {dimension_numbers = #tpu.dot_dimension_numbers<[1], [0], [0], [1], [0, 0, 1, 1], [], []>} : vector<5x36xbf16>, vector<36x1024xbf16>, vector<5x1024xf32> -> vector<5x1024xf32>
    %512 = vector.broadcast %447 : vector<5x1xf32> to vector<5x1024xf32>
    %513 = arith.addf %511, %512 : vector<5x1024xf32>
    %cst_157 = arith.constant dense<0xFF800000> : vector<1024xf32>
    %514 = vector.multi_reduction <maximumf>, %513, %cst_157 [0] : vector<5x1024xf32> to vector<1024xf32>
    %515 = vector.shape_cast %514 : vector<1024xf32> to vector<1x1024xf32>
    %516 = vector.broadcast %515 : vector<1x1024xf32> to vector<5x1024xf32>
    %517 = arith.subf %513, %516 : vector<5x1024xf32>
    %518 = math.exp %517 : vector<5x1024xf32>
    %cst_158 = arith.constant dense<0.000000e+00> : vector<1024xf32>
    %519 = vector.multi_reduction <add>, %518, %cst_158 [0] : vector<5x1024xf32> to vector<1024xf32>
    %520 = vector.shape_cast %519 : vector<1024xf32> to vector<1x1024xf32>
    %521 = vector.broadcast %520 : vector<1x1024xf32> to vector<5x1024xf32>
    %522 = arith.divf %518, %521 : vector<5x1024xf32>
    %c0_159 = arith.constant 0 : index
    %c0_160 = arith.constant 0 : index
    %c0_161 = arith.constant 0 : index
    %523 = vector.load %arg22[%c0_159, %c0_160, %c0_161] : memref<1x5x1024xf32, #tpu.memory_space<vmem>>, vector<1x5x1024xf32>
    %524 = vector.shape_cast %523 : vector<1x5x1024xf32> to vector<5x1024xf32>
    %525 = vector.shape_cast %522 : vector<5x1024xf32> to vector<1x5x1024xf32>
    tpu.vector_store %arg22[%c0_159, %c0_160, %c0_161], %525 {strides = array<i32>} : memref<1x5x1024xf32, #tpu.memory_space<vmem>>, vector<1x5x1024xf32>,
    return
  }
  func.func @transform_0(%arg0: i32) -> (i32, i32, i32) {
    %c0_i32 = arith.constant 0 : i32
    %c0_i32_0 = arith.constant 0 : i32
    %c0_i32_1 = arith.constant 0 : i32
    return %arg0, %c0_i32, %c0_i32_0 : i32, i32, i32
  }
  func.func @transform_1(%arg0: i32) -> (i32, i32, i32) {
    %c0_i32 = arith.constant 0 : i32
    %c0_i32_0 = arith.constant 0 : i32
    %c0_i32_1 = arith.constant 0 : i32
    return %arg0, %c0_i32, %c0_i32_0 : i32, i32, i32
  }
  func.func @transform_2(%arg0: i32) -> (i32, i32, i32) {
    %c0_i32 = arith.constant 0 : i32
    %c0_i32_0 = arith.constant 0 : i32
    %c0_i32_1 = arith.constant 0 : i32
    return %arg0, %c0_i32, %c0_i32_0 : i32, i32, i32
  }
  func.func @transform_3(%arg0: i32) -> (i32, i32, i32) {
    %c0_i32 = arith.constant 0 : i32
    %c0_i32_0 = arith.constant 0 : i32
    %c0_i32_1 = arith.constant 0 : i32
    return %arg0, %c0_i32, %c0_i32_0 : i32, i32, i32
  }
  func.func @transform_4(%arg0: i32) -> (i32, i32) {
    %c0_i32 = arith.constant 0 : i32
    %c0_i32_0 = arith.constant 0 : i32
    %c0_i32_1 = arith.constant 0 : i32
    return %c0_i32, %c0_i32_0 : i32, i32
  }
  func.func @transform_5(%arg0: i32) -> (i32, i32) {
    %c0_i32 = arith.constant 0 : i32
    %c0_i32_0 = arith.constant 0 : i32
    %c0_i32_1 = arith.constant 0 : i32
    return %c0_i32, %c0_i32_0 : i32, i32
  }
  func.func @transform_6(%arg0: i32) -> (i32, i32) {
    %c0_i32 = arith.constant 0 : i32
    %c0_i32_0 = arith.constant 0 : i32
    %c0_i32_1 = arith.constant 0 : i32
    return %c0_i32, %c0_i32_0 : i32, i32
  }
  func.func @transform_7(%arg0: i32) -> (i32, i32) {
    %c0_i32 = arith.constant 0 : i32
    %c0_i32_0 = arith.constant 0 : i32
    %c0_i32_1 = arith.constant 0 : i32
    return %c0_i32, %c0_i32_0 : i32, i32
  }
  func.func @transform_8(%arg0: i32) -> (i32, i32) {
    %c0_i32 = arith.constant 0 : i32
    %c0_i32_0 = arith.constant 0 : i32
    %c0_i32_1 = arith.constant 0 : i32
    return %c0_i32, %c0_i32_0 : i32, i32
  }
  func.func @transform_9(%arg0: i32) -> (i32, i32) {
    %c0_i32 = arith.constant 0 : i32
    %c0_i32_0 = arith.constant 0 : i32
    %c0_i32_1 = arith.constant 0 : i32
    return %c0_i32, %c0_i32_0 : i32, i32
  }
  func.func @transform_10(%arg0: i32) -> (i32, i32) {
    %c0_i32 = arith.constant 0 : i32
    %c0_i32_0 = arith.constant 0 : i32
    %c0_i32_1 = arith.constant 0 : i32
    return %c0_i32, %c0_i32_0 : i32, i32
  }
  func.func @transform_11(%arg0: i32) -> (i32, i32) {
    %c0_i32 = arith.constant 0 : i32
    %c0_i32_0 = arith.constant 0 : i32
    %c0_i32_1 = arith.constant 0 : i32
    return %c0_i32, %c0_i32_0 : i32, i32
  }
  func.func @transform_12(%arg0: i32) -> (i32, i32) {
    %c0_i32 = arith.constant 0 : i32
    %c0_i32_0 = arith.constant 0 : i32
    %c0_i32_1 = arith.constant 0 : i32
    return %c0_i32, %c0_i32_0 : i32, i32
  }
  func.func @transform_13(%arg0: i32) -> (i32, i32) {
    %c0_i32 = arith.constant 0 : i32
    %c0_i32_0 = arith.constant 0 : i32
    %c0_i32_1 = arith.constant 0 : i32
    return %c0_i32, %c0_i32_0 : i32, i32
  }
  func.func @transform_14(%arg0: i32) -> (i32, i32) {
    %c0_i32 = arith.constant 0 : i32
    %c0_i32_0 = arith.constant 0 : i32
    %c0_i32_1 = arith.constant 0 : i32
    return %c0_i32, %c0_i32_0 : i32, i32
  }
  func.func @transform_15(%arg0: i32) -> (i32, i32) {
    %c0_i32 = arith.constant 0 : i32
    %c0_i32_0 = arith.constant 0 : i32
    %c0_i32_1 = arith.constant 0 : i32
    return %c0_i32, %c0_i32_0 : i32, i32
  }
  func.func @transform_16(%arg0: i32) -> (i32, i32) {
    %c0_i32 = arith.constant 0 : i32
    %c0_i32_0 = arith.constant 0 : i32
    %c0_i32_1 = arith.constant 0 : i32
    return %c0_i32, %c0_i32_0 : i32, i32
  }
  func.func @transform_17(%arg0: i32) -> (i32, i32) {
    %c0_i32 = arith.constant 0 : i32
    %c0_i32_0 = arith.constant 0 : i32
    %c0_i32_1 = arith.constant 0 : i32
    return %c0_i32, %c0_i32_0 : i32, i32
  }
  func.func @transform_18(%arg0: i32) -> (i32, i32) {
    %c0_i32 = arith.constant 0 : i32
    %c0_i32_0 = arith.constant 0 : i32
    %c0_i32_1 = arith.constant 0 : i32
    return %c0_i32, %c0_i32_0 : i32, i32
  }
  func.func @transform_19(%arg0: i32) -> (i32, i32) {
    %c0_i32 = arith.constant 0 : i32
    %c0_i32_0 = arith.constant 0 : i32
    %c0_i32_1 = arith.constant 0 : i32
    return %c0_i32, %c0_i32_0 : i32, i32
  }
  func.func @transform_20(%arg0: i32) -> (i32, i32) {
    %c0_i32 = arith.constant 0 : i32
    %c0_i32_0 = arith.constant 0 : i32
    %c0_i32_1 = arith.constant 0 : i32
    return %c0_i32, %c0_i32_0 : i32, i32
  }
  func.func @transform_21(%arg0: i32) -> (i32, i32, i32) {
    %c0_i32 = arith.constant 0 : i32
    %c0_i32_0 = arith.constant 0 : i32
    %c0_i32_1 = arith.constant 0 : i32
    return %arg0, %c0_i32, %c0_i32_0 : i32, i32, i32
  }
}

</mosaic_0001>

<bundles_post_ra>
// kernel: decoder_forward.1
= control target key start
LH: loop header
LB: loop body
LE: loop exit
PB: predicated region body
PF: predicated region fallthrough
CT: control target
= control target key end

     0   :  { %s9692_s0 = inlined_call_operand.vmem [shape: bf16[2,32,16], index: 0, kind: input, shape index: {}]   ;;  %s9693_s1 = inlined_call_operand.vmem [shape: bf16[2,16,64], index: 1, kind: input, shape index: {}]   ;;  %s9694_s2 = inlined_call_operand.vmem [shape: bf16[2,8,256], index: 2, kind: input, shape index: {}]   ;;  %s9695_s3 = inlined_call_operand.vmem [shape: bf16[2,4,1024], index: 3, kind: input, shape index: {}]   ;;  %s9696_s4 = inlined_call_operand.vmem [shape: bf16[16,64], index: 4, kind: input, shape index: {}]   ;;  %s9697_s5 = inlined_call_operand.vmem [shape: bf16[64,256], index: 5, kind: input, shape index: {}]   ;;  %s9698_s6 = inlined_call_operand.vmem [shape: bf16[256,1024], index: 6, kind: input, shape index: {}]   ;;  %s9699_s7 = inlined_call_operand.vmem [shape: bf16[16,432], index: 7, kind: input, shape index: {}]   ;;  %s9700_s8 = inlined_call_operand.vmem [shape: f32[16,1], index: 8, kind: input, shape index: {}]   ;;  %s9701_s9 = inlined_call_operand.vmem [shape: bf16[16,144], index: 9, kind: input, shape index: {}]   ;;  %s9702_s10 = inlined_call_operand.vmem [shape: f32[16,1], index: 10, kind: input, shape index: {}]   ;;  %s9703_s11 = inlined_call_operand.vmem [shape: bf16[8,216], index: 11, kind: input, shape index: {}]   ;;  %s9704_s12 = inlined_call_operand.vmem [shape: f32[8,1], index: 12, kind: input, shape index: {}]   ;;  %s9705_s13 = inlined_call_operand.vmem [shape: bf16[8,72], index: 13, kind: input, shape index: {}]   ;;  %s9706_s14 = inlined_call_operand.vmem [shape: f32[8,1], index: 14, kind: input, shape index: {}]   ;;  %s9707_s15 = inlined_call_operand.vmem [shape: bf16[4,108], index: 15, kind: input, shape index: {}]   ;;  %s9708_s16 = inlined_call_operand.vmem [shape: f32[4,1], index: 16, kind: input, shape index: {}]   ;;  %s9709_s17 = inlined_call_operand.vmem [shape: bf16[4,36], index: 17, kind: input, shape index: {}]   ;;  %s9710_s18 = inlined_call_operand.vmem [shape: f32[4,1], index: 18, kind: input, shape index: {}]   ;;  %s9711_s19 = inlined_call_operand.vmem [shape: bf16[5,36], index: 19, kind: input, shape index: {}]   ;;  %s9712_s20 = inlined_call_operand.vmem [shape: f32[5,1], index: 20, kind: input, shape index: {}]   ;;  %s9713_s21 = inlined_call_operand.vmem [shape: f32[2,5,1024], index: 21, kind: output, shape index: {}]  }
   0x1   :  { %9872 = sst [smem:[#allocation34_spill]] %s9692_s0 }
   0x2   :  { %9873 = sst [smem:[#allocation35_spill]] %s9693_s1 }
   0x3   :  { %9874 = sst [smem:[#allocation36_spill]] %s9694_s2  ;;  %s6426_s2 = smov 0  }
   0x4   :  { %9875 = sst [smem:[#allocation37_spill]] %s9695_s3 }
   0x5   :  { %9876 = sst [smem:[#allocation38_spill]] %s9696_s4 }
   0x6   :  { %9877 = sst [smem:[#allocation39_spill]] %s9697_s5 }
   0x7   :  { %9878 = sst [smem:[#allocation40_spill]] %s9699_s7 }
   0x8   :  { %9879 = sst [smem:[#allocation41_spill]] %s9700_s8 }
   0x9 LB: > { %s5944_s25 = sadd.s32 4294967295, %s6287_s2   ;;  %p5948_p0 = scmp.ge.s32.totalorder %s6287_s2, 1  ;;  %s6287_s2 = sphi %s6426_s2, %s31_s2  }
   0xa   : > { %p617_p1 = scmp.lt.s32.totalorder %s6287_s2, 3 }
   0xc   : > { %p618_p2 = pnand %p5948_p0, %p617_p1 }
   0xe   : > { %621 = sbr.rel (%p618_p2) target bundleno = 4275 (0x10b3), region = 104 }
  0x13   : > { %s9880_s3 = sld [smem:[#allocation38_spill]]  ;;  %p692_p3 = scmp.lt.s32.totalorder %s5944_s25, 1  ;;  %vm754_vm0 = vcmask 130048   ;;  %v9760_v4 = vmov 0   ;;  %v840_v5 = vlaneseq  ;;  %vm825_vm5 = vcmask 72704  }
  0x14   : > { %s9881_s4 = sld [smem:[#allocation34_spill]]  ;;  %s6289_s26 = smov 9   ;;  %6216 = vset.pattern.permute.xlu0 %v9760_v4  ;;  %6217 = vset.pattern.permute.xlu1 %v9760_v4  ;;  %vm833_vm6 = vcmask 596992   ;;  %vm1025_vm12 = vcmask 392192   ;;  %vm9731_vm14 = vcmask 523264  }
  0x15   : > { %s10198_s25 = smov (!%p692_p3, %s5944_s25), 1  ;;  %s9882_s1 = sld [smem:[#allocation35_spill]]  ;;  %v6457_v6 = vand.u32 127, %v840_v5  ;;  %v6460_v8 = vshrl.u32 %v840_v5, 7 }
  0x16   : > { %s9715_s28 = sshll.u32 %s10198_s25, 4  ;;  %s9720_s5 = sshll.u32 %s10198_s25, 3 }
  0x17   : > { %v846_v7 = vand.u32 7, %v6457_v6  ;;  %v6463_v11 = vsub.s32 0, %v6460_v8  ;;  %s6291_s27 = smov 10   ;;  %s9718_s29 = smov 16  }
  0x18   : > { %s6294_s0 = smov 8   ;;  %s6297_s22 = smov 119  }
  0x19   : > { %v6218_v0 = vld [vmem:[%s9880_s3] sm:$0xff]   ;;  %vm855_vm1 = vcmp.ne.s32.totalorder %v846_v7, 7  ;;  %vm854_vm3 = vcmp.ne.s32.totalorder %v846_v7, 0  ;;  %s9716_s3 = smov 2   ;;  %s9725_s23 = smov 112  }
  0x1a   : > { %6175 = vmatprep.subr.bf16.mxu0 %v6218_v0  ;;  %s696_s30 = scalar_lea.vmem %s9881_s4, %s9715_s28  ;;  %vm870_vm2 = vmpackc.low %vm855_vm1, %vm855_vm1  ;;  %s9721_s4 = smov 18  }
  0x1b   : > { %6176 = vmatpush3.bf16.msra.mxu0 %v6218_v0  ;;  %v6219_v1 = vld [vmem:[%s696_s30] sm:$0xff]   ;;  %v6222_v2 = vld [vmem:[%s696_s30 + $0x8] sm:$0xff]   ;;  %s701_s24 = scalar_lea.vmem %s9882_s1, %s9720_s5  ;;  %v871_v13 = vsel %vm870_vm2, 65537, %v9760_v4  ;;  %vm858_vm4 = vmpackc.low %vm854_vm3, %vm854_vm3  ;;  %s6296_s30 = smov 111  }
  0x1c   : > { %6177 = vmatprep.mubr.msk.bf16.mxu0 %vm754_vm0, %v6219_v1  ;;  %v6223_v3 = vld [vmem:[%s701_s24] sm:$0xff]   ;;  %1070 = vmatprep.subr.bf16.mxu0 %v9760_v4  ;;  %v875_v17 = vrot.slane %v871_v13, %v6463_v11  ;;  %v859_v18 = vsel %vm858_vm4, 65537, %v9760_v4  ;;  %s6299_s1 = smov 118   ;;  %s9750_s24 = smov 126  }
  0x1d   : > { %823 = vrot.lane.b32.xlu0 %v6223_v3, %s6289_s26  ;;  %v6471_v19 = vrot.slane %v859_v18, %v6463_v11  ;;  %s9883_s7 = sld [smem:[#allocation40_spill]]  ;;  %s9736_s28 = smov 34  }
  0x1e   : > { %6178 = vmatmul.mubr.msk.bf16.vlgmr.msra.gmra.mxu0 %vm754_vm0, %v6222_v2  ;;  %s9884_s8 = sld [smem:[#allocation41_spill]]  ;;  %s9893_s5 = smov 127  }
  0x1f   : > { %vm864_vm13 = vcmp.ne.s16.totalorder %v6471_v19, 0 }
  0x23   : > { %v6226_v44 = vld [vmem:[%s9883_s7 + $0x4] ss:$16 sps:$4 sm:$0xff]   ;;  %v6227_v47 = vld [vmem:[%s9883_s7 + $0xc] ss:$16 sps:$4 sm:$0xff]  }
  0x24   : > { %1061 = vmatprep.mubr.bf16.mxu1 %v6226_v44  ;;  %5969 = vmatprep.mubr.msk.bf16.mxu0 %vm1025_vm12, %v6227_v47  ;;  %v732_v50 = vld [vmem:[%s9884_s8] sm:$0xff]  ;;  %v733_v53 = vld [vmem:[%s9884_s8 + $0x8] sm:$0xff]  ;;  %s9921_s8 = smov 94  }
  0x8f   : > { %v824_v20 = vpop.permute.xlu0 %823 }
  0x90   : > { %v832_v21 = vsel %vm825_vm5, 0, %v824_v20  ;;  %v6224_v20 = vld [vmem:[%s9883_s7] ss:$16 sps:$4 sm:$0xff]  }
  0x91   : > { %v6479_v22 = vsel %vm833_vm6, %v832_v21, 0 }
  0xde   : > { %v6179_v9 = vpop.f32.mrf.mxu0 }
  0xe0   : > { %v795_v10 = vpop.f32.mrf.mxu0 }
  0xe2   : > { %v6180_v12 = vpop.f32.mrf.mxu0 }
  0xe3   : > { %v811_v14 = vpack.c.bf16 %v6180_v12, %v6179_v9  ;;  %v867_v12 = vsel %vm864_vm13, %v6479_v22, 0 }
  0xe4   : > { %v798_v15 = vpop.f32.mrf.mxu0 }
  0xe5   : > { %v810_v16 = vpack.c.bf16 %v798_v15, %v795_v10  ;;  %821 = vrot.lane.b32.xlu1 %v811_v14, %s6289_s26 }
  0xe7   : > { %819 = vrot.lane.b32.xlu0 %v810_v16, %s6289_s26 }
  0xe9   : > { %888 = vrot.lane.b32.xlu1 %v875_v17, %s6291_s27  ;;  %s9723_s27 = smov 127  }
  0xeb   : > { %876 = vrot.lane.b32.xlu0 %v875_v17, %s9716_s3  ;;  %s9888_s3 = sld [smem:[#allocation36_spill]] }
  0xed   : > { %894 = vrot.lane.b32.xlu1 %v6471_v19, %s9718_s29 }
  0xef   : > { %882 = vrot.lane.b32.xlu0 %v6471_v19, %s6294_s0  ;;  %s6302_s0 = smov 120  }
  0xf1   : > { %900 = vrot.lane.b32.xlu1 %v875_v17, %s9721_s4  ;;  %s9727_s4 = smov 110  }
  0xf3   : > { %979 = vrot.lane.b32.xlu0 %v6479_v22, %s6296_s30 }
  0xf5   : > { %946 = vrot.lane.b32.xlu1 %v6479_v22, %s6297_s22 }
 0x157   : > { %v822_v23 = vpop.permute.xlu1 %821 }
 0x158   : > { %v830_v24 = vsel %vm825_vm5, 0, %v822_v23 }
 0x159   : > { %v6488_v25 = vsel %vm833_vm6, %v830_v24, 0  ;;  %v820_v26 = vpop.permute.xlu0 %819 }
 0x15a   : > { %v828_v27 = vsel %vm825_vm5, 0, %v820_v26  ;;  %944 = vrot.lane.b32.xlu0 %v6488_v25, %s6297_s22  ;;  %v866_v15 = vsel %vm864_vm13, %v6488_v25, 0 }
 0x15b   : > { %v6493_v28 = vpop.permute.xlu1 %888  ;;  %v6496_v29 = vsel %vm833_vm6, %v828_v27, 0 }
 0x15c   : > { %vm890_vm7 = vcmp.ne.s16.totalorder %v6493_v28, 0  ;;  %v865_v18 = vsel %vm864_vm13, %v6496_v29, 0 }
 0x15d   : > { %v6498_v30 = vpop.permute.xlu0 %876  ;;  %v891_v33 = vsel %vm890_vm7, %v6496_v29, 0  ;;  %v893_v41 = vsel %vm890_vm7, %v6479_v22, 0  ;;  %v892_v43 = vsel %vm890_vm7, %v6488_v25, 0 }
 0x15e   : > { %975 = vrot.lane.b32.xlu0 %v6496_v29, %s6296_s30  ;;  %vm878_vm9 = vcmp.ne.s16.totalorder %v6498_v30, 0  ;;  %v6230_v30 = vld [vmem:[%s9701_s9 + $0x4] ss:$8 sps:$4 sm:$0xff]  }
 0x15f   : > { %v6503_v31 = vpop.permute.xlu1 %894  ;;  %v879_v35 = vsel %vm878_vm9, %v6496_v29, 0  ;;  %v880_v37 = vsel %vm878_vm9, %v6488_v25, 0  ;;  %v881_v51 = vsel %vm878_vm9, %v6479_v22, 0 }
 0x160   : > { %vm896_vm8 = vcmp.ne.s16.totalorder %v6503_v31, 0  ;;  %v736_v31 = vld [vmem:[%s9702_s10] sm:$0xff] }
 0x161   : > { %v899_v32 = vsel %vm896_vm8, %v6479_v22, 0  ;;  %v6513_v34 = vpop.permute.xlu0 %882  ;;  %v898_v38 = vsel %vm896_vm8, %v6488_v25, 0  ;;  %v897_v40 = vsel %vm896_vm8, %v6496_v29, 0 }
 0x162   : > { %970 = vrot.lane.b32.xlu1 %v899_v32, %s9725_s23  ;;  %954 = vrot.lane.b32.xlu0 %v891_v33, %s6299_s1  ;;  %vm884_vm10 = vcmp.ne.s16.totalorder %v6513_v34, 0  ;;  %v737_v34 = vld [vmem:[%s9702_s10 + $0x8] sm:$0xff] }
 0x163   : > { %v887_v39 = vsel %vm884_vm10, %v6479_v22, 0  ;;  %v6551_v42 = vpop.permute.xlu1 %900  ;;  %v886_v46 = vsel %vm884_vm10, %v6488_v25, 0  ;;  %v885_v49 = vsel %vm884_vm10, %v6496_v29, 0 }
 0x164   : > { %vm902_vm11 = vcmp.ne.s16.totalorder %v6551_v42, 0 }
 0x165   : > { %v980_v36 = vpop.permute.xlu0 %979  ;;  %v905_v45 = vsel %vm902_vm11, %v6479_v22, 0  ;;  %v904_v48 = vsel %vm902_vm11, %v6488_v25, 0  ;;  %v903_v52 = vsel %vm902_vm11, %v6496_v29, 0 }
 0x166   : > { %977 = vrot.lane.b32.xlu1 %v6488_v25, %s6296_s30  ;;  %921 = vrot.lane.b32.xlu0 %v879_v35, %s9750_s24 }
 0x167   : > { %1071 = vmatpush1.bf16.msra.mxu0 %v980_v36  ;;  %v947_v55 = vpop.permute.xlu1 %946 }
 0x168   : > { %1072 = vmatprep.subr.bf16.mxu0 %v9760_v4 }
 0x16a   : > { %923 = vrot.lane.b32.xlu1 %v880_v37, %s9750_s24  ;;  %968 = vrot.lane.b32.xlu0 %v898_v38, %s9725_s23 }
 0x16e   : > { %913 = vrot.lane.b32.xlu1 %v6479_v22, %s9723_s27  ;;  %911 = vrot.lane.b32.xlu0 %v6488_v25, %s9723_s27  ;;  %v6229_v22 = vld [vmem:[%s9883_s7 + $0x8] ss:$16 sps:$4 sm:$0xff]   ;;  %s6315_s7 = smov 63  }
 0x172   : > { %942 = vrot.lane.b32.xlu1 %v6496_v29, %s6297_s22  ;;  %937 = vrot.lane.b32.xlu0 %v887_v39, %s6302_s0 }
 0x176   : > { %966 = vrot.lane.b32.xlu1 %v897_v40, %s9725_s23  ;;  %958 = vrot.lane.b32.xlu0 %v893_v41, %s6299_s1 }
 0x17a   : > { %909 = vrot.lane.b32.xlu1 %v6496_v29, %s9723_s27  ;;  %956 = vrot.lane.b32.xlu0 %v892_v43, %s6299_s1 }
 0x17e   : > { %991 = vrot.lane.b32.xlu0 %v905_v45, %s9727_s4  ;;  %935 = vrot.lane.b32.xlu1 %v886_v46, %s6302_s0 }
 0x182   : > { %989 = vrot.lane.b32.xlu0 %v904_v48, %s9727_s4  ;;  %933 = vrot.lane.b32.xlu1 %v885_v49, %s6302_s0 }
 0x186   : > { %925 = vrot.lane.b32.xlu1 %v881_v51, %s9750_s24  ;;  %998 = vperm.xlu0 %6216, %v732_v50  }
 0x18a   : > { %987 = vrot.lane.b32.xlu1 %v903_v52, %s9727_s4 }
 0x18e   : > { %1003 = vperm.xlu1 %6217, %v733_v53  }
 0x1cc   : > { %v945_v54 = vpop.permute.xlu0 %944 }
 0x1d0   : > { %v976_v56 = vpop.permute.xlu0 %975 }
 0x1d4   : > { %v971_v57 = vpop.permute.xlu1 %970  ;;  %v955_v58 = vpop.permute.xlu0 %954 }
 0x1d5   : > { %6153 = vmatprep.subr.bf16.mxu1 %v955_v58 }
 0x1d8   : > { %v978_v59 = vpop.permute.xlu1 %977  ;;  %v922_v60 = vpop.permute.xlu0 %921 }
 0x1d9   : > { %1073 = vmatpush1.bf16.msra.mxu0 %v978_v59 }
 0x1da   : > { %1074 = vmatprep.subr.bf16.mxu0 %v9760_v4 }
 0x1dc   : > { %v924_v61 = vpop.permute.xlu1 %923  ;;  %v969_v62 = vpop.permute.xlu0 %968 }
 0x1dd   : > { %6154 = vmatpush3.bf16.msra.mxu1 %v924_v61  ;;  %1075 = vmatpush1.bf16.msra.mxu0 %v976_v56 }
 0x1de   : > { %6155 = vmatprep.subr.bf16.mxu1 %v947_v55  ;;  %1076 = vmatprep.subr.bf16.mxu0 %v9760_v4 }
 0x1e0   : > { %v914_v63 = vpop.permute.xlu1 %913  ;;  %v912_v0 = vpop.permute.xlu0 %911 }
 0x1e1   : > { %6156 = vmatpush3.bf16.msra.mxu1 %v922_v60  ;;  %1077 = vmatpush1.bf16.msra.mxu0 %v971_v57 }
 0x1e2   : > { %6157 = vmatprep.subr.bf16.mxu1 %v945_v54  ;;  %1078 = vmatprep.subr.bf16.mxu0 %v9760_v4 }
 0x1e4   : > { %v943_v1 = vpop.permute.xlu1 %942  ;;  %v938_v2 = vpop.permute.xlu0 %937 }
 0x1e5   : > { %6158 = vmatpush3.bf16.msra.mxu1 %v914_v63  ;;  %1079 = vmatpush1.bf16.msra.mxu0 %v969_v62 }
 0x1e6   : > { %6159 = vmatprep.subr.bf16.mxu1 %v943_v1  ;;  %1080 = vmatprep.subr.bf16.mxu0 %v9760_v4 }
 0x1e8   : > { %v967_v3 = vpop.permute.xlu1 %966  ;;  %v959_v5 = vpop.permute.xlu0 %958 }
 0x1e9   : > { %6160 = vmatpush3.bf16.msra.mxu1 %v912_v0  ;;  %1081 = vmatpush1.bf16.msra.mxu0 %v967_v3 }
 0x1ea   : > { %6161 = vmatprep.subr.bf16.mxu1 %v938_v2  ;;  %1082 = vmatprep.subr.bf16.mxu0 %v9760_v4  ;;  %v6232_v2 = vld [vmem:[%s9701_s9] ss:$8 sps:$4 sm:$0xff]  }
 0x1ec   : > { %v910_v7 = vpop.permute.xlu1 %909  ;;  %v957_v9 = vpop.permute.xlu0 %956 }
 0x1ed   : > { %6162 = vmatpush3.bf16.msra.mxu1 %v910_v7  ;;  %1083 = vmatpush1.bf16.msra.mxu0 %v959_v5 }
 0x1ee   : > { %1084 = vmatprep.subr.bf16.mxu0 %v9760_v4 }
 0x1f0   : > { %v936_v10 = vpop.permute.xlu1 %935  ;;  %v992_v13 = vpop.permute.xlu0 %991 }
 0x1f1   : > { %6163 = vmatprep.subr.bf16.mxu1 %v936_v10  ;;  %1085 = vmatpush1.bf16.msra.mxu0 %v957_v9 }
 0x1f2   : > { %6164 = vmatpush3.bf16.msra.mxu1 %v867_v12  ;;  %1096 = vmatprep.subr.bf16.mxu0 %v9760_v4 }
 0x1f4   : > { %v934_v14 = vpop.permute.xlu1 %933  ;;  %v990_v16 = vpop.permute.xlu0 %989 }
 0x1f5   : > { %6165 = vmatprep.subr.bf16.mxu1 %v934_v14  ;;  %1097 = vmatpush2.bf16.msra.mxu0 %v992_v13 }
 0x1f6   : > { %6166 = vmatpush3.bf16.msra.mxu1 %v866_v15  ;;  %1098 = vmatprep.subr.bf16.mxu0 %v9760_v4 }
 0x1f8   : > { %v926_v17 = vpop.permute.xlu1 %925 }
 0x1f9   : > { %6167 = vmatprep.subr.bf16.mxu1 %v926_v17  ;;  %1099 = vmatpush2.bf16.msra.mxu0 %v990_v16 }
 0x1fa   : > { %6168 = vmatpush3.bf16.msra.mxu1 %v865_v18  ;;  %1100 = vmatprep.subr.bf16.mxu0 %v9760_v4 }
 0x1fb   : > { %1179 = vmatprep.subr.bf16.mxu1 %v9760_v4 }
 0x1fc   : > { %v988_v21 = vpop.permute.xlu1 %987 }
 0x1fd   : > { %1062 = vmatmul.mubr.bf16.vlgmr.msra.gmra.mxu1 %v6224_v20  ;;  %1101 = vmatpush2.bf16.msra.mxu0 %v988_v21 }
 0x1fe   : > { %5972 = vmatprep.mubr.msk.bf16.mxu1 %vm754_vm0, %v6230_v30 }
 0x200   : > { %1103 = vmatmul.mubr.bf16.vlgmr.msra.gmra.mxu0 %v6229_v22  ;;  %v6694_v22 = vadd.s32 128, %v6457_v6 }
 0x201   : > { %1312 = vmatprep.mubr.bf16.mxu0 %v9760_v4  ;;  %v999_v25 = vpop.permute.xlu0 %998 }
 0x209   : > { %v1004_v36 = vpop.permute.xlu1 %1003 }
 0x2bd   : > { %v6169_v23 = vpop.f32.mrf.mxu1 }
 0x2bf   : > { %v6170_v24 = vpop.f32.mrf.mxu1 }
 0x2c0   : > { %v6171_v26 = vadd.f32 %v6170_v24, %v6169_v23  ;;  %v1104_v27 = vpop.f32.mrf.mxu0  ;;  %v1363_v23 = vand.u32 15, %v6457_v6  ;;  %v1370_v24 = vand.u32 15, %v6694_v22 }
 0x2c1   : > { %v6172_v29 = vpop.f32.mrf.mxu1 }
 0x2c2   : > { %v1064_v32 = vadd.f32 %v6171_v26, %v999_v25  ;;  %v1106_v33 = vpop.f32.mrf.mxu0  ;;  %vm1385_vm15 = vcmp.ne.s32.totalorder %v1363_v23, 15  ;;  %vm1386_vm1 = vcmp.ne.s32.totalorder %v1370_v24, 15  ;;  %vm1383_vm3 = vcmp.ne.s32.totalorder %v1363_v23, 0 }
 0x2c3   : > { %v6173_v35 = vpop.f32.mrf.mxu1  ;;  %vm1411_vm2 = vmpackc.low %vm1386_vm1, %vm1385_vm15  ;;  %vm1384_vm4 = vcmp.ne.s32.totalorder %v1370_v24, 0  ;;  %vm1455_vm15 = vcmask 146432  }
 0x2c4   : > { %v6174_v37 = vadd.f32 %v6173_v35, %v6172_v29  ;;  %v1107_v38 = vpop.f32.mrf.mxu0  ;;  %v1105_v39 = vadd.f32 %v1104_v27, %v1064_v32  ;;  %v1412_v25 = vsel %vm1411_vm2, 65537, %v9760_v4  ;;  %v6701_v27 = vsub.s32 4, %v6460_v8 }
 0x2c5   : > { %v1416_v26 = vrot.slane %v1412_v25, %v6463_v11 }
 0x2c6   : > { %v1067_v40 = vadd.f32 %v6174_v37, %v1004_v36  ;;  %v1109_v41 = vpop.f32.mrf.mxu0  ;;  %v1111_v44 = vmax.f32 %v1105_v39, 0.0  ;;  %v1420_v29 = vrot.slane %v1412_v25, %v6701_v27 }
 0x2c8   : > { %v1108_v43 = vadd.f32 %v1107_v38, %v1067_v40 }
 0x2ca   : > { %v1112_v45 = vmax.f32 %v1108_v43, 0.0 }
 0x2cc   : > { %v1113_v46 = vpack.c.bf16 %v1112_v45, %v1111_v44 }
 0x2ce   : > { %1115 = vrot.lane.b32.xlu1 %v1113_v46, %s6289_s26  ;;  %s6304_s26 = smov 17  }
 0x340   : > { %v1116_v47 = vpop.permute.xlu1 %1115 }
 0x341   : > { %v1118_v48 = vsel %vm825_vm5, 0, %v1116_v47  ;;  %vm1391_vm5 = vmpackc.low %vm1384_vm4, %vm1383_vm3  ;;  %vm9730_vm4 = vcmask 277504  }
 0x342   : > { %v1119_v49 = vsel %vm833_vm6, %v1118_v48, 0  ;;  %v1392_v41 = vsel %vm1391_vm5, 65537, %v9760_v4  ;;  %vm1340_vm6 = vcmask 138240  }
 0x343   : > { %1150 = vrot.lane.b32.xlu0 %v1119_v49, %s6296_s30  ;;  %v1125_v50 = vsel %vm896_vm8, %v1119_v49, 0  ;;  %v1124_v51 = vsel %vm890_vm7, %v1119_v49, 0  ;;  %v1123_v52 = vsel %vm884_vm10, %v1119_v49, 0  ;;  %v1122_v53 = vsel %vm878_vm9, %v1119_v49, 0 }
 0x344   : > { %1147 = vrot.lane.b32.xlu1 %v1125_v50, %s9725_s23  ;;  %v1126_v28 = vsel %vm902_vm11, %v1119_v49, 0  ;;  %v1121_v0 = vsel %vm864_vm13, %v1119_v49, 0  ;;  %s9887_s23 = sshll.u32 %s10198_s25, 3  ;;  %v6716_v44 = vrot.slane %v1392_v41, %v6463_v11  ;;  %v6720_v45 = vrot.slane %v1392_v41, %v6701_v27 }
 0x345   : > { %s706_s29 = scalar_lea.vmem %s9888_s3, %s9887_s23  ;;  %vm1500_vm8 = vcmask 1043456   ;;  %vm9729_vm9 = vcmask 15360   ;;  %s9891_s23 = smov 110  }
 0x346   : > { %v1223_v36 = vld [vmem:[%s706_s29] sm:$0xff]  ;;  %s9752_s3 = smov 94   ;;  %s9754_s29 = smov 95  }
 0x347   : > { %1143 = vrot.lane.b32.xlu0 %v1124_v51, %s6299_s1  ;;  %v5982_v40 = vcombine.low %v1223_v36, %v1223_v36  ;;  %v5983_v43 = vcombine.high %v1223_v36, %v1223_v36  ;;  %s9889_s1 = smov 16  }
 0x348   : > { %1139 = vrot.lane.b32.xlu1 %v1119_v49, %s6297_s22  ;;  %s9890_s22 = smov 2  }
 0x34b   : > { %1136 = vrot.lane.b32.xlu0 %v1123_v52, %s6302_s0  ;;  %s9892_s0 = smov 112  }
 0x34c   : > { %1132 = vrot.lane.b32.xlu1 %v1122_v53, %s9750_s24 }
 0x34f   : > { %1128 = vrot.lane.b32.xlu0 %v1119_v49, %s9723_s27  ;;  %s9885_s27 = sld [smem:[#allocation39_spill]] }
 0x350   : > { %1154 = vrot.lane.b32.xlu1 %v1126_v28, %s9727_s4  ;;  %s9886_s4 = smov 18  }
 0x353   : > { %1159 = vperm.xlu0 %6216, %v736_v31  }
 0x354   : > { %1164 = vperm.xlu1 %6217, %v737_v34  }
 0x355   : > { %v6233_v42 = vld [vmem:[%s9885_s27 + $0x30] ss:$8 sps:$4 sm:$0xff]   ;;  %v6235_v54 = vld [vmem:[%s9885_s27 + $0x34] ss:$8 sps:$4 sm:$0xff]   ;;  %v6238_v55 = vld [vmem:[%s9885_s27 + $0x24] ss:$8 sps:$4 sm:$0xff]  }
 0x356   : > { %1288 = vmatprep.subr.bf16.mxu0 %v6235_v54  ;;  %v6236_v56 = vld [vmem:[%s9885_s27 + $0x20] ss:$8 sps:$4 sm:$0xff]   ;;  %v6241_v3 = vld [vmem:[%s9885_s27 + $0x14] ss:$8 sps:$4 sm:$0xff]   ;;  %v6239_v19 = vld [vmem:[%s9885_s27 + $0x10] ss:$8 sps:$4 sm:$0xff]  }
 0x357   : > { %1289 = vmatpush1.bf16.msra.mxu0 %v6233_v42  ;;  %v6244_v5 = vld [vmem:[%s9885_s27 + $0x4] ss:$8 sps:$4 sm:$0xff]   ;;  %v6242_v7 = vld [vmem:[%s9885_s27] ss:$8 sps:$4 sm:$0xff]   ;;  %1451 = vrot.lane.b32.xlu0 %v1416_v26, %s9886_s4 }
 0x358   : > { %1290 = vmatprep.subr.bf16.mxu0 %v6238_v55  ;;  %1453 = vrot.lane.b32.xlu1 %v1420_v29, %s9886_s4  ;;  %s9734_s4 = smov 32  }
 0x35b   : > { %1291 = vmatpush1.bf16.msra.mxu0 %v6236_v56 }
 0x35c   : > { %1292 = vmatprep.subr.bf16.mxu0 %v6241_v3 }
 0x35f   : > { %1293 = vmatpush1.bf16.msra.mxu0 %v6239_v19 }
 0x360   : > { %1294 = vmatprep.subr.bf16.mxu0 %v6244_v5 }
 0x363   : > { %1295 = vmatpush1.bf16.msra.mxu0 %v6242_v7 }
 0x3b5   : > { %v1151_v57 = vpop.permute.xlu0 %1150 }
 0x3b6   : > { %1180 = vmatpush1.bf16.msra.mxu1 %v1151_v57  ;;  %v1148_v58 = vpop.permute.xlu1 %1147 }
 0x3b7   : > { %1181 = vmatprep.subr.bf16.mxu1 %v9760_v4 }
 0x3b9   : > { %v1144_v59 = vpop.permute.xlu0 %1143 }
 0x3ba   : > { %1182 = vmatpush1.bf16.msra.mxu1 %v1148_v58  ;;  %v1140_v60 = vpop.permute.xlu1 %1139 }
 0x3bb   : > { %1183 = vmatprep.subr.bf16.mxu1 %v9760_v4 }
 0x3bd   : > { %v1137_v61 = vpop.permute.xlu0 %1136 }
 0x3be   : > { %1184 = vmatpush1.bf16.msra.mxu1 %v1144_v59  ;;  %v1133_v62 = vpop.permute.xlu1 %1132 }
 0x3bf   : > { %1185 = vmatprep.subr.bf16.mxu1 %v9760_v4 }
 0x3c1   : > { %v1129_v63 = vpop.permute.xlu0 %1128 }
 0x3c2   : > { %1186 = vmatpush1.bf16.msra.mxu1 %v1140_v60  ;;  %v1155_v1 = vpop.permute.xlu1 %1154 }
 0x3c3   : > { %1187 = vmatprep.subr.bf16.mxu1 %v9760_v4 }
 0x3c6   : > { %1188 = vmatpush1.bf16.msra.mxu1 %v1137_v61 }
 0x3c7   : > { %1189 = vmatprep.subr.bf16.mxu1 %v9760_v4 }
 0x3ca   : > { %1190 = vmatpush1.bf16.msra.mxu1 %v1133_v62 }
 0x3cb   : > { %1191 = vmatprep.subr.bf16.mxu1 %v9760_v4 }
 0x3ce   : > { %1192 = vmatpush1.bf16.msra.mxu1 %v1129_v63  ;;  %v1160_v10 = vpop.permute.xlu0 %1159 }
 0x3cf   : > { %1193 = vmatprep.subr.bf16.mxu1 %v9760_v4  ;;  %v1165_v14 = vpop.permute.xlu1 %1164 }
 0x3d2   : > { %1194 = vmatpush1.bf16.msra.mxu1 %v1121_v0  ;;  %v6734_v46 = vpop.permute.xlu0 %1451 }
 0x3d3   : > { %1209 = vmatprep.subr.bf16.mxu1 %v9760_v4  ;;  %v6736_v47 = vpop.permute.xlu1 %1453  ;;  %vm1457_vm7 = vcmp.ne.s16.totalorder %v6734_v46, 0 }
 0x3d4   : > { %vm9739_vm1 = vcmp.ne.s16.totalorder %v6736_v47, 0 }
 0x3d6   : > { %1210 = vmatpush2.bf16.msra.mxu1 %v1155_v1 }
 0x3d9   : > { %1212 = vmatmul.mubr.bf16.vlgmr.msra.gmra.mxu1 %v6232_v2 }
 0x3da   : > { %2009 = vmatprep.mubr.bf16.mxu1 %v9760_v4 }
 0x499   : > { %v1213_v9 = vpop.f32.mrf.mxu1 }
 0x49a   : > { %v1214_v13 = vadd.f32 %v1213_v9, %v1160_v10 }
 0x49b   : > { %v1215_v12 = vpop.f32.mrf.mxu1 }
 0x49c   : > { %v1220_v18 = vmax.f32 %v1214_v13, 0.0 }
 0x49d   : > { %v1216_v15 = vpop.f32.mrf.mxu1 }
 0x49e   : > { %v1217_v16 = vadd.f32 %v1216_v15, %v1165_v14  ;;  %v6833_v14 = vsel %vm1455_vm15, %v6734_v46, %v6736_v47 }
 0x49f   : > { %v1218_v17 = vpop.f32.mrf.mxu1  ;;  %vm9740_vm2 = vcmp.ne.s16.totalorder %v6833_v14, 0 }
 0x4a0   : > { %v1221_v20 = vmax.f32 %v1217_v16, 0.0 }
 0x4a2   : > { %v1222_v21 = vpack.c.bf16 %v1221_v20, %v1220_v18 }
 0x4a4   : > { %5981 = vmatmul.mubr.msk.bf16.vlgmr.msra.gmra.mxu0 %vm9731_vm14, %v1222_v21 }
 0x564   : > { %v1314_v32 = vpop.f32.mrf.mxu0 }
 0x566   : > { %v1316_v33 = vpop.f32.mrf.mxu0 }
 0x568   : > { %v1318_v35 = vpop.f32.mrf.mxu0 }
 0x569   : > { %v1323_v37 = vpack.c.bf16 %v1318_v35, %v1314_v32 }
 0x56a   : > { %v1320_v38 = vpop.f32.mrf.mxu0 }
 0x56b   : > { %v1324_v39 = vpack.c.bf16 %v1320_v38, %v1316_v33  ;;  %1332 = vrot.lane.b32.xlu0 %v1323_v37, %s6304_s26 }
 0x56d   : > { %1334 = vrot.lane.b32.xlu1 %v1324_v39, %s6304_s26 }
 0x56f   : > { %1336 = vrot.lane.b32.xlu0 %v5982_v40, %s6304_s26 }
 0x571   : > { %1338 = vrot.lane.b32.xlu1 %v5983_v43, %s6304_s26 }
 0x573   : > { %1436 = vrot.lane.b32.xlu0 %v6716_v44, %s9889_s1 }
 0x575   : > { %1438 = vrot.lane.b32.xlu1 %v6720_v45, %s9889_s1  ;;  %s9748_s1 = smov 96  }
 0x577   : > { %1421 = vrot.lane.b32.xlu0 %v1416_v26, %s9890_s22 }
 0x579   : > { %1423 = vrot.lane.b32.xlu1 %v1420_v29, %s9890_s22 }
 0x57b   : > { %1481 = vrot.lane.b32.xlu0 %v1416_v26, %s9736_s28 }
 0x57d   : > { %1483 = vrot.lane.b32.xlu1 %v1420_v29, %s9736_s28  ;;  %s9910_s28 = smov 34  }
 0x57f   : > { %1466 = vrot.lane.b32.xlu0 %v6716_v44, %s9734_s4 }
 0x581   : > { %1468 = vrot.lane.b32.xlu1 %v6720_v45, %s9734_s4  ;;  %s9911_s4 = smov 32  }
 0x5dd   : > { %v1333_v48 = vpop.permute.xlu0 %1332 }
 0x5de   : > { %v6740_v49 = vsel %vm1340_vm6, 0, %v1333_v48 }
 0x5df   : > { %v1335_v50 = vpop.permute.xlu1 %1334  ;;  %v1460_v52 = vsel %vm1457_vm7, %v6740_v49, 0  ;;  %v6825_v10 = vrot.slane %v6740_v49, 4 }
 0x5e0   : > { %v1613_v42 = vrot.slane %v1460_v52, 4  ;;  %v6791_v63 = vsel %vm1340_vm6, %v1335_v50, 0  ;;  %v6816_v7 = vsel %vm1340_vm6, %v1333_v48, %v1335_v50 }
 0x5e1   : > { %v1337_v51 = vpop.permute.xlu0 %1336  ;;  %v6850_v18 = vrot.slane %v6816_v7, 4  ;;  %v6855_v20 = vsel %vm9739_vm1, %v6791_v63, 0  ;;  %v6862_v21 = vsel %vm9740_vm2, %v6816_v7, 0  ;;  %v1503_v38 = vrot.slane %v6791_v63, 4 }
 0x5e2   : > { %v6746_v53 = vsel %vm1340_vm6, 0, %v1337_v51  ;;  %v1615_v23 = vrot.slane %v6855_v20, 4  ;;  %v1614_v24 = vrot.slane %v6862_v21, 4 }
 0x5e3   : > { %v1339_v28 = vpop.permute.xlu1 %1338  ;;  %v1463_v31 = vsel %vm1457_vm7, %v6746_v53, 0  ;;  %v1504_v5 = vrot.slane %v6746_v53, 4 }
 0x5e4   : > { %v6752_v34 = vsel %vm1340_vm6, %v1337_v51, %v1339_v28  ;;  %v6755_v30 = vsel %vm1340_vm6, %v1339_v28, 0  ;;  %v1616_v54 = vrot.slane %v1463_v31, 4 }
 0x5e5   : > { %v6757_v55 = vpop.permute.xlu0 %1436  ;;  %1598 = vrot.lane.b32.xlu1 %v6755_v30, %s6296_s30  ;;  %1596 = vrot.lane.b32.xlu0 %v6752_v34, %s6296_s30  ;;  %v6829_v13 = vsel %vm1500_vm8, %v6825_v10, %v1504_v5  ;;  %v1506_v33 = vrot.slane %v6752_v34, 4  ;;  %v1508_v36 = vrot.slane %v6755_v30, 4 }
 0x5e6   : > { %v6764_v56 = vsel %vm1500_vm8, %v1613_v42, %v1616_v54  ;;  %vm9741_vm13 = vcmp.ne.s16.totalorder %v6757_v55, 0 }
 0x5e7   : > { %v6766_v57 = vpop.permute.xlu1 %1438  ;;  %v1445_v1 = vsel %vm9741_vm13, %v6740_v49, 0  ;;  %v1448_v9 = vsel %vm9741_vm13, %v6746_v53, 0  ;;  %v1507_v39 = vsel %vm1500_vm8, %v6850_v18, %v1506_v33  ;;  %v1509_v43 = vsel %vm1500_vm8, %v1503_v38, %v1508_v36 }
 0x5e8   : > { %v1560_v2 = vrot.slane %v1445_v1, 4  ;;  %v1563_v12 = vrot.slane %v1448_v9, 4  ;;  %v6845_v16 = vsel %vm754_vm0, %v6757_v55, %v6766_v57  ;;  %vm9732_vm3 = vcmp.ne.s16.totalorder %v6766_v57, 0 }
 0x5e9   : > { %1594 = vrot.lane.b32.xlu0 %v6746_v53, %s6296_s30  ;;  %v6770_v58 = vpop.permute.xlu0 %1421  ;;  %vm9738_vm0 = vcmp.ne.s16.totalorder %v6845_v16, 0  ;;  %v1447_v25 = vsel %vm9732_vm3, %v6791_v63, 0  ;;  %v1450_v37 = vsel %vm9732_vm3, %v6755_v30, 0  ;;  %vm9744_vm13 = vcmask 1031168  }
 0x5ea   : > { %vm1427_vm12 = vcmp.ne.s16.totalorder %v6770_v58, 0  ;;  %v1564_v17 = vsel %vm1500_vm8, %v1560_v2, %v1563_v12  ;;  %v1446_v26 = vsel %vm9738_vm0, %v6816_v7, 0  ;;  %v1562_v29 = vrot.slane %v1447_v25, 4 }
 0x5eb   : > { %v6772_v59 = vpop.permute.xlu1 %1423  ;;  %v1433_v0 = vsel %vm1427_vm12, %v6746_v53, 0  ;;  %v1430_v3 = vsel %vm1427_vm12, %v6740_v49, 0  ;;  %v1561_v32 = vrot.slane %v1446_v26, 4  ;;  %v1449_v35 = vsel %vm9738_vm0, %v6752_v34, 0 }
 0x5ec   : > { %v6777_v60 = vsel %vm9729_vm9, %v6770_v58, %v6772_v59  ;;  %vm9745_vm10 = vcmp.ne.s16.totalorder %v6772_v59, 0  ;;  %v1565_v40 = vrot.slane %v1449_v35, 4  ;;  %v1567_v41 = vrot.slane %v1450_v37, 4 }
 0x5ed   : > { %vm1428_vm11 = vcmp.ne.s16.totalorder %v6777_v60, 0  ;;  %v1435_v61 = vsel %vm9745_vm10, %v6755_v30, 0  ;;  %v1432_v19 = vsel %vm9745_vm10, %v6791_v63, 0  ;;  %v6902_v52 = vpop.permute.xlu0 %1481  ;;  %vm1754_vm0 = vcmask 719872  }
 0x5ee   : > { %1545 = vrot.lane.b32.xlu1 %v1435_v61, %s9750_s24  ;;  %v1434_v62 = vsel %vm1428_vm11, %v6752_v34, 0  ;;  %v1431_v15 = vsel %vm1428_vm11, %v6816_v7, 0  ;;  %v1566_v50 = vsel %vm1500_vm8, %v1561_v32, %v1565_v40  ;;  %v1568_v51 = vsel %vm1500_vm8, %v1562_v29, %v1567_v41 }
 0x5ef   : > { %1543 = vrot.lane.b32.xlu0 %v1434_v62, %s9750_s24  ;;  %v6897_v48 = vpop.permute.xlu1 %1483  ;;  %vm1487_vm5 = vcmp.ne.s16.totalorder %v6902_v52, 0  ;;  %vm1703_vm10 = vcmask 769024  }
 0x5f0   : > { %v6908_v28 = vsel %vm9730_vm4, %v6902_v52, %v6897_v48  ;;  %v1493_v31 = vsel %vm1487_vm5, %v6746_v53, 0  ;;  %vm1489_vm9 = vcmp.ne.s16.totalorder %v6897_v48, 0  ;;  %vm9733_vm4 = vcmask 261120  }
 0x5f1   : > { %vm1488_vm15 = vcmp.ne.s16.totalorder %v6908_v28, 0  ;;  %v1495_v54 = vsel %vm1489_vm9, %v6755_v30, 0  ;;  %v1490_v1 = vsel %vm1487_vm5, %v6740_v49, 0 }
 0x5f2   : > { %1592 = vrot.lane.b32.xlu1 %v6791_v63, %s6296_s30  ;;  %v1491_v61 = vsel %vm1488_vm15, %v6816_v7, 0 }
 0x5f3   : > { %1541 = vrot.lane.b32.xlu0 %v1433_v0, %s9750_s24  ;;  %v6932_v62 = vpop.permute.xlu1 %1468  ;;  %v1492_v0 = vsel %vm1489_vm9, %v6791_v63, 0 }
 0x5f4   : > { %vm1474_vm3 = vcmp.ne.s16.totalorder %v6932_v62, 0 }
 0x5f5   : > { %v1480_v5 = vsel %vm1474_vm3, %v6755_v30, 0 }
 0x5f6   : > { %1622 = vrot.lane.b32.xlu1 %v1613_v42, %s9891_s23  ;;  %v1494_v42 = vsel %vm1488_vm15, %v6752_v34, 0 }
 0x5f7   : > { %1588 = vrot.lane.b32.xlu0 %v6740_v49, %s6296_s30 }
 0x5fa   : > { %1569 = vrot.lane.b32.xlu1 %v1560_v2, %s9892_s0  ;;  %v6941_v2 = vpop.permute.xlu0 %1466 }
 0x5fb   : > { %1535 = vrot.lane.b32.xlu0 %v1430_v3, %s9750_s24  ;;  %v6947_v3 = vsel %vm9733_vm4, %v6941_v2, %v6932_v62  ;;  %vm1472_vm4 = vcmp.ne.s16.totalorder %v6941_v2, 0 }
 0x5fc   : > { %vm1473_vm14 = vcmp.ne.s16.totalorder %v6947_v3, 0  ;;  %v1478_v9 = vsel %vm1472_vm4, %v6746_v53, 0  ;;  %v1475_v26 = vsel %vm1472_vm4, %v6740_v49, 0 }
 0x5fd   : > { %v1476_v12 = vsel %vm1473_vm14, %v6816_v7, 0 }
 0x5fe   : > { %1539 = vrot.lane.b32.xlu1 %v1432_v19, %s9750_s24  ;;  %v1479_v19 = vsel %vm1473_vm14, %v6752_v34, 0 }
 0x5ff   : > { %1590 = vrot.lane.b32.xlu0 %v6816_v7, %s6296_s30 }
 0x602   : > { %1516 = vrot.lane.b32.xlu1 %v6829_v13, %s9893_s5 }
 0x603   : > { %1537 = vrot.lane.b32.xlu0 %v1431_v15, %s9750_s24  ;;  %v6982_v15 = vld [vmem:[%s9703_s11] sm:$0xff] }
 0x606   : > { %1575 = vrot.lane.b32.xlu1 %v1564_v17, %s9892_s0  ;;  %v5985_v17 = vcombine.high %v6982_v15, %v6982_v15 }
 0x607   : > { %1512 = vrot.lane.b32.xlu0 %v6850_v18, %s9893_s5 }
 0x608   : > { %5988 = vmatprep.mubr.msk.bf16.mxu0 %vm1754_vm0, %v5985_v17  ;;  %vm9742_vm0 = vcmask 908288  }
 0x60a   : > { %1626 = vrot.lane.b32.xlu1 %v1615_v23, %s9891_s23 }
 0x60b   : > { %1624 = vrot.lane.b32.xlu0 %v1614_v24, %s9891_s23 }
 0x60e   : > { %1573 = vrot.lane.b32.xlu1 %v1562_v29, %s9892_s0 }
 0x60f   : > { %1571 = vrot.lane.b32.xlu0 %v1561_v32, %s9892_s0  ;;  %v1233_v32 = vld [vmem:[%s9704_s12] sm:$0xff] }
 0x612   : > { %1518 = vrot.lane.b32.xlu1 %v1507_v39, %s9893_s5 }
 0x613   : > { %1520 = vrot.lane.b32.xlu0 %v1509_v43, %s9893_s5 }
 0x616   : > { %1577 = vrot.lane.b32.xlu1 %v1566_v50, %s9892_s0 }
 0x617   : > { %1579 = vrot.lane.b32.xlu0 %v1568_v51, %s9892_s0 }
 0x61a   : > { %1514 = vrot.lane.b32.xlu1 %v1503_v38, %s9893_s5 }
 0x61b   : > { %1510 = vrot.lane.b32.xlu0 %v6825_v10, %s9893_s5 }
 0x61e   : > { %1697 = vrot.lane.b32.xlu1 %v1493_v31, %s9752_s3 }
 0x61f   : > { %1699 = vrot.lane.b32.xlu0 %v1494_v42, %s9752_s3 }
 0x622   : > { %1701 = vrot.lane.b32.xlu1 %v1495_v54, %s9752_s3 }
 0x623   : > { %1693 = vrot.lane.b32.xlu0 %v1491_v61, %s9752_s3 }
 0x626   : > { %1695 = vrot.lane.b32.xlu1 %v1492_v0, %s9752_s3 }
 0x627   : > { %1691 = vrot.lane.b32.xlu0 %v1490_v1, %s9752_s3 }
 0x62a   : > { %1674 = vrot.lane.b32.xlu1 %v1507_v39, %s9754_s29 }
 0x62b   : > { %1676 = vrot.lane.b32.xlu0 %v1509_v43, %s9754_s29 }
 0x62e   : > { %1672 = vrot.lane.b32.xlu1 %v6829_v13, %s9754_s29  ;;  %v1464_v13 = vsel %vm9740_vm2, %v6752_v34, 0  ;;  %vm9743_vm2 = vcmask 916480  }
 0x62f   : > { %1655 = vrot.lane.b32.xlu0 %v1479_v19, %s9748_s1  ;;  %v1618_v25 = vrot.slane %v1464_v13, 4 }
 0x632   : > { %1657 = vrot.lane.b32.xlu1 %v1480_v5, %s9748_s1 }
 0x633   : > { %1668 = vrot.lane.b32.xlu0 %v6850_v18, %s9754_s29  ;;  %v1477_v18 = vsel %vm1474_vm3, %v6791_v63, 0 }
 0x636   : > { %1670 = vrot.lane.b32.xlu1 %v1503_v38, %s9754_s29 }
 0x637   : > { %1653 = vrot.lane.b32.xlu0 %v1478_v9, %s9748_s1 }
 0x63a   : > { %1666 = vrot.lane.b32.xlu1 %v6825_v10, %s9754_s29  ;;  %v1465_v10 = vsel %vm9739_vm1, %v6755_v30, 0  ;;  %v1619_v30 = vsel %vm1500_vm8, %v1614_v24, %v1618_v25  ;;  %vm1634_vm1 = vcmask 900096  }
 0x63b   : > { %1649 = vrot.lane.b32.xlu0 %v1476_v12, %s9748_s1  ;;  %v1620_v29 = vrot.slane %v1465_v10, 4 }
 0x63d   : > { %v1621_v63 = vsel %vm1500_vm8, %v1615_v23, %v1620_v29 }
 0x63e   : > { %1651 = vrot.lane.b32.xlu1 %v1477_v18, %s9748_s1 }
 0x63f   : > { %1647 = vrot.lane.b32.xlu0 %v1475_v26, %s9748_s1 }
 0x642   : > { %1630 = vrot.lane.b32.xlu1 %v1619_v30, %s9891_s23 }
 0x643   : > { %1632 = vrot.lane.b32.xlu0 %v1621_v63, %s9891_s23 }
 0x646   : > { %1628 = vrot.lane.b32.xlu1 %v6764_v56, %s9891_s23 }
 0x647   : > { %1745 = vperm.xlu0 %6216, %v1233_v32  }
 0x657   : > { %v1597_v33 = vpop.permute.xlu0 %1596  ;;  %v1599_v21 = vpop.permute.xlu1 %1598 }
 0x658   : > { %v1604_v61 = vsel %vm9742_vm0, %v1597_v33, %v1599_v21 }
 0x65b   : > { %v1595_v35 = vpop.permute.xlu0 %1594 }
 0x65c   : > { %v1603_v0 = vsel %vm9742_vm0, %v1595_v35, %v1597_v33 }
 0x660   : > { %v1546_v24 = vpop.permute.xlu1 %1545 }
 0x661   : > { %v1544_v36 = vpop.permute.xlu0 %1543 }
 0x662   : > { %v1551_v32 = vsel %vm9744_vm13, %v1544_v36, %v1546_v24 }
 0x664   : > { %v1593_v37 = vpop.permute.xlu1 %1592 }
 0x665   : > { %v1542_v38 = vpop.permute.xlu0 %1541 }
 0x668   : > { %v1623_v20 = vpop.permute.xlu1 %1622 }
 0x669   : > { %v1589_v39 = vpop.permute.xlu0 %1588 }
 0x66c   : > { %v1570_v23 = vpop.permute.xlu1 %1569 }
 0x66d   : > { %v1536_v40 = vpop.permute.xlu0 %1535 }
 0x670   : > { %v1540_v41 = vpop.permute.xlu1 %1539 }
 0x671   : > { %v1591_v43 = vpop.permute.xlu0 %1590 }
 0x672   : > { %v1602_v10 = vsel %vm9742_vm0, %v1591_v43, %v1593_v37  ;;  %v1601_v18 = vsel %vm9742_vm0, %v1589_v39, %v1591_v43  ;;  %v1550_v39 = vsel %vm9744_vm13, %v1542_v38, %v1544_v36  ;;  %vm1522_vm0 = vcmask 1039360  }
 0x674   : > { %v1517_v50 = vpop.permute.xlu1 %1516 }
 0x675   : > { %v1538_v51 = vpop.permute.xlu0 %1537 }
 0x678   : > { %v1576_v31 = vpop.permute.xlu1 %1575 }
 0x679   : > { %v1513_v42 = vpop.permute.xlu0 %1512 }
 0x67c   : > { %v1627_v56 = vpop.permute.xlu1 %1626 }
 0x67d   : > { %v1625_v54 = vpop.permute.xlu0 %1624 }
 0x67e   : > { %v1635_v1 = vsel %vm1634_vm1, %v1623_v20, %v1625_v54  ;;  %v1636_v19 = vsel %vm1634_vm1, %v1625_v54, %v1627_v56  ;;  %v1549_v54 = vsel %vm9744_vm13, %v1538_v51, %v1540_v41 }
 0x67f   : > { %v1733_v5 = vsel %vm1500_vm8, %v1604_v61, %v1636_v19  ;;  %v1729_v9 = vsel %vm1500_vm8, %v1603_v0, %v1635_v1 }
 0x680   : > { %1764 = vmatprep.subr.bf16.mxu0 %v1733_v5  ;;  %v1574_v12 = vpop.permute.xlu1 %1573 }
 0x681   : > { %v1572_v13 = vpop.permute.xlu0 %1571  ;;  %1765 = vmatpush1.bf16.msra.mxu0 %v1729_v9 }
 0x682   : > { %1766 = vmatprep.subr.bf16.mxu0 %v1602_v10  ;;  %v1583_v29 = vsel %vm9743_vm2, %v1572_v13, %v1574_v12  ;;  %v1582_v21 = vsel %vm9743_vm2, %v1570_v23, %v1572_v13 }
 0x683   : > { %v1725_v37 = vsel %vm1500_vm8, %v1551_v32, %v1583_v29  ;;  %v1721_v43 = vsel %vm1500_vm8, %v1550_v39, %v1582_v21 }
 0x684   : > { %v1519_v17 = vpop.permute.xlu1 %1518 }
 0x685   : > { %v1521_v25 = vpop.permute.xlu0 %1520  ;;  %1767 = vmatpush1.bf16.msra.mxu0 %v1601_v18  ;;  %v1525_v38 = vsel %vm1522_vm0, %v1517_v50, %v1519_v17 }
 0x686   : > { %v1526_v61 = vsel %vm1522_vm0, %v1519_v17, %v1521_v25 }
 0x688   : > { %v1578_v26 = vpop.permute.xlu1 %1577 }
 0x689   : > { %v1580_v30 = vpop.permute.xlu0 %1579  ;;  %v1584_v33 = vsel %vm9743_vm2, %v1576_v31, %v1578_v26  ;;  %v1548_v31 = vsel %vm9744_vm13, %v1536_v40, %v1538_v51  ;;  %vm9747_vm13 = vcmp.ne.s16.totalorder %v6716_v44, 0 }
 0x68a   : > { %v1585_v63 = vsel %vm9743_vm2, %v1578_v26, %v1580_v30  ;;  %vm9746_vm2 = vcmp.ne.s16.totalorder %v6720_v45, 0  ;;  %v1405_v5 = vsel %vm9747_vm13, %v6746_v53, 0 }
 0x68b   : > { %1768 = vmatprep.subr.bf16.mxu0 %v1585_v63  ;;  %v1406_v41 = vsel %vm9746_vm2, %v6752_v34, 0 }
 0x68c   : > { %1769 = vmatpush1.bf16.msra.mxu0 %v1584_v33  ;;  %v1515_v35 = vpop.permute.xlu1 %1514 }
 0x68d   : > { %v1511_v20 = vpop.permute.xlu0 %1510  ;;  %1770 = vmatprep.subr.bf16.mxu0 %v1725_v37  ;;  %v1524_v0 = vsel %vm1522_vm0, %v1513_v42, %v1515_v35 }
 0x68e   : > { %v1523_v1 = vsel %vm1522_vm0, %v1511_v20, %v1513_v42  ;;  %v1717_v51 = vsel %vm1500_vm8, %v1406_v41, %v1524_v0  ;;  %v1403_v42 = vsel %vm9747_vm13, %v6740_v49, 0  ;;  %vm1659_vm13 = vcmask 785408  }
 0x68f   : > { %v1713_v50 = vsel %vm1500_vm8, %v1405_v5, %v1523_v1  ;;  %v5984_v41 = vcombine.low %v6982_v15, %v6982_v15 }
 0x690   : > { %1771 = vmatpush1.bf16.msra.mxu0 %v1721_v43  ;;  %v1698_v56 = vpop.permute.xlu1 %1697 }
 0x691   : > { %v1700_v24 = vpop.permute.xlu0 %1699  ;;  %1772 = vmatprep.subr.bf16.mxu0 %v1549_v54 }
 0x692   : > { %v1706_v12 = vsel %vm1703_vm10, %v1698_v56, %v1700_v24 }
 0x693   : > { %v1759_v17 = vsel %vm1500_vm8, %v1706_v12, 0 }
 0x694   : > { %1773 = vmatpush1.bf16.msra.mxu0 %v1548_v31  ;;  %v1702_v23 = vpop.permute.xlu1 %1701 }
 0x695   : > { %v1694_v36 = vpop.permute.xlu0 %1693  ;;  %1774 = vmatprep.subr.bf16.mxu0 %v1526_v61  ;;  %v1707_v13 = vsel %vm1703_vm10, %v1700_v24, %v1702_v23 }
 0x698   : > { %1775 = vmatpush1.bf16.msra.mxu0 %v1525_v38  ;;  %v1696_v40 = vpop.permute.xlu1 %1695 }
 0x699   : > { %v1692_v19 = vpop.permute.xlu0 %1691  ;;  %1776 = vmatprep.subr.bf16.mxu0 %v1717_v51  ;;  %v1705_v25 = vsel %vm1703_vm10, %v1694_v36, %v1696_v40 }
 0x69a   : > { %v1704_v49 = vsel %vm1703_vm10, %v1692_v19, %v1694_v36 }
 0x69c   : > { %1777 = vmatpush1.bf16.msra.mxu0 %v1713_v50  ;;  %v1675_v9 = vpop.permute.xlu1 %1674 }
 0x69d   : > { %v1677_v34 = vpop.permute.xlu0 %1676  ;;  %5986 = vmatprep.subr.msk.bf16.mxu0 %vm9746_vm2, %v6816_v7  ;;  %vm1678_vm2 = vcmask 777216  }
 0x69e   : > { %v1682_v29 = vsel %vm1678_vm2, %v1675_v9, %v1677_v34 }
 0x6a0   : > { %1779 = vmatpush1.bf16.msra.mxu0 %v1403_v42  ;;  %v1673_v53 = vpop.permute.xlu1 %1672 }
 0x6a1   : > { %v1656_v10 = vpop.permute.xlu0 %1655  ;;  %5987 = vmatprep.subr.msk.bf16.mxu0 %vm1500_vm8, %v1707_v13  ;;  %v1681_v32 = vsel %vm1678_vm2, %v1673_v53, %v1675_v9 }
 0x6a4   : > { %1785 = vmatpush2.bf16.msra.mxu0 %v1759_v17  ;;  %v1658_v18 = vpop.permute.xlu1 %1657 }
 0x6a5   : > { %v1669_v7 = vpop.permute.xlu0 %1668  ;;  %1786 = vmatprep.subr.bf16.mxu0 %v1705_v25  ;;  %v1663_v33 = vsel %vm1659_vm13, %v1656_v10, %v1658_v18 }
 0x6a8   : > { %1787 = vmatpush2.bf16.msra.mxu0 %v1704_v49  ;;  %v1671_v26 = vpop.permute.xlu1 %1670 }
 0x6a9   : > { %v1680_v30 = vsel %vm1678_vm2, %v1669_v7, %v1671_v26  ;;  %v1654_v63 = vpop.permute.xlu0 %1653  ;;  %1788 = vmatprep.subr.bf16.mxu0 %v1682_v29 }
 0x6aa   : > { %v1741_v35 = vsel %vm1500_vm8, %v1663_v33, %v1680_v30  ;;  %v1662_v37 = vsel %vm1659_vm13, %v1654_v63, %v1656_v10 }
 0x6ac   : > { %1789 = vmatpush2.bf16.msra.mxu0 %v1681_v32  ;;  %v1667_v21 = vpop.permute.xlu1 %1666 }
 0x6ad   : > { %v1679_v20 = vsel %vm1678_vm2, %v1667_v21, %v1669_v7  ;;  %v1650_v39 = vpop.permute.xlu0 %1649  ;;  %1790 = vmatprep.subr.bf16.mxu0 %v1741_v35 }
 0x6ae   : > { %v1737_v43 = vsel %vm1500_vm8, %v1662_v37, %v1679_v20 }
 0x6b0   : > { %1791 = vmatpush2.bf16.msra.mxu0 %v1737_v43  ;;  %v1652_v56 = vpop.permute.xlu1 %1651  ;;  %v2073_v43 = vld [vmem:[%s9698_s6 + $0x188] sm:$0xff] }
 0x6b1   : > { %v1648_v54 = vpop.permute.xlu0 %1647  ;;  %v1661_v24 = vsel %vm1659_vm13, %v1650_v39, %v1652_v56  ;;  %v2077_v56 = vld [vmem:[%s9698_s6 + $0x1a8] sm:$0xff] }
 0x6b2   : > { %v1660_v31 = vsel %vm1659_vm13, %v1648_v54, %v1650_v39  ;;  %1792 = vmatprep.subr.bf16.mxu0 %v1661_v24  ;;  %v6042_v54 = vcombine.high %v2073_v43, %v2077_v56  ;;  %v2065_v24 = vld [vmem:[%s9698_s6 + $0x148] sm:$0xff] }
 0x6b4   : > { %1793 = vmatpush2.bf16.msra.mxu0 %v1660_v31  ;;  %v1631_v23 = vpop.permute.xlu1 %1630  ;;  %v2069_v31 = vld [vmem:[%s9698_s6 + $0x168] sm:$0xff] }
 0x6b5   : > { %v1633_v61 = vpop.permute.xlu0 %1632 }
 0x6b6   : > { %v1638_v0 = vsel %vm1634_vm1, %v1631_v23, %v1633_v61  ;;  %v6034_v61 = vcombine.high %v2065_v24, %v2069_v31 }
 0x6b7   : > { %1794 = vmatprep.subr.bf16.mxu0 %v1638_v0  ;;  %v2057_v0 = vld [vmem:[%s9698_s6 + $0x108] sm:$0xff] }
 0x6b8   : > { %v1629_v36 = vpop.permute.xlu1 %1628 }
 0x6b9   : > { %v1637_v38 = vsel %vm1634_vm1, %v1629_v36, %v1631_v23  ;;  %v6041_v23 = vcombine.low %v2073_v43, %v2077_v56  ;;  %v2061_v36 = vld [vmem:[%s9698_s6 + $0x128] sm:$0xff] }
 0x6ba   : > { %1795 = vmatpush2.bf16.msra.mxu0 %v1637_v38  ;;  %v6033_v38 = vcombine.low %v2065_v24, %v2069_v31 }
 0x6bd   : > { %1797 = vmatmul.mubr.bf16.vlgmr.msra.gmra.mxu0 %v5984_v41  ;;  %v6026_v41 = vcombine.high %v2057_v0, %v2061_v36 }
 0x6c2   : > { %v1746_v1 = vpop.permute.xlu0 %1745 }
 0x77d   : > { %v1798_v40 = vpop.f32.mrf.mxu0 }
 0x77e   : > { %v1799_v51 = vadd.f32 %v1798_v40, %v1746_v1  ;;  %v2053_v40 = vld [vmem:[%s9698_s6 + $0xe8] sm:$0xff] }
 0x77f   : > { %v1800_v19 = vpop.f32.mrf.mxu0 }
 0x780   : > { %v1805_v5 = vmax.f32 %v1799_v51, 0.0  ;;  %v1801_v50 = vadd.f32 %v1800_v19, %v1746_v1  ;;  %v2049_v1 = vld [vmem:[%s9698_s6 + $0xc8] sm:$0xff]  ;;  %v6025_v51 = vcombine.low %v2057_v0, %v2061_v36 }
 0x781   : > { %v1802_v9 = vpop.f32.mrf.mxu0  ;;  %v6018_v19 = vcombine.high %v2049_v1, %v2053_v40 }
 0x782   : > { %v1807_v34 = vpack.c.bf16 %v1805_v5, %v1805_v5  ;;  %v1806_v42 = vmax.f32 %v1801_v50, 0.0  ;;  %v2041_v5 = vld [vmem:[%s9698_s6 + $0x88] sm:$0xff]  ;;  %v6017_v9 = vcombine.low %v2049_v1, %v2053_v40 }
 0x783   : > { %v1803_v12 = vpop.f32.mrf.mxu0  ;;  %v2045_v50 = vld [vmem:[%s9698_s6 + $0xa8] sm:$0xff] }
 0x784   : > { %v1808_v13 = vpack.c.bf16 %v1806_v42, %v1806_v42  ;;  %1811 = vrot.lane.b32.xlu1 %v1807_v34, %s6304_s26  ;;  %v6010_v34 = vcombine.high %v2041_v5, %v2045_v50  ;;  %v2033_v42 = vld [vmem:[%s9698_s6 + $0x48] sm:$0xff] }
 0x785   : > { %v2037_v12 = vld [vmem:[%s9698_s6 + $0x68] sm:$0xff] }
 0x786   : > { %1813 = vrot.lane.b32.xlu0 %v1808_v13, %s6304_s26  ;;  %v6009_v13 = vcombine.low %v2041_v5, %v2045_v50  ;;  %s6311_s26 = smov 64  }
 0x7f6   : > { %v1812_v53 = vpop.permute.xlu1 %1811 }
 0x7f7   : > { %v7072_v15 = vsel %vm1340_vm6, 0, %v1812_v53 }
 0x7f8   : > { %1878 = vrot.lane.b32.xlu0 %v7072_v15, %s6296_s30  ;;  %v1837_v10 = vsel %vm1487_vm5, %v7072_v15, 0  ;;  %v1834_v17 = vsel %vm1472_vm4, %v7072_v15, 0  ;;  %v1842_v18 = vrot.slane %v7072_v15, 4  ;;  %v1814_v25 = vpop.permute.xlu0 %1813  ;;  %v1825_v7 = vsel %vm1427_vm12, %v7072_v15, 0 }
 0x7f9   : > { %1922 = vrot.lane.b32.xlu1 %v1837_v10, %s9752_s3  ;;  %v1821_v52 = vsel %vm1340_vm6, %v1814_v25, 0  ;;  %v7093_v2 = vsel %vm1340_vm6, %v1812_v53, %v1814_v25  ;;  %v1831_v29 = vsel %vm1457_vm7, %v7072_v15, 0  ;;  %vm9894_vm6 = vcmp.ne.s16.totalorder %v6772_v59, 0  ;;  %v2025_v10 = vld [vmem:[%s9698_s6 + $0x8] sm:$0xff] }
 0x7fa   : > { %v1839_v49 = vsel %vm1489_vm9, %v1821_v52, 0  ;;  %v1838_v58 = vsel %vm1488_vm15, %v7093_v2, 0  ;;  %v1836_v26 = vsel %vm1474_vm3, %v1821_v52, 0  ;;  %v1835_v48 = vsel %vm1473_vm14, %v7093_v2, 0 }
 0x7fb   : > { %v1889_v30 = vrot.slane %v1831_v29, 4  ;;  %v1826_v28 = vsel %vm1428_vm11, %v7093_v2, 0  ;;  %v1827_v46 = vsel %vm9894_vm6, %v1821_v52, 0  ;;  %vm9895_vm7 = vcmp.ne.s16.totalorder %v6757_v55, 0  ;;  %v2141_v29 = vld [vmem:[%s9698_s6 + $0x3a8] sm:$0xff] }
 0x7fc   : > { %1903 = vrot.lane.b32.xlu0 %v1834_v17, %s9748_s1  ;;  %v1828_v62 = vsel %vm9895_vm7, %v7072_v15, 0  ;;  %v1843_v3 = vrot.slane %v7093_v2, 4  ;;  %vm9896_vm14 = vcmp.ne.s16.totalorder %v6833_v14, 0  ;;  %v1844_v59 = vrot.slane %v1821_v52, 4  ;;  %v2029_v17 = vld [vmem:[%s9698_s6 + $0x28] sm:$0xff] }
 0x7fd   : > { %1911 = vrot.lane.b32.xlu1 %v1842_v18, %s9754_s29  ;;  %v1867_v63 = vrot.slane %v1828_v62, 4  ;;  %v1832_v32 = vsel %vm9896_vm14, %v7093_v2, 0  ;;  %vm9897_vm9 = vcmp.ne.s16.totalorder %v6845_v16, 0  ;;  %vm9898_vm11 = vcmp.ne.s16.totalorder %v6736_v47, 0  ;;  %v2081_v47 = vld [vmem:[%s9698_s6 + $0x1c8] sm:$0xff]  ;;  %v1235_v16 = vld [vmem:[%s9706_s14] sm:$0xff] }
 0x7fe   : > { %v1890_v60 = vrot.slane %v1832_v32, 4  ;;  %v1829_v55 = vsel %vm9897_vm9, %v7093_v2, 0  ;;  %v1833_v33 = vsel %vm9898_vm11, %v1821_v52, 0  ;;  %vm9899_vm12 = vcmp.ne.s16.totalorder %v6766_v57, 0  ;;  %v2085_v57 = vld [vmem:[%s9698_s6 + $0x1e8] sm:$0xff] }
 0x7ff   : > { %v1868_v21 = vrot.slane %v1829_v55, 4  ;;  %v1891_v14 = vrot.slane %v1833_v33, 4  ;;  %v1830_v35 = vsel %vm9899_vm12, %v1821_v52, 0  ;;  %v6049_v20 = vcombine.low %v2081_v47, %v2085_v57  ;;  %v2125_v32 = vld [vmem:[%s9698_s6 + $0x328] sm:$0xff] }
 0x800   : > { %1856 = vrot.lane.b32.xlu0 %v1825_v7, %s9750_s24  ;;  %v1869_v37 = vrot.slane %v1830_v35, 4  ;;  %v6050_v39 = vcombine.high %v2081_v47, %v2085_v57  ;;  %v6002_v53 = vcombine.high %v2033_v42, %v2037_v12  ;;  %v5994_v25 = vcombine.high %v2025_v10, %v2029_v17  ;;  %v2145_v7 = vld [vmem:[%s9698_s6 + $0x3c8] sm:$0xff] }
 0x801   : > { %1882 = vrot.lane.b32.xlu1 %v1821_v52, %s6296_s30  ;;  %v2149_v52 = vld [vmem:[%s9698_s6 + $0x3e8] sm:$0xff]  ;;  %vm9900_vm3 = vcmask 908288   ;;  %vm9902_vm5 = vcmask 916480   ;;  %vm9903_vm15 = vcmask 1031168   ;;  %vm9907_vm14 = vcmp.ne.s16.totalorder %v6716_v44, 0 }
 0x802   : > { %2837 = vmatprep.subr.bf16.mxu0 %v6050_v39  ;;  %v2113_v55 = vld [vmem:[%s9698_s6 + $0x2c8] sm:$0xff]  ;;  %vm9901_vm4 = vmmov %vm9900_vm3  ;;  %vm1967_vm9 = vcmask 588800  }
 0x803   : > { %2838 = vmatpush1.bf16.msra.mxu0 %v6049_v20  ;;  %v2117_v33 = vld [vmem:[%s9698_s6 + $0x2e8] sm:$0xff]  ;;  %vm9904_vm6 = vmmov %vm9902_vm5 }
 0x804   : > { %1880 = vrot.lane.b32.xlu0 %v7093_v2, %s6296_s30  ;;  %2839 = vmatprep.subr.bf16.mxu0 %v6042_v54  ;;  %v2105_v35 = vld [vmem:[%s9698_s6 + $0x288] sm:$0xff]  ;;  %v6081_v47 = vcombine.low %v2113_v55, %v2117_v33  ;;  %vm9905_vm7 = vmmov %vm9903_vm15  ;;  %s6310_s30 = smov 66  }
 0x805   : > { %1926 = vrot.lane.b32.xlu1 %v1839_v49, %s9752_s3  ;;  %v5993_v49 = vcombine.low %v2025_v10, %v2029_v17 }
 0x807   : > { %2840 = vmatpush1.bf16.msra.mxu0 %v6041_v23 }
 0x808   : > { %1924 = vrot.lane.b32.xlu0 %v1838_v58, %s9752_s3  ;;  %2841 = vmatprep.subr.bf16.mxu0 %v6034_v61  ;;  %v6114_v58 = vcombine.high %v2145_v7, %v2149_v52  ;;  %s9912_s3 = sshll.u32 %s10198_s25, 4 }
 0x809   : > { %1907 = vrot.lane.b32.xlu1 %v1836_v26, %s9748_s1  ;;  %v2137_v26 = vld [vmem:[%s9698_s6 + $0x388] sm:$0xff] }
 0x80a   : > { %v6105_v62 = vcombine.low %v2137_v26, %v2141_v29 }
 0x80b   : > { %2842 = vmatpush1.bf16.msra.mxu0 %v6033_v38 }
 0x80c   : > { %1905 = vrot.lane.b32.xlu0 %v1835_v48, %s9748_s1  ;;  %2843 = vmatprep.subr.bf16.mxu0 %v6026_v41  ;;  %v6113_v48 = vcombine.low %v2145_v7, %v2149_v52  ;;  %s9924_s1 = smov 96  }
 0x80d   : > { %1892 = vrot.lane.b32.xlu1 %v1889_v30, %s9891_s23  ;;  %v6106_v30 = vcombine.high %v2137_v26, %v2141_v29 }
 0x80f   : > { %2844 = vmatpush1.bf16.msra.mxu0 %v6025_v51 }
 0x810   : > { %1858 = vrot.lane.b32.xlu0 %v1826_v28, %s9750_s24  ;;  %2845 = vmatprep.subr.bf16.mxu0 %v6018_v19  ;;  %v2129_v28 = vld [vmem:[%s9698_s6 + $0x348] sm:$0xff] }
 0x811   : > { %1860 = vrot.lane.b32.xlu1 %v1827_v46, %s9750_s24  ;;  %v2133_v46 = vld [vmem:[%s9698_s6 + $0x368] sm:$0xff]  ;;  %s9923_s24 = smov 126  }
 0x813   : > { %2846 = vmatpush1.bf16.msra.mxu0 %v6017_v9 }
 0x814   : > { %1913 = vrot.lane.b32.xlu0 %v1843_v3, %s9754_s29  ;;  %2847 = vmatprep.subr.bf16.mxu0 %v6010_v34 }
 0x815   : > { %1870 = vrot.lane.b32.xlu1 %v1867_v63, %s9892_s0  ;;  %v2121_v63 = vld [vmem:[%s9698_s6 + $0x308] sm:$0xff] }
 0x817   : > { %2848 = vmatpush1.bf16.msra.mxu0 %v6009_v13 }
 0x818   : > { %1894 = vrot.lane.b32.xlu0 %v1890_v60, %s9891_s23  ;;  %2849 = vmatprep.subr.bf16.mxu0 %v6002_v53  ;;  %v6097_v60 = vcombine.low %v2129_v28, %v2133_v46 }
 0x819   : > { %1915 = vrot.lane.b32.xlu1 %v1844_v59, %s9754_s29 }
 0x81c   : > { %1872 = vrot.lane.b32.xlu0 %v1868_v21, %s9892_s0  ;;  %v6089_v21 = vcombine.low %v2121_v63, %v2125_v32 }
 0x81d   : > { %1896 = vrot.lane.b32.xlu1 %v1891_v14, %s9891_s23  ;;  %v6082_v14 = vcombine.high %v2113_v55, %v2117_v33  ;;  %s6313_s23 = smov 33  }
 0x820   : > { %1847 = vrot.lane.b32.xlu0 %v1843_v3, %s9893_s5  ;;  %v6098_v3 = vcombine.high %v2129_v28, %v2133_v46 }
 0x821   : > { %1874 = vrot.lane.b32.xlu1 %v1869_v37, %s9892_s0  ;;  %v2109_v37 = vld [vmem:[%s9698_s6 + $0x2a8] sm:$0xff]  ;;  %s6314_s0 = smov 62  }
 0x822   : > { %v6074_v57 = vcombine.high %v2105_v35, %v2109_v37 }
 0x824   : > { %1845 = vrot.lane.b32.xlu0 %v1842_v18, %s9893_s5  ;;  %v6001_v18 = vcombine.low %v2033_v42, %v2037_v12 }
 0x825   : > { %1849 = vrot.lane.b32.xlu1 %v1844_v59, %s9893_s5  ;;  %v6090_v59 = vcombine.high %v2121_v63, %v2125_v32  ;;  %v2080_v32 = vld [vmem:[%s9698_s6 + $0x1c0] sm:$0xff] }
 0x826   : > { %2850 = vmatpush1.bf16.msra.mxu0 %v6001_v18 }
 0x827   : > { %2851 = vmatprep.subr.bf16.mxu0 %v5994_v25 }
 0x829   : > { %1964 = vperm.xlu1 %6217, %v1235_v16   ;;  %v6073_v16 = vcombine.low %v2105_v35, %v2109_v37 }
 0x82a   : > { %2852 = vmatpush1.bf16.msra.mxu0 %v5993_v49 }
 0x82b   : > { %2853 = vmatprep.subr.bf16.mxu0 %v6114_v58 }
 0x82e   : > { %2854 = vmatpush2.bf16.msra.mxu0 %v6113_v48 }
 0x82f   : > { %2855 = vmatprep.subr.bf16.mxu0 %v6106_v30 }
 0x832   : > { %2856 = vmatpush2.bf16.msra.mxu0 %v6105_v62 }
 0x833   : > { %2857 = vmatprep.subr.bf16.mxu0 %v6098_v3 }
 0x836   : > { %2858 = vmatpush2.bf16.msra.mxu0 %v6097_v60  ;;  %v2084_v60 = vld [vmem:[%s9698_s6 + $0x1e0] sm:$0xff] }
 0x837   : > { %2859 = vmatprep.subr.bf16.mxu0 %v6090_v59  ;;  %v6048_v37 = vcombine.high %v2080_v32, %v2084_v60 }
 0x83a   : > { %2860 = vmatpush2.bf16.msra.mxu0 %v6089_v21 }
 0x83b   : > { %2861 = vmatprep.subr.bf16.mxu0 %v6082_v14 }
 0x83e   : > { %2862 = vmatpush2.bf16.msra.mxu0 %v6081_v47 }
 0x83f   : > { %2863 = vmatprep.subr.bf16.mxu0 %v6074_v57  ;;  %v1823_v57 = vsel %vm9907_vm14, %v7072_v15, 0  ;;  %v2064_v15 = vld [vmem:[%s9698_s6 + $0x140] sm:$0xff] }
 0x842   : > { %2864 = vmatpush2.bf16.msra.mxu0 %v6073_v16  ;;  %v2072_v16 = vld [vmem:[%s9698_s6 + $0x180] sm:$0xff] }
 0x86a   : > { %v1879_v20 = vpop.permute.xlu0 %1878 }
 0x86b   : > { %v1923_v39 = vpop.permute.xlu1 %1922 }
 0x86e   : > { %v1904_v43 = vpop.permute.xlu0 %1903 }
 0x86f   : > { %v1912_v56 = vpop.permute.xlu1 %1911 }
 0x872   : > { %v1857_v54 = vpop.permute.xlu0 %1856 }
 0x873   : > { %v1883_v24 = vpop.permute.xlu1 %1882 }
 0x876   : > { %v1881_v31 = vpop.permute.xlu0 %1880 }
 0x877   : > { %v1927_v23 = vpop.permute.xlu1 %1926  ;;  %v1885_v52 = vsel %vm9900_vm3, %v1881_v31, %v1883_v24  ;;  %v1884_v58 = vsel %vm9901_vm4, %v1879_v20, %v1881_v31  ;;  %v2076_v20 = vld [vmem:[%s9698_s6 + $0x1a0] sm:$0xff] }
 0x878   : > { %v6040_v44 = vcombine.high %v2072_v16, %v2076_v20  ;;  %v2056_v24 = vld [vmem:[%s9698_s6 + $0x100] sm:$0xff] }
 0x879   : > { %v2060_v31 = vld [vmem:[%s9698_s6 + $0x120] sm:$0xff] }
 0x87a   : > { %v1925_v61 = vpop.permute.xlu0 %1924 }
 0x87b   : > { %v1928_v0 = vsel %vm1703_vm10, %v1923_v39, %v1925_v61  ;;  %v1908_v36 = vpop.permute.xlu1 %1907  ;;  %v1929_v38 = vsel %vm1703_vm10, %v1925_v61, %v1927_v23  ;;  %v6024_v61 = vcombine.high %v2056_v24, %v2060_v31 }
 0x87c   : > { %5989 = vmatprep.subr.msk.bf16.mxu1 %vm1500_vm8, %v1929_v38  ;;  %v1972_v41 = vsel %vm1500_vm8, %v1928_v0, 0  ;;  %v2048_v0 = vld [vmem:[%s9698_s6 + $0xc0] sm:$0xff]  ;;  %v6023_v38 = vcombine.low %v2056_v24, %v2060_v31 }
 0x87d   : > { %1984 = vmatpush1.bf16.msra.mxu1 %v1972_v41 }
 0x87e   : > { %v1906_v1 = vpop.permute.xlu0 %1905 }
 0x87f   : > { %v1893_v40 = vpop.permute.xlu1 %1892  ;;  %v1910_v12 = vsel %vm1659_vm13, %v1906_v1, %v1908_v36  ;;  %v1909_v53 = vsel %vm1659_vm13, %v1904_v43, %v1906_v1  ;;  %v2068_v43 = vld [vmem:[%s9698_s6 + $0x160] sm:$0xff] }
 0x880   : > { %v6031_v23 = vcombine.low %v2064_v15, %v2068_v43  ;;  %v2052_v36 = vld [vmem:[%s9698_s6 + $0xe0] sm:$0xff] }
 0x881   : > { %v6016_v41 = vcombine.high %v2048_v0, %v2052_v36  ;;  %v2040_v1 = vld [vmem:[%s9698_s6 + $0x80] sm:$0xff] }
 0x882   : > { %v1859_v51 = vpop.permute.xlu0 %1858 }
 0x883   : > { %v1861_v19 = vpop.permute.xlu1 %1860  ;;  %v1862_v3 = vsel %vm9905_vm7, %v1857_v54, %v1859_v51  ;;  %v6032_v54 = vcombine.high %v2064_v15, %v2068_v43  ;;  %v2092_v15 = vld [vmem:[%s9698_s6 + $0x220] sm:$0xff]  ;;  %v2089_v43 = vld [vmem:[%s9698_s6 + $0x208] sm:$0xff] }
 0x884   : > { %v1863_v46 = vsel %vm9903_vm15, %v1859_v51, %v1861_v19  ;;  %v6015_v51 = vcombine.low %v2048_v0, %v2052_v36  ;;  %v7389_v0 = vld [vmem:[%s9698_s6 + $0x1d8] sm:$0xff] }
 0x886   : > { %v1914_v5 = vpop.permute.xlu0 %1913 }
 0x887   : > { %v1871_v50 = vpop.permute.xlu1 %1870  ;;  %v1917_v34 = vsel %vm1678_vm2, %v1912_v56, %v1914_v5  ;;  %v6039_v56 = vcombine.low %v2072_v16, %v2076_v20 }
 0x888   : > { %v1956_v18 = vsel %vm1500_vm8, %v1909_v53, %v1917_v34 }
 0x88a   : > { %v1895_v9 = vpop.permute.xlu0 %1894 }
 0x88b   : > { %v1916_v42 = vpop.permute.xlu1 %1915  ;;  %v1898_v25 = vsel %vm1634_vm1, %v1893_v40, %v1895_v9  ;;  %v2044_v40 = vld [vmem:[%s9698_s6 + $0xa0] sm:$0xff] }
 0x88c   : > { %v1918_v13 = vsel %vm1678_vm2, %v1914_v5, %v1916_v42  ;;  %v1948_v48 = vsel %vm1500_vm8, %v1884_v58, %v1898_v25  ;;  %v6008_v19 = vcombine.high %v2040_v1, %v2044_v40  ;;  %v2032_v5 = vld [vmem:[%s9698_s6 + $0x40] sm:$0xff] }
 0x88d   : > { %v1960_v10 = vsel %vm1500_vm8, %v1910_v12, %v1918_v13  ;;  %v2024_v42 = vld [vmem:[%s9698_s6] sm:$0xff] }
 0x88e   : > { %1985 = vmatprep.subr.bf16.mxu1 %v1960_v10  ;;  %v1873_v17 = vpop.permute.xlu0 %1872  ;;  %v2028_v12 = vld [vmem:[%s9698_s6 + $0x20] sm:$0xff] }
 0x88f   : > { %v1897_v7 = vpop.permute.xlu1 %1896  ;;  %1986 = vmatpush1.bf16.msra.mxu1 %v1956_v18  ;;  %v1876_v30 = vsel %vm9902_vm5, %v1871_v50, %v1873_v17  ;;  %v2036_v50 = vld [vmem:[%s9698_s6 + $0x60] sm:$0xff]  ;;  %v5992_v53 = vcombine.high %v2024_v42, %v2028_v12  ;;  %v5991_v18 = vcombine.low %v2024_v42, %v2028_v12 }
 0x890   : > { %v1899_v49 = vsel %vm1634_vm1, %v1895_v9, %v1897_v7  ;;  %v1940_v55 = vsel %vm1500_vm8, %v1862_v3, %v1876_v30  ;;  %vm9906_vm1 = vcmp.ne.s16.totalorder %v6720_v45, 0  ;;  %v1234_v45 = vld [vmem:[%s9705_s13] sm:$0xf]  ;;  %v6007_v9 = vcombine.low %v2040_v1, %v2044_v40  ;;  %v7398_v1 = vld [vmem:[%s9698_s6 + $0x1f8] sm:$0xff] }
 0x891   : > { %v1952_v26 = vsel %vm1500_vm8, %v1885_v52, %v1899_v49  ;;  %v1824_v35 = vsel %vm9906_vm1, %v7093_v2, 0  ;;  %v6047_v2 = vcombine.low %v2080_v32, %v2084_v60  ;;  %v6000_v34 = vcombine.high %v2032_v5, %v2036_v50  ;;  %v2144_v10 = vld [vmem:[%s9698_s6 + $0x3c0] sm:$0xff] }
 0x892   : > { %1987 = vmatprep.subr.bf16.mxu1 %v1952_v26  ;;  %v1848_v29 = vpop.permute.xlu0 %1847  ;;  %v5999_v13 = vcombine.low %v2032_v5, %v2036_v50  ;;  %v2136_v7 = vld [vmem:[%s9698_s6 + $0x380] sm:$0xff]  ;;  %v6053_v40 = vcombine.low %v7389_v0, %v7398_v1  ;;  %v3091_v5 = vand.u32 31, %v6694_v22  ;;  %v3074_v50 = vadd.s32 256, %v6457_v6 }
 0x893   : > { %v1875_v28 = vpop.permute.xlu1 %1874  ;;  %1988 = vmatpush1.bf16.msra.mxu1 %v1948_v48  ;;  %v2140_v52 = vld [vmem:[%s9698_s6 + $0x3a0] sm:$0xff] }
 0x894   : > { %v1877_v62 = vsel %vm9904_vm6, %v1873_v17, %v1875_v28  ;;  %v2148_v17 = vld [vmem:[%s9698_s6 + $0x3e0] sm:$0xff]  ;;  %v6104_v58 = vcombine.high %v2136_v7, %v2140_v52  ;;  %v6103_v48 = vcombine.low %v2136_v7, %v2140_v52  ;;  %vm3185_vm12 = vcmp.ne.s32.totalorder %v3091_v5, 31 }
 0x895   : > { %v1944_v63 = vsel %vm1500_vm8, %v1863_v46, %v1877_v62  ;;  %v6112_v25 = vcombine.high %v2144_v10, %v2148_v17  ;;  %v6111_v49 = vcombine.low %v2144_v10, %v2148_v17  ;;  %v2128_v26 = vld [vmem:[%s9698_s6 + $0x340] sm:$0xff]  ;;  %vm3177_vm5 = vcmp.ne.s32.totalorder %v3091_v5, 0 }
 0x896   : > { %1989 = vmatprep.subr.bf16.mxu1 %v1944_v63  ;;  %v1846_v59 = vpop.permute.xlu0 %1845  ;;  %v2120_v28 = vld [vmem:[%s9698_s6 + $0x300] sm:$0xff]  ;;  %v3076_v52 = vadd.s32 512, %v6457_v6 }
 0x897   : > { %v1851_v33 = vsel %vm1522_vm0, %v1846_v59, %v1848_v29  ;;  %v1850_v21 = vpop.permute.xlu1 %1849  ;;  %1990 = vmatpush1.bf16.msra.mxu1 %v1940_v55  ;;  %v2124_v46 = vld [vmem:[%s9698_s6 + $0x320] sm:$0xff] }
 0x898   : > { %v1852_v14 = vsel %vm1522_vm0, %v1848_v29, %v1850_v21  ;;  %v1932_v39 = vsel %vm1500_vm8, %v1823_v57, %v1851_v33  ;;  %v2132_v29 = vld [vmem:[%s9698_s6 + $0x360] sm:$0xff]  ;;  %v6088_v3 = vcombine.high %v2120_v28, %v2124_v46  ;;  %v6087_v60 = vcombine.low %v2120_v28, %v2124_v46  ;;  %v2097_v57 = vld [vmem:[%s9698_s6 + $0x248] sm:$0xff] }
 0x899   : > { %v1936_v47 = vsel %vm1500_vm8, %v1824_v35, %v1852_v14  ;;  %v6096_v30 = vcombine.high %v2128_v26, %v2132_v29  ;;  %v6095_v62 = vcombine.low %v2128_v26, %v2132_v29  ;;  %v2112_v63 = vld [vmem:[%s9698_s6 + $0x2c0] sm:$0xff]  ;;  %v3112_v26 = vand.u32 31, %v3076_v52 }
 0x89a   : > { %1991 = vmatprep.subr.bf16.mxu1 %v1936_v47  ;;  %v2116_v32 = vld [vmem:[%s9698_s6 + $0x2e0] sm:$0xff]  ;;  %v3078_v46 = vadd.s32 768, %v6457_v6 }
 0x89b   : > { %1992 = vmatpush1.bf16.msra.mxu1 %v1932_v39  ;;  %v6080_v59 = vcombine.high %v2112_v63, %v2116_v32  ;;  %v2104_v55 = vld [vmem:[%s9698_s6 + $0x280] sm:$0xff]  ;;  %v6079_v21 = vcombine.low %v2112_v63, %v2116_v32  ;;  %v2101_v39 = vld [vmem:[%s9698_s6 + $0x268] sm:$0xff] }
 0x89c   : > { %2796 = vmatprep.subr.bf16.mxu1 %v6048_v37  ;;  %v2108_v33 = vld [vmem:[%s9698_s6 + $0x2a0] sm:$0xff]  ;;  %v3126_v32 = vand.u32 31, %v3078_v46  ;;  %v2047_v46 = vld [vmem:[%s9698_s6 + $0xb8] sm:$0xff] }
 0x89d   : > { %v6072_v14 = vcombine.high %v2104_v55, %v2108_v33  ;;  %v6071_v35 = vcombine.low %v2104_v55, %v2108_v33  ;;  %v2096_v37 = vld [vmem:[%s9698_s6 + $0x240] sm:$0xff] }
 0x89e   : > { %5990 = vmatmul.mubr.msk.bf16.vlgmr.msra.gmra.mxu1 %vm1967_vm9, %v1234_v45  ;;  %v2100_v47 = vld [vmem:[%s9698_s6 + $0x260] sm:$0xff]  ;;  %v6065_v45 = vcombine.low %v2097_v57, %v2101_v39 }
 0x89f   : > { %2797 = vmatpush1.bf16.msra.mxu1 %v6047_v2  ;;  %v6063_v16 = vcombine.low %v2096_v37, %v2100_v47  ;;  %v6064_v20 = vcombine.high %v2096_v37, %v2100_v47  ;;  %v6066_v2 = vcombine.high %v2097_v57, %v2101_v39 }
 0x8a0   : > { %2798 = vmatprep.subr.bf16.mxu1 %v6040_v44  ;;  %v2088_v44 = vld [vmem:[%s9698_s6 + $0x200] sm:$0xff] }
 0x8a1   : > { %2865 = vmatprep.subr.bf16.mxu0 %v6066_v2  ;;  %v6055_v24 = vcombine.low %v2088_v44, %v2092_v15  ;;  %v2074_v2 = vld [vmem:[%s9698_s6 + $0x190] sm:$0xff] }
 0x8a2   : > { %2866 = vmatpush2.bf16.msra.mxu0 %v6065_v45 }
 0x8a3   : > { %2799 = vmatpush1.bf16.msra.mxu1 %v6039_v56  ;;  %v6056_v56 = vcombine.high %v2088_v44, %v2092_v15  ;;  %v2075_v15 = vld [vmem:[%s9698_s6 + $0x198] sm:$0xff] }
 0x8a4   : > { %2800 = vmatprep.subr.bf16.mxu1 %v6032_v54  ;;  %v2093_v54 = vld [vmem:[%s9698_s6 + $0x228] sm:$0xff] }
 0x8a5   : > { %v6058_v31 = vcombine.high %v2089_v43, %v2093_v54  ;;  %v6057_v36 = vcombine.low %v2089_v43, %v2093_v54  ;;  %v2079_v43 = vld [vmem:[%s9698_s6 + $0x1b8] sm:$0xff] }
 0x8a7   : > { %2801 = vmatpush1.bf16.msra.mxu1 %v6031_v23  ;;  %v7379_v23 = vld [vmem:[%s9698_s6 + $0x1d0] sm:$0xff]  ;;  %2867 = vmatprep.subr.bf16.mxu0 %v6058_v31 }
 0x8a8   : > { %2802 = vmatprep.subr.bf16.mxu1 %v6024_v61  ;;  %v7384_v61 = vld [vmem:[%s9698_s6 + $0x1f0] sm:$0xff]  ;;  %2868 = vmatpush2.bf16.msra.mxu0 %v6057_v36  ;;  %v6046_v36 = vcombine.high %v2075_v15, %v2079_v43 }
 0x8ab   : > { %2803 = vmatpush1.bf16.msra.mxu1 %v6023_v38  ;;  %v6051_v38 = vcombine.low %v7379_v23, %v7384_v61 }
 0x8ac   : > { %2804 = vmatprep.subr.bf16.mxu1 %v6016_v41  ;;  %v6052_v41 = vcombine.high %v7379_v23, %v7384_v61  ;;  %v2062_v23 = vld [vmem:[%s9698_s6 + $0x130] sm:$0xff]  ;;  %v2059_v61 = vld [vmem:[%s9698_s6 + $0x118] sm:$0xff] }
 0x8af   : > { %2805 = vmatpush1.bf16.msra.mxu1 %v6015_v51  ;;  %v6054_v51 = vcombine.high %v7389_v0, %v7398_v1  ;;  %v2063_v0 = vld [vmem:[%s9698_s6 + $0x138] sm:$0xff] }
 0x8b0   : > { %2806 = vmatprep.subr.bf16.mxu1 %v6008_v19  ;;  %v3084_v19 = vand.u32 31, %v6457_v6 }
 0x8b1   : > { %2919 = vmatprep.subr.bf16.mxu0 %v6054_v51  ;;  %v2067_v51 = vld [vmem:[%s9698_s6 + $0x158] sm:$0xff] }
 0x8b2   : > { %vm3184_vm11 = vcmp.ne.s32.totalorder %v3084_v19, 31  ;;  %vm3176_vm4 = vcmp.ne.s32.totalorder %v3084_v19, 0  ;;  %v2071_v19 = vld [vmem:[%s9698_s6 + $0x178] sm:$0xff] }
 0x8b3   : > { %2807 = vmatpush1.bf16.msra.mxu1 %v6007_v9  ;;  %v3075_v9 = vadd.s32 384, %v6457_v6  ;;  %vm3280_vm3 = vmpackc.low %vm3185_vm12, %vm3184_vm11  ;;  %vm3188_vm12 = vcmp.ne.s32.totalorder %v3112_v26, 31  ;;  %v6037_v1 = vcombine.low %v2067_v51, %v2071_v19 }
 0x8b4   : > { %2808 = vmatprep.subr.bf16.mxu1 %v6000_v34  ;;  %v3098_v34 = vand.u32 31, %v3074_v50  ;;  %v3284_v12 = vsel %vm3280_vm3, 65537, %v9760_v4  ;;  %vm3208_vm7 = vmpackc.low %vm3177_vm5, %vm3176_vm4  ;;  %vm3180_vm5 = vcmp.ne.s32.totalorder %v3112_v26, 0 }
 0x8b5   : > { %v3105_v42 = vand.u32 31, %v3075_v9  ;;  %v3295_v22 = vrot.slane %v3284_v12, %v6701_v27  ;;  %v3212_v10 = vsel %vm3208_vm7, 65537, %v9760_v4  ;;  %vm3190_vm7 = vcmp.ne.s32.totalorder %v3126_v32, 31 }
 0x8b6   : > { %vm3186_vm15 = vcmp.ne.s32.totalorder %v3098_v34, 31  ;;  %vm3178_vm14 = vcmp.ne.s32.totalorder %v3098_v34, 0  ;;  %v6045_v9 = vcombine.low %v2075_v15, %v2079_v43 }
 0x8b7   : > { %2809 = vmatpush1.bf16.msra.mxu1 %v5999_v13  ;;  %vm3187_vm6 = vcmp.ne.s32.totalorder %v3105_v42, 31  ;;  %v3291_v13 = vrot.slane %v3284_v12, %v6463_v11  ;;  %vm3179_vm9 = vcmp.ne.s32.totalorder %v3105_v42, 0  ;;  %3487 = vrot.lane.b32.xlu1 %v3295_v22, %s6310_s30  ;;  %v6038_v42 = vcombine.high %v2067_v51, %v2071_v19  ;;  %v2058_v12 = vld [vmem:[%s9698_s6 + $0x110] sm:$0xff] }
 0x8b8   : > { %2810 = vmatprep.subr.bf16.mxu1 %v5992_v53  ;;  %vm3281_vm1 = vmpackc.low %vm3187_vm6, %vm3186_vm15  ;;  %v6027_v52 = vcombine.low %v2058_v12, %v2062_v23 }
 0x8b9   : > { %v3285_v53 = vsel %vm3281_vm1, 65537, %v9760_v4  ;;  %3485 = vrot.lane.b32.xlu0 %v3291_v13, %s6310_s30  ;;  %vm3209_vm11 = vmpackc.low %vm3179_vm9, %vm3178_vm14  ;;  %vm3182_vm9 = vcmp.ne.s32.totalorder %v3126_v32, 0 }
 0x8ba   : > { %v3299_v17 = vrot.slane %v3285_v53, %v6463_v11  ;;  %v3213_v7 = vsel %vm3209_vm11, 65537, %v9760_v4 }
 0x8bb   : > { %2811 = vmatpush1.bf16.msra.mxu1 %v5991_v18  ;;  %v7417_v18 = vrot.slane %v3212_v10, %v6701_v27 }
 0x8bc   : > { %2812 = vmatprep.subr.bf16.mxu1 %v6112_v25  ;;  %v7421_v25 = vrot.slane %v3212_v10, %v6463_v11  ;;  %v2051_v10 = vld [vmem:[%s9698_s6 + $0xd8] sm:$0xff] }
 0x8bd   : > { %9908 = vst [vmem:[#allocation2_spill] sm:$0xff] %v7417_v18  ;;  %3489 = vrot.lane.b32.xlu0 %v3299_v17, %s6310_s30  ;;  %3445 = vrot.lane.b32.xlu1 %v7417_v18, %s6311_s26 }
 0x8be   : > { %9909 = vst [vmem:[#allocation3_spill] sm:$0xff] %v7421_v25 }
 0x8bf   : > { %2813 = vmatpush2.bf16.msra.mxu1 %v6111_v49  ;;  %v3077_v49 = vadd.s32 640, %v6457_v6 }
 0x8c0   : > { %2814 = vmatprep.subr.bf16.mxu1 %v6104_v58  ;;  %v7431_v58 = vrot.slane %v3213_v7, %v6463_v11 }
 0x8c1   : > { %3443 = vrot.lane.b32.xlu0 %v7421_v25, %s6311_s26  ;;  %3402 = vrot.lane.b32.xlu1 %v3291_v13, %s9910_s28  ;;  %v3119_v29 = vand.u32 31, %v3077_v49  ;;  %v6029_v49 = vcombine.low %v2059_v61, %v2063_v0 }
 0x8c3   : > { %2815 = vmatpush2.bf16.msra.mxu1 %v6103_v48  ;;  %vm3189_vm3 = vcmp.ne.s32.totalorder %v3119_v29, 31  ;;  %vm3181_vm15 = vcmp.ne.s32.totalorder %v3119_v29, 0 }
 0x8c4   : > { %2816 = vmatprep.subr.bf16.mxu1 %v6096_v30  ;;  %vm3282_vm4 = vmpackc.low %vm3189_vm3, %vm3188_vm12  ;;  %vm3052_vm3 = vcmask 269312  }
 0x8c5   : > { %3447 = vrot.lane.b32.xlu0 %v7431_v58, %s6311_s26  ;;  %3406 = vrot.lane.b32.xlu1 %v3299_v17, %s9910_s28  ;;  %v3286_v48 = vsel %vm3282_vm4, 65537, %v9760_v4  ;;  %vm3210_vm6 = vmpackc.low %vm3181_vm15, %vm3180_vm5  ;;  %vm3501_vm5 = vcmask 539648  }
 0x8c6   : > { %v3307_v30 = vrot.slane %v3286_v48, %v6463_v11  ;;  %v3214_v28 = vsel %vm3210_vm6, 65537, %v9760_v4  ;;  %v7484_v37 = vrot.slane %v3286_v48, %v6701_v27  ;;  %v2042_v48 = vld [vmem:[%s9698_s6 + $0x90] sm:$0xff] }
 0x8c7   : > { %2817 = vmatpush2.bf16.msra.mxu1 %v6095_v62  ;;  %v3079_v62 = vadd.s32 896, %v6457_v6  ;;  %v7455_v63 = vrot.slane %v3214_v28, %v6463_v11  ;;  %v7525_v5 = vrot.slane %v3214_v28, %v6701_v27  ;;  %v2043_v28 = vld [vmem:[%s9698_s6 + $0x98] sm:$0xff] }
 0x8c8   : > { %2818 = vmatprep.subr.bf16.mxu1 %v6088_v3  ;;  %v3303_v3 = vrot.slane %v3285_v53, %v6701_v27  ;;  %v2054_v53 = vld [vmem:[%s9698_s6 + $0xf0] sm:$0xff] }
 0x8c9   : > { %3404 = vrot.lane.b32.xlu0 %v3295_v22, %s9910_s28  ;;  %3322 = vrot.lane.b32.xlu1 %v3295_v22, %s9890_s22  ;;  %v2050_v22 = vld [vmem:[%s9698_s6 + $0xd0] sm:$0xff] }
 0x8ca   : > { %v6020_v26 = vcombine.high %v2050_v22, %v2054_v53 }
 0x8cb   : > { %2819 = vmatpush2.bf16.msra.mxu1 %v6087_v60  ;;  %v3133_v60 = vand.u32 31, %v3079_v62  ;;  %v6019_v62 = vcombine.low %v2050_v22, %v2054_v53 }
 0x8cc   : > { %2820 = vmatprep.subr.bf16.mxu1 %v6080_v59  ;;  %v7459_v59 = vrot.slane %v3213_v7, %v6701_v27 }
 0x8cd   : > { %3320 = vrot.lane.b32.xlu0 %v3291_v13, %s9890_s22  ;;  %3361 = vrot.lane.b32.xlu1 %v7421_v25, %s9911_s4  ;;  %vm3191_vm1 = vcmp.ne.s32.totalorder %v3133_v60, 31  ;;  %vm3183_vm11 = vcmp.ne.s32.totalorder %v3133_v60, 0  ;;  %v6030_v13 = vcombine.high %v2059_v61, %v2063_v0  ;;  %v6014_v60 = vcombine.high %v2043_v28, %v2047_v46 }
 0x8ce   : > { %vm3283_vm14 = vmpackc.low %vm3191_vm1, %vm3190_vm7 }
 0x8cf   : > { %2821 = vmatpush2.bf16.msra.mxu1 %v6079_v21  ;;  %v7469_v6 = vsel %vm3283_vm14, 65537, %v9760_v4  ;;  %vm3211_vm12 = vmpackc.low %vm3183_vm11, %vm3182_vm9  ;;  %v1965_v21 = vpop.permute.xlu1 %1964 }
 0x8d0   : > { %2822 = vmatprep.subr.bf16.mxu1 %v6072_v14  ;;  %v7476_v55 = vrot.slane %v7469_v6, %v6463_v11  ;;  %v7479_v33 = vsel %vm3211_vm12, 65537, %v9760_v4  ;;  %v3319_v7 = vrot.slane %v7469_v6, %v6701_v27  ;;  %v2034_v6 = vld [vmem:[%s9698_s6 + $0x50] sm:$0xff]  ;;  %vm9925_vm12 = vcmask 523264  }
 0x8d1   : > { %3324 = vrot.lane.b32.xlu0 %v3299_v17, %s9890_s22  ;;  %3365 = vrot.lane.b32.xlu1 %v7431_v58, %s9911_s4  ;;  %v7490_v47 = vrot.slane %v7479_v33, %v6463_v11  ;;  %v2078_v11 = vld [vmem:[%s9698_s6 + $0x1b0] sm:$0xff]  ;;  %v2055_v17 = vld [vmem:[%s9698_s6 + $0xf8] sm:$0xff] }
 0x8d2   : > { %v6044_v31 = vcombine.high %v2074_v2, %v2078_v11  ;;  %v6043_v50 = vcombine.low %v2074_v2, %v2078_v11  ;;  %v6022_v29 = vcombine.high %v2051_v10, %v2055_v17  ;;  %v2031_v2 = vld [vmem:[%s9698_s6 + $0x38] sm:$0xff] }
 0x8d3   : > { %2823 = vmatpush2.bf16.msra.mxu1 %v6071_v35 }
 0x8d4   : > { %2824 = vmatprep.subr.bf16.mxu1 %v6064_v20 }
 0x8d5   : > { %3363 = vrot.lane.b32.xlu0 %v7417_v18, %s9911_s4  ;;  %3493 = vrot.lane.b32.xlu1 %v3307_v30, %s6310_s30 }
 0x8d7   : > { %2825 = vmatpush2.bf16.msra.mxu1 %v6063_v16 }
 0x8d8   : > { %2826 = vmatprep.subr.bf16.mxu1 %v6056_v56 }
 0x8d9   : > { %3491 = vrot.lane.b32.xlu0 %v3303_v3, %s6310_s30  ;;  %3451 = vrot.lane.b32.xlu1 %v7455_v63, %s6311_s26 }
 0x8db   : > { %2827 = vmatpush2.bf16.msra.mxu1 %v6055_v24  ;;  %v2066_v24 = vld [vmem:[%s9698_s6 + $0x150] sm:$0xff] }
 0x8dc   : > { %2878 = vmatprep.subr.bf16.mxu1 %v6052_v41  ;;  %v2070_v41 = vld [vmem:[%s9698_s6 + $0x170] sm:$0xff] }
 0x8dd   : > { %3449 = vrot.lane.b32.xlu0 %v7459_v59, %s6311_s26  ;;  %3410 = vrot.lane.b32.xlu1 %v3307_v30, %s9910_s28  ;;  %v6036_v34 = vcombine.high %v2066_v24, %v2070_v41 }
 0x8e1   : > { %3408 = vrot.lane.b32.xlu0 %v3303_v3, %s9910_s28  ;;  %3328 = vrot.lane.b32.xlu1 %v3307_v30, %s9890_s22  ;;  %v2046_v30 = vld [vmem:[%s9698_s6 + $0xb0] sm:$0xff] }
 0x8e2   : > { %v6012_v32 = vcombine.high %v2042_v48, %v2046_v30 }
 0x8e5   : > { %3326 = vrot.lane.b32.xlu0 %v3303_v3, %s9890_s22  ;;  %3369 = vrot.lane.b32.xlu1 %v7455_v63, %s9911_s4  ;;  %v6021_v3 = vcombine.low %v2051_v10, %v2055_v17 }
 0x8e9   : > { %3367 = vrot.lane.b32.xlu0 %v7459_v59, %s9911_s4  ;;  %3497 = vrot.lane.b32.xlu1 %v7476_v55, %s6310_s30 }
 0x8ed   : > { %3495 = vrot.lane.b32.xlu0 %v7484_v37, %s6310_s30  ;;  %3455 = vrot.lane.b32.xlu1 %v7490_v47, %s6311_s26 }
 0x8f1   : > { %3453 = vrot.lane.b32.xlu0 %v7525_v5, %s6311_s26  ;;  %3414 = vrot.lane.b32.xlu1 %v7476_v55, %s9910_s28 }
 0x8f5   : > { %3412 = vrot.lane.b32.xlu0 %v7484_v37, %s9910_s28  ;;  %3332 = vrot.lane.b32.xlu1 %v7476_v55, %s9890_s22  ;;  %v2038_v55 = vld [vmem:[%s9698_s6 + $0x70] sm:$0xff] }
 0x8f6   : > { %v6003_v11 = vcombine.low %v2034_v6, %v2038_v55 }
 0x8f9   : > { %3499 = vrot.lane.b32.xlu0 %v3319_v7, %s6310_s30  ;;  %3373 = vrot.lane.b32.xlu1 %v7490_v47, %s9911_s4  ;;  %s9913_s30 = sld [smem:[#allocation37_spill]] }
 0x8fd   : > { %3330 = vrot.lane.b32.xlu0 %v7484_v37, %s9890_s22  ;;  %3416 = vrot.lane.b32.xlu1 %v3319_v7, %s9910_s28  ;;  %v2027_v37 = vld [vmem:[%s9698_s6 + $0x18] sm:$0xff] }
 0x8ff   : > { %s711_s28 = scalar_lea.vmem %s9913_s30, %s9912_s3 }
 0x901   : > { %3371 = vrot.lane.b32.xlu0 %v7525_v5, %s9911_s4  ;;  %3334 = vrot.lane.b32.xlu1 %v3319_v7, %s9890_s22  ;;  %v2122_v7 = vld [vmem:[%s9698_s6 + $0x310] sm:$0xff] }
 0x95e   : > { %v2011_v14 = vpop.f32.mrf.mxu1 }
 0x95f   : > { %v2012_v35 = vadd.f32 %v2011_v14, %v1965_v21  ;;  %v2039_v14 = vld [vmem:[%s9698_s6 + $0x78] sm:$0xff] }
 0x960   : > { %v2013_v57 = vpop.f32.mrf.mxu1 }
 0x961   : > { %v2014_v16 = vadd.f32 %v2013_v57, %v1965_v21  ;;  %v2018_v20 = vmax.f32 %v2012_v35, 0.0  ;;  %v2035_v21 = vld [vmem:[%s9698_s6 + $0x58] sm:$0xff]  ;;  %v6011_v35 = vcombine.low %v2042_v48, %v2046_v30  ;;  %v6013_v57 = vcombine.low %v2043_v28, %v2047_v46  ;;  %v2114_v46 = vld [vmem:[%s9698_s6 + $0x2d0] sm:$0xff] }
 0x962   : > { %v2015_v39 = vpop.f32.mrf.mxu1  ;;  %v6005_v15 = vcombine.low %v2035_v21, %v2039_v14 }
 0x963   : > { %v2019_v45 = vmax.f32 %v2014_v16, 0.0  ;;  %v7508_v54 = vpack.c.bf16 %v2018_v20, %v2018_v20  ;;  %v6004_v16 = vcombine.high %v2034_v6, %v2038_v55  ;;  %v6006_v20 = vcombine.high %v2035_v21, %v2039_v14  ;;  %v2026_v39 = vld [vmem:[%s9698_s6 + $0x10] sm:$0xff] }
 0x964   : > { %v2016_v44 = vpop.f32.mrf.mxu1  ;;  %v2106_v14 = vld [vmem:[%s9698_s6 + $0x290] sm:$0xff] }
 0x965   : > { %v2021_v56 = vpack.c.bf16 %v2019_v45, %v2019_v45  ;;  %v2030_v45 = vld [vmem:[%s9698_s6 + $0x30] sm:$0xff]  ;;  %v7613_v44 = vrot.slane %v7479_v33, %v6701_v27  ;;  %v2147_v27 = vld [vmem:[%s9698_s6 + $0x3d8] sm:$0xff] }
 0x966   : > { %v5996_v43 = vcombine.high %v2026_v39, %v2030_v45  ;;  %v2151_v33 = vld [vmem:[%s9698_s6 + $0x3f8] sm:$0xff] }
 0x967   : > { %2828 = vmatprep.mubr.bf16.mxu1 %v2021_v56  ;;  %2869 = vmatprep.mubr.bf16.mxu0 %v2021_v56  ;;  %v6118_v19 = vcombine.high %v2147_v27, %v2151_v33 }
 0x968   : > { %2829 = vmatmul.mubr.bf16.vlgmr.msra.gmra.mxu1 %v7508_v54  ;;  %2870 = vmatmul.mubr.bf16.vlgmr.msra.gmra.mxu0 %v7508_v54 }
 0x969   : > { %2879 = vmatpush1.bf16.msra.mxu1 %v6051_v38  ;;  %2920 = vmatpush1.bf16.msra.mxu0 %v6053_v40  ;;  %v6035_v38 = vcombine.low %v2066_v24, %v2070_v41  ;;  %v6028_v40 = vcombine.high %v2058_v12, %v2062_v23  ;;  %v2146_v24 = vld [vmem:[%s9698_s6 + $0x3d0] sm:$0xff]  ;;  %v5997_v41 = vcombine.low %v2027_v37, %v2031_v2 }
 0x96a   : > { %2910 = vmatprep.mubr.bf16.mxu1 %v2021_v56  ;;  %2951 = vmatprep.mubr.bf16.mxu0 %v2021_v56  ;;  %v5998_v56 = vcombine.high %v2027_v37, %v2031_v2  ;;  %v6117_v23 = vcombine.low %v2147_v27, %v2151_v33  ;;  %v2098_v2 = vld [vmem:[%s9698_s6 + $0x250] sm:$0xff] }
 0x96b   : > { %2880 = vmatprep.subr.bf16.mxu1 %v6044_v31  ;;  %2921 = vmatprep.subr.bf16.mxu0 %v6046_v36  ;;  %v2150_v31 = vld [vmem:[%s9698_s6 + $0x3f0] sm:$0xff]  ;;  %v5995_v36 = vcombine.low %v2026_v39, %v2030_v45 }
 0x96c   : > { %3457 = vrot.lane.b32.xlu0 %v7613_v44, %s6311_s26  ;;  %v6116_v51 = vcombine.high %v2146_v24, %v2150_v31  ;;  %v6115_v12 = vcombine.low %v2146_v24, %v2150_v31  ;;  %v2090_v33 = vld [vmem:[%s9698_s6 + $0x210] sm:$0xff] }
 0x96d   : > { %2881 = vmatpush1.bf16.msra.mxu1 %v6043_v50  ;;  %2922 = vmatpush1.bf16.msra.mxu0 %v6045_v9  ;;  %v2138_v50 = vld [vmem:[%s9698_s6 + $0x390] sm:$0xff] }
 0x96e   : > { %2882 = vmatprep.subr.bf16.mxu1 %v6036_v34  ;;  %2923 = vmatprep.subr.bf16.mxu0 %v6038_v42  ;;  %v2142_v9 = vld [vmem:[%s9698_s6 + $0x3b0] sm:$0xff]  ;;  %v2139_v34 = vld [vmem:[%s9698_s6 + $0x398] sm:$0xff] }
 0x96f   : > { %v2143_v42 = vld [vmem:[%s9698_s6 + $0x3b8] sm:$0xff]  ;;  %v6108_v61 = vcombine.high %v2138_v50, %v2142_v9  ;;  %v6107_v22 = vcombine.low %v2138_v50, %v2142_v9 }
 0x970   : > { %3375 = vrot.lane.b32.xlu0 %v7613_v44, %s9911_s4  ;;  %v6110_v0 = vcombine.high %v2139_v34, %v2143_v42  ;;  %v6109_v53 = vcombine.low %v2139_v34, %v2143_v42  ;;  %s9919_s4 = smov 95  }
 0x971   : > { %2883 = vmatpush1.bf16.msra.mxu1 %v6035_v38  ;;  %2924 = vmatpush1.bf16.msra.mxu0 %v6037_v1  ;;  %v2130_v38 = vld [vmem:[%s9698_s6 + $0x350] sm:$0xff] }
 0x972   : > { %2884 = vmatprep.subr.bf16.mxu1 %v6028_v40  ;;  %2925 = vmatprep.subr.bf16.mxu0 %v6030_v13  ;;  %v2134_v1 = vld [vmem:[%s9698_s6 + $0x370] sm:$0xff]  ;;  %v2131_v40 = vld [vmem:[%s9698_s6 + $0x358] sm:$0xff] }
 0x973   : > { %v2135_v13 = vld [vmem:[%s9698_s6 + $0x378] sm:$0xff]  ;;  %v6100_v10 = vcombine.high %v2130_v38, %v2134_v1 }
 0x974   : > { %v6102_v17 = vcombine.high %v2131_v40, %v2135_v13  ;;  %v6101_v48 = vcombine.low %v2131_v40, %v2135_v13 }
 0x975   : > { %2885 = vmatpush1.bf16.msra.mxu1 %v6027_v52  ;;  %2926 = vmatpush1.bf16.msra.mxu0 %v6029_v49  ;;  %v2126_v52 = vld [vmem:[%s9698_s6 + $0x330] sm:$0xff]  ;;  %v2123_v49 = vld [vmem:[%s9698_s6 + $0x318] sm:$0xff] }
 0x976   : > { %2886 = vmatprep.subr.bf16.mxu1 %v6020_v26  ;;  %2927 = vmatprep.subr.bf16.mxu0 %v6022_v29  ;;  %v2127_v26 = vld [vmem:[%s9698_s6 + $0x338] sm:$0xff]  ;;  %v6099_v29 = vcombine.low %v2130_v38, %v2134_v1  ;;  %v6092_v30 = vcombine.high %v2122_v7, %v2126_v52  ;;  %v2023_v38 = vld [vmem:[%s711_s28 + $0x8] sm:$0xff] }
 0x977   : > { %v6094_v28 = vcombine.high %v2123_v49, %v2127_v26  ;;  %v6093_v6 = vcombine.low %v2123_v49, %v2127_v26  ;;  %v2987_v1 = vcombine.high %v2023_v38, %v2023_v38 }
 0x979   : > { %2887 = vmatpush1.bf16.msra.mxu1 %v6019_v62  ;;  %2928 = vmatpush1.bf16.msra.mxu0 %v6021_v3  ;;  %v2118_v62 = vld [vmem:[%s9698_s6 + $0x2f0] sm:$0xff]  ;;  %v2115_v3 = vld [vmem:[%s9698_s6 + $0x2d8] sm:$0xff] }
 0x97a   : > { %2888 = vmatprep.subr.bf16.mxu1 %v6012_v32  ;;  %2929 = vmatprep.subr.bf16.mxu0 %v6014_v60  ;;  %v2119_v32 = vld [vmem:[%s9698_s6 + $0x2f8] sm:$0xff]  ;;  %v6091_v60 = vcombine.low %v2122_v7, %v2126_v52  ;;  %v6084_v55 = vcombine.high %v2114_v46, %v2118_v62 }
 0x97b   : > { %v6086_v21 = vcombine.high %v2115_v3, %v2119_v32  ;;  %v6085_v39 = vcombine.low %v2115_v3, %v2119_v32  ;;  %v7733_v3 = vpop.permute.xlu1 %3487 }
 0x97d   : > { %2889 = vmatpush1.bf16.msra.mxu1 %v6011_v35  ;;  %2930 = vmatpush1.bf16.msra.mxu0 %v6013_v57  ;;  %v2110_v35 = vld [vmem:[%s9698_s6 + $0x2b0] sm:$0xff]  ;;  %v2107_v57 = vld [vmem:[%s9698_s6 + $0x298] sm:$0xff] }
 0x97e   : > { %2890 = vmatprep.subr.bf16.mxu1 %v6004_v16  ;;  %2931 = vmatprep.subr.bf16.mxu0 %v6006_v20  ;;  %v2111_v16 = vld [vmem:[%s9698_s6 + $0x2b8] sm:$0xff]  ;;  %v6083_v20 = vcombine.low %v2114_v46, %v2118_v62  ;;  %v6076_v45 = vcombine.high %v2106_v14, %v2110_v35 }
 0x97f   : > { %v6078_v37 = vcombine.high %v2107_v57, %v2111_v16  ;;  %v6077_v24 = vcombine.low %v2107_v57, %v2111_v16 }
 0x981   : > { %2891 = vmatpush1.bf16.msra.mxu1 %v6003_v11  ;;  %2932 = vmatpush1.bf16.msra.mxu0 %v6005_v15  ;;  %v2102_v11 = vld [vmem:[%s9698_s6 + $0x270] sm:$0xff]  ;;  %v2099_v15 = vld [vmem:[%s9698_s6 + $0x258] sm:$0xff] }
 0x982   : > { %2892 = vmatprep.subr.bf16.mxu1 %v5996_v43  ;;  %2933 = vmatprep.subr.bf16.mxu0 %v5998_v56  ;;  %v2103_v43 = vld [vmem:[%s9698_s6 + $0x278] sm:$0xff]  ;;  %v6075_v56 = vcombine.low %v2106_v14, %v2110_v35  ;;  %v6068_v31 = vcombine.high %v2098_v2, %v2102_v11 }
 0x983   : > { %v6070_v27 = vcombine.high %v2099_v15, %v2103_v43  ;;  %v6069_v50 = vcombine.low %v2099_v15, %v2103_v43 }
 0x985   : > { %2893 = vmatpush1.bf16.msra.mxu1 %v5995_v36  ;;  %2934 = vmatpush1.bf16.msra.mxu0 %v5997_v41  ;;  %v2094_v36 = vld [vmem:[%s9698_s6 + $0x230] sm:$0xff]  ;;  %v2091_v41 = vld [vmem:[%s9698_s6 + $0x218] sm:$0xff] }
 0x986   : > { %2894 = vmatprep.subr.bf16.mxu1 %v6116_v51  ;;  %2935 = vmatprep.subr.bf16.mxu0 %v6118_v19  ;;  %v2095_v51 = vld [vmem:[%s9698_s6 + $0x238] sm:$0xff]  ;;  %v6067_v19 = vcombine.low %v2098_v2, %v2102_v11  ;;  %v6060_v9 = vcombine.high %v2090_v33, %v2094_v36  ;;  %v6059_v42 = vcombine.low %v2090_v33, %v2094_v36 }
 0x987   : > { %v6062_v34 = vcombine.high %v2091_v41, %v2095_v51 }
 0x989   : > { %2895 = vmatpush2.bf16.msra.mxu1 %v6115_v12  ;;  %2936 = vmatpush2.bf16.msra.mxu0 %v6117_v23  ;;  %v6061_v12 = vcombine.low %v2091_v41, %v2095_v51  ;;  %v6312_v23 = vmov 1983009808  }
 0x98a   : > { %2896 = vmatprep.subr.bf16.mxu1 %v6108_v61  ;;  %2937 = vmatprep.subr.bf16.mxu0 %v6110_v0  ;;  %v2972_v61 = vunpack.c.l.s4 %v6312_v23 }
 0x98c   : > { %v2973_v0 = vunpack.c.0.s8 %v2972_v61 }
 0x98d   : > { %2897 = vmatpush2.bf16.msra.mxu1 %v6107_v22  ;;  %2938 = vmatpush2.bf16.msra.mxu0 %v6109_v53 }
 0x98e   : > { %2898 = vmatprep.subr.bf16.mxu1 %v6100_v10  ;;  %2939 = vmatprep.subr.bf16.mxu0 %v6102_v17  ;;  %v2976_v40 = vsub.s32 %v2973_v0, %v6460_v8 }
 0x990   : > { %v7726_v13 = vrot.slane %v2023_v38, %v2976_v40  ;;  %v7728_v22 = vrot.slane %v2987_v1, %v2976_v40 }
 0x991   : > { %2899 = vmatpush2.bf16.msra.mxu1 %v6099_v29  ;;  %2940 = vmatpush2.bf16.msra.mxu0 %v6101_v48  ;;  %v7730_v29 = vpop.permute.xlu0 %3485 }
 0x992   : > { %2900 = vmatprep.subr.bf16.mxu1 %v6092_v30  ;;  %2941 = vmatprep.subr.bf16.mxu0 %v6094_v28  ;;  %vm9871_vm4 = vcmp.ne.s16.totalorder %v7730_v29, 0 }
 0x995   : > { %2901 = vmatpush2.bf16.msra.mxu1 %v6091_v60  ;;  %2942 = vmatpush2.bf16.msra.mxu0 %v6093_v6  ;;  %v7739_v57 = vpop.permute.xlu0 %3489 }
 0x996   : > { %2902 = vmatprep.subr.bf16.mxu1 %v6084_v55  ;;  %2943 = vmatprep.subr.bf16.mxu0 %v6086_v21 }
 0x999   : > { %2903 = vmatpush2.bf16.msra.mxu1 %v6083_v20  ;;  %2944 = vmatpush2.bf16.msra.mxu0 %v6085_v39  ;;  %v7743_v20 = vpop.permute.xlu1 %3445  ;;  %v7746_v39 = vpop.permute.xlu0 %3443 }
 0x99a   : > { %2904 = vmatprep.subr.bf16.mxu1 %v6076_v45  ;;  %2945 = vmatprep.subr.bf16.mxu0 %v6078_v37  ;;  %vm9763_vm15 = vcmp.ne.s16.totalorder %v7746_v39, 0 }
 0x99d   : > { %2905 = vmatpush2.bf16.msra.mxu1 %v6075_v56  ;;  %2946 = vmatpush2.bf16.msra.mxu0 %v6077_v24  ;;  %v7748_v45 = vpop.permute.xlu1 %3402  ;;  %v7750_v37 = vpop.permute.xlu0 %3447 }
 0x99e   : > { %2906 = vmatprep.subr.bf16.mxu1 %v6068_v31  ;;  %2947 = vmatprep.subr.bf16.mxu0 %v6070_v27  ;;  %vm9868_vm7 = vcmp.ne.s16.totalorder %v7748_v45, 0 }
 0x9a1   : > { %2907 = vmatpush2.bf16.msra.mxu1 %v6067_v19  ;;  %2948 = vmatpush2.bf16.msra.mxu0 %v6069_v50  ;;  %v7752_v2 = vpop.permute.xlu1 %3406  ;;  %v7754_v11 = vpop.permute.xlu0 %3404 }
 0x9a2   : > { %2908 = vmatprep.subr.bf16.mxu1 %v6060_v9  ;;  %2949 = vmatprep.subr.bf16.mxu0 %v6062_v34  ;;  %v3002_v9 = vcombine.low %v7726_v13, %v7726_v13 }
 0x9a5   : > { %2909 = vmatpush2.bf16.msra.mxu1 %v6059_v42  ;;  %2950 = vmatpush2.bf16.msra.mxu0 %v6061_v12  ;;  %v7756_v15 = vpop.permute.xlu1 %3322  ;;  %v7758_v43 = vpop.permute.xlu0 %3320 }
 0x9a6   : > { %vm9867_vm14 = vcmp.ne.s16.totalorder %v7758_v43, 0 }
 0x9a8   : > { %2911 = vmatmul.mubr.bf16.vlgmr.msra.gmra.mxu1 %v7508_v54  ;;  %2952 = vmatmul.mubr.bf16.vlgmr.msra.gmra.mxu0 %v7508_v54  ;;  %v2022_v54 = vld [vmem:[%s711_s28] sm:$0xff] }
 0x9a9   : > { %4065 = vmatprep.mubr.bf16.mxu1 %v9760_v4  ;;  %4147 = vmatprep.mubr.bf16.mxu0 %v9760_v4  ;;  %v2970_v53 = vcombine.high %v2022_v54, %v2022_v54  ;;  %v2977_v10 = vrot.slane %v2022_v54, %v2976_v40  ;;  %v7760_v56 = vpop.permute.xlu1 %3361  ;;  %v7762_v24 = vpop.permute.xlu0 %3324 }
 0x9aa   : > { %vm9757_vm9 = vcmp.ne.s16.totalorder %v7760_v56, 0 }
 0x9ab   : > { %v2985_v17 = vcombine.low %v2977_v10, %v2977_v10  ;;  %v2984_v7 = vrot.slane %v2970_v53, %v2976_v40  ;;  %v3003_v53 = vcombine.low %v7728_v22, %v7728_v22 }
 0x9ad   : > { %v2986_v62 = vcombine.low %v2984_v7, %v2984_v7  ;;  %v7764_v31 = vpop.permute.xlu1 %3365  ;;  %v7766_v27 = vpop.permute.xlu0 %3363 }
 0x9b1   : > { %v7768_v33 = vpop.permute.xlu1 %3493  ;;  %v7770_v36 = vpop.permute.xlu0 %3491 }
 0x9b5   : > { %v7772_v41 = vpop.permute.xlu1 %3451  ;;  %v7774_v51 = vpop.permute.xlu0 %3449 }
 0x9b9   : > { %v7776_v19 = vpop.permute.xlu1 %3410  ;;  %v7778_v50 = vpop.permute.xlu0 %3408 }
 0x9bd   : > { %v7782_v34 = vpop.permute.xlu1 %3328  ;;  %v7784_v61 = vpop.permute.xlu0 %3326 }
 0xa28   : > { %v2830_v52 = vpop.f32.mrf.mxu1  ;;  %v2871_v49 = vpop.f32.mrf.mxu0 }
 0xa29   : > { %v2960_v26 = vpack.c.bf16 %v2830_v52, %v2830_v52  ;;  %v2962_v28 = vpack.c.bf16 %v2871_v49, %v2871_v49  ;;  %v7792_v52 = vpop.permute.xlu1 %3369 }
 0xa2a   : > { %v2832_v48 = vpop.f32.mrf.mxu1  ;;  %v2873_v30 = vpop.f32.mrf.mxu0 }
 0xa2b   : > { %v2961_v46 = vpack.c.bf16 %v2832_v48, %v2832_v48  ;;  %v3006_v8 = vsel %vm1500_vm8, %v2960_v26, %v2985_v17  ;;  %v2963_v6 = vpack.c.bf16 %v2873_v30, %v2873_v30  ;;  %v3012_v35 = vsel %vm1500_vm8, %v2962_v28, %v2986_v62  ;;  %v7797_v28 = vpop.permute.xlu0 %3367 }
 0xa2c   : > { %v2875_v32 = vpop.f32.mrf.mxu0  ;;  %3036 = vrot.lane.b32.xlu1 %v3006_v8, %s6313_s23  ;;  %v2834_v60 = vpop.f32.mrf.mxu1 }
 0xa2d   : > { %v3009_v55 = vsel %vm1500_vm8, %v2961_v46, %v2977_v10  ;;  %v3015_v16 = vsel %vm1500_vm8, %v2963_v6, %v2984_v7  ;;  %v7802_v8 = vpop.permute.xlu1 %3497 }
 0xa2e   : > { %v2876_v21 = vpop.f32.mrf.mxu0  ;;  %3038 = vrot.lane.b32.xlu0 %v3009_v55, %s6313_s23  ;;  %v2835_v14 = vpop.f32.mrf.mxu1 }
 0xa30   : > { %3040 = vrot.lane.b32.xlu1 %v3012_v35, %s6313_s23 }
 0xa31   : > { %v7806_v62 = vpop.permute.xlu1 %3455 }
 0xa32   : > { %3042 = vrot.lane.b32.xlu0 %v3015_v16, %s6313_s23 }
 0xa35   : > { %v7810_v60 = vpop.permute.xlu1 %3414 }
 0xa39   : > { %v7814_v55 = vpop.permute.xlu1 %3332 }
 0xa3d   : > { %v7818_v14 = vpop.permute.xlu1 %3373 }
 0xa41   : > { %v7822_v35 = vpop.permute.xlu1 %3416 }
 0xa42   : > { %9915 = vst [vmem:[#allocation5_spill] sm:$0xff] %v7822_v35 }
 0xa68   : > { %v2912_v42 = vpop.f32.mrf.mxu1  ;;  %v2953_v12 = vpop.f32.mrf.mxu0 }
 0xa69   : > { %v2964_v23 = vpack.c.bf16 %v2912_v42, %v2912_v42  ;;  %v2966_v1 = vpack.c.bf16 %v2953_v12, %v2953_v12  ;;  %v7828_v42 = vpop.permute.xlu1 %3334 }
 0xa6a   : > { %v2914_v0 = vpop.f32.mrf.mxu1  ;;  %v2955_v38 = vpop.f32.mrf.mxu0  ;;  %9917 = vst [vmem:[#allocation7_spill] sm:$0xff] %v7828_v42 }
 0xa6b   : > { %v2965_v40 = vpack.c.bf16 %v2914_v0, %v2914_v0  ;;  %v3018_v54 = vsel %vm1500_vm8, %v2964_v23, %v3002_v9  ;;  %v2967_v48 = vpack.c.bf16 %v2955_v38, %v2955_v38  ;;  %v3024_v30 = vsel %vm1500_vm8, %v2966_v1, %v3003_v53 }
 0xa6c   : > { %v2957_v10 = vpop.f32.mrf.mxu0  ;;  %3044 = vrot.lane.b32.xlu1 %v3018_v54, %s6313_s23  ;;  %v2916_v17 = vpop.f32.mrf.mxu1 }
 0xa6d   : > { %v3021_v7 = vsel %vm1500_vm8, %v2965_v40, %v7726_v13  ;;  %v3027_v46 = vsel %vm1500_vm8, %v2967_v48, %v7728_v22  ;;  %v7804_v13 = vpop.permute.xlu0 %3495  ;;  %v7852_v17 = vsel %vm3501_vm5, %v7730_v29, %v7733_v3 }
 0xa6e   : > { %v2958_v49 = vpop.f32.mrf.mxu0  ;;  %3046 = vrot.lane.b32.xlu0 %v3021_v7, %s6313_s23  ;;  %v2917_v26 = vpop.f32.mrf.mxu1  ;;  %vm9857_vm6 = vcmp.ne.s16.totalorder %v7852_v17, 0 }
 0xa70   : > { %3048 = vrot.lane.b32.xlu1 %v3024_v30, %s6313_s23 }
 0xa71   : > { %v7808_v32 = vpop.permute.xlu0 %3453 }
 0xa74   : > { %3050 = vrot.lane.b32.xlu1 %v3027_v46, %s6313_s23  ;;  %v7876_v46 = vsel %vm3501_vm5, %v7733_v3, %v7739_v57 }
 0xa75   : > { %v7812_v6 = vpop.permute.xlu0 %3412  ;;  %9920 = vst [vmem:[#allocation9_spill] sm:$0xff] %v7876_v46  ;;  %vm9756_vm1 = vcmp.ne.s16.totalorder %v7876_v46, 0 }
 0xa79   : > { %v7816_v21 = vpop.permute.xlu0 %3499 }
 0xa7a   : > { %9914 = vst [vmem:[#allocation4_spill] sm:$0xff] %v7816_v21 }
 0xa7d   : > { %v7820_v22 = vpop.permute.xlu0 %3330 }
 0xa81   : > { %v7824_v16 = vpop.permute.xlu0 %3371 }
 0xa85   : > { %v7826_v9 = vpop.permute.xlu0 %3457 }
 0xa86   : > { %9916 = vst [vmem:[#allocation6_spill] sm:$0xff] %v7826_v9 }
 0xa89   : > { %v7830_v12 = vpop.permute.xlu0 %3375 }
 0xa8a   : > { %9918 = vst [vmem:[#allocation8_spill] sm:$0xff] %v7830_v12 }
 0xa9e   : > { %v3037_v23 = vpop.permute.xlu1 %3036 }
 0xa9f   : > { %v7833_v0 = vsel %vm3052_vm3, 0, %v3037_v23 }
 0xaa0   : > { %3652 = vrot.lane.b32.xlu0 %v7833_v0, %s9919_s4  ;;  %v3039_v38 = vpop.permute.xlu0 %3038  ;;  %v3518_v54 = vsel %vm9871_vm4, %v7833_v0, 0  ;;  %v3529_v53 = vrot.slane %v7833_v0, 2  ;;  %v3766_v10 = vrot.slane %v7833_v0, 6  ;;  %v3476_v26 = vsel %vm9763_vm15, %v7833_v0, 0 }
 0xaa1   : > { %v7855_v7 = vsel %vm3052_vm3, %v3037_v23, %v3039_v38  ;;  %v3731_v30 = vrot.slane %v3476_v26, 4  ;;  %v7905_v26 = vsel %vm3501_vm5, %v7739_v57, %v7770_v36 }
 0xaa2   : > { %v3041_v1 = vpop.permute.xlu1 %3040  ;;  %v3519_v49 = vsel %vm9857_vm6, %v7855_v7, 0  ;;  %9922 = vst [vmem:[#allocation10_spill] sm:$0xff] %v7905_v26  ;;  %vm9758_vm11 = vcmp.ne.s16.totalorder %v7905_v26, 0  ;;  %v3530_v57 = vrot.slane %v7855_v7, 2 }
 0xaa3   : > { %v7839_v40 = vsel %vm3052_vm3, %v3039_v38, %v3041_v1  ;;  %v3434_v38 = vsel %vm9868_vm7, %v7833_v0, 0 }
 0xaa4   : > { %3656 = vrot.lane.b32.xlu1 %v7839_v40, %s9919_s4  ;;  %3811 = vrot.lane.b32.xlu0 %v3518_v54, %s6314_s0  ;;  %v7867_v48 = vpop.permute.xlu0 %3042  ;;  %v3687_v3 = vrot.slane %v3434_v38, 2  ;;  %v3352_v54 = vsel %vm9867_vm14, %v7833_v0, 0  ;;  %v7914_v38 = vsel %vm9925_vm12, %v7746_v39, %v7743_v20 }
 0xaa5   : > { %v7880_v23 = vsel %vm3052_vm3, %v3041_v1, %v7867_v48  ;;  %v3520_v1 = vsel %vm9756_vm1, %v7839_v40, 0  ;;  %vm9759_vm1 = vcmp.ne.s16.totalorder %v7914_v38, 0 }
 0xaa8   : > { %3538 = vrot.lane.b32.xlu1 %v3529_v53, %s9893_s5  ;;  %3775 = vrot.lane.b32.xlu0 %v3766_v10, %s6315_s7  ;;  %v3393_v53 = vsel %vm9757_vm9, %v7833_v0, 0  ;;  %v3573_v10 = vrot.slane %v3352_v54, 4  ;;  %vm9926_vm9 = vcmask 277504  }
 0xaa9   : > { %v7927_v54 = vsel %vm9926_vm9, %v7748_v45, %v7754_v11 }
 0xaaa   : > { %vm9762_vm12 = vcmp.ne.s16.totalorder %v7927_v54, 0 }
 0xaac   : > { %3813 = vrot.lane.b32.xlu1 %v3519_v49, %s6314_s0  ;;  %3654 = vrot.lane.b32.xlu0 %v7855_v7, %s9919_s4  ;;  %v3617_v49 = vrot.slane %v3393_v53, 6  ;;  %v3477_v53 = vsel %vm9759_vm1, %v7855_v7, 0  ;;  %vm9928_vm1 = vcmask 523264  }
 0xab0   : > { %3740 = vrot.lane.b32.xlu1 %v3731_v30, %s6311_s26  ;;  %3658 = vrot.lane.b32.xlu0 %v7880_v23, %s9919_s4  ;;  %v3767_v30 = vrot.slane %v7855_v7, 6 }
 0xab4   : > { %3696 = vrot.lane.b32.xlu1 %v3687_v3, %s9921_s8  ;;  %3815 = vrot.lane.b32.xlu0 %v3520_v1, %s6314_s0  ;;  %v3521_v3 = vsel %vm9758_vm11, %v7880_v23, 0  ;;  %v3768_v1 = vrot.slane %v7839_v40, 6  ;;  %vm9927_vm11 = vcmask 15360  }
 0xab8   : > { %3582 = vrot.lane.b32.xlu1 %v3573_v10, %s9923_s24  ;;  %3626 = vrot.lane.b32.xlu0 %v3617_v49, %s9924_s1  ;;  %v3732_v10 = vrot.slane %v3477_v53, 4  ;;  %v3531_v49 = vrot.slane %v7839_v40, 2  ;;  %v7951_v53 = vsel %vm9928_vm1, %v7743_v20, %v7750_v37  ;;  %v3532_v20 = vrot.slane %v7880_v23, 2 }
 0xab9   : > { %vm9930_vm1 = vcmask 277504  }
 0xabc   : > { %3777 = vrot.lane.b32.xlu1 %v3767_v30, %s6315_s7  ;;  %3817 = vrot.lane.b32.xlu0 %v3521_v3, %s6314_s0  ;;  %v7939_v30 = vsel %vm9927_vm11, %v7758_v43, %v7756_v15  ;;  %v3435_v3 = vsel %vm9762_vm12, %v7855_v7, 0  ;;  %vm9929_vm11 = vcmask 261120   ;;  %vm9768_vm12 = vcmp.ne.s16.totalorder %v7951_v53, 0 }
 0xabd   : > { %vm9783_vm9 = vcmp.ne.s16.totalorder %v7939_v30, 0  ;;  %v7956_v4 = vsel %vm9929_vm11, %v7760_v56, %v7766_v27 }
 0xabe   : > { %vm9769_vm15 = vcmp.ne.s16.totalorder %v7956_v4, 0 }
 0xabf   : > { %v3394_v26 = vsel %vm9769_vm15, %v7855_v7, 0  ;;  %vm9932_vm15 = vcmask 261120  }
 0xac0   : > { %3540 = vrot.lane.b32.xlu1 %v3530_v57, %s9893_s5  ;;  %3779 = vrot.lane.b32.xlu0 %v3768_v1, %s6315_s7  ;;  %v3688_v57 = vrot.slane %v3435_v3, 2  ;;  %v3769_v1 = vrot.slane %v7880_v23, 6  ;;  %v7969_v3 = vsel %vm9930_vm1, %v7754_v11, %v7752_v2  ;;  %vm9931_vm1 = vcmask 15360  }
 0xac1   : > { %vm9770_vm11 = vcmp.ne.s16.totalorder %v7969_v3, 0  ;;  %v7983_v11 = vsel %vm9931_vm1, %v7756_v15, %v7762_v24 }
 0xac2   : > { %v3436_v46 = vsel %vm9770_vm11, %v7839_v40, 0  ;;  %vm9933_vm11 = vcmask 523264  }
 0xac4   : > { %3742 = vrot.lane.b32.xlu1 %v3732_v10, %s6311_s26  ;;  %3542 = vrot.lane.b32.xlu0 %v3531_v49, %s9893_s5  ;;  %v3353_v10 = vsel %vm9783_vm9, %v7855_v7, 0  ;;  %vm9949_vm9 = vcmask 261120  }
 0xac5   : > { %v3574_v49 = vrot.slane %v3353_v10, 4 }
 0xac8   : > { %3698 = vrot.lane.b32.xlu1 %v3688_v57, %s9921_s8  ;;  %3781 = vrot.lane.b32.xlu0 %v3769_v1, %s6315_s7  ;;  %v3478_v57 = vsel %vm9768_vm12, %v7839_v40, 0  ;;  %v3618_v1 = vrot.slane %v3394_v26, 6  ;;  %vm9771_vm12 = vcmp.ne.s16.totalorder %v7983_v11, 0  ;;  %v7994_v26 = vsel %vm9932_vm15, %v7766_v27, %v7764_v31 }
 0xac9   : > { %v3733_v10 = vrot.slane %v3478_v57, 4  ;;  %v3354_v15 = vsel %vm9771_vm12, %v7839_v40, 0  ;;  %vm9772_vm1 = vcmp.ne.s16.totalorder %v7994_v26, 0  ;;  %v8004_v57 = vsel %vm9933_vm11, %v7750_v37, %v7774_v51 }
 0xaca   : > { %9934 = vst [vmem:[#allocation11_spill] sm:$0xff] %v8004_v57  ;;  %vm9773_vm15 = vcmp.ne.s16.totalorder %v8004_v57, 0  ;;  %vm9935_vm12 = vcmask 277504  }
 0xacc   : > { %3584 = vrot.lane.b32.xlu1 %v3574_v49, %s9923_s24  ;;  %3544 = vrot.lane.b32.xlu0 %v3532_v20, %s9893_s5  ;;  %v3689_v49 = vrot.slane %v3436_v46, 2  ;;  %v3575_v20 = vrot.slane %v3354_v15, 4  ;;  %v3395_v46 = vsel %vm9772_vm1, %v7839_v40, 0  ;;  %v8024_v15 = vsel %vm3501_vm5, %v7770_v36, %v7768_v33 }
 0xacd   : > { %v3619_v27 = vrot.slane %v3395_v46, 6  ;;  %9936 = vst [vmem:[#allocation12_spill] sm:$0xff] %v8024_v15  ;;  %vm9937_vm1 = vcmask 15360  }
 0xad0   : > { %3628 = vrot.lane.b32.xlu1 %v3618_v1, %s9924_s1  ;;  %3744 = vrot.lane.b32.xlu0 %v3733_v10, %s6311_s26  ;;  %v8014_v1 = vsel %vm9935_vm12, %v7752_v2, %v7778_v50  ;;  %v3479_v10 = vsel %vm9773_vm15, %v7880_v23, 0  ;;  %v8029_v2 = vsel %vm9937_vm1, %v7762_v24, %v7784_v61  ;;  %vm9781_vm12 = vcmp.ne.s16.totalorder %v8024_v15, 0 }
 0xad1   : > { %vm9774_vm11 = vcmp.ne.s16.totalorder %v8014_v1, 0  ;;  %9938 = vst [vmem:[#allocation13_spill] sm:$0xff] %v8029_v2  ;;  %vm9780_vm15 = vcmp.ne.s16.totalorder %v8029_v2, 0  ;;  %vm9939_vm1 = vcmask 261120  }
 0xad2   : > { %v3437_v46 = vsel %vm9774_vm11, %v7880_v23, 0  ;;  %v8046_v24 = vsel %vm9939_vm1, %v7764_v31, %v7797_v28  ;;  %vm9941_vm1 = vcmask 523264  }
 0xad3   : > { %v3690_v36 = vrot.slane %v3437_v46, 2  ;;  %9940 = vst [vmem:[#allocation14_spill] sm:$0xff] %v8046_v24  ;;  %vm9779_vm11 = vcmp.ne.s16.totalorder %v8046_v24, 0 }
 0xad4   : > { %3700 = vrot.lane.b32.xlu0 %v3689_v49, %s9921_s8  ;;  %v3734_v49 = vrot.slane %v3479_v10, 4  ;;  %v3396_v31 = vsel %vm9779_vm11, %v7880_v23, 0 }
 0xad5   : > { %v3620_v57 = vrot.slane %v3396_v31, 6 }
 0xad8   : > { %3586 = vrot.lane.b32.xlu0 %v3575_v20, %s9923_s24 }
 0xadc   : > { %3630 = vrot.lane.b32.xlu0 %v3619_v27, %s9924_s1  ;;  %v3355_v27 = vsel %vm9780_vm15, %v7880_v23, 0  ;;  %vm9943_vm15 = vcmask 277504  }
 0xade   : > { %v3045_v37 = vpop.permute.xlu1 %3044 }
 0xadf   : > { %v8033_v20 = vsel %vm3052_vm3, %v7867_v48, %v3045_v37 }
 0xae0   : > { %3660 = vrot.lane.b32.xlu1 %v8033_v20, %s9919_s4  ;;  %3746 = vrot.lane.b32.xlu0 %v3734_v49, %s6311_s26  ;;  %v3522_v48 = vsel %vm9781_vm12, %v8033_v20, 0  ;;  %v3770_v10 = vrot.slane %v8033_v20, 6  ;;  %v3576_v49 = vrot.slane %v3355_v27, 4  ;;  %v3533_v2 = vrot.slane %v8033_v20, 2 }
 0xae1   : > { %vm9946_vm12 = vcmask 15360  }
 0xae2   : > { %v3049_v46 = vpop.permute.xlu1 %3048 }
 0xae4   : > { %3819 = vrot.lane.b32.xlu1 %v3522_v48, %s6314_s0  ;;  %3702 = vrot.lane.b32.xlu0 %v3690_v36, %s9921_s8  ;;  %v3047_v48 = vpop.permute.xlu0 %3046  ;;  %v8069_v36 = vsel %vm9941_vm1, %v7774_v51, %v7772_v41  ;;  %v8085_v51 = vsel %vm9943_vm15, %v7778_v50, %v7776_v19  ;;  %v8110_v50 = vsel %vm9946_vm12, %v7784_v61, %v7782_v34 }
 0xae5   : > { %9942 = vst [vmem:[#allocation15_spill] sm:$0xff] %v8069_v36  ;;  %v8072_v27 = vsel %vm3052_vm3, %v3045_v37, %v3047_v48  ;;  %vm9782_vm11 = vcmp.ne.s16.totalorder %v8069_v36, 0  ;;  %9944 = vst [vmem:[#allocation16_spill] sm:$0xff] %v8085_v51  ;;  %vm9846_vm15 = vcmp.ne.s16.totalorder %v8085_v51, 0  ;;  %vm9793_vm12 = vcmp.ne.s16.totalorder %v8110_v50, 0 }
 0xae6   : > { %v3480_v31 = vsel %vm9782_vm11, %v8033_v20, 0  ;;  %9947 = vst [vmem:[#allocation18_spill] sm:$0xff] %v8110_v50 }
 0xae8   : > { %3783 = vrot.lane.b32.xlu1 %v3770_v10, %s6315_s7  ;;  %3588 = vrot.lane.b32.xlu0 %v3576_v49, %s9923_s24  ;;  %v8075_v10 = vsel %vm3052_vm3, %v3047_v48, %v3049_v46  ;;  %v3051_v49 = vpop.permute.xlu1 %3050 }
 0xae9   : > { %v8093_v37 = vsel %vm3052_vm3, %v3049_v46, %v3051_v49  ;;  %v8115_v46 = vsel %vm3501_vm5, %v7802_v8, %v7816_v21 }
 0xaea   : > { %9948 = vst [vmem:[#allocation19_spill] sm:$0xff] %v8115_v46  ;;  %vm9791_vm11 = vcmp.ne.s16.totalorder %v8115_v46, 0  ;;  %v3773_v50 = vrot.slane %v8093_v37, 6 }
 0xaec   : > { %3546 = vrot.lane.b32.xlu1 %v3533_v2, %s9893_s5  ;;  %3632 = vrot.lane.b32.xlu0 %v3620_v57, %s9924_s1  ;;  %v8090_v57 = vsel %vm3501_vm5, %v7768_v33, %v7804_v13  ;;  %v8096_v2 = vsel %vm3052_vm3, %v3051_v49, 0  ;;  %v3735_v33 = vrot.slane %v3480_v31, 4  ;;  %v3438_v49 = vsel %vm9846_vm15, %v8033_v20, 0 }
 0xaed   : > { %9945 = vst [vmem:[#allocation17_spill] sm:$0xff] %v8090_v57  ;;  %vm9786_vm1 = vcmp.ne.s16.totalorder %v8090_v57, 0  ;;  %v3691_v61 = vrot.slane %v3438_v49, 2  ;;  %v8130_v31 = vsel %vm9949_vm9, %v7797_v28, %v7792_v52  ;;  %v3525_v57 = vsel %vm9791_vm11, %v8093_v37, 0 }
 0xaee   : > { %v3523_v48 = vsel %vm9786_vm1, %v8072_v27, 0  ;;  %9950 = vst [vmem:[#allocation20_spill] sm:$0xff] %v8130_v31  ;;  %vm9792_vm1 = vcmp.ne.s16.totalorder %v8130_v31, 0  ;;  %v3771_v49 = vrot.slane %v8072_v27, 6  ;;  %vm9951_vm9 = vcmask 523264  }
 0xaef   : > { %v3397_v28 = vsel %vm9792_vm1, %v8033_v20, 0 }
 0xaf0   : > { %3664 = vrot.lane.b32.xlu1 %v8075_v10, %s9919_s4  ;;  %3662 = vrot.lane.b32.xlu0 %v8072_v27, %s9919_s4  ;;  %v3621_v46 = vrot.slane %v3397_v28, 6 }
 0xaf4   : > { %3668 = vrot.lane.b32.xlu1 %v8096_v2, %s9919_s4  ;;  %3666 = vrot.lane.b32.xlu0 %v8093_v37, %s9919_s4 }
 0xaf8   : > { %3748 = vrot.lane.b32.xlu1 %v3735_v33, %s6311_s26  ;;  %3821 = vrot.lane.b32.xlu0 %v3523_v48, %s6314_s0  ;;  %v3356_v33 = vsel %vm9793_vm12, %v8033_v20, 0  ;;  %vm9954_vm12 = vcmask 277504  }
 0xaf9   : > { %v3577_v48 = vrot.slane %v3356_v33, 4  ;;  %v3534_v33 = vrot.slane %v8072_v27, 2 }
 0xafc   : > { %3704 = vrot.lane.b32.xlu1 %v3691_v61, %s9921_s8  ;;  %3825 = vrot.lane.b32.xlu0 %v3525_v57, %s6314_s0  ;;  %v8151_v57 = vsel %vm9951_vm9, %v7772_v41, %v7808_v32  ;;  %v8156_v61 = vsel %vm3501_vm5, %v7804_v13, %v7802_v8  ;;  %v8166_v41 = vsel %vm9954_vm12, %v7776_v19, %v7812_v6  ;;  %vm9795_vm9 = vcmp.ne.s16.totalorder %v7816_v21, 0 }
 0xafd   : > { %9952 = vst [vmem:[#allocation21_spill] sm:$0xff] %v8151_v57  ;;  %9953 = vst [vmem:[#allocation22_spill] sm:$0xff] %v8156_v61  ;;  %vm9796_vm11 = vcmp.ne.s16.totalorder %v8151_v57, 0  ;;  %vm9794_vm1 = vcmp.ne.s16.totalorder %v8156_v61, 0  ;;  %vm9798_vm5 = vcmp.ne.s16.totalorder %v8166_v41, 0  ;;  %vm9956_vm12 = vcmask 15360  }
 0xafe   : > { %9955 = vst [vmem:[#allocation23_spill] sm:$0xff] %v8166_v41  ;;  %v3524_v8 = vsel %vm9794_vm1, %v8075_v10, 0  ;;  %v3481_v13 = vsel %vm9796_vm11, %v8072_v27, 0  ;;  %v8181_v19 = vsel %vm9956_vm12, %v7782_v34, %v7820_v22  ;;  %vm9958_vm12 = vcmask 261120  }
 0xaff   : > { %9957 = vst [vmem:[#allocation24_spill] sm:$0xff] %v8181_v19  ;;  %vm9797_vm1 = vcmp.ne.s16.totalorder %v8181_v19, 0  ;;  %v8196_v34 = vsel %vm9958_vm12, %v7792_v52, %v7824_v16  ;;  %vm9960_vm11 = vcmask 523264  }
 0xb00   : > { %3590 = vrot.lane.b32.xlu1 %v3577_v48, %s9923_s24  ;;  %3785 = vrot.lane.b32.xlu0 %v3771_v49, %s6315_s7  ;;  %v3439_v48 = vsel %vm9798_vm5, %v8072_v27, 0  ;;  %v3772_v49 = vrot.slane %v8075_v10, 6  ;;  %9959 = vst [vmem:[#allocation25_spill] sm:$0xff] %v8196_v34  ;;  %v8210_v52 = vsel %vm9960_vm11, %v7808_v32, %v7806_v62  ;;  %vm9962_vm12 = vmmov %vm9960_vm11  ;;  %vm9964_vm11 = vcmask 277504  }
 0xb01   : > { %v3692_v28 = vrot.slane %v3439_v48, 2  ;;  %9961 = vst [vmem:[#allocation26_spill] sm:$0xff] %v8210_v52 }
 0xb04   : > { %3634 = vrot.lane.b32.xlu1 %v3621_v46, %s9924_s1  ;;  %3789 = vrot.lane.b32.xlu0 %v3773_v50, %s6315_s7  ;;  %v3736_v50 = vrot.slane %v3481_v13, 4  ;;  %v3526_v46 = vsel %vm9795_vm9, %v8096_v2, 0  ;;  %vm9801_vm9 = vcmp.ne.s16.totalorder %v8196_v34, 0  ;;  %v3774_v13 = vrot.slane %v8096_v2, 6 }
 0xb05   : > { %v3398_v48 = vsel %vm9801_vm9, %v8072_v27, 0 }
 0xb08   : > { %3823 = vrot.lane.b32.xlu1 %v3524_v8, %s6314_s0  ;;  %3548 = vrot.lane.b32.xlu0 %v3534_v33, %s9893_s5  ;;  %v3357_v33 = vsel %vm9797_vm1, %v8072_v27, 0  ;;  %vm9809_vm1 = vcmp.ne.s16.totalorder %v8210_v52, 0 }
 0xb0c   : > { %3827 = vrot.lane.b32.xlu1 %v3526_v46, %s6314_s0  ;;  %3750 = vrot.lane.b32.xlu0 %v3736_v50, %s6311_s26  ;;  %v3578_v50 = vrot.slane %v3357_v33, 4  ;;  %v8215_v46 = vsel %vm9962_vm12, %v7806_v62, %v7826_v9  ;;  %v3622_v33 = vrot.slane %v3398_v48, 6  ;;  %v8230_v62 = vsel %vm9964_vm11, %v7812_v6, %v7810_v60  ;;  %vm9966_vm12 = vmmov %vm9964_vm11 }
 0xb0d   : > { %9963 = vst [vmem:[#allocation27_spill] sm:$0xff] %v8215_v46  ;;  %vm9806_vm5 = vcmp.ne.s16.totalorder %v8215_v46, 0  ;;  %9965 = vst [vmem:[#allocation28_spill] sm:$0xff] %v8230_v62  ;;  %vm9815_vm11 = vcmp.ne.s16.totalorder %v8230_v62, 0 }
 0xb0e   : > { %v3483_v21 = vsel %vm9806_vm5, %v8093_v37, 0 }
 0xb0f   : > { %v3738_v34 = vrot.slane %v3483_v21, 4 }
 0xb10   : > { %3787 = vrot.lane.b32.xlu1 %v3772_v49, %s6315_s7  ;;  %3706 = vrot.lane.b32.xlu0 %v3692_v28, %s9921_s8  ;;  %v3535_v28 = vrot.slane %v8075_v10, 2 }
 0xb12   : > { %v8204_v8 = vpop.permute.xlu0 %3652 }
 0xb14   : > { %3791 = vrot.lane.b32.xlu1 %v3774_v13, %s6315_s7  ;;  %3592 = vrot.lane.b32.xlu0 %v3578_v50, %s9923_s24  ;;  %v8235_v13 = vsel %vm9966_vm12, %v7810_v60, %v7822_v35  ;;  %v3482_v50 = vsel %vm9809_vm1, %v8075_v10, 0  ;;  %vm9968_vm12 = vcmask 15360  }
 0xb15   : > { %9967 = vst [vmem:[#allocation29_spill] sm:$0xff] %v8235_v13  ;;  %vm9812_vm9 = vcmp.ne.s16.totalorder %v8235_v13, 0  ;;  %v3737_v48 = vrot.slane %v3482_v50, 4  ;;  %v8254_v52 = vsel %vm9968_vm12, %v7820_v22, %v7814_v55  ;;  %vm9970_vm5 = vmmov %vm9968_vm12 }
 0xb16   : > { %v8224_v49 = vpop.permute.xlu1 %3656  ;;  %v3812_v32 = vpop.permute.xlu0 %3811  ;;  %9969 = vst [vmem:[#allocation30_spill] sm:$0xff] %v8254_v52  ;;  %v3441_v46 = vsel %vm9812_vm9, %v8093_v37, 0  ;;  %vm9823_vm12 = vcmp.ne.s16.totalorder %v8254_v52, 0 }
 0xb17   : > { %v3694_v50 = vrot.slane %v3441_v46, 2 }
 0xb18   : > { %3550 = vrot.lane.b32.xlu1 %v3535_v28, %s9893_s5  ;;  %3636 = vrot.lane.b32.xlu0 %v3622_v33, %s9924_s1  ;;  %v8259_v28 = vsel %vm9970_vm5, %v7814_v55, %v7828_v42  ;;  %v3440_v33 = vsel %vm9815_vm11, %v8075_v10, 0  ;;  %vm9972_vm5 = vcmask 261120  }
 0xb19   : > { %9971 = vst [vmem:[#allocation31_spill] sm:$0xff] %v8259_v28  ;;  %vm9818_vm1 = vcmp.ne.s16.totalorder %v8259_v28, 0  ;;  %v3693_v55 = vrot.slane %v3440_v33, 2  ;;  %v8276_v62 = vsel %vm9972_vm5, %v7824_v16, %v7818_v14  ;;  %vm9974_vm9 = vmmov %vm9972_vm5 }
 0xb1a   : > { %v8247_v6 = vpop.permute.xlu1 %3538  ;;  %v8249_v60 = vpop.permute.xlu0 %3775  ;;  %9973 = vst [vmem:[#allocation32_spill] sm:$0xff] %v8276_v62  ;;  %v3359_v13 = vsel %vm9818_vm1, %v8093_v37, 0  ;;  %vm9840_vm5 = vcmp.ne.s16.totalorder %v8276_v62, 0  ;;  %vm9829_vm1 = vcmp.ne.s16.totalorder %v7826_v9, 0 }
 0xb1b   : > { %v3580_v33 = vrot.slane %v3359_v13, 4  ;;  %v3399_v52 = vsel %vm9840_vm5, %v8075_v10, 0  ;;  %vm9976_vm5 = vcmask 523264  }
 0xb1c   : > { %3752 = vrot.lane.b32.xlu1 %v3737_v48, %s6311_s26  ;;  %3754 = vrot.lane.b32.xlu0 %v3738_v34, %s6311_s26  ;;  %v8281_v48 = vsel %vm9974_vm9, %v7818_v14, %v7830_v12  ;;  %v3358_v34 = vsel %vm9823_vm12, %v8075_v10, 0  ;;  %vm9864_vm9 = vcmask 506880   ;;  %v3623_v13 = vrot.slane %v3399_v52, 6  ;;  %vm9977_vm15 = vmmov %vm9976_vm5 }
 0xb1d   : > { %9975 = vst [vmem:[#allocation33_spill] sm:$0xff] %v8281_v48  ;;  %vm9828_vm11 = vcmp.ne.s16.totalorder %v8281_v48, 0  ;;  %v3579_v14 = vrot.slane %v3358_v34, 4  ;;  %vm3838_vm12 = vcmask 1045504   ;;  %v3484_v48 = vsel %vm9829_vm1, %v8096_v2, 0 }
 0xb1e   : > { %v3814_v21 = vpop.permute.xlu1 %3813  ;;  %v8271_v22 = vpop.permute.xlu0 %3654  ;;  %vm9839_vm1 = vcmp.ne.s16.totalorder %v7828_v42, 0 }
 0xb20   : > { %3708 = vrot.lane.b32.xlu1 %v3693_v55, %s9921_s8  ;;  %3710 = vrot.lane.b32.xlu0 %v3694_v50, %s9921_s8  ;;  %v3400_v55 = vsel %vm9828_vm11, %v8093_v37, 0  ;;  %v3830_v50 = vsel %vm9864_vm9, %v3812_v32, %v3814_v21  ;;  %vm9830_vm11 = vcmp.ne.s16.totalorder %v7822_v35, 0 }
 0xb21   : > { %v3624_v19 = vrot.slane %v3400_v55, 6  ;;  %v4010_v32 = vsel %vm3838_vm12, %v3830_v50, 0  ;;  %v3442_v55 = vsel %vm9830_vm11, %v8096_v2, 0  ;;  %vm9845_vm11 = vcmp.ne.s16.totalorder %v7830_v12, 0 }
 0xb22   : > { %v3741_v16 = vpop.permute.xlu1 %3740  ;;  %v8293_v46 = vpop.permute.xlu0 %3658  ;;  %v3401_v9 = vsel %vm9845_vm11, %v8096_v2, 0  ;;  %vm3895_vm11 = vcmask 1041408  }
 0xb23   : > { %v3625_v35 = vrot.slane %v3401_v9, 6 }
 0xb24   : > { %3594 = vrot.lane.b32.xlu1 %v3579_v14, %s9923_s24  ;;  %3596 = vrot.lane.b32.xlu0 %v3580_v33, %s9923_s24  ;;  %v3739_v33 = vrot.slane %v3484_v48, 4  ;;  %v3695_v48 = vrot.slane %v3442_v55, 2 }
 0xb26   : > { %v3697_v28 = vpop.permute.xlu1 %3696  ;;  %v8305_v34 = vpop.permute.xlu0 %3815 }
 0xb27   : > { %v3831_v62 = vsel %vm9864_vm9, %v3814_v21, %v8305_v34  ;;  %v3536_v21 = vrot.slane %v8093_v37, 2 }
 0xb28   : > { %3638 = vrot.lane.b32.xlu1 %v3623_v13, %s9924_s1  ;;  %3640 = vrot.lane.b32.xlu0 %v3624_v19, %s9924_s1  ;;  %v2153_v19 = vld [vmem:[%s9708_s16] sm:$0xf]  ;;  %v3360_v13 = vsel %vm9839_vm1, %v8096_v2, 0  ;;  %vm3793_vm1 = vcmask 515072  }
 0xb29   : > { %6119 = vmatprep.subr.msk.bf16.mxu1 %vm3838_vm12, %v3831_v62 }
 0xb2a   : > { %4036 = vmatpush1.bf16.msra.mxu1 %v4010_v32  ;;  %v3583_v52 = vpop.permute.xlu1 %3582  ;;  %v3627_v14 = vpop.permute.xlu0 %3626 }
 0xb2c   : > { %3756 = vrot.lane.b32.xlu1 %v3739_v33, %s6311_s26  ;;  %3552 = vrot.lane.b32.xlu0 %v3536_v21, %s9893_s5  ;;  %v3581_v33 = vrot.slane %v3360_v13, 4 }
 0xb2e   : > { %v3778_v62 = vpop.permute.xlu1 %3777  ;;  %v8327_v50 = vpop.permute.xlu0 %3817 }
 0xb30   : > { %3712 = vrot.lane.b32.xlu1 %v3695_v48, %s9921_s8  ;;  %4002 = vperm.xlu0 %6216, %v2153_v19   ;;  %v3537_v19 = vrot.slane %v8096_v2, 2  ;;  %v3794_v2 = vsel %vm3793_vm1, %v8249_v60, %v3778_v62 }
 0xb32   : > { %v8334_v32 = vpop.permute.xlu0 %3779  ;;  %v3541_v21 = vpop.permute.xlu1 %3540 }
 0xb33   : > { %v3795_v9 = vsel %vm3793_vm1, %v3778_v62, %v8334_v32 }
 0xb34   : > { %3598 = vrot.lane.b32.xlu1 %v3581_v33, %s9923_s24 }
 0xb36   : > { %v8340_v55 = vpop.permute.xlu0 %3542  ;;  %v3743_v42 = vpop.permute.xlu1 %3742 }
 0xb37   : > { %v3758_v12 = vsel %vm9976_vm5, %v3741_v16, %v3743_v42 }
 0xb38   : > { %3642 = vrot.lane.b32.xlu1 %v3625_v35, %s9924_s1  ;;  %v3977_v41 = vsel %vm3895_vm11, %v3758_v12, %v3794_v2 }
 0xb3a   : > { %v8343_v48 = vpop.permute.xlu0 %3781  ;;  %v3699_v61 = vpop.permute.xlu1 %3698 }
 0xb3b   : > { %v3714_v16 = vsel %vm1703_vm10, %v3697_v28, %v3699_v61 }
 0xb3c   : > { %3554 = vrot.lane.b32.xlu1 %v3537_v19, %s9893_s5  ;;  %v3953_v60 = vsel %vm1500_vm8, %v3714_v16, %v3758_v12 }
 0xb3e   : > { %v8347_v13 = vpop.permute.xlu0 %3544  ;;  %v3585_v19 = vpop.permute.xlu1 %3584 }
 0xb42   : > { %v8350_v57 = vpop.permute.xlu0 %3744 }
 0xb43   : > { %v3759_v35 = vsel %vm9977_vm15, %v3743_v42, %v8350_v57  ;;  %v3671_v42 = vsel %vm1678_vm2, %v8271_v22, %v8224_v49  ;;  %vm9978_vm15 = vcmask 1031168  }
 0xb44   : > { %v3980_v33 = vsel %vm3895_vm11, %v3759_v35, %v3795_v9  ;;  %vm9979_vm5 = vmmov %vm9978_vm15 }
 0xb45   : > { %4037 = vmatprep.subr.bf16.mxu1 %v3980_v33 }
 0xb46   : > { %4038 = vmatpush1.bf16.msra.mxu1 %v3977_v41  ;;  %v8361_v31 = vpop.permute.xlu0 %3700  ;;  %v3629_v41 = vpop.permute.xlu1 %3628 }
 0xb47   : > { %v3715_v36 = vsel %vm1703_vm10, %v3699_v61, %v8361_v31  ;;  %v3670_v61 = vsel %vm1678_vm2, %v8204_v8, %v8271_v22  ;;  %v3557_v8 = vsel %vm1522_vm0, %v3541_v21, %v8340_v55 }
 0xb48   : > { %v3956_v51 = vsel %vm1500_vm8, %v3715_v36, %v3759_v35  ;;  %v3926_v28 = vsel %vm3838_vm12, %v3671_v42, %v3715_v36  ;;  %v3922_v9 = vsel %vm3838_vm12, %v3670_v61, %v3714_v16  ;;  %v3644_v35 = vsel %vm1659_vm13, %v3627_v14, %v3629_v41 }
 0xb49   : > { %4039 = vmatprep.subr.bf16.mxu1 %v3956_v51  ;;  %v3600_v36 = vsel %vm9979_vm5, %v3583_v52, %v3585_v19  ;;  %v3556_v52 = vsel %vm1522_vm0, %v8247_v6, %v3541_v21  ;;  %vm9856_vm5 = vcmp.ne.s16.totalorder %v7421_v25, 0  ;;  %v3832_v21 = vsel %vm9864_vm9, %v8305_v34, %v8327_v50 }
 0xb4a   : > { %4040 = vmatpush1.bf16.msra.mxu1 %v3953_v60  ;;  %v8370_v62 = vpop.permute.xlu0 %3586  ;;  %v3897_v22 = vsel %vm3895_vm11, %v3600_v36, %v3644_v35 }
 0xb4b   : > { %4041 = vmatprep.subr.bf16.mxu1 %v3926_v28  ;;  %v3601_v12 = vsel %vm9978_vm15, %v3585_v19, %v8370_v62  ;;  %vm9855_vm15 = vcmp.ne.s16.totalorder %v7417_v18, 0  ;;  %v3872_v19 = vsel %vm1500_vm8, %v3556_v52, %v3600_v36 }
 0xb4c   : > { %v3875_v42 = vsel %vm1500_vm8, %v3557_v8, %v3601_v12  ;;  %v3257_v60 = vsel %vm9855_vm15, %v7855_v7, 0  ;;  %vm4005_vm15 = vcmask 883712  }
 0xb4d   : > { %v3845_v61 = vsel %vm3838_vm12, %v3257_v60, %v3557_v8 }
 0xb4e   : > { %4042 = vmatpush1.bf16.msra.mxu1 %v3922_v9  ;;  %v8378_v2 = vpop.permute.xlu0 %3630  ;;  %v3256_v9 = vsel %vm9856_vm5, %v7833_v0, 0  ;;  %v4016_v0 = vsel %vm3838_vm12, %v3832_v21, 0  ;;  %vm9981_vm5 = vcmask 523264  }
 0xb4f   : > { %v3645_v51 = vsel %vm1659_vm13, %v3629_v41, %v8378_v2  ;;  %v3841_v6 = vsel %vm3838_vm12, %v3256_v9, %v3556_v52  ;;  %vm9982_vm6 = vmmov %vm9981_vm5 }
 0xb50   : > { %v3900_v33 = vsel %vm3895_vm11, %v3601_v12, %v3645_v51  ;;  %v8415_v51 = vld [vmem:[%s9707_s15] sm:$0x3] }
 0xb51   : > { %4043 = vmatprep.subr.bf16.mxu1 %v3900_v33  ;;  %v9980_v33 = vmov 0  }
 0xb52   : > { %v8389_v14 = vpop.permute.xlu1 %3660  ;;  %4044 = vmatpush1.bf16.msra.mxu1 %v3897_v22  ;;  %v3747_v16 = vpop.permute.xlu0 %3746 }
 0xb53   : > { %4045 = vmatprep.subr.bf16.mxu1 %v3875_v42  ;;  %v3760_v52 = vsel %vm9981_vm5, %v8350_v57, %v3747_v16 }
 0xb56   : > { %v3820_v28 = vpop.permute.xlu1 %3819  ;;  %4046 = vmatpush1.bf16.msra.mxu1 %v3872_v19  ;;  %v3703_v41 = vpop.permute.xlu0 %3702 }
 0xb57   : > { %4047 = vmatprep.subr.bf16.mxu1 %v3845_v61  ;;  %v3833_v12 = vsel %vm9864_vm9, %v8327_v50, %v3820_v28  ;;  %v3716_v57 = vsel %vm1703_vm10, %v8361_v31, %v3703_v41 }
 0xb5a   : > { %v8408_v35 = vpop.permute.xlu1 %3783  ;;  %4048 = vmatpush1.bf16.msra.mxu1 %v3841_v6  ;;  %v3589_v7 = vpop.permute.xlu0 %3588  ;;  %v3796_v6 = vsel %vm3793_vm1, %v8334_v32, %v8343_v48  ;;  %v3673_v32 = vsel %vm1678_vm2, %v8293_v46, %v8389_v14 }
 0xb5b   : > { %6121 = vmatprep.subr.msk.bf16.mxu1 %vm3838_vm12, %v3833_v12  ;;  %v3797_v61 = vsel %vm3793_vm1, %v8343_v48, %v8408_v35  ;;  %v3983_v12 = vsel %vm3895_vm11, %v3760_v52, %v3796_v6  ;;  %v3959_v48 = vsel %vm1500_vm8, %v3716_v57, %v3760_v52 }
 0xb5d   : > { %6120 = vmatmul.mubr.msk.bf16.vlgmr.msra.gmra.mxu1 %vm4005_vm15, %v8415_v51 }
 0xb5e   : > { %v8421_v34 = vpop.permute.xlu1 %3546  ;;  %4077 = vmatpush1.bf16.msra.mxu1 %v4016_v0  ;;  %v3633_v36 = vpop.permute.xlu0 %3632  ;;  %4106 = vmatprep.mubr.bf16.mxu1 %v9980_v33 }
 0xb62   : > { %v8424_v50 = vpop.permute.xlu1 %3664  ;;  %v8426_v8 = vpop.permute.xlu0 %3662 }
 0xb66   : > { %v8428_v22 = vpop.permute.xlu1 %3668  ;;  %v8430_v42 = vpop.permute.xlu0 %3666 }
 0xb6a   : > { %v8434_v19 = vpop.permute.xlu1 %3748  ;;  %v3822_v60 = vpop.permute.xlu0 %3821 }
 0xb6b   : > { %v3761_v9 = vsel %vm9982_vm6, %v3747_v16, %v8434_v19  ;;  %vm9983_vm6 = vcmask 1031168  }
 0xb6c   : > { %v3986_v21 = vsel %vm3895_vm11, %v3761_v9, %v3797_v61  ;;  %vm9984_vm5 = vmmov %vm9983_vm6 }
 0xb6d   : > { %4078 = vmatprep.subr.bf16.mxu1 %v3986_v21  ;;  %v3646_v21 = vsel %vm1659_vm13, %v8378_v2, %v3633_v36  ;;  %v3834_v2 = vsel %vm9864_vm9, %v3820_v28, %v3822_v60 }
 0xb6e   : > { %v8448_v0 = vpop.permute.xlu1 %3704  ;;  %4079 = vmatpush1.bf16.msra.mxu1 %v3983_v12  ;;  %v3826_v18 = vpop.permute.xlu0 %3825  ;;  %v4022_v28 = vsel %vm3838_vm12, %v3834_v2, 0 }
 0xb6f   : > { %v3717_v25 = vsel %vm1703_vm10, %v3703_v41, %v8448_v0  ;;  %v3672_v41 = vsel %vm1678_vm2, %v8224_v49, %v8293_v46  ;;  %v3559_v46 = vsel %vm1522_vm0, %v8347_v13, %v8421_v34 }
 0xb70   : > { %v3962_v16 = vsel %vm1500_vm8, %v3717_v25, %v3761_v9  ;;  %v3934_v31 = vsel %vm3838_vm12, %v3673_v32, %v3717_v25  ;;  %v3930_v9 = vsel %vm3838_vm12, %v3672_v41, %v3716_v57  ;;  %v3602_v32 = vsel %vm9984_vm5, %v8370_v62, %v3589_v7 }
 0xb71   : > { %4080 = vmatprep.subr.bf16.mxu1 %v3962_v16  ;;  %v3903_v57 = vsel %vm3895_vm11, %v3602_v32, %v3646_v21  ;;  %vm9862_vm5 = vcmp.ne.s16.totalorder %v7431_v58, 0 }
 0xb72   : > { %v8457_v61 = vpop.permute.xlu1 %3590  ;;  %4081 = vmatpush1.bf16.msra.mxu1 %v3959_v48  ;;  %v3786_v6 = vpop.permute.xlu0 %3785 }
 0xb73   : > { %4082 = vmatprep.subr.bf16.mxu1 %v3934_v31  ;;  %v3603_v16 = vsel %vm9983_vm6, %v3589_v7, %v8457_v61  ;;  %vm9863_vm6 = vcmp.ne.s16.totalorder %v7459_v59, 0  ;;  %v3558_v7 = vsel %vm1522_vm0, %v8340_v55, %v8347_v13  ;;  %v3258_v55 = vsel %vm9862_vm5, %v7839_v40, 0 }
 0xb74   : > { %v3881_v31 = vsel %vm1500_vm8, %v3559_v46, %v3603_v16  ;;  %v3849_v13 = vsel %vm3838_vm12, %v3258_v55, %v3558_v7  ;;  %vm9985_vm5 = vcmask 523264  }
 0xb76   : > { %v8466_v12 = vpop.permute.xlu1 %3634  ;;  %4083 = vmatpush1.bf16.msra.mxu1 %v3930_v9  ;;  %v8468_v52 = vpop.permute.xlu0 %3789  ;;  %v3259_v9 = vsel %vm9863_vm6, %v7880_v23, 0  ;;  %vm9986_vm6 = vmmov %vm9985_vm5 }
 0xb77   : > { %v3647_v25 = vsel %vm1659_vm13, %v3633_v36, %v8466_v12  ;;  %v3878_v36 = vsel %vm1500_vm8, %v3558_v7, %v3602_v32 }
 0xb78   : > { %v3906_v49 = vsel %vm3895_vm11, %v3603_v16, %v3647_v25 }
 0xb79   : > { %4084 = vmatprep.subr.bf16.mxu1 %v3906_v49 }
 0xb7a   : > { %v3824_v48 = vpop.permute.xlu1 %3823  ;;  %4085 = vmatpush1.bf16.msra.mxu1 %v3903_v57  ;;  %v8483_v41 = vpop.permute.xlu0 %3548 }
 0xb7b   : > { %4086 = vmatprep.subr.bf16.mxu1 %v3881_v31  ;;  %v3835_v62 = vsel %vm9864_vm9, %v3822_v60, %v3824_v48  ;;  %v3853_v60 = vsel %vm3838_vm12, %v3259_v9, %v3559_v46  ;;  %v3836_v25 = vsel %vm9864_vm9, %v3824_v48, %v3826_v18 }
 0xb7c   : > { %6123 = vmatprep.subr.msk.bf16.mxu0 %vm3838_vm12, %v3835_v62  ;;  %v4028_v46 = vsel %vm3838_vm12, %v3836_v25, 0 }
 0xb7d   : > { %4118 = vmatpush1.bf16.msra.mxu0 %v4022_v28  ;;  %v3798_v28 = vsel %vm3793_vm1, %v8408_v35, %v3786_v6 }
 0xb7e   : > { %v3828_v21 = vpop.permute.xlu1 %3827  ;;  %4087 = vmatpush1.bf16.msra.mxu1 %v3878_v36  ;;  %v3751_v16 = vpop.permute.xlu0 %3750 }
 0xb7f   : > { %4088 = vmatprep.subr.bf16.mxu1 %v3853_v60  ;;  %v3837_v32 = vsel %vm9864_vm9, %v3826_v18, %v3828_v21  ;;  %v3762_v18 = vsel %vm9985_vm5, %v8434_v19, %v3751_v16  ;;  %vm9989_vm9 = vcmask 523264  }
 0xb80   : > { %v3989_v9 = vsel %vm3895_vm11, %v3762_v18, %v3798_v28 }
 0xb82   : > { %v3788_v49 = vpop.permute.xlu1 %3787  ;;  %4089 = vmatpush1.bf16.msra.mxu1 %v3849_v13  ;;  %v3707_v23 = vpop.permute.xlu0 %3706 }
 0xb83   : > { %6125 = vmatprep.subr.msk.bf16.mxu1 %vm3838_vm12, %v3837_v32  ;;  %v3799_v62 = vsel %vm3793_vm1, %v3786_v6, %v3788_v49  ;;  %v3718_v21 = vsel %vm1703_vm10, %v8448_v0, %v3707_v23  ;;  %v3674_v0 = vsel %vm1678_vm2, %v8389_v14, %v8426_v8 }
 0xb84   : > { %v3965_v35 = vsel %vm1500_vm8, %v3718_v21, %v3762_v18 }
 0xb85   : > { %6122 = vmatmul.mubr.msk.bf16.vlgmr.msra.gmra.mxu1 %vm4005_vm15, %v8415_v51 }
 0xb86   : > { %v3792_v2 = vpop.permute.xlu1 %3791  ;;  %4159 = vmatpush1.bf16.msra.mxu1 %v4028_v46  ;;  %4188 = vmatprep.mubr.bf16.mxu1 %v9980_v33  ;;  %v3593_v40 = vpop.permute.xlu0 %3592 }
 0xb8a   : > { %v8509_v57 = vpop.permute.xlu1 %3550  ;;  %v3637_v48 = vpop.permute.xlu0 %3636 }
 0xb8b   : > { %v3648_v46 = vsel %vm1659_vm13, %v8466_v12, %v3637_v48  ;;  %v3561_v14 = vsel %vm1522_vm0, %v8483_v41, %v8509_v57 }
 0xb8e   : > { %v3753_v31 = vpop.permute.xlu1 %3752  ;;  %v3755_v55 = vpop.permute.xlu0 %3754 }
 0xb8f   : > { %v3763_v7 = vsel %vm9986_vm6, %v3751_v16, %v3753_v31  ;;  %v3675_v16 = vsel %vm1678_vm2, %v8426_v8, %v8424_v50  ;;  %vm9987_vm6 = vcmask 1031168   ;;  %v3764_v12 = vsel %vm9989_vm9, %v3753_v31, %v3755_v55 }
 0xb90   : > { %v3992_v36 = vsel %vm3895_vm11, %v3763_v7, %v3799_v62  ;;  %vm9988_vm5 = vmmov %vm9987_vm6  ;;  %v3800_v31 = vsel %vm3793_vm1, %v3788_v49, %v8468_v52 }
 0xb91   : > { %4119 = vmatprep.subr.bf16.mxu0 %v3992_v36  ;;  %v3604_v28 = vsel %vm9988_vm5, %v8457_v61, %v3593_v40  ;;  %v3801_v61 = vsel %vm3793_vm1, %v8468_v52, %v3792_v2  ;;  %vm9990_vm5 = vmmov %vm9989_vm9  ;;  %vm9865_vm9 = vcmp.ne.s16.totalorder %v7455_v63, 0 }
 0xb92   : > { %v3709_v60 = vpop.permute.xlu1 %3708  ;;  %4120 = vmatpush1.bf16.msra.mxu0 %v3989_v9  ;;  %v3711_v32 = vpop.permute.xlu0 %3710  ;;  %v3909_v8 = vsel %vm3895_vm11, %v3604_v28, %v3648_v46  ;;  %v3260_v49 = vsel %vm9865_vm9, %v8033_v20, 0  ;;  %v3676_v20 = vsel %vm1678_vm2, %v8424_v50, %v8430_v42 }
 0xb93   : > { %v3719_v19 = vsel %vm1703_vm10, %v3707_v23, %v3709_v60  ;;  %v3938_v23 = vsel %vm3838_vm12, %v3674_v0, %v3718_v21 }
 0xb94   : > { %v3968_v13 = vsel %vm1500_vm8, %v3719_v19, %v3763_v7  ;;  %v3942_v25 = vsel %vm3838_vm12, %v3675_v16, %v3719_v19  ;;  %v3560_v19 = vsel %vm1522_vm0, %v8421_v34, %v8483_v41 }
 0xb95   : > { %4121 = vmatprep.subr.bf16.mxu0 %v3968_v13  ;;  %v3884_v16 = vsel %vm1500_vm8, %v3560_v19, %v3604_v28 }
 0xb96   : > { %v8527_v6 = vpop.permute.xlu1 %3594  ;;  %4122 = vmatpush1.bf16.msra.mxu0 %v3965_v35  ;;  %v3995_v35 = vsel %vm3895_vm11, %v3764_v12, %v3800_v31 }
 0xb97   : > { %4123 = vmatprep.subr.bf16.mxu0 %v3942_v25  ;;  %v3605_v18 = vsel %vm9987_vm6, %v3593_v40, %v8527_v6  ;;  %vm9866_vm6 = vcmp.ne.s16.totalorder %v7525_v5, 0  ;;  %v3597_v40 = vpop.permute.xlu0 %3596 }
 0xb98   : > { %v3887_v21 = vsel %vm1500_vm8, %v3561_v14, %v3605_v18  ;;  %v3261_v2 = vsel %vm9866_vm6, %v8072_v27, 0  ;;  %v3677_v27 = vsel %vm1678_vm2, %v8430_v42, %v8428_v22  ;;  %vm3255_vm6 = vcmp.ne.s16.totalorder %v7613_v44, 0 }
 0xb99   : > { %v3861_v34 = vsel %vm3838_vm12, %v3261_v2, %v3561_v14 }
 0xb9a   : > { %v3639_v62 = vpop.permute.xlu1 %3638  ;;  %4124 = vmatpush1.bf16.msra.mxu0 %v3938_v23 }
 0xb9b   : > { %v3649_v7 = vsel %vm1659_vm13, %v3637_v48, %v3639_v62  ;;  %v3641_v0 = vpop.permute.xlu0 %3640 }
 0xb9c   : > { %v3912_v36 = vsel %vm3895_vm11, %v3605_v18, %v3649_v7  ;;  %v3650_v18 = vsel %vm1659_vm13, %v3639_v62, %v3641_v0 }
 0xb9d   : > { %4125 = vmatprep.subr.bf16.mxu0 %v3912_v36 }
 0xb9e   : > { %v3757_v9 = vpop.permute.xlu1 %3756  ;;  %4126 = vmatpush1.bf16.msra.mxu0 %v3909_v8 }
 0xb9f   : > { %v3765_v48 = vsel %vm9990_vm5, %v3755_v55, %v3757_v9  ;;  %4127 = vmatprep.subr.bf16.mxu0 %v3887_v21  ;;  %v3720_v55 = vsel %vm1703_vm10, %v3709_v60, %v3711_v32  ;;  %v3857_v60 = vsel %vm3838_vm12, %v3260_v49, %v3560_v19  ;;  %v3553_v28 = vpop.permute.xlu0 %3552  ;;  %vm9991_vm5 = vcmask 1031168  }
 0xba0   : > { %v3998_v13 = vsel %vm3895_vm11, %v3765_v48, %v3801_v61  ;;  %v3971_v23 = vsel %vm1500_vm8, %v3720_v55, %v3764_v12  ;;  %v3946_v22 = vsel %vm3838_vm12, %v3676_v20, %v3720_v55  ;;  %vm9992_vm9 = vmmov %vm9991_vm5  ;;  %v3562_v62 = vsel %vm1522_vm0, %v8509_v57, %v3553_v28 }
 0xba1   : > { %4160 = vmatprep.subr.bf16.mxu1 %v3998_v13  ;;  %v3606_v8 = vsel %vm9992_vm9, %v8527_v6, %v3597_v40  ;;  %v3263_v6 = vsel %vm3255_vm6, %v8093_v37, 0  ;;  %vm3254_vm9 = vcmp.ne.s16.totalorder %v7490_v47, 0 }
 0xba2   : > { %v3713_v25 = vpop.permute.xlu1 %3712  ;;  %4128 = vmatpush1.bf16.msra.mxu0 %v3884_v16  ;;  %4161 = vmatpush1.bf16.msra.mxu1 %v3995_v35  ;;  %v3915_v42 = vsel %vm3895_vm11, %v3606_v8, %v3650_v18  ;;  %v3890_v61 = vsel %vm1500_vm8, %v3562_v62, %v3606_v8 }
 0xba3   : > { %v3721_v52 = vsel %vm1703_vm10, %v3711_v32, %v3713_v25  ;;  %4129 = vmatprep.subr.bf16.mxu0 %v3861_v34 }
 0xba4   : > { %v3974_v41 = vsel %vm1500_vm8, %v3721_v52, %v3765_v48  ;;  %v3950_v32 = vsel %vm3838_vm12, %v3677_v27, %v3721_v52 }
 0xba5   : > { %4162 = vmatprep.subr.bf16.mxu1 %v3974_v41 }
 0xba6   : > { %v3599_v46 = vpop.permute.xlu1 %3598  ;;  %4130 = vmatpush1.bf16.msra.mxu0 %v3857_v60  ;;  %4163 = vmatpush1.bf16.msra.mxu1 %v3971_v23 }
 0xba7   : > { %4164 = vmatprep.subr.bf16.mxu1 %v3950_v32  ;;  %v3607_v36 = vsel %vm9991_vm5, %v3597_v40, %v3599_v46  ;;  %v3262_v40 = vsel %vm3254_vm9, %v8075_v10, 0  ;;  %vm9994_vm5 = vcmp.ne.s16.totalorder %v7746_v39, 0 }
 0xba8   : > { %v3865_v48 = vsel %vm3838_vm12, %v3262_v40, %v3562_v62 }
 0xba9   : > { %6124 = vmatmul.mubr.msk.bf16.vlgmr.msra.gmra.mxu0 %vm4005_vm15, %v8415_v51 }
 0xbaa   : > { %v3643_v7 = vpop.permute.xlu1 %3642  ;;  %4165 = vmatpush1.bf16.msra.mxu1 %v3946_v22  ;;  %4812 = vmatprep.mubr.bf16.mxu0 %v9980_v33 }
 0xbab   : > { %v3651_v14 = vsel %vm1659_vm13, %v3641_v0, %v3643_v7  ;;  %v4003_v19 = vpop.permute.xlu0 %4002 }
 0xbac   : > { %v3918_v50 = vsel %vm3895_vm11, %v3607_v36, %v3651_v14 }
 0xbad   : > { %4166 = vmatprep.subr.bf16.mxu1 %v3918_v50 }
 0xbae   : > { %v3555_v12 = vpop.permute.xlu1 %3554  ;;  %4167 = vmatpush1.bf16.msra.mxu1 %v3915_v42 }
 0xbaf   : > { %v3563_v9 = vsel %vm1522_vm0, %v3553_v28, %v3555_v12 }
 0xbb0   : > { %v3893_v21 = vsel %vm1500_vm8, %v3563_v9, %v3607_v36  ;;  %v3869_v57 = vsel %vm3838_vm12, %v3263_v6, %v3563_v9 }
 0xbb1   : > { %4168 = vmatprep.subr.bf16.mxu1 %v3893_v21 }
 0xbb2   : > { %4169 = vmatpush1.bf16.msra.mxu1 %v3890_v61 }
 0xbb3   : > { %4170 = vmatprep.subr.bf16.mxu1 %v3869_v57 }
 0xbb6   : > { %4171 = vmatpush1.bf16.msra.mxu1 %v3865_v48 }
 0xbb9   : > { %6126 = vmatmul.mubr.msk.bf16.vlgmr.msra.gmra.mxu1 %vm4005_vm15, %v8415_v51  ;;  %vm9993_vm15 = vcmp.ne.s16.totalorder %v7852_v17, 0 }
 0xbba   : > { %4935 = vmatprep.mubr.bf16.mxu1 %v9980_v33 }
 0xc1d   : > { %v4067_v37 = vpop.f32.mrf.mxu1 }
 0xc1e   : > { %v4068_v31 = vadd.f32 %v4067_v37, %v4003_v19 }
 0xc1f   : > { %v4069_v13 = vpop.f32.mrf.mxu1 }
 0xc20   : > { %v4197_v16 = vmax.f32 %v4068_v31, 0.0  ;;  %v4070_v35 = vadd.f32 %v4069_v13, %v4003_v19 }
 0xc21   : > { %v4071_v2 = vpop.f32.mrf.mxu1 }
 0xc22   : > { %v4205_v55 = vpack.c.bf16 %v4197_v16, %v4197_v16  ;;  %v4198_v25 = vmax.f32 %v4070_v35, 0.0 }
 0xc23   : > { %v4072_v34 = vpop.f32.mrf.mxu1 }
 0xc24   : > { %v4206_v52 = vpack.c.bf16 %v4198_v25, %v4198_v25  ;;  %4221 = vrot.lane.b32.xlu1 %v4205_v55, %s6313_s23 }
 0xc26   : > { %4223 = vrot.lane.b32.xlu0 %v4206_v52, %s6313_s23 }
 0xc45   : > { %v4108_v10 = vpop.f32.mrf.mxu1 }
 0xc46   : > { %v4109_v41 = vadd.f32 %v4108_v10, %v4003_v19 }
 0xc47   : > { %v4110_v51 = vpop.f32.mrf.mxu1 }
 0xc48   : > { %v4199_v49 = vmax.f32 %v4109_v41, 0.0  ;;  %v4111_v27 = vadd.f32 %v4110_v51, %v4003_v19 }
 0xc49   : > { %v4112_v0 = vpop.f32.mrf.mxu1 }
 0xc4a   : > { %v4207_v60 = vpack.c.bf16 %v4199_v49, %v4199_v49  ;;  %v4200_v23 = vmax.f32 %v4111_v27, 0.0 }
 0xc4b   : > { %v4113_v46 = vpop.f32.mrf.mxu1 }
 0xc4c   : > { %v4208_v32 = vpack.c.bf16 %v4200_v23, %v4200_v23  ;;  %4225 = vrot.lane.b32.xlu1 %v4207_v60, %s6313_s23 }
 0xc4e   : > { %4227 = vrot.lane.b32.xlu0 %v4208_v32, %s6313_s23 }
 0xc69   : > { %v4149_v20 = vpop.f32.mrf.mxu0 }
 0xc6a   : > { %v4150_v22 = vadd.f32 %v4149_v20, %v4003_v19 }
 0xc6b   : > { %v4151_v18 = vpop.f32.mrf.mxu0 }
 0xc6c   : > { %v4201_v7 = vmax.f32 %v4150_v22, 0.0  ;;  %v4152_v28 = vadd.f32 %v4151_v18, %v4003_v19 }
 0xc6d   : > { %v4153_v36 = vpop.f32.mrf.mxu0 }
 0xc6e   : > { %v4209_v14 = vpack.c.bf16 %v4201_v7, %v4201_v7  ;;  %v4202_v8 = vmax.f32 %v4152_v28, 0.0 }
 0xc6f   : > { %v4154_v50 = vpop.f32.mrf.mxu0 }
 0xc70   : > { %v4210_v42 = vpack.c.bf16 %v4202_v8, %v4202_v8  ;;  %4229 = vrot.lane.b32.xlu1 %v4209_v14, %s6313_s23 }
 0xc72   : > { %4231 = vrot.lane.b32.xlu0 %v4210_v42, %s6313_s23  ;;  %v10000_v42 = vld [vmem:[#allocation9_spill] sm:$0xff] }
 0xc79   : > { %v4190_v62 = vpop.f32.mrf.mxu1 }
 0xc7a   : > { %v4191_v12 = vadd.f32 %v4190_v62, %v4003_v19 }
 0xc7b   : > { %v4192_v9 = vpop.f32.mrf.mxu1 }
 0xc7c   : > { %v4203_v21 = vmax.f32 %v4191_v12, 0.0  ;;  %v4193_v61 = vadd.f32 %v4192_v9, %v4003_v19 }
 0xc7d   : > { %v4194_v6 = vpop.f32.mrf.mxu1 }
 0xc7e   : > { %v4211_v57 = vpack.c.bf16 %v4203_v21, %v4203_v21  ;;  %v4204_v40 = vmax.f32 %v4193_v61, 0.0 }
 0xc7f   : > { %v4195_v48 = vpop.f32.mrf.mxu1 }
 0xc80   : > { %v4212_v37 = vpack.c.bf16 %v4204_v40, %v4204_v40  ;;  %4233 = vrot.lane.b32.xlu1 %v4211_v57, %s6313_s23 }
 0xc82   : > { %4235 = vrot.lane.b32.xlu0 %v4212_v37, %s6313_s23 }
 0xc96   : > { %v4222_v31 = vpop.permute.xlu1 %4221 }
 0xc97   : > { %v8618_v13 = vsel %vm3052_vm3, 0, %v4222_v31 }
 0xc98   : > { %v4224_v16 = vpop.permute.xlu0 %4223  ;;  %4435 = vrot.lane.b32.xlu0 %v8618_v13, %s9919_s4  ;;  %v4301_v19 = vsel %vm9871_vm4, %v8618_v13, 0  ;;  %v4549_v2 = vrot.slane %v8618_v13, 2  ;;  %v4283_v55 = vsel %vm9868_vm7, %v8618_v13, 0  ;;  %v4312_v25 = vrot.slane %v8618_v13, 6 }
 0xc99   : > { %4593 = vrot.lane.b32.xlu1 %v4301_v19, %s6314_s0  ;;  %v8627_v35 = vsel %vm3052_vm3, %v4222_v31, %v4224_v16  ;;  %v4470_v34 = vrot.slane %v4283_v55, 6  ;;  %v4265_v52 = vsel %vm9867_vm14, %v8618_v13, 0  ;;  %v4292_v51 = vsel %vm9994_vm5, %v8618_v13, 0  ;;  %v10005_v31 = vld [vmem:[#allocation10_spill] sm:$0xff] }
 0xc9a   : > { %v4302_v10 = vsel %vm9993_vm15, %v8627_v35, 0  ;;  %v4356_v41 = vrot.slane %v4265_v52, 4  ;;  %v4514_v49 = vrot.slane %v4292_v51, 4  ;;  %v4550_v27 = vrot.slane %v8627_v35, 2 }
 0xc9b   : > { %vm9995_vm14 = vcmp.ne.s16.totalorder %v7760_v56, 0  ;;  %vm9996_vm15 = vcmp.ne.s16.totalorder %v7939_v30, 0  ;;  %v4313_v32 = vrot.slane %v8627_v35, 6  ;;  %vm9997_vm5 = vcmp.ne.s16.totalorder %v7927_v54, 0 }
 0xc9c   : > { %4437 = vrot.lane.b32.xlu0 %v8627_v35, %s9919_s4  ;;  %v4274_v0 = vsel %vm9995_vm14, %v8618_v13, 0  ;;  %v4266_v60 = vsel %vm9996_vm15, %v8627_v35, 0  ;;  %v4284_v20 = vsel %vm9997_vm5, %v8627_v35, 0  ;;  %vm9998_vm14 = vcmp.ne.s16.totalorder %v7914_v38, 0 }
 0xc9d   : > { %4558 = vrot.lane.b32.xlu1 %v4549_v2, %s6315_s7  ;;  %v4400_v23 = vrot.slane %v4274_v0, 2  ;;  %v4357_v46 = vrot.slane %v4266_v60, 4  ;;  %v4471_v22 = vrot.slane %v4284_v20, 6  ;;  %v4293_v18 = vsel %vm9998_vm14, %v8627_v35, 0  ;;  %v10010_v0 = vld [vmem:[#allocation11_spill] sm:$0xff] }
 0xc9e   : > { %v4515_v7 = vrot.slane %v4293_v18, 4  ;;  %vm9999_vm15 = vcmp.ne.s16.totalorder %v7956_v4, 0  ;;  %vm10001_vm5 = vcmp.ne.s16.totalorder %v10000_v42, 0  ;;  %vm10002_vm14 = vcmp.ne.s16.totalorder %v7969_v3, 0 }
 0xc9f   : > { %v4275_v28 = vsel %vm9999_vm15, %v8627_v35, 0  ;;  %vm10003_vm15 = vcmp.ne.s16.totalorder %v7951_v53, 0  ;;  %vm10080_vm4 = vcmp.ne.s16.totalorder %v7431_v58, 0 }
 0xca0   : > { %4321 = vrot.lane.b32.xlu0 %v4312_v25, %s9893_s5  ;;  %v4401_v36 = vrot.slane %v4275_v28, 2  ;;  %v10015_v28 = vld [vmem:[#allocation16_spill] sm:$0xff] }
 0xca1   : > { %4479 = vrot.lane.b32.xlu1 %v4470_v34, %s9921_s8 }
 0xca4   : > { %4595 = vrot.lane.b32.xlu0 %v4302_v10, %s6314_s0 }
 0xca5   : > { %4365 = vrot.lane.b32.xlu1 %v4356_v41, %s9923_s24 }
 0xca8   : > { %4523 = vrot.lane.b32.xlu0 %v4514_v49, %s6311_s26 }
 0xca9   : > { %4560 = vrot.lane.b32.xlu1 %v4550_v27, %s6315_s7 }
 0xcac   : > { %4409 = vrot.lane.b32.xlu0 %v4400_v23, %s9924_s1 }
 0xcad   : > { %4367 = vrot.lane.b32.xlu1 %v4357_v46, %s9923_s24 }
 0xcb0   : > { %4323 = vrot.lane.b32.xlu0 %v4313_v32, %s9893_s5  ;;  %v10012_v32 = vld [vmem:[#allocation13_spill] sm:$0xff] }
 0xcb4   : > { %4481 = vrot.lane.b32.xlu0 %v4471_v22, %s9921_s8 }
 0xcb8   : > { %4525 = vrot.lane.b32.xlu0 %v4515_v7, %s6311_s26 }
 0xcbc   : > { %4411 = vrot.lane.b32.xlu0 %v4401_v36, %s9924_s1 }
 0xcbe   : > { %v4226_v14 = vpop.permute.xlu1 %4225 }
 0xcbf   : > { %v8676_v8 = vsel %vm3052_vm3, %v4224_v16, %v4226_v14 }
 0xcc0   : > { %4439 = vrot.lane.b32.xlu1 %v8676_v8, %s9919_s4  ;;  %v4551_v50 = vrot.slane %v8676_v8, 2  ;;  %v4303_v62 = vsel %vm10001_vm5, %v8676_v8, 0  ;;  %v4314_v12 = vrot.slane %v8676_v8, 6  ;;  %v4228_v9 = vpop.permute.xlu0 %4227  ;;  %v4285_v61 = vsel %vm10002_vm14, %v8676_v8, 0 }
 0xcc1   : > { %v8689_v21 = vsel %vm3052_vm3, %v4226_v14, %v4228_v9  ;;  %v4472_v6 = vrot.slane %v4285_v61, 6  ;;  %v4294_v57 = vsel %vm10003_vm15, %v8676_v8, 0  ;;  %vm10004_vm5 = vcmp.ne.s16.totalorder %v7994_v26, 0  ;;  %v10019_v61 = vld [vmem:[#allocation17_spill] sm:$0xff] }
 0xcc2   : > { %4562 = vrot.lane.b32.xlu0 %v4551_v50, %s6315_s7  ;;  %v4516_v40 = vrot.slane %v4294_v57, 4  ;;  %v4276_v48 = vsel %vm10004_vm5, %v8676_v8, 0  ;;  %vm10006_vm14 = vcmp.ne.s16.totalorder %v10005_v31, 0  ;;  %v4552_v19 = vrot.slane %v8689_v21, 2  ;;  %v10021_v57 = vld [vmem:[#allocation18_spill] sm:$0xff] }
 0xcc3   : > { %v4402_v37 = vrot.slane %v4276_v48, 2  ;;  %v4304_v16 = vsel %vm10006_vm14, %v8689_v21, 0  ;;  %v4315_v55 = vrot.slane %v8689_v21, 6  ;;  %vm10007_vm15 = vcmp.ne.s16.totalorder %v7983_v11, 0 }
 0xcc4   : > { %4597 = vrot.lane.b32.xlu1 %v4303_v62, %s6314_s0  ;;  %v4267_v34 = vsel %vm10007_vm15, %v8676_v8, 0  ;;  %vm10008_vm5 = vcmp.ne.s16.totalorder %v8014_v1, 0  ;;  %vm10009_vm14 = vcmp.ne.s16.totalorder %v8024_v15, 0  ;;  %vm10011_vm15 = vcmp.ne.s16.totalorder %v10010_v0, 0  ;;  %v10017_v62 = vld [vmem:[#allocation15_spill] sm:$0xff] }
 0xcc5   : > { %v4358_v10 = vrot.slane %v4267_v34, 4  ;;  %v4286_v51 = vsel %vm10008_vm5, %v8689_v21, 0  ;;  %v4295_v60 = vsel %vm10011_vm15, %v8689_v21, 0  ;;  %vm10013_vm5 = vcmp.ne.s16.totalorder %v10012_v32, 0  ;;  %v10025_v34 = vld [vmem:[#allocation23_spill] sm:$0xff] }
 0xcc6   : > { %v4473_v49 = vrot.slane %v4286_v51, 6  ;;  %v4517_v23 = vrot.slane %v4295_v60, 4  ;;  %v4268_v20 = vsel %vm10013_vm5, %v8689_v21, 0  ;;  %vm10016_vm15 = vcmp.ne.s16.totalorder %v10015_v28, 0 }
 0xcc7   : > { %v4359_v22 = vrot.slane %v4268_v20, 4  ;;  %vm10018_vm5 = vcmp.ne.s16.totalorder %v10017_v62, 0 }
 0xcc8   : > { %4325 = vrot.lane.b32.xlu1 %v4314_v12, %s9893_s5 }
 0xccc   : > { %4441 = vrot.lane.b32.xlu1 %v8689_v21, %s9919_s4 }
 0xcd0   : > { %4483 = vrot.lane.b32.xlu1 %v4472_v6, %s9921_s8 }
 0xcd4   : > { %4527 = vrot.lane.b32.xlu1 %v4516_v40, %s6311_s26 }
 0xcd8   : > { %4413 = vrot.lane.b32.xlu1 %v4402_v37, %s9924_s1 }
 0xcdc   : > { %4599 = vrot.lane.b32.xlu1 %v4304_v16, %s6314_s0  ;;  %v10023_v16 = vld [vmem:[#allocation20_spill] sm:$0xff] }
 0xce0   : > { %4564 = vrot.lane.b32.xlu1 %v4552_v19, %s6315_s7 }
 0xce2   : > { %v4230_v2 = vpop.permute.xlu1 %4229 }
 0xce3   : > { %v8713_v25 = vsel %vm3052_vm3, %v4228_v9, %v4230_v2 }
 0xce4   : > { %v4232_v52 = vpop.permute.xlu0 %4231  ;;  %4327 = vrot.lane.b32.xlu1 %v4315_v55, %s9893_s5  ;;  %4443 = vrot.lane.b32.xlu0 %v8713_v25, %s9919_s4  ;;  %v4305_v27 = vsel %vm10009_vm14, %v8713_v25, 0  ;;  %v4553_v46 = vrot.slane %v8713_v25, 2  ;;  %v4316_v18 = vrot.slane %v8713_v25, 6  ;;  %vm10014_vm14 = vcmp.ne.s16.totalorder %v8046_v24, 0 }
 0xce5   : > { %v8722_v41 = vsel %vm3052_vm3, %v4230_v2, %v4232_v52  ;;  %v4277_v7 = vsel %vm10014_vm14, %v8689_v21, 0  ;;  %v4287_v36 = vsel %vm10016_vm15, %v8713_v25, 0  ;;  %v4296_v12 = vsel %vm10018_vm5, %v8713_v25, 0 }
 0xce6   : > { %v4403_v14 = vrot.slane %v4277_v7, 2  ;;  %v4474_v50 = vrot.slane %v4287_v36, 6  ;;  %v4518_v9 = vrot.slane %v4296_v12, 4  ;;  %vm10020_vm14 = vcmp.ne.s16.totalorder %v10019_v61, 0  ;;  %v10031_v36 = vld [vmem:[#allocation24_spill] sm:$0xff] }
 0xce7   : > { %v4306_v6 = vsel %vm10020_vm14, %v8722_v41, 0  ;;  %vm10022_vm15 = vcmp.ne.s16.totalorder %v10021_v57, 0  ;;  %v4554_v48 = vrot.slane %v8722_v41, 2  ;;  %vm10024_vm5 = vcmp.ne.s16.totalorder %v10023_v16, 0  ;;  %v10055_v57 = vld [vmem:[#allocation5_spill] sm:$0xff]  ;;  %v10059_v16 = vld [vmem:[#allocation6_spill] sm:$0xff] }
 0xce8   : > { %4445 = vrot.lane.b32.xlu1 %v8722_v41, %s9919_s4  ;;  %4369 = vrot.lane.b32.xlu0 %v4358_v10, %s9923_s24  ;;  %v4269_v40 = vsel %vm10022_vm15, %v8713_v25, 0  ;;  %v4278_v19 = vsel %vm10024_vm5, %v8713_v25, 0  ;;  %v4317_v2 = vrot.slane %v8722_v41, 6  ;;  %vm10026_vm14 = vcmp.ne.s16.totalorder %v10025_v34, 0  ;;  %v10047_v34 = vld [vmem:[#allocation27_spill] sm:$0xff] }
 0xce9   : > { %v4360_v37 = vrot.slane %v4269_v40, 4  ;;  %v4404_v55 = vrot.slane %v4278_v19, 2  ;;  %v4288_v10 = vsel %vm10026_vm14, %v8722_v41, 0  ;;  %vm10032_vm14 = vcmp.ne.s16.totalorder %v10031_v36, 0 }
 0xcea   : > { %vm10060_vm7 = vcmp.ne.s16.totalorder %v10059_v16, 0 }
 0xcec   : > { %4485 = vrot.lane.b32.xlu1 %v4473_v49, %s9921_s8  ;;  %4601 = vrot.lane.b32.xlu0 %v4305_v27, %s6314_s0  ;;  %v4475_v27 = vrot.slane %v4288_v10, 6 }
 0xcf0   : > { %4529 = vrot.lane.b32.xlu1 %v4517_v23, %s6311_s26  ;;  %4566 = vrot.lane.b32.xlu0 %v4553_v46, %s6315_s7  ;;  %v10027_v23 = vld [vmem:[#allocation21_spill] sm:$0xff] }
 0xcf1   : > { %vm10028_vm15 = vcmp.ne.s16.totalorder %v10027_v23, 0 }
 0xcf2   : > { %v4234_v51 = vpop.permute.xlu1 %4233  ;;  %v4297_v46 = vsel %vm10028_vm15, %v8722_v41, 0 }
 0xcf3   : > { %v8779_v60 = vsel %vm3052_vm3, %v4232_v52, %v4234_v51  ;;  %v4270_v52 = vsel %vm10032_vm14, %v8722_v41, 0 }
 0xcf4   : > { %4371 = vrot.lane.b32.xlu1 %v4359_v22, %s9923_s24  ;;  %4329 = vrot.lane.b32.xlu0 %v4316_v18, %s9893_s5  ;;  %v4236_v49 = vpop.permute.xlu0 %4235  ;;  %v4519_v22 = vrot.slane %v4297_v46, 4  ;;  %v10029_v18 = vld [vmem:[#allocation22_spill] sm:$0xff] }
 0xcf5   : > { %vm10030_vm5 = vcmp.ne.s16.totalorder %v10029_v18, 0  ;;  %v8816_v10 = vsel %vm3052_vm3, %v4236_v49, 0 }
 0xcf6   : > { %v4307_v7 = vsel %vm10030_vm5, %v8779_v60, 0 }
 0xcf8   : > { %4415 = vrot.lane.b32.xlu1 %v4403_v14, %s9924_s1  ;;  %4487 = vrot.lane.b32.xlu0 %v4474_v50, %s9921_s8  ;;  %v4361_v14 = vrot.slane %v4270_v52, 4  ;;  %v4555_v50 = vrot.slane %v8779_v60, 2  ;;  %v10037_v52 = vld [vmem:[#allocation19_spill] sm:$0xff] }
 0xcf9   : > { %vm10038_vm14 = vcmp.ne.s16.totalorder %v10037_v52, 0 }
 0xcfc   : > { %4603 = vrot.lane.b32.xlu1 %v4306_v6, %s6314_s0  ;;  %4531 = vrot.lane.b32.xlu0 %v4518_v9, %s6311_s26  ;;  %v10033_v9 = vld [vmem:[#allocation25_spill] sm:$0xff] }
 0xcfd   : > { %vm10034_vm15 = vcmp.ne.s16.totalorder %v10033_v9, 0 }
 0xcfe   : > { %v4279_v6 = vsel %vm10034_vm15, %v8722_v41, 0 }
 0xd00   : > { %4568 = vrot.lane.b32.xlu1 %v4554_v48, %s6315_s7  ;;  %4373 = vrot.lane.b32.xlu0 %v4360_v37, %s9923_s24  ;;  %v4405_v48 = vrot.slane %v4279_v6, 2  ;;  %v4318_v37 = vrot.slane %v8779_v60, 6 }
 0xd04   : > { %4331 = vrot.lane.b32.xlu1 %v4317_v2, %s9893_s5  ;;  %4417 = vrot.lane.b32.xlu0 %v4404_v55, %s9924_s1  ;;  %v8813_v55 = vsel %vm3052_vm3, %v4234_v51, %v4236_v49 }
 0xd05   : > { %v4308_v51 = vsel %vm10038_vm14, %v8813_v55, 0  ;;  %v4556_v6 = vrot.slane %v8813_v55, 2 }
 0xd08   : > { %4489 = vrot.lane.b32.xlu1 %v4475_v27, %s9921_s8  ;;  %4447 = vrot.lane.b32.xlu0 %v8779_v60, %s9919_s4  ;;  %v10035_v27 = vld [vmem:[#allocation28_spill] sm:$0xff] }
 0xd09   : > { %vm10036_vm5 = vcmp.ne.s16.totalorder %v10035_v27, 0  ;;  %v4319_v27 = vrot.slane %v8813_v55, 6 }
 0xd0a   : > { %v8787_v20 = vpop.permute.xlu0 %4435  ;;  %v4289_v46 = vsel %vm10036_vm5, %v8779_v60, 0 }
 0xd0b   : > { %v4594_v40 = vpop.permute.xlu1 %4593 }
 0xd0c   : > { %4533 = vrot.lane.b32.xlu1 %v4519_v22, %s6311_s26  ;;  %4605 = vrot.lane.b32.xlu0 %v4307_v7, %s6314_s0  ;;  %v4476_v22 = vrot.slane %v4289_v46, 6 }
 0xd0e   : > { %v8798_v12 = vpop.permute.xlu0 %4437 }
 0xd0f   : > { %v8810_v2 = vpop.permute.xlu1 %4558 }
 0xd10   : > { %4375 = vrot.lane.b32.xlu1 %v4361_v14, %s9923_s24  ;;  %4570 = vrot.lane.b32.xlu0 %v4555_v50, %s6315_s7  ;;  %v10039_v14 = vld [vmem:[#allocation26_spill] sm:$0xff] }
 0xd11   : > { %vm10040_vm15 = vcmp.ne.s16.totalorder %v10039_v14, 0 }
 0xd12   : > { %v8808_v19 = vpop.permute.xlu0 %4321  ;;  %v4298_v49 = vsel %vm10040_vm15, %v8779_v60, 0 }
 0xd13   : > { %v8831_v50 = vpop.permute.xlu1 %4479 }
 0xd14   : > { %4419 = vrot.lane.b32.xlu1 %v4405_v48, %s9924_s1  ;;  %4333 = vrot.lane.b32.xlu0 %v4318_v37, %s9893_s5  ;;  %v4520_v48 = vrot.slane %v4298_v49, 4  ;;  %v10041_v37 = vld [vmem:[#allocation30_spill] sm:$0xff]  ;;  %v10045_v49 = vld [vmem:[#allocation32_spill] sm:$0xff] }
 0xd15   : > { %vm10042_vm5 = vcmp.ne.s16.totalorder %v10041_v37, 0  ;;  %vm10046_vm15 = vcmp.ne.s16.totalorder %v10045_v49, 0  ;;  %v10049_v49 = vld [vmem:[#allocation4_spill] sm:$0xff] }
 0xd16   : > { %v4596_v7 = vpop.permute.xlu0 %4595  ;;  %v4271_v46 = vsel %vm10042_vm5, %v8779_v60, 0  ;;  %v4280_v23 = vsel %vm10046_vm15, %v8779_v60, 0  ;;  %vm10048_vm5 = vcmp.ne.s16.totalorder %v10047_v34, 0 }
 0xd17   : > { %v8841_v14 = vpop.permute.xlu1 %4365  ;;  %v4362_v36 = vrot.slane %v4271_v46, 4  ;;  %v4299_v46 = vsel %vm10048_vm5, %v8813_v55, 0 }
 0xd18   : > { %4449 = vrot.lane.b32.xlu1 %v8813_v55, %s9919_s4  ;;  %4451 = vrot.lane.b32.xlu0 %v8816_v10, %s9919_s4 }
 0xd1a   : > { %v4524_v9 = vpop.permute.xlu0 %4523 }
 0xd1b   : > { %v4561_v52 = vpop.permute.xlu1 %4560 }
 0xd1c   : > { %4607 = vrot.lane.b32.xlu1 %v4308_v51, %s6314_s0  ;;  %4491 = vrot.lane.b32.xlu0 %v4476_v22, %s9921_s8  ;;  %v10043_v51 = vld [vmem:[#allocation29_spill] sm:$0xff] }
 0xd1d   : > { %vm10044_vm14 = vcmp.ne.s16.totalorder %v10043_v51, 0  ;;  %v4521_v51 = vrot.slane %v4299_v46, 4  ;;  %v10053_v46 = vld [vmem:[#allocation33_spill] sm:$0xff] }
 0xd1e   : > { %v4290_v22 = vsel %vm10044_vm14, %v8813_v55, 0  ;;  %v8852_v37 = vpop.permute.xlu0 %4409  ;;  %vm10050_vm14 = vcmp.ne.s16.totalorder %v10049_v49, 0  ;;  %vm10054_vm5 = vcmp.ne.s16.totalorder %v10053_v46, 0 }
 0xd1f   : > { %v8869_v34 = vpop.permute.xlu1 %4367  ;;  %v4281_v49 = vsel %vm10054_vm5, %v8813_v55, 0 }
 0xd20   : > { %4572 = vrot.lane.b32.xlu1 %v4556_v6, %s6315_s7  ;;  %4535 = vrot.lane.b32.xlu0 %v4520_v48, %s6311_s26  ;;  %v4477_v6 = vrot.slane %v4290_v22, 6  ;;  %v4406_v48 = vrot.slane %v4280_v23, 2 }
 0xd22   : > { %v8867_v22 = vpop.permute.xlu0 %4323 }
 0xd24   : > { %4335 = vrot.lane.b32.xlu1 %v4319_v27, %s9893_s5  ;;  %4377 = vrot.lane.b32.xlu0 %v4362_v36, %s9923_s24  ;;  %v4309_v27 = vsel %vm10050_vm14, %v8816_v10, 0  ;;  %v10051_v36 = vld [vmem:[#allocation31_spill] sm:$0xff]  ;;  %vm10056_vm14 = vcmp.ne.s16.totalorder %v10055_v57, 0  ;;  %v4300_v57 = vsel %vm10060_vm7, %v8816_v10, 0 }
 0xd25   : > { %vm10052_vm15 = vcmp.ne.s16.totalorder %v10051_v36, 0  ;;  %v4522_v62 = vrot.slane %v4300_v57, 4 }
 0xd26   : > { %v4272_v23 = vsel %vm10052_vm15, %v8813_v55, 0  ;;  %v4482_v18 = vpop.permute.xlu0 %4481  ;;  %vm10057_vm15 = vcmask 506880  }
 0xd27   : > { %vm10058_vm5 = vmmov %vm10057_vm15  ;;  %v4497_v57 = vsel %vm1703_vm10, %v8831_v50, %v4482_v18 }
 0xd28   : > { %4493 = vrot.lane.b32.xlu1 %v4477_v6, %s9921_s8  ;;  %4421 = vrot.lane.b32.xlu0 %v4406_v48, %s9924_s1  ;;  %v4363_v6 = vrot.slane %v4272_v23, 4  ;;  %v4557_v48 = vrot.slane %v8816_v10, 2  ;;  %v4291_v23 = vsel %vm10056_vm14, %v8816_v10, 0 }
 0xd2c   : > { %4537 = vrot.lane.b32.xlu1 %v4521_v51, %s6311_s26  ;;  %4609 = vrot.lane.b32.xlu0 %v4309_v27, %s6314_s0  ;;  %v4407_v51 = vrot.slane %v4281_v49, 2  ;;  %v4320_v27 = vrot.slane %v8816_v10, 6  ;;  %v4478_v49 = vrot.slane %v4291_v23, 6  ;;  %v10061_v23 = vld [vmem:[#allocation7_spill] sm:$0xff] }
 0xd2d   : > { %vm10062_vm14 = vcmp.ne.s16.totalorder %v10061_v23, 0 }
 0xd30   : > { %4379 = vrot.lane.b32.xlu1 %v4363_v6, %s9923_s24  ;;  %4574 = vrot.lane.b32.xlu0 %v4557_v48, %s6315_s7  ;;  %v2155_v6 = vld [vmem:[%s9710_s18] sm:$0xf]  ;;  %v4611_v48 = vsel %vm10057_vm15, %v4594_v40, %v4596_v7  ;;  %vm10065_vm15 = vcmask 523264  }
 0xd32   : > { %v8877_v36 = vpop.permute.xlu1 %4439 }
 0xd34   : > { %4423 = vrot.lane.b32.xlu1 %v4407_v51, %s9924_s1  ;;  %4337 = vrot.lane.b32.xlu0 %v4320_v27, %s9893_s5  ;;  %v4526_v51 = vpop.permute.xlu0 %4525  ;;  %v4757_v27 = vsel %vm3895_vm11, %v4611_v48, 0 }
 0xd35   : > { %v4541_v23 = vsel %vm10065_vm15, %v4524_v9, %v4526_v51 }
 0xd36   : > { %v8889_v46 = vpop.permute.xlu1 %4597 }
 0xd37   : > { %v4612_v61 = vsel %vm10058_vm5, %v4596_v7, %v8889_v46  ;;  %v4273_v7 = vsel %vm10062_vm14, %v8816_v10, 0  ;;  %vm10066_vm5 = vmmov %vm10065_vm15  ;;  %vm10071_vm15 = vcmask 1031168  }
 0xd38   : > { %4749 = vperm.xlu1 %6217, %v2155_v6   ;;  %4495 = vrot.lane.b32.xlu0 %v4478_v49, %s9921_s8  ;;  %v4364_v6 = vrot.slane %v4273_v7, 4  ;;  %v4412_v28 = vpop.permute.xlu0 %4411  ;;  %v10063_v49 = vld [vmem:[#allocation8_spill] sm:$0xff] }
 0xd39   : > { %6127 = vmatprep.subr.msk.bf16.mxu0 %vm3895_vm11, %v4612_v61  ;;  %vm10064_vm7 = vcmp.ne.s16.totalorder %v10063_v49, 0  ;;  %v4576_v49 = vsel %vm3793_vm1, %v8810_v2, %v4561_v52 }
 0xd3a   : > { %4791 = vmatpush1.bf16.msra.mxu0 %v4757_v27  ;;  %v8899_v40 = vpop.permute.xlu1 %4325  ;;  %v4282_v61 = vsel %vm10064_vm7, %v8816_v10, 0 }
 0xd3b   : > { %v4408_v27 = vrot.slane %v4282_v61, 2  ;;  %v4340_v2 = vsel %vm1522_vm0, %v8867_v22, %v8899_v40 }
 0xd3c   : > { %4539 = vrot.lane.b32.xlu0 %v4522_v62, %s6311_s26  ;;  %v4453_v62 = vsel %vm1678_vm2, %v8787_v20, %v8798_v12  ;;  %v8919_v7 = vpop.permute.xlu0 %4562 }
 0xd3d   : > { %v4685_v10 = vsel %vm3895_vm11, %v4453_v62, %v4497_v57 }
 0xd3e   : > { %v8905_v16 = vpop.permute.xlu1 %4441 }
 0xd40   : > { %4381 = vrot.lane.b32.xlu0 %v4364_v6, %s9923_s24  ;;  %v4454_v6 = vsel %vm1678_vm2, %v8798_v12, %v8877_v36 }
 0xd42   : > { %v4484_v48 = vpop.permute.xlu1 %4483 }
 0xd43   : > { %v4498_v15 = vsel %vm1703_vm10, %v4482_v18, %v4484_v48  ;;  %v4708_v18 = vsel %vm1500_vm8, %v4685_v10, %v4541_v23  ;;  %v4339_v10 = vsel %vm1522_vm0, %v8808_v19, %v8867_v22  ;;  %v4427_v19 = vsel %vm1659_vm13, %v8852_v37, %v4412_v28 }
 0xd44   : > { %4425 = vrot.lane.b32.xlu0 %v4408_v27, %s9924_s1  ;;  %v4688_v50 = vsel %vm3895_vm11, %v4454_v6, %v4498_v15  ;;  %v4577_v27 = vsel %vm3793_vm1, %v4561_v52, %v8919_v7  ;;  %v4724_v12 = vsel %vm3838_vm12, %v4708_v18, %v4576_v49  ;;  %v10067_v52 = vld [vmem:[#allocation3_spill] sm:$0xff] }
 0xd45   : > { %vm10068_vm14 = vcmp.ne.s16.totalorder %v10067_v52, 0 }
 0xd46   : > { %v4528_v61 = vpop.permute.xlu1 %4527 }
 0xd47   : > { %v4542_v9 = vsel %vm10066_vm5, %v4526_v51, %v4528_v61  ;;  %vm10072_vm5 = vmmov %vm10071_vm15 }
 0xd48   : > { %v4710_v20 = vsel %vm1500_vm8, %v4688_v50, %v4542_v9  ;;  %v4257_v50 = vsel %vm10068_vm14, %v8618_v13, 0  ;;  %v10069_v9 = vld [vmem:[#allocation2_spill] sm:$0xff]  ;;  %v4383_v13 = vsel %vm10072_vm5, %v8841_v14, %v8869_v34  ;;  %vm10073_vm14 = vcmask 506880  }
 0xd49   : > { %v4727_v57 = vsel %vm3838_vm12, %v4710_v20, %v4577_v27  ;;  %v4621_v49 = vsel %vm3895_vm11, %v4257_v50, %v4339_v10  ;;  %vm10070_vm7 = vcmp.ne.s16.totalorder %v10069_v9, 0  ;;  %vm10075_vm5 = vcmask 523264  }
 0xd4a   : > { %4792 = vmatprep.subr.bf16.mxu0 %v4727_v57  ;;  %v8934_v62 = vpop.permute.xlu1 %4413  ;;  %v4258_v18 = vsel %vm10070_vm7, %v8627_v35, 0  ;;  %v4644_v50 = vsel %vm1500_vm8, %v4621_v49, %v4383_v13  ;;  %vm10074_vm7 = vmmov %vm10073_vm14 }
 0xd4b   : > { %4793 = vmatpush1.bf16.msra.mxu0 %v4724_v12  ;;  %v4624_v57 = vsel %vm3895_vm11, %v4258_v18, %v4340_v2  ;;  %v4428_v12 = vsel %vm1659_vm13, %v4412_v28, %v8934_v62  ;;  %v4660_v2 = vsel %vm3838_vm12, %v4644_v50, %v4427_v19  ;;  %v8974_v28 = vld [vmem:[%s9709_s17] sm:$0x3] }
 0xd4e   : > { %v4600_v15 = vpop.permute.xlu1 %4599 }
 0xd4f   : > { %v4613_v18 = vsel %vm10073_vm14, %v8889_v46, %v4600_v15  ;;  %vm10076_vm14 = vmmov %vm10075_vm5 }
 0xd50   : > { %v4763_v19 = vsel %vm3895_vm11, %v4613_v18, 0 }
 0xd52   : > { %v4565_v51 = vpop.permute.xlu1 %4564 }
 0xd56   : > { %v8937_v6 = vpop.permute.xlu0 %4443  ;;  %v4328_v23 = vpop.permute.xlu1 %4327 }
 0xd57   : > { %v4456_v50 = vsel %vm1678_vm2, %v8905_v16, %v8937_v6 }
 0xd5a   : > { %v4370_v27 = vpop.permute.xlu0 %4369  ;;  %v8952_v20 = vpop.permute.xlu1 %4445 }
 0xd5b   : > { %v4384_v22 = vsel %vm10071_vm15, %v8869_v34, %v4370_v27  ;;  %vm4752_vm15 = vcmask 293888  }
 0xd5c   : > { %v4646_v35 = vsel %vm1500_vm8, %v4624_v57, %v4384_v22 }
 0xd5d   : > { %v4663_v10 = vsel %vm3838_vm12, %v4646_v35, %v4428_v12 }
 0xd5e   : > { %v4602_v9 = vpop.permute.xlu0 %4601  ;;  %4794 = vmatprep.subr.bf16.mxu0 %v4663_v10  ;;  %v4486_v37 = vpop.permute.xlu1 %4485  ;;  %v4455_v10 = vsel %vm1678_vm2, %v8877_v36, %v8905_v16  ;;  %v4578_v36 = vsel %vm3793_vm1, %v8919_v7, %v4565_v51 }
 0xd5f   : > { %4795 = vmatpush1.bf16.msra.mxu0 %v4660_v2  ;;  %v4614_v34 = vsel %vm10074_vm7, %v4600_v15, %v4602_v9  ;;  %v4499_v13 = vsel %vm1703_vm10, %v4484_v48, %v4486_v37  ;;  %vm10077_vm7 = vcmask 1031168  }
 0xd60   : > { %6129 = vmatprep.subr.msk.bf16.mxu0 %vm3895_vm11, %v4614_v34  ;;  %v4691_v2 = vsel %vm3895_vm11, %v4455_v10, %v4499_v13 }
 0xd62   : > { %v8977_v14 = vpop.permute.xlu0 %4566  ;;  %6128 = vmatmul.mubr.msk.bf16.vlgmr.msra.gmra.mxu0 %vm4752_vm15, %v8974_v28  ;;  %v4530_v49 = vpop.permute.xlu1 %4529 }
 0xd63   : > { %4832 = vmatpush1.bf16.msra.mxu0 %v4763_v19  ;;  %4853 = vmatprep.mubr.bf16.mxu0 %v9980_v33  ;;  %v4543_v12 = vsel %vm10075_vm5, %v4528_v61, %v4530_v49  ;;  %vm10078_vm5 = vcmp.ne.s16.totalorder %v7459_v59, 0 }
 0xd64   : > { %v4712_v61 = vsel %vm1500_vm8, %v4691_v2, %v4543_v12  ;;  %v4341_v12 = vsel %vm1522_vm0, %v8899_v40, %v4328_v23  ;;  %v4260_v7 = vsel %vm10078_vm5, %v8689_v21, 0  ;;  %vm10083_vm5 = vcmask 523264  }
 0xd66   : > { %v8983_v46 = vpop.permute.xlu0 %4329  ;;  %v4372_v15 = vpop.permute.xlu1 %4371 }
 0xd6a   : > { %v4488_v57 = vpop.permute.xlu0 %4487  ;;  %v4416_v22 = vpop.permute.xlu1 %4415 }
 0xd6b   : > { %v4500_v35 = vsel %vm1703_vm10, %v4486_v37, %v4488_v57  ;;  %v4579_v37 = vsel %vm3793_vm1, %v4565_v51, %v8977_v14  ;;  %v4429_v2 = vsel %vm1659_vm13, %v8934_v62, %v4416_v22 }
 0xd6c   : > { %v4694_v19 = vsel %vm3895_vm11, %v4456_v50, %v4500_v35  ;;  %v4730_v35 = vsel %vm3838_vm12, %v4712_v61, %v4578_v36 }
 0xd6e   : > { %v4532_v18 = vpop.permute.xlu0 %4531  ;;  %v4604_v34 = vpop.permute.xlu1 %4603 }
 0xd6f   : > { %v4544_v48 = vsel %vm10076_vm14, %v4530_v49, %v4532_v18  ;;  %v4342_v49 = vsel %vm1522_vm0, %v4328_v23, %v8983_v46  ;;  %vm10079_vm14 = vmmov %vm10077_vm7 }
 0xd70   : > { %v4714_v52 = vsel %vm1500_vm8, %v4694_v19, %v4544_v48  ;;  %v4385_v51 = vsel %vm10079_vm14, %v4370_v27, %v4372_v15  ;;  %v4630_v50 = vsel %vm3895_vm11, %v4260_v7, %v4342_v49  ;;  %vm10084_vm14 = vmmov %vm10083_vm5 }
 0xd71   : > { %v4733_v16 = vsel %vm3838_vm12, %v4714_v52, %v4579_v37  ;;  %v4259_v52 = vsel %vm10080_vm4, %v8676_v8, 0  ;;  %vm10081_vm4 = vcmask 506880  }
 0xd72   : > { %v9004_v24 = vpop.permute.xlu0 %4373  ;;  %4833 = vmatprep.subr.bf16.mxu0 %v4733_v16  ;;  %v4569_v13 = vpop.permute.xlu1 %4568  ;;  %v4627_v23 = vsel %vm3895_vm11, %v4259_v52, %v4341_v12  ;;  %v4615_v62 = vsel %vm10081_vm4, %v4602_v9, %v4604_v34 }
 0xd73   : > { %4834 = vmatpush1.bf16.msra.mxu0 %v4730_v35  ;;  %v4386_v10 = vsel %vm10077_vm7, %v4372_v15, %v9004_v24  ;;  %v4648_v27 = vsel %vm1500_vm8, %v4627_v23, %v4385_v51  ;;  %vm10082_vm7 = vmmov %vm10081_vm4  ;;  %v4769_v35 = vsel %vm3895_vm11, %v4615_v62, 0  ;;  %vm10085_vm4 = vcmask 1031168  }
 0xd74   : > { %v4650_v61 = vsel %vm1500_vm8, %v4630_v50, %v4386_v10  ;;  %v4666_v8 = vsel %vm3838_vm12, %v4648_v27, %v4429_v2 }
 0xd76   : > { %v4418_v19 = vpop.permute.xlu0 %4417  ;;  %v4332_v40 = vpop.permute.xlu1 %4331 }
 0xd77   : > { %v4430_v48 = vsel %vm1659_vm13, %v4416_v22, %v4418_v19 }
 0xd78   : > { %v4669_v21 = vsel %vm3838_vm12, %v4650_v61, %v4430_v48  ;;  %v4457_v48 = vsel %vm1678_vm2, %v8937_v6, %v8952_v20  ;;  %v4580_v6 = vsel %vm3793_vm1, %v8977_v14, %v4569_v13 }
 0xd79   : > { %4835 = vmatprep.subr.bf16.mxu0 %v4669_v21 }
 0xd7a   : > { %v9029_v15 = vpop.permute.xlu0 %4447  ;;  %4836 = vmatpush1.bf16.msra.mxu0 %v4666_v8  ;;  %v4490_v37 = vpop.permute.xlu1 %4489 }
 0xd7b   : > { %v4501_v50 = vsel %vm1703_vm10, %v4488_v57, %v4490_v37  ;;  %v4458_v61 = vsel %vm1678_vm2, %v8952_v20, %v9029_v15 }
 0xd7c   : > { %v4697_v21 = vsel %vm3895_vm11, %v4457_v48, %v4501_v50 }
 0xd7d   : > { %6130 = vmatmul.mubr.msk.bf16.vlgmr.msra.gmra.mxu0 %vm4752_vm15, %v8974_v28 }
 0xd7e   : > { %v4606_v36 = vpop.permute.xlu0 %4605  ;;  %v4534_v22 = vpop.permute.xlu1 %4533  ;;  %4894 = vmatprep.mubr.bf16.mxu0 %v9980_v33 }
 0xd7f   : > { %v4616_v16 = vsel %vm10082_vm7, %v4604_v34, %v4606_v36  ;;  %v4545_v23 = vsel %vm10083_vm5, %v4532_v18, %v4534_v22  ;;  %vm10086_vm7 = vmmov %vm10085_vm4  ;;  %vm10087_vm5 = vcmp.ne.s16.totalorder %v7525_v5, 0 }
 0xd80   : > { %6131 = vmatprep.subr.msk.bf16.mxu0 %vm3895_vm11, %v4616_v16  ;;  %v4716_v62 = vsel %vm1500_vm8, %v4697_v21, %v4545_v23  ;;  %v4343_v23 = vsel %vm1522_vm0, %v8983_v46, %v4332_v40  ;;  %v4262_v14 = vsel %vm10087_vm5, %v8722_v41, 0  ;;  %vm10091_vm5 = vcmask 523264  }
 0xd81   : > { %4873 = vmatpush1.bf16.msra.mxu0 %v4769_v35  ;;  %v4736_v50 = vsel %vm3838_vm12, %v4716_v62, %v4580_v6 }
 0xd82   : > { %v9038_v49 = vpop.permute.xlu0 %4570  ;;  %v4376_v12 = vpop.permute.xlu1 %4375 }
 0xd83   : > { %v4581_v18 = vsel %vm3793_vm1, %v4569_v13, %v9038_v49  ;;  %v4387_v48 = vsel %vm10086_vm7, %v9004_v24, %v4376_v12 }
 0xd86   : > { %v9040_v10 = vpop.permute.xlu0 %4333  ;;  %v4420_v9 = vpop.permute.xlu1 %4419 }
 0xd87   : > { %v4431_v21 = vsel %vm1659_vm13, %v4418_v19, %v4420_v9 }
 0xd8a   : > { %v4452_v7 = vpop.permute.xlu0 %4451  ;;  %v4450_v51 = vpop.permute.xlu1 %4449 }
 0xd8e   : > { %v4492_v52 = vpop.permute.xlu0 %4491  ;;  %v4608_v2 = vpop.permute.xlu1 %4607 }
 0xd8f   : > { %v4502_v34 = vsel %vm1703_vm10, %v4490_v37, %v4492_v52 }
 0xd90   : > { %v4700_v8 = vsel %vm3895_vm11, %v4458_v61, %v4502_v34 }
 0xd92   : > { %v4536_v27 = vpop.permute.xlu0 %4535  ;;  %v4573_v16 = vpop.permute.xlu1 %4572 }
 0xd93   : > { %v4546_v57 = vsel %vm10084_vm14, %v4534_v22, %v4536_v27  ;;  %v4344_v22 = vsel %vm1522_vm0, %v4332_v40, %v9040_v10  ;;  %vm10088_vm14 = vcmp.ne.s16.totalorder %v7455_v63, 0 }
 0xd94   : > { %v4718_v37 = vsel %vm1500_vm8, %v4700_v8, %v4546_v57  ;;  %v4261_v13 = vsel %vm10088_vm14, %v8713_v25, 0  ;;  %v4636_v61 = vsel %vm3895_vm11, %v4262_v14, %v4344_v22  ;;  %v4460_v14 = vsel %vm1678_vm2, %v4450_v51, %v4452_v7  ;;  %vm10092_vm14 = vmmov %vm10091_vm5 }
 0xd95   : > { %v4739_v20 = vsel %vm3838_vm12, %v4718_v37, %v4581_v18  ;;  %v4633_v46 = vsel %vm3895_vm11, %v4261_v13, %v4343_v23 }
 0xd96   : > { %v4378_v35 = vpop.permute.xlu0 %4377  ;;  %4874 = vmatprep.subr.bf16.mxu0 %v4739_v20  ;;  %v4336_v40 = vpop.permute.xlu1 %4335  ;;  %v4652_v41 = vsel %vm1500_vm8, %v4633_v46, %v4387_v48 }
 0xd97   : > { %4875 = vmatpush1.bf16.msra.mxu0 %v4736_v50  ;;  %v4388_v34 = vsel %vm10085_vm4, %v4376_v12, %v4378_v35  ;;  %vm10089_vm4 = vcmask 506880   ;;  %v4672_v25 = vsel %vm3838_vm12, %v4652_v41, %v4431_v21 }
 0xd98   : > { %v4654_v24 = vsel %vm1500_vm8, %v4636_v61, %v4388_v34  ;;  %v4617_v62 = vsel %vm10089_vm4, %v4606_v36, %v4608_v2  ;;  %vm10090_vm7 = vmmov %vm10089_vm4  ;;  %v4459_v34 = vsel %vm1678_vm2, %v9029_v15, %v4450_v51  ;;  %vm10093_vm4 = vcmask 1031168  }
 0xd99   : > { %v4775_v37 = vsel %vm3895_vm11, %v4617_v62, 0  ;;  %v4345_v62 = vsel %vm1522_vm0, %v9040_v10, %v4336_v40 }
 0xd9a   : > { %v4422_v8 = vpop.permute.xlu0 %4421 }
 0xd9b   : > { %v4432_v57 = vsel %vm1659_vm13, %v4420_v9, %v4422_v8  ;;  %v4494_v9 = vpop.permute.xlu1 %4493 }
 0xd9c   : > { %v4675_v12 = vsel %vm3838_vm12, %v4654_v24, %v4432_v57  ;;  %v4503_v22 = vsel %vm1703_vm10, %v4492_v52, %v4494_v9  ;;  %v4582_v24 = vsel %vm3793_vm1, %v9038_v49, %v4573_v16  ;;  %v4264_v49 = vsel %vm3255_vm6, %v8813_v55, 0 }
 0xd9d   : > { %4876 = vmatprep.subr.bf16.mxu0 %v4675_v12  ;;  %v4703_v13 = vsel %vm3895_vm11, %v4459_v34, %v4503_v22 }
 0xd9e   : > { %v4610_v18 = vpop.permute.xlu0 %4609  ;;  %4877 = vmatpush1.bf16.msra.mxu0 %v4672_v25 }
 0xd9f   : > { %v4618_v19 = vsel %vm10090_vm7, %v4608_v2, %v4610_v18  ;;  %v4538_v20 = vpop.permute.xlu1 %4537  ;;  %vm10094_vm7 = vmmov %vm10093_vm4 }
 0xda0   : > { %6133 = vmatprep.subr.msk.bf16.mxu1 %vm3895_vm11, %v4618_v19  ;;  %v4547_v23 = vsel %vm10091_vm5, %v4536_v27, %v4538_v20  ;;  %vm10095_vm5 = vcmp.ne.s16.totalorder %v7730_v29, 0 }
 0xda1   : > { %6132 = vmatmul.mubr.msk.bf16.vlgmr.msra.gmra.mxu0 %vm4752_vm15, %v8974_v28  ;;  %4914 = vmatpush1.bf16.msra.mxu1 %v4775_v37  ;;  %v4720_v21 = vsel %vm1500_vm8, %v4703_v13, %v4547_v23 }
 0xda2   : > { %v4575_v6 = vpop.permute.xlu0 %4574  ;;  %5560 = vmatprep.mubr.bf16.mxu0 %v9980_v33  ;;  %v4742_v7 = vsel %vm3838_vm12, %v4720_v21, %v4582_v24 }
 0xda3   : > { %v4380_v48 = vpop.permute.xlu1 %4379  ;;  %v4583_v52 = vsel %vm3793_vm1, %v4573_v16, %v4575_v6  ;;  %v4263_v16 = vsel %vm3254_vm9, %v8779_v60, 0 }
 0xda4   : > { %v4389_v18 = vsel %vm10094_vm7, %v4378_v35, %v4380_v48  ;;  %v4639_v6 = vsel %vm3895_vm11, %v4263_v16, %v4345_v62  ;;  %vm10098_vm7 = vcmp.ne.s16.totalorder %v7852_v17, 0 }
 0xda5   : > { %v4656_v35 = vsel %vm1500_vm8, %v4639_v6, %v4389_v18 }
 0xda6   : > { %v4338_v36 = vpop.permute.xlu0 %4337 }
 0xda7   : > { %v4346_v51 = vsel %vm1522_vm0, %v4336_v40, %v4338_v36  ;;  %v4424_v41 = vpop.permute.xlu1 %4423 }
 0xda8   : > { %v4642_v19 = vsel %vm3895_vm11, %v4264_v49, %v4346_v51  ;;  %v4433_v37 = vsel %vm1659_vm13, %v4422_v8, %v4424_v41 }
 0xda9   : > { %v4678_v55 = vsel %vm3838_vm12, %v4656_v35, %v4433_v37 }
 0xdaa   : > { %v4496_v50 = vpop.permute.xlu0 %4495 }
 0xdab   : > { %v4504_v2 = vsel %vm1703_vm10, %v4494_v9, %v4496_v50 }
 0xdac   : > { %v4706_v46 = vsel %vm3895_vm11, %v4460_v14, %v4504_v2 }
 0xdae   : > { %v4540_v61 = vpop.permute.xlu0 %4539 }
 0xdaf   : > { %v4548_v57 = vsel %vm10092_vm14, %v4538_v20, %v4540_v61  ;;  %vm10096_vm14 = vcmp.ne.s16.totalorder %v7748_v45, 0 }
 0xdb0   : > { %v4722_v27 = vsel %vm1500_vm8, %v4706_v46, %v4548_v57 }
 0xdb1   : > { %v4745_v15 = vsel %vm3838_vm12, %v4722_v27, %v4583_v52 }
 0xdb2   : > { %v4382_v12 = vpop.permute.xlu0 %4381  ;;  %4915 = vmatprep.subr.bf16.mxu1 %v4745_v15 }
 0xdb3   : > { %4916 = vmatpush1.bf16.msra.mxu1 %v4742_v7  ;;  %v4390_v25 = vsel %vm10093_vm4, %v4380_v48, %v4382_v12  ;;  %v4750_v60 = vpop.permute.xlu1 %4749  ;;  %vm10097_vm4 = vcmp.ne.s16.totalorder %v7758_v43, 0 }
 0xdb4   : > { %v4658_v40 = vsel %vm1500_vm8, %v4642_v19, %v4390_v25 }
 0xdb6   : > { %v4426_v9 = vpop.permute.xlu0 %4425 }
 0xdb7   : > { %v4434_v10 = vsel %vm1659_vm13, %v4424_v41, %v4426_v9 }
 0xdb8   : > { %v4681_v36 = vsel %vm3838_vm12, %v4658_v40, %v4434_v10 }
 0xdb9   : > { %4917 = vmatprep.subr.bf16.mxu1 %v4681_v36 }
 0xdba   : > { %4918 = vmatpush1.bf16.msra.mxu1 %v4678_v55 }
 0xdbd   : > { %6134 = vmatmul.mubr.msk.bf16.vlgmr.msra.gmra.mxu1 %vm4752_vm15, %v8974_v28 }
 0xdbe   : > { %5601 = vmatprep.mubr.bf16.mxu1 %v9980_v33 }
 0xe22   : > { %v4814_v8 = vpop.f32.mrf.mxu0 }
 0xe23   : > { %v4815_v20 = vadd.f32 %v4814_v8, %v4750_v60 }
 0xe24   : > { %v4816_v50 = vpop.f32.mrf.mxu0 }
 0xe25   : > { %v4944_v22 = vmax.f32 %v4815_v20, 0.0  ;;  %v4817_v23 = vadd.f32 %v4816_v50, %v4750_v60 }
 0xe26   : > { %v4818_v2 = vpop.f32.mrf.mxu0 }
 0xe27   : > { %v4952_v34 = vpack.c.bf16 %v4944_v22, %v4944_v22  ;;  %v4945_v48 = vmax.f32 %v4817_v23, 0.0 }
 0xe28   : > { %v4819_v14 = vpop.f32.mrf.mxu0 }
 0xe29   : > { %v4953_v13 = vpack.c.bf16 %v4945_v48, %v4945_v48  ;;  %4970 = vrot.lane.b32.xlu0 %v4952_v34, %s6313_s23 }
 0xe2b   : > { %4972 = vrot.lane.b32.xlu1 %v4953_v13, %s6313_s23 }
 0xe3d   : > { %v4855_v61 = vpop.f32.mrf.mxu0 }
 0xe3e   : > { %v4856_v21 = vadd.f32 %v4855_v61, %v4750_v60 }
 0xe3f   : > { %v4857_v28 = vpop.f32.mrf.mxu0 }
 0xe40   : > { %v4946_v46 = vmax.f32 %v4856_v21, 0.0  ;;  %v4858_v57 = vadd.f32 %v4857_v28, %v4750_v60 }
 0xe41   : > { %v4859_v52 = vpop.f32.mrf.mxu0 }
 0xe42   : > { %v4954_v27 = vpack.c.bf16 %v4946_v46, %v4946_v46  ;;  %v4947_v24 = vmax.f32 %v4858_v57, 0.0 }
 0xe43   : > { %v4860_v15 = vpop.f32.mrf.mxu0 }
 0xe44   : > { %v4955_v12 = vpack.c.bf16 %v4947_v24, %v4947_v24  ;;  %4974 = vrot.lane.b32.xlu0 %v4954_v27, %s6313_s23 }
 0xe46   : > { %4976 = vrot.lane.b32.xlu1 %v4955_v12, %s6313_s23 }
 0xe61   : > { %v4896_v7 = vpop.f32.mrf.mxu0 }
 0xe62   : > { %v4897_v51 = vadd.f32 %v4896_v7, %v4750_v60 }
 0xe63   : > { %v4898_v41 = vpop.f32.mrf.mxu0 }
 0xe64   : > { %v4948_v62 = vmax.f32 %v4897_v51, 0.0  ;;  %v4899_v25 = vadd.f32 %v4898_v41, %v4750_v60 }
 0xe65   : > { %v4900_v18 = vpop.f32.mrf.mxu0 }
 0xe66   : > { %v4956_v49 = vpack.c.bf16 %v4948_v62, %v4948_v62  ;;  %v4949_v16 = vmax.f32 %v4899_v25, 0.0 }
 0xe67   : > { %v4901_v19 = vpop.f32.mrf.mxu0 }
 0xe68   : > { %v4957_v37 = vpack.c.bf16 %v4949_v16, %v4949_v16  ;;  %4978 = vrot.lane.b32.xlu0 %v4956_v49, %s6313_s23 }
 0xe6a   : > { %4980 = vrot.lane.b32.xlu1 %v4957_v37, %s6313_s23 }
 0xe7d   : > { %v4937_v9 = vpop.f32.mrf.mxu1 }
 0xe7e   : > { %v4938_v6 = vadd.f32 %v4937_v9, %v4750_v60 }
 0xe7f   : > { %v4939_v10 = vpop.f32.mrf.mxu1 }
 0xe80   : > { %v4950_v40 = vmax.f32 %v4938_v6, 0.0  ;;  %v4940_v35 = vadd.f32 %v4939_v10, %v4750_v60 }
 0xe81   : > { %v4941_v36 = vpop.f32.mrf.mxu1 }
 0xe82   : > { %v4958_v55 = vpack.c.bf16 %v4950_v40, %v4950_v40  ;;  %v4951_v8 = vmax.f32 %v4940_v35, 0.0 }
 0xe83   : > { %v4942_v20 = vpop.f32.mrf.mxu1 }
 0xe84   : > { %v4959_v50 = vpack.c.bf16 %v4951_v8, %v4951_v8  ;;  %4982 = vrot.lane.b32.xlu0 %v4958_v55, %s6313_s23  ;;  %v10116_v20 = vld [vmem:[#allocation12_spill] sm:$0xff] }
 0xe86   : > { %4984 = vrot.lane.b32.xlu1 %v4959_v50, %s6313_s23 }
 0xe9b   : > { %v4971_v22 = vpop.permute.xlu0 %4970 }
 0xe9c   : > { %v9137_v23 = vsel %vm3052_vm3, 0, %v4971_v22 }
 0xe9d   : > { %v4973_v2 = vpop.permute.xlu1 %4972  ;;  %5184 = vrot.lane.b32.xlu1 %v9137_v23, %s9919_s4  ;;  %v5050_v60 = vsel %vm10095_vm5, %v9137_v23, 0  ;;  %v5298_v48 = vrot.slane %v9137_v23, 2  ;;  %v5032_v14 = vsel %vm10096_vm14, %v9137_v23, 0  ;;  %v5061_v13 = vrot.slane %v9137_v23, 6 }
 0xe9e   : > { %5342 = vrot.lane.b32.xlu0 %v5050_v60, %s6314_s0  ;;  %v9146_v34 = vsel %vm3052_vm3, %v4971_v22, %v4973_v2  ;;  %v5219_v29 = vrot.slane %v5032_v14, 6  ;;  %v5014_v61 = vsel %vm10097_vm4, %v9137_v23, 0  ;;  %vm10099_vm5 = vcmp.ne.s16.totalorder %v7746_v39, 0  ;;  %v10118_v14 = vld [vmem:[#allocation16_spill] sm:$0xff] }
 0xe9f   : > { %v5051_v21 = vsel %vm10098_vm7, %v9146_v34, 0  ;;  %v5105_v28 = vrot.slane %v5014_v61, 4  ;;  %v5041_v45 = vsel %vm10099_vm5, %v9137_v23, 0  ;;  %v5299_v57 = vrot.slane %v9146_v34, 2  ;;  %v10120_v61 = vld [vmem:[#allocation15_spill] sm:$0xff] }
 0xea0   : > { %v5263_v46 = vrot.slane %v5041_v45, 4  ;;  %vm10100_vm14 = vcmp.ne.s16.totalorder %v7760_v56, 0  ;;  %vm10101_vm4 = vcmp.ne.s16.totalorder %v7939_v30, 0  ;;  %v5062_v27 = vrot.slane %v9146_v34, 6  ;;  %v10122_v45 = vld [vmem:[#allocation20_spill] sm:$0xff] }
 0xea1   : > { %5186 = vrot.lane.b32.xlu1 %v9146_v34, %s9919_s4  ;;  %v5023_v43 = vsel %vm10100_vm14, %v9137_v23, 0  ;;  %v5015_v17 = vsel %vm10101_vm4, %v9146_v34, 0  ;;  %vm10102_vm7 = vcmp.ne.s16.totalorder %v7927_v54, 0  ;;  %vm10103_vm5 = vcmp.ne.s16.totalorder %v7914_v38, 0 }
 0xea2   : > { %5307 = vrot.lane.b32.xlu0 %v5298_v48, %s6315_s7  ;;  %v5149_v39 = vrot.slane %v5023_v43, 2  ;;  %v5106_v52 = vrot.slane %v5015_v17, 4  ;;  %v5033_v56 = vsel %vm10102_vm7, %v9146_v34, 0  ;;  %v5042_v12 = vsel %vm10103_vm5, %v9146_v34, 0 }
 0xea3   : > { %v5220_v15 = vrot.slane %v5033_v56, 6  ;;  %vm10104_vm14 = vcmp.ne.s16.totalorder %v10000_v42, 0  ;;  %v5264_v7 = vrot.slane %v5042_v12, 4  ;;  %vm10105_vm4 = vcmp.ne.s16.totalorder %v7956_v4, 0 }
 0xea4   : > { %v5024_v51 = vsel %vm10105_vm4, %v9146_v34, 0  ;;  %vm10106_vm7 = vcmp.ne.s16.totalorder %v7969_v3, 0  ;;  %vm10107_vm5 = vcmp.ne.s16.totalorder %v7951_v53, 0  ;;  %vm10109_vm4 = vcmp.ne.s16.totalorder %v10005_v31, 0 }
 0xea5   : > { %5070 = vrot.lane.b32.xlu1 %v5061_v13, %s9893_s5  ;;  %v5150_v62 = vrot.slane %v5024_v51, 2 }
 0xea6   : > { %5228 = vrot.lane.b32.xlu0 %v5219_v29, %s9921_s8 }
 0xea9   : > { %5344 = vrot.lane.b32.xlu1 %v5051_v21, %s6314_s0 }
 0xeaa   : > { %5114 = vrot.lane.b32.xlu0 %v5105_v28, %s9923_s24 }
 0xead   : > { %5272 = vrot.lane.b32.xlu1 %v5263_v46, %s6311_s26 }
 0xeae   : > { %5309 = vrot.lane.b32.xlu0 %v5299_v57, %s6315_s7 }
 0xeb1   : > { %5158 = vrot.lane.b32.xlu1 %v5149_v39, %s9924_s1  ;;  %v10124_v39 = vld [vmem:[#allocation17_spill] sm:$0xff] }
 0xeb2   : > { %5116 = vrot.lane.b32.xlu0 %v5106_v52, %s9923_s24 }
 0xeb5   : > { %5072 = vrot.lane.b32.xlu1 %v5062_v27, %s9893_s5  ;;  %v10126_v27 = vld [vmem:[#allocation18_spill] sm:$0xff] }
 0xeb6   : > { %v4975_v24 = vpop.permute.xlu0 %4974 }
 0xeb7   : > { %v9186_v30 = vsel %vm3052_vm3, %v4973_v2, %v4975_v24 }
 0xeb8   : > { %5188 = vrot.lane.b32.xlu0 %v9186_v30, %s9919_s4  ;;  %v5052_v54 = vsel %vm10104_vm14, %v9186_v30, 0  ;;  %v5063_v41 = vrot.slane %v9186_v30, 6  ;;  %v5034_v38 = vsel %vm10106_vm7, %v9186_v30, 0  ;;  %v4977_v42 = vpop.permute.xlu1 %4976  ;;  %v5043_v4 = vsel %vm10107_vm5, %v9186_v30, 0 }
 0xeb9   : > { %5230 = vrot.lane.b32.xlu1 %v5220_v15, %s9921_s8  ;;  %v5221_v25 = vrot.slane %v5034_v38, 6  ;;  %v9212_v18 = vsel %vm3052_vm3, %v4975_v24, %v4977_v42  ;;  %v5265_v3 = vrot.slane %v5043_v4, 4  ;;  %v5300_v49 = vrot.slane %v9186_v30, 2  ;;  %v10132_v4 = vld [vmem:[#allocation23_spill] sm:$0xff] }
 0xeba   : > { %vm10108_vm14 = vcmp.ne.s16.totalorder %v7994_v26, 0  ;;  %v5053_v19 = vsel %vm10109_vm4, %v9212_v18, 0  ;;  %vm10110_vm7 = vcmp.ne.s16.totalorder %v7983_v11, 0  ;;  %v5301_v26 = vrot.slane %v9212_v18, 2 }
 0xebb   : > { %v5025_v16 = vsel %vm10108_vm14, %v9186_v30, 0  ;;  %v5016_v37 = vsel %vm10110_vm7, %v9186_v30, 0  ;;  %vm10111_vm5 = vcmp.ne.s16.totalorder %v10012_v32, 0  ;;  %v5064_v31 = vrot.slane %v9212_v18, 6 }
 0xebc   : > { %5346 = vrot.lane.b32.xlu0 %v5052_v54, %s6314_s0  ;;  %v5151_v53 = vrot.slane %v5025_v16, 2  ;;  %v5107_v9 = vrot.slane %v5016_v37, 4  ;;  %v5017_v6 = vsel %vm10111_vm5, %v9212_v18, 0  ;;  %vm10112_vm14 = vcmp.ne.s16.totalorder %v8014_v1, 0  ;;  %v10114_v1 = vld [vmem:[#allocation14_spill] sm:$0xff] }
 0xebd   : > { %5274 = vrot.lane.b32.xlu1 %v5264_v7, %s6311_s26  ;;  %v5108_v10 = vrot.slane %v5017_v6, 4  ;;  %v5035_v11 = vsel %vm10112_vm14, %v9212_v18, 0  ;;  %vm10113_vm4 = vcmp.ne.s16.totalorder %v10010_v0, 0  ;;  %vm10115_vm7 = vcmp.ne.s16.totalorder %v10114_v1, 0  ;;  %v10128_v7 = vld [vmem:[#allocation22_spill] sm:$0xff] }
 0xebe   : > { %v5222_v40 = vrot.slane %v5035_v11, 6  ;;  %v5044_v32 = vsel %vm10113_vm4, %v9212_v18, 0  ;;  %v5026_v8 = vsel %vm10115_vm7, %v9212_v18, 0  ;;  %vm10117_vm5 = vcmp.ne.s16.totalorder %v10116_v20, 0  ;;  %v10140_v11 = vld [vmem:[#allocation28_spill] sm:$0xff] }
 0xebf   : > { %v5266_v55 = vrot.slane %v5044_v32, 4  ;;  %v5152_v50 = vrot.slane %v5026_v8, 2  ;;  %vm10119_vm14 = vcmp.ne.s16.totalorder %v10118_v14, 0  ;;  %vm10121_vm4 = vcmp.ne.s16.totalorder %v10120_v61, 0  ;;  %v10142_v8 = vld [vmem:[#allocation25_spill] sm:$0xff] }
 0xec0   : > { %5074 = vrot.lane.b32.xlu0 %v5063_v41, %s9893_s5  ;;  %vm10123_vm7 = vcmp.ne.s16.totalorder %v10122_v45, 0 }
 0xec1   : > { %5160 = vrot.lane.b32.xlu1 %v5150_v62, %s9924_s1 }
 0xec4   : > { %5232 = vrot.lane.b32.xlu0 %v5221_v25, %s9921_s8 }
 0xec5   : > { %5190 = vrot.lane.b32.xlu1 %v9212_v18, %s9919_s4 }
 0xec8   : > { %5276 = vrot.lane.b32.xlu0 %v5265_v3, %s6311_s26 }
 0xec9   : > { %5311 = vrot.lane.b32.xlu1 %v5300_v49, %s6315_s7 }
 0xecc   : > { %5162 = vrot.lane.b32.xlu0 %v5151_v53, %s9924_s1  ;;  %v10134_v53 = vld [vmem:[#allocation21_spill] sm:$0xff] }
 0xecd   : > { %5348 = vrot.lane.b32.xlu1 %v5053_v19, %s6314_s0 }
 0xed0   : > { %5313 = vrot.lane.b32.xlu0 %v5301_v26, %s6315_s7 }
 0xed1   : > { %5118 = vrot.lane.b32.xlu1 %v5107_v9, %s9923_s24  ;;  %v10136_v9 = vld [vmem:[#allocation4_spill] sm:$0xff] }
 0xed4   : > { %5120 = vrot.lane.b32.xlu0 %v5108_v10, %s9923_s24  ;;  %v10138_v10 = vld [vmem:[#allocation24_spill] sm:$0xff] }
 0xed5   : > { %5076 = vrot.lane.b32.xlu1 %v5064_v31, %s9893_s5 }
 0xed9   : > { %5234 = vrot.lane.b32.xlu1 %v5222_v40, %s9921_s8 }
 0xeda   : > { %v4979_v35 = vpop.permute.xlu0 %4978 }
 0xedb   : > { %v9248_v36 = vsel %vm3052_vm3, %v4977_v42, %v4979_v35  ;;  %v10130_v42 = vld [vmem:[#allocation19_spill] sm:$0xff] }
 0xedc   : > { %5192 = vrot.lane.b32.xlu0 %v9248_v36, %s9919_s4  ;;  %v5054_v0 = vsel %vm10117_vm5, %v9248_v36, 0  ;;  %v5065_v22 = vrot.slane %v9248_v36, 6  ;;  %v5302_v2 = vrot.slane %v9248_v36, 2  ;;  %v4981_v60 = vpop.permute.xlu1 %4980  ;;  %v5036_v13 = vsel %vm10119_vm14, %v9248_v36, 0 }
 0xedd   : > { %5278 = vrot.lane.b32.xlu1 %v5266_v55, %s6311_s26  ;;  %v9266_v48 = vsel %vm3052_vm3, %v4979_v35, %v4981_v60  ;;  %v5223_v29 = vrot.slane %v5036_v13, 6  ;;  %v5045_v21 = vsel %vm10121_vm4, %v9248_v36, 0  ;;  %v5027_v46 = vsel %vm10123_vm7, %v9248_v36, 0  ;;  %v10146_v13 = vld [vmem:[#allocation30_spill] sm:$0xff] }
 0xede   : > { %v5267_v28 = vrot.slane %v5045_v21, 4  ;;  %v5153_v57 = vrot.slane %v5027_v46, 2  ;;  %vm10125_vm5 = vcmp.ne.s16.totalorder %v10124_v39, 0  ;;  %vm10127_vm14 = vcmp.ne.s16.totalorder %v10126_v27, 0  ;;  %v10148_v46 = vld [vmem:[#allocation32_spill] sm:$0xff] }
 0xedf   : > { %v5055_v52 = vsel %vm10125_vm5, %v9266_v48, 0  ;;  %v5018_v56 = vsel %vm10127_vm14, %v9248_v36, 0  ;;  %v5303_v54 = vrot.slane %v9266_v48, 2  ;;  %vm10129_vm4 = vcmp.ne.s16.totalorder %v10128_v7, 0 }
 0xee0   : > { %5350 = vrot.lane.b32.xlu0 %v5054_v0, %s6314_s0  ;;  %v5109_v15 = vrot.slane %v5018_v56, 4  ;;  %v5066_v41 = vrot.slane %v9266_v48, 6  ;;  %vm10131_vm7 = vcmp.ne.s16.totalorder %v10130_v42, 0  ;;  %vm10133_vm5 = vcmp.ne.s16.totalorder %v10132_v4, 0  ;;  %v10144_v0 = vld [vmem:[#allocation26_spill] sm:$0xff]  ;;  %v10150_v56 = vld [vmem:[#allocation29_spill] sm:$0xff] }
 0xee1   : > { %5164 = vrot.lane.b32.xlu1 %v5152_v50, %s9924_s1  ;;  %v5037_v3 = vsel %vm10133_vm5, %v9266_v48, 0  ;;  %vm10137_vm14 = vcmp.ne.s16.totalorder %v10136_v9, 0  ;;  %vm10143_vm5 = vcmp.ne.s16.totalorder %v10142_v8, 0 }
 0xee2   : > { %v5224_v49 = vrot.slane %v5037_v3, 6  ;;  %v5028_v20 = vsel %vm10143_vm5, %v9266_v48, 0 }
 0xee4   : > { %5078 = vrot.lane.b32.xlu0 %v5065_v22, %s9893_s5 }
 0xee5   : > { %5315 = vrot.lane.b32.xlu1 %v5302_v2, %s6315_s7  ;;  %v5154_v2 = vrot.slane %v5028_v20, 2 }
 0xee8   : > { %5194 = vrot.lane.b32.xlu0 %v9266_v48, %s9919_s4 }
 0xeec   : > { %5236 = vrot.lane.b32.xlu0 %v5223_v29, %s9921_s8 }
 0xef0   : > { %5280 = vrot.lane.b32.xlu0 %v5267_v28, %s6311_s26 }
 0xef4   : > { %5166 = vrot.lane.b32.xlu0 %v5153_v57, %s9924_s1 }
 0xef6   : > { %v4983_v43 = vpop.permute.xlu0 %4982 }
 0xef7   : > { %v9283_v17 = vsel %vm3052_vm3, %v4981_v60, %v4983_v43 }
 0xef8   : > { %v4985_v24 = vpop.permute.xlu1 %4984  ;;  %5352 = vrot.lane.b32.xlu0 %v5055_v52, %s6314_s0  ;;  %5196 = vrot.lane.b32.xlu1 %v9283_v17, %s9919_s4  ;;  %v5056_v51 = vsel %vm10129_vm4, %v9283_v17, 0  ;;  %v5304_v38 = vrot.slane %v9283_v17, 2  ;;  %v5067_v16 = vrot.slane %v9283_v17, 6  ;;  %vm10139_vm4 = vcmp.ne.s16.totalorder %v10138_v10, 0 }
 0xef9   : > { %v9295_v12 = vsel %vm3052_vm3, %v4983_v43, %v4985_v24  ;;  %v9308_v62 = vsel %vm3052_vm3, %v4985_v24, 0  ;;  %vm10135_vm3 = vcmp.ne.s16.totalorder %v10134_v53, 0  ;;  %v5019_v31 = vsel %vm10139_vm4, %v9266_v48, 0  ;;  %v10156_v53 = vld [vmem:[#allocation5_spill] sm:$0xff] }
 0xefa   : > { %v5057_v25 = vsel %vm10131_vm7, %v9295_v12, 0  ;;  %v5046_v19 = vsel %vm10135_vm3, %v9266_v48, 0  ;;  %v5058_v6 = vsel %vm10137_vm14, %v9308_v62, 0  ;;  %vm10141_vm7 = vcmp.ne.s16.totalorder %v10140_v11, 0 }
 0xefb   : > { %v5268_v37 = vrot.slane %v5046_v19, 4  ;;  %v5038_v40 = vsel %vm10141_vm7, %v9283_v17, 0  ;;  %v5110_v35 = vrot.slane %v5019_v31, 4  ;;  %vm10145_vm3 = vcmp.ne.s16.totalorder %v10144_v0, 0  ;;  %v10158_v31 = vld [vmem:[#allocation33_spill] sm:$0xff] }
 0xefc   : > { %5198 = vrot.lane.b32.xlu0 %v9295_v12, %s9919_s4  ;;  %5122 = vrot.lane.b32.xlu1 %v5109_v15, %s9923_s24  ;;  %v5225_v55 = vrot.slane %v5038_v40, 6  ;;  %v5047_v50 = vsel %vm10145_vm3, %v9283_v17, 0  ;;  %vm10147_vm14 = vcmp.ne.s16.totalorder %v10146_v13, 0  ;;  %v5305_v21 = vrot.slane %v9295_v12, 2  ;;  %v10160_v40 = vld [vmem:[#allocation6_spill] sm:$0xff] }
 0xefd   : > { %v5269_v60 = vrot.slane %v5047_v50, 4  ;;  %v5020_v29 = vsel %vm10147_vm14, %v9283_v17, 0  ;;  %vm10149_vm4 = vcmp.ne.s16.totalorder %v10148_v46, 0  ;;  %v5068_v39 = vrot.slane %v9295_v12, 6  ;;  %v10166_v46 = vld [vmem:[#allocation8_spill] sm:$0xff] }
 0xefe   : > { %v5111_v28 = vrot.slane %v5020_v29, 4  ;;  %v5029_v57 = vsel %vm10149_vm4, %v9283_v17, 0  ;;  %vm10151_vm7 = vcmp.ne.s16.totalorder %v10150_v56, 0  ;;  %v5306_v7 = vrot.slane %v9308_v62, 2 }
 0xeff   : > { %v5155_v52 = vrot.slane %v5029_v57, 2  ;;  %v5039_v24 = vsel %vm10151_vm7, %v9295_v12, 0  ;;  %v5069_v4 = vrot.slane %v9308_v62, 6  ;;  %vm10157_vm14 = vcmp.ne.s16.totalorder %v10156_v53, 0 }
 0xf00   : > { %5317 = vrot.lane.b32.xlu0 %v5303_v54, %s6315_s7  ;;  %5354 = vrot.lane.b32.xlu1 %v5056_v51, %s6314_s0  ;;  %v5226_v54 = vrot.slane %v5039_v24, 6  ;;  %v5040_v19 = vsel %vm10157_vm14, %v9308_v62, 0  ;;  %vm10159_vm4 = vcmp.ne.s16.totalorder %v10158_v31, 0  ;;  %vm10161_vm7 = vcmp.ne.s16.totalorder %v10160_v40, 0 }
 0xf01   : > { %v5030_v11 = vsel %vm10159_vm4, %v9295_v12, 0  ;;  %vm10167_vm4 = vcmp.ne.s16.totalorder %v10166_v46, 0 }
 0xf02   : > { %v5156_v20 = vrot.slane %v5030_v11, 2  ;;  %v5031_v57 = vsel %vm10167_vm4, %v9308_v62, 0  ;;  %v10170_v11 = vld [vmem:[#allocation3_spill] sm:$0xff]  ;;  %vm10174_vm4 = vcmask 1031168  }
 0xf04   : > { %5080 = vrot.lane.b32.xlu0 %v5066_v41, %s9893_s5  ;;  %5200 = vrot.lane.b32.xlu1 %v9308_v62, %s9919_s4  ;;  %v10152_v41 = vld [vmem:[#allocation27_spill] sm:$0xff] }
 0xf05   : > { %vm10153_vm5 = vcmp.ne.s16.totalorder %v10152_v41, 0 }
 0xf08   : > { %5356 = vrot.lane.b32.xlu0 %v5057_v25, %s6314_s0  ;;  %5319 = vrot.lane.b32.xlu1 %v5304_v38, %s6315_s7  ;;  %v5048_v38 = vsel %vm10153_vm5, %v9295_v12, 0  ;;  %vm10162_vm5 = vcmask 506880  }
 0xf09   : > { %v5270_v25 = vrot.slane %v5048_v38, 4 }
 0xf0c   : > { %5238 = vrot.lane.b32.xlu0 %v5224_v49, %s9921_s8  ;;  %5082 = vrot.lane.b32.xlu1 %v5067_v16, %s9893_s5  ;;  %v10154_v49 = vld [vmem:[#allocation31_spill] sm:$0xff] }
 0xf0d   : > { %vm10155_vm3 = vcmp.ne.s16.totalorder %v10154_v49, 0 }
 0xf0e   : > { %v5021_v16 = vsel %vm10155_vm3, %v9295_v12, 0  ;;  %vm10163_vm3 = vmmov %vm10162_vm5 }
 0xf0f   : > { %v9328_v26 = vpop.permute.xlu1 %5184  ;;  %v5112_v9 = vrot.slane %v5021_v16, 4 }
 0xf10   : > { %5282 = vrot.lane.b32.xlu0 %v5268_v37, %s6311_s26  ;;  %5358 = vrot.lane.b32.xlu1 %v5058_v6, %s6314_s0  ;;  %v5343_v32 = vpop.permute.xlu0 %5342  ;;  %v5227_v6 = vrot.slane %v5040_v19, 6  ;;  %s6149_s0 = sshll.u32 %s10198_s25, 6 }
 0xf13   : > { %v9341_v1 = vpop.permute.xlu1 %5186 }
 0xf14   : > { %5124 = vrot.lane.b32.xlu0 %v5110_v35, %s9923_s24  ;;  %5240 = vrot.lane.b32.xlu1 %v5225_v55, %s9921_s8  ;;  %v9351_v22 = vpop.permute.xlu0 %5307  ;;  %v5049_v35 = vsel %vm10161_vm7, %v9308_v62, 0  ;;  %vm10168_vm7 = vcmask 523264   ;;  %v5202_v41 = vsel %vm1678_vm2, %v9328_v26, %v9341_v1 }
 0xf15   : > { %v5271_v0 = vrot.slane %v5049_v35, 4 }
 0xf17   : > { %v9353_v14 = vpop.permute.xlu1 %5070 }
 0xf18   : > { %5168 = vrot.lane.b32.xlu0 %v5154_v2, %s9924_s1  ;;  %5284 = vrot.lane.b32.xlu1 %v5269_v60, %s6311_s26  ;;  %v5229_v61 = vpop.permute.xlu0 %5228  ;;  %v10164_v60 = vld [vmem:[#allocation7_spill] sm:$0xff] }
 0xf19   : > { %vm10165_vm14 = vcmp.ne.s16.totalorder %v10164_v60, 0 }
 0xf1a   : > { %v5022_v13 = vsel %vm10165_vm14, %v9308_v62, 0 }
 0xf1b   : > { %v5345_v45 = vpop.permute.xlu1 %5344 }
 0xf1c   : > { %5321 = vrot.lane.b32.xlu0 %v5305_v21, %s6315_s7  ;;  %5126 = vrot.lane.b32.xlu1 %v5111_v28, %s9923_s24  ;;  %v9366_v43 = vpop.permute.xlu0 %5114  ;;  %v5360_v55 = vsel %vm10162_vm5, %v5343_v32, %v5345_v45  ;;  %v4961_v32 = vld [vmem:[%s9712_s20] sm:$0x1f]  ;;  %v5113_v28 = vrot.slane %v5022_v13, 4  ;;  %vm10169_vm5 = vmmov %vm10168_vm7 }
 0xf1d   : > { %v5505_v29 = vsel %vm3895_vm11, %v5360_v55, 0  ;;  %v9479_v13 = vld [vmem:[%s9711_s19] sm:$0x7] }
 0xf1f   : > { %v5273_v27 = vpop.permute.xlu1 %5272 }
 0xf20   : > { %5084 = vrot.lane.b32.xlu0 %v5068_v39, %s9893_s5  ;;  %5170 = vrot.lane.b32.xlu1 %v5155_v52, %s9924_s1  ;;  %v5310_v15 = vpop.permute.xlu0 %5309  ;;  %v5157_v52 = vrot.slane %v5031_v57, 2 }
 0xf21   : > { %v5325_v26 = vsel %vm3793_vm1, %v9351_v22, %v5310_v15 }
 0xf23   : > { %v9375_v51 = vpop.permute.xlu1 %5158 }
 0xf24   : > { %5242 = vrot.lane.b32.xlu0 %v5226_v54, %s9921_s8  ;;  %5323 = vrot.lane.b32.xlu1 %v5306_v7, %s6315_s7  ;;  %v9382_v42 = vpop.permute.xlu0 %5116 }
 0xf27   : > { %v5073_v3 = vpop.permute.xlu1 %5072 }
 0xf28   : > { %5286 = vrot.lane.b32.xlu0 %v5270_v25, %s6311_s26  ;;  %5086 = vrot.lane.b32.xlu1 %v5069_v4, %s9893_s5 }
 0xf2a   : > { %v9393_v37 = vpop.permute.xlu0 %5188 }
 0xf2b   : > { %v5231_v10 = vpop.permute.xlu1 %5230  ;;  %v5203_v62 = vsel %vm1678_vm2, %v9341_v1, %v9393_v37 }
 0xf2c   : > { %5128 = vrot.lane.b32.xlu0 %v5112_v9, %s9923_s24  ;;  %5244 = vrot.lane.b32.xlu1 %v5227_v6, %s9921_s8  ;;  %v5246_v56 = vsel %vm1703_vm10, %v5229_v61, %v5231_v10 }
 0xf2d   : > { %v5434_v38 = vsel %vm3895_vm11, %v5202_v41, %v5246_v56 }
 0xf2e   : > { %v9404_v8 = vpop.permute.xlu0 %5346 }
 0xf2f   : > { %v5361_v50 = vsel %vm10163_vm3, %v5345_v45, %v9404_v8  ;;  %v5275_v2 = vpop.permute.xlu1 %5274  ;;  %vm10171_vm3 = vcmp.ne.s16.totalorder %v10170_v11, 0 }
 0xf30   : > { %5172 = vrot.lane.b32.xlu0 %v5156_v20, %s9924_s1  ;;  %5288 = vrot.lane.b32.xlu1 %v5271_v0, %s6311_s26  ;;  %v5290_v54 = vsel %vm10168_vm7, %v5273_v27, %v5275_v2  ;;  %v5006_v40 = vsel %vm10171_vm3, %v9137_v23, 0  ;;  %vm10175_vm7 = vmmov %vm10174_vm4 }
 0xf31   : > { %6135 = vmatprep.subr.msk.bf16.mxu0 %vm3895_vm11, %v5361_v50  ;;  %v5457_v61 = vsel %vm1500_vm8, %v5434_v38, %v5290_v54  ;;  %v5132_v23 = vsel %vm10175_vm7, %v9366_v43, %v9382_v42  ;;  %vm10180_vm7 = vcmp.ne.s16.totalorder %v7431_v58, 0 }
 0xf32   : > { %5539 = vmatpush1.bf16.msra.mxu0 %v5505_v29  ;;  %v9418_v21 = vpop.permute.xlu0 %5074  ;;  %v5473_v9 = vsel %vm3838_vm12, %v5457_v61, %v5325_v26 }
 0xf33   : > { %v5161_v45 = vpop.permute.xlu1 %5160  ;;  %v5089_v31 = vsel %vm1522_vm0, %v5073_v3, %v9418_v21 }
 0xf34   : > { %5498 = vperm.xlu0 %6216, %v4961_v32   ;;  %5130 = vrot.lane.b32.xlu1 %v5113_v28, %s9923_s24  ;;  %s9665_s24 = scalar_lea.vmem %s9713_s21, %s6149_s0 }
 0xf36   : > { %v5233_v39 = vpop.permute.xlu0 %5232 }
 0xf37   : > { %v9425_v24 = vpop.permute.xlu1 %5190  ;;  %v5247_v7 = vsel %vm1703_vm10, %v5231_v10, %v5233_v39  ;;  %v5088_v10 = vsel %vm1522_vm0, %v9353_v14, %v5073_v3  ;;  %v5176_v14 = vsel %vm1659_vm13, %v9375_v51, %v5161_v45 }
 0xf38   : > { %5174 = vrot.lane.b32.xlu1 %v5157_v52, %s9924_s1  ;;  %v5437_v4 = vsel %vm3895_vm11, %v5203_v62, %v5247_v7  ;;  %v5370_v22 = vsel %vm3895_vm11, %v5006_v40, %v5088_v10  ;;  %v5204_v61 = vsel %vm1678_vm2, %v9393_v37, %v9425_v24 }
 0xf39   : > { %v5393_v60 = vsel %vm1500_vm8, %v5370_v22, %v5132_v23 }
 0xf3a   : > { %v5277_v25 = vpop.permute.xlu0 %5276  ;;  %v5409_v51 = vsel %vm3838_vm12, %v5393_v60, %v5176_v14 }
 0xf3b   : > { %v5291_v27 = vsel %vm10169_vm5, %v5275_v2, %v5277_v25  ;;  %v5312_v49 = vpop.permute.xlu1 %5311  ;;  %vm10176_vm5 = vcmask 506880  }
 0xf3c   : > { %v5326_v16 = vsel %vm3793_vm1, %v5310_v15, %v5312_v49  ;;  %v5459_v53 = vsel %vm1500_vm8, %v5437_v4, %v5291_v27  ;;  %v10172_v15 = vld [vmem:[#allocation2_spill] sm:$0xff]  ;;  %vm10177_vm3 = vmmov %vm10176_vm5 }
 0xf3d   : > { %v5476_v19 = vsel %vm3838_vm12, %v5459_v53, %v5326_v16  ;;  %vm10173_vm14 = vcmp.ne.s16.totalorder %v10172_v15, 0 }
 0xf3e   : > { %5540 = vmatprep.subr.bf16.mxu0 %v5476_v19  ;;  %v9445_v1 = vpop.permute.xlu0 %5162  ;;  %v5007_v35 = vsel %vm10173_vm14, %v9146_v34, 0  ;;  %vm10178_vm14 = vcmask 523264  }
 0xf3f   : > { %v5349_v6 = vpop.permute.xlu1 %5348  ;;  %5541 = vmatpush1.bf16.msra.mxu0 %v5473_v9  ;;  %v5373_v20 = vsel %vm3895_vm11, %v5007_v35, %v5089_v31  ;;  %v5177_v50 = vsel %vm1659_vm13, %v5161_v45, %v9445_v1 }
 0xf40   : > { %v5362_v28 = vsel %vm10176_vm5, %v9404_v8, %v5349_v6  ;;  %vm10181_vm5 = vcmp.ne.s16.totalorder %v7459_v59, 0 }
 0xf41   : > { %v5511_v57 = vsel %vm3895_vm11, %v5362_v28, 0  ;;  %v5009_v35 = vsel %vm10181_vm5, %v9212_v18, 0 }
 0xf42   : > { %v5314_v0 = vpop.permute.xlu0 %5313 }
 0xf43   : > { %v9459_v55 = vpop.permute.xlu1 %5118  ;;  %v5327_v9 = vsel %vm3793_vm1, %v5312_v49, %v5314_v0  ;;  %v5008_v49 = vsel %vm10180_vm7, %v9186_v30, 0 }
 0xf44   : > { %v5133_v3 = vsel %vm10174_vm4, %v9382_v42, %v9459_v55  ;;  %vm10179_vm4 = vmmov %vm10178_vm14 }
 0xf45   : > { %v5395_v34 = vsel %vm1500_vm8, %v5373_v20, %v5133_v3 }
 0xf46   : > { %v5412_v2 = vsel %vm3838_vm12, %v5395_v34, %v5177_v50  ;;  %v5121_v43 = vpop.permute.xlu0 %5120 }
 0xf47   : > { %5542 = vmatprep.subr.bf16.mxu0 %v5412_v2  ;;  %v5077_v29 = vpop.permute.xlu1 %5076 }
 0xf48   : > { %5543 = vmatpush1.bf16.msra.mxu0 %v5409_v51  ;;  %v5090_v40 = vsel %vm1522_vm0, %v9418_v21, %v5077_v29 }
 0xf49   : > { %v5376_v15 = vsel %vm3895_vm11, %v5008_v49, %v5090_v40 }
 0xf4b   : > { %6136 = vmatmul.mubr.msk.bf16.vlgmr.msra.gmra.mxu0 %vm4752_vm15, %v9479_v13  ;;  %v5235_v32 = vpop.permute.xlu1 %5234 }
 0xf4c   : > { %5642 = vmatprep.mubr.bf16.mxu0 %v9980_v33  ;;  %v5248_v62 = vsel %vm1703_vm10, %v5233_v39, %v5235_v32 }
 0xf4d   : > { %v5440_v27 = vsel %vm3895_vm11, %v5204_v61, %v5248_v62 }
 0xf4e   : > { %v9484_v42 = vpop.permute.xlu0 %5192 }
 0xf4f   : > { %v5279_v52 = vpop.permute.xlu1 %5278  ;;  %v5205_v16 = vsel %vm1678_vm2, %v9425_v24, %v9484_v42 }
 0xf50   : > { %v5292_v8 = vsel %vm10178_vm14, %v5277_v25, %v5279_v52 }
 0xf51   : > { %v5461_v39 = vsel %vm1500_vm8, %v5440_v27, %v5292_v8 }
 0xf52   : > { %v5351_v45 = vpop.permute.xlu0 %5350  ;;  %v5479_v24 = vsel %vm3838_vm12, %v5461_v39, %v5327_v9 }
 0xf53   : > { %v5363_v46 = vsel %vm10177_vm3, %v5349_v6, %v5351_v45  ;;  %v5165_v7 = vpop.permute.xlu1 %5164  ;;  %vm10182_vm3 = vcmask 1031168  }
 0xf54   : > { %6137 = vmatprep.subr.msk.bf16.mxu1 %vm3895_vm11, %v5363_v46  ;;  %vm10183_vm14 = vmmov %vm10182_vm3 }
 0xf55   : > { %5580 = vmatpush1.bf16.msra.mxu1 %v5511_v57  ;;  %v5134_v58 = vsel %vm10183_vm14, %v9459_v55, %v5121_v43  ;;  %vm10188_vm14 = vcmask 523264  }
 0xf56   : > { %v9491_v56 = vpop.permute.xlu0 %5078  ;;  %v5397_v50 = vsel %vm1500_vm8, %v5376_v15, %v5134_v58 }
 0xf57   : > { %v9504_v4 = vpop.permute.xlu1 %5315  ;;  %v5091_v22 = vsel %vm1522_vm0, %v5077_v29, %v9491_v56 }
 0xf58   : > { %v5328_v19 = vsel %vm3793_vm1, %v5314_v0, %v9504_v4  ;;  %v5178_v0 = vsel %vm1659_vm13, %v9445_v1, %v5165_v7  ;;  %v5379_v21 = vsel %vm3895_vm11, %v5009_v35, %v5091_v22 }
 0xf59   : > { %v5415_v2 = vsel %vm3838_vm12, %v5397_v50, %v5178_v0 }
 0xf5a   : > { %v9493_v54 = vpop.permute.xlu0 %5194 }
 0xf5e   : > { %v9495_v41 = vpop.permute.xlu0 %5236 }
 0xf5f   : > { %v5249_v38 = vsel %vm1703_vm10, %v5235_v32, %v9495_v41 }
 0xf60   : > { %v5443_v25 = vsel %vm3895_vm11, %v5205_v16, %v5249_v38  ;;  %v5206_v16 = vsel %vm1678_vm2, %v9484_v42, %v9493_v54 }
 0xf62   : > { %v5281_v53 = vpop.permute.xlu0 %5280 }
 0xf63   : > { %v5293_v26 = vsel %vm10179_vm4, %v5279_v52, %v5281_v53  ;;  %vm10184_vm4 = vcmask 506880  }
 0xf64   : > { %v5463_v37 = vsel %vm1500_vm8, %v5443_v25, %v5293_v26  ;;  %vm10185_vm7 = vmmov %vm10184_vm4 }
 0xf65   : > { %v5482_v6 = vsel %vm3838_vm12, %v5463_v37, %v5328_v19  ;;  %vm10186_vm5 = vmmov %vm10184_vm4 }
 0xf66   : > { %5581 = vmatprep.subr.bf16.mxu1 %v5482_v6  ;;  %v9518_v10 = vpop.permute.xlu0 %5166 }
 0xf67   : > { %5582 = vmatpush1.bf16.msra.mxu1 %v5479_v24  ;;  %v5179_v30 = vsel %vm1659_vm13, %v5165_v7, %v9518_v10 }
 0xf6a   : > { %v9521_v31 = vpop.permute.xlu1 %5196  ;;  %v5353_v11 = vpop.permute.xlu0 %5352 }
 0xf6b   : > { %v5364_v59 = vsel %vm10184_vm4, %v5351_v45, %v5353_v11  ;;  %v5207_v39 = vsel %vm1678_vm2, %v9493_v54, %v9521_v31 }
 0xf6c   : > { %v5517_v55 = vsel %vm3895_vm11, %v5364_v59, 0 }
 0xf6e   : > { %v5123_v20 = vpop.permute.xlu1 %5122  ;;  %v9534_v14 = vpop.permute.xlu0 %5198 }
 0xf6f   : > { %v5135_v3 = vsel %vm10182_vm3, %v5121_v43, %v5123_v20  ;;  %vm10187_vm3 = vmmov %vm10184_vm4 }
 0xf70   : > { %v5399_v23 = vsel %vm1500_vm8, %v5379_v21, %v5135_v3  ;;  %vm10189_vm4 = vmmov %vm10188_vm14 }
 0xf71   : > { %v5418_v18 = vsel %vm3838_vm12, %v5399_v23, %v5179_v30 }
 0xf72   : > { %v5355_v34 = vpop.permute.xlu1 %5354  ;;  %5583 = vmatprep.subr.bf16.mxu1 %v5418_v18  ;;  %v5318_v1 = vpop.permute.xlu0 %5317 }
 0xf73   : > { %v5365_v60 = vsel %vm10185_vm7, %v5353_v11, %v5355_v34  ;;  %5584 = vmatpush1.bf16.msra.mxu1 %v5415_v2  ;;  %v5329_v42 = vsel %vm3793_vm1, %v9504_v4, %v5318_v1  ;;  %vm10190_vm7 = vcmask 1031168  }
 0xf74   : > { %6139 = vmatprep.subr.msk.bf16.mxu0 %vm3895_vm11, %v5365_v60  ;;  %v5208_v60 = vsel %vm1678_vm2, %v9521_v31, %v9534_v14 }
 0xf75   : > { %5621 = vmatpush1.bf16.msra.mxu0 %v5517_v55 }
 0xf76   : > { %v9552_v51 = vpop.permute.xlu1 %5200  ;;  %6138 = vmatmul.mubr.msk.bf16.vlgmr.msra.gmra.mxu1 %vm4752_vm15, %v9479_v13  ;;  %v5081_v29 = vpop.permute.xlu0 %5080 }
 0xf77   : > { %5683 = vmatprep.mubr.bf16.mxu1 %v9980_v33  ;;  %v5092_v49 = vsel %vm1522_vm0, %v9491_v56, %v5081_v29 }
 0xf7a   : > { %v9557_v43 = vpop.permute.xlu1 %5319  ;;  %v5357_v32 = vpop.permute.xlu0 %5356 }
 0xf7b   : > { %v5366_v46 = vsel %vm10186_vm5, %v5355_v34, %v5357_v32  ;;  %v5330_v9 = vsel %vm3793_vm1, %v5318_v1, %v9557_v43  ;;  %vm10191_vm5 = vcmp.ne.s16.totalorder %v7525_v5, 0 }
 0xf7c   : > { %v5523_v62 = vsel %vm3895_vm11, %v5366_v46, 0  ;;  %v5011_v4 = vsel %vm10191_vm5, %v9266_v48, 0 }
 0xf7e   : > { %v9559_v28 = vpop.permute.xlu1 %5082  ;;  %v5239_v45 = vpop.permute.xlu0 %5238 }
 0xf7f   : > { %v5250_v33 = vsel %vm1703_vm10, %v9495_v41, %v5239_v45  ;;  %v5093_v22 = vsel %vm1522_vm0, %v5081_v29, %v9559_v28  ;;  %v5209_v29 = vsel %vm1678_vm2, %v9534_v14, %v9552_v51 }
 0xf80   : > { %v5446_v25 = vsel %vm3895_vm11, %v5206_v16, %v5250_v33  ;;  %v5385_v21 = vsel %vm3895_vm11, %v5011_v4, %v5093_v22  ;;  %v5013_v16 = vsel %vm3255_vm6, %v9295_v12, 0 }
 0xf82   : > { %v5359_v57 = vpop.permute.xlu1 %5358  ;;  %v5283_v52 = vpop.permute.xlu0 %5282 }
 0xf83   : > { %v5367_v7 = vsel %vm10187_vm3, %v5357_v32, %v5359_v57  ;;  %v5294_v61 = vsel %vm10188_vm14, %v5281_v53, %v5283_v52  ;;  %vm10192_vm3 = vmmov %vm10190_vm7  ;;  %vm10193_vm14 = vcmp.ne.s16.totalorder %v7455_v63, 0 }
 0xf84   : > { %6141 = vmatprep.subr.msk.bf16.mxu1 %vm3895_vm11, %v5367_v7  ;;  %v5465_v37 = vsel %vm1500_vm8, %v5446_v25, %v5294_v61  ;;  %v5010_v0 = vsel %vm10193_vm14, %v9248_v36, 0  ;;  %vm10196_vm2 = vmmov %vm10192_vm3 }
 0xf85   : > { %5662 = vmatpush1.bf16.msra.mxu1 %v5523_v62  ;;  %v5485_v40 = vsel %vm3838_vm12, %v5465_v37, %v5329_v42  ;;  %v5382_v56 = vsel %vm3895_vm11, %v5010_v0, %v5092_v49 }
 0xf86   : > { %v5241_v8 = vpop.permute.xlu1 %5240  ;;  %v5125_v38 = vpop.permute.xlu0 %5124 }
 0xf87   : > { %v5251_v27 = vsel %vm1703_vm10, %v5239_v45, %v5241_v8  ;;  %v5136_v35 = vsel %vm10192_vm3, %v5123_v20, %v5125_v38 }
 0xf88   : > { %v5449_v41 = vsel %vm3895_vm11, %v5207_v39, %v5251_v27  ;;  %v5401_v48 = vsel %vm1500_vm8, %v5382_v56, %v5136_v35  ;;  %v5012_v39 = vsel %vm3254_vm9, %v9283_v17, 0 }
 0xf8a   : > { %v5285_v26 = vpop.permute.xlu1 %5284  ;;  %v5169_v19 = vpop.permute.xlu0 %5168 }
 0xf8b   : > { %v5295_v53 = vsel %vm10189_vm4, %v5283_v52, %v5285_v26  ;;  %v5180_v3 = vsel %vm1659_vm13, %v9518_v10, %v5169_v19 }
 0xf8c   : > { %v5467_v6 = vsel %vm1500_vm8, %v5449_v41, %v5295_v53  ;;  %v5421_v63 = vsel %vm3838_vm12, %v5401_v48, %v5180_v3 }
 0xf8d   : > { %v5488_v54 = vsel %vm3838_vm12, %v5467_v6, %v5330_v9 }
 0xf8e   : > { %v5127_v24 = vpop.permute.xlu1 %5126  ;;  %5622 = vmatprep.subr.bf16.mxu0 %v5488_v54  ;;  %v5322_v11 = vpop.permute.xlu0 %5321 }
 0xf8f   : > { %5623 = vmatpush1.bf16.msra.mxu0 %v5485_v40  ;;  %v5137_v15 = vsel %vm10190_vm7, %v5125_v38, %v5127_v24  ;;  %vm10194_vm7 = vmmov %vm10189_vm4  ;;  %v5331_v31 = vsel %vm3793_vm1, %v9557_v43, %v5322_v11 }
 0xf90   : > { %v5403_v5 = vsel %vm1500_vm8, %v5385_v21, %v5137_v15 }
 0xf92   : > { %v5171_v58 = vpop.permute.xlu1 %5170  ;;  %v5085_v30 = vpop.permute.xlu0 %5084 }
 0xf93   : > { %v5181_v23 = vsel %vm1659_vm13, %v5169_v19, %v5171_v58  ;;  %v5094_v61 = vsel %vm1522_vm0, %v9559_v28, %v5085_v30 }
 0xf94   : > { %v5424_v20 = vsel %vm3838_vm12, %v5403_v5, %v5181_v23  ;;  %v5388_v37 = vsel %vm3895_vm11, %v5012_v39, %v5094_v61 }
 0xf95   : > { %5624 = vmatprep.subr.bf16.mxu0 %v5424_v20 }
 0xf96   : > { %v5324_v36 = vpop.permute.xlu1 %5323  ;;  %5625 = vmatpush1.bf16.msra.mxu0 %v5421_v63  ;;  %v5243_v59 = vpop.permute.xlu0 %5242 }
 0xf97   : > { %v5252_v34 = vsel %vm1703_vm10, %v5241_v8, %v5243_v59  ;;  %v5332_v7 = vsel %vm3793_vm1, %v5322_v11, %v5324_v36 }
 0xf98   : > { %v5452_v32 = vsel %vm3895_vm11, %v5208_v60, %v5252_v34 }
 0xf99   : > { %6140 = vmatmul.mubr.msk.bf16.vlgmr.msra.gmra.mxu0 %vm4752_vm15, %v9479_v13 }
 0xf9a   : > { %v5087_v10 = vpop.permute.xlu1 %5086  ;;  %v5287_v18 = vpop.permute.xlu0 %5286 }
 0xf9b   : > { %v5296_v1 = vsel %vm10189_vm4, %v5285_v26, %v5287_v18  ;;  %v5095_v51 = vsel %vm1522_vm0, %v5085_v30, %v5087_v10  ;;  %vm5692_vm0 = vcmask 1044480  }
 0xf9c   : > { %v5469_v46 = vsel %vm1500_vm8, %v5452_v32, %v5296_v1  ;;  %v5391_v25 = vsel %vm3895_vm11, %v5013_v16, %v5095_v51 }
 0xf9d   : > { %v5491_v14 = vsel %vm3838_vm12, %v5469_v46, %v5331_v31 }
 0xf9e   : > { %v5245_v50 = vpop.permute.xlu1 %5244  ;;  %v5129_v55 = vpop.permute.xlu0 %5128 }
 0xf9f   : > { %v5253_v2 = vsel %vm1703_vm10, %v5243_v59, %v5245_v50  ;;  %vm10195_vm10 = vmmov %vm10192_vm3  ;;  %v5138_v43 = vsel %vm10196_vm2, %v5127_v24, %v5129_v55 }
 0xfa0   : > { %v5455_v57 = vsel %vm3895_vm11, %v5209_v29, %v5253_v2  ;;  %v5405_v44 = vsel %vm1500_vm8, %v5388_v37, %v5138_v43 }
 0xfa2   : > { %v5289_v45 = vpop.permute.xlu1 %5288  ;;  %v5173_v33 = vpop.permute.xlu0 %5172 }
 0xfa3   : > { %v5297_v52 = vsel %vm10194_vm7, %v5287_v18, %v5289_v45  ;;  %v5182_v26 = vsel %vm1659_vm13, %v5171_v58, %v5173_v33 }
 0xfa4   : > { %v5471_v62 = vsel %vm1500_vm8, %v5455_v57, %v5297_v52  ;;  %v5427_v53 = vsel %vm3838_vm12, %v5405_v44, %v5182_v26 }
 0xfa5   : > { %v5494_v8 = vsel %vm3838_vm12, %v5471_v62, %v5332_v7 }
 0xfa6   : > { %v5131_v38 = vpop.permute.xlu1 %5130  ;;  %5663 = vmatprep.subr.bf16.mxu1 %v5494_v8 }
 0xfa7   : > { %5664 = vmatpush1.bf16.msra.mxu1 %v5491_v14  ;;  %v5139_v27 = vsel %vm10195_vm10, %v5129_v55, %v5131_v38 }
 0xfa8   : > { %v5407_v41 = vsel %vm1500_vm8, %v5391_v25, %v5139_v27 }
 0xfaa   : > { %v5175_v19 = vpop.permute.xlu1 %5174 }
 0xfab   : > { %v5183_v28 = vsel %vm1659_vm13, %v5173_v33, %v5175_v19 }
 0xfac   : > { %v5430_v12 = vsel %vm3838_vm12, %v5407_v41, %v5183_v28 }
 0xfad   : > { %5665 = vmatprep.subr.bf16.mxu1 %v5430_v12 }
 0xfae   : > { %5666 = vmatpush1.bf16.msra.mxu1 %v5427_v53 }
 0xfaf   : > { %v9649_v47 = vpop.permute.xlu0 %5498 }
 0xfb1   : > { %6142 = vmatmul.mubr.msk.bf16.vlgmr.msra.gmra.mxu1 %vm4752_vm15, %v9479_v13 }
0x100b   : > { %v5562_v17 = vpop.f32.mrf.mxu0 }
0x100c   : > { %v5563_v9 = vadd.f32 %v5562_v17, %v9649_v47 }
0x100d   : > { %v5564_v6 = vpop.f32.mrf.mxu0 }
0x100e   : > { %v5693_v42 = vsel %vm5692_vm0, %v5563_v9, -inf  ;;  %v5565_v54 = vadd.f32 %v5564_v6, %v9649_v47 }
0x100f   : > { %v5694_v24 = vrot.slane %v5693_v42, 4  ;;  %v5566_v11 = vpop.f32.mrf.mxu0 }
0x1010   : > { %v5700_v40 = vsel %vm5692_vm0, %v5565_v54, -inf }
0x1011   : > { %v5695_v22 = vmax.f32 %v5693_v42, %v5694_v24  ;;  %v5701_v49 = vrot.slane %v5700_v40, 4  ;;  %v5567_v15 = vpop.f32.mrf.mxu0 }
0x1013   : > { %v5696_v4 = vrot.slane %v5695_v22, 2  ;;  %v5702_v13 = vmax.f32 %v5700_v40, %v5701_v49 }
0x1015   : > { %v5697_v35 = vmax.f32 %v5695_v22, %v5696_v4  ;;  %v5703_v0 = vrot.slane %v5702_v13, 2 }
0x1017   : > { %v5698_v21 = vrot.slane %v5697_v35, 1  ;;  %v5704_v3 = vmax.f32 %v5702_v13, %v5703_v0 }
0x1019   : > { %v5699_v58 = vmax.f32 %v5697_v35, %v5698_v21  ;;  %v5705_v30 = vrot.slane %v5704_v3, 1 }
0x101b   : > { %v5749_v56 = vsub.f32 %v5563_v9, %v5699_v58  ;;  %v5706_v23 = vmax.f32 %v5704_v3, %v5705_v30 }
0x101d   : > { %v5757_v5 = vmul.f32 1.442695, %v5749_v56  ;;  %v5750_v48 = vsub.f32 %v5565_v54, %v5706_v23 }
0x101f   : > { %6249 = vpow2.f32 %v5757_v5  ;;  %v5759_v20 = vmul.f32 1.442695, %v5750_v48 }
0x1021   : > { %6251 = vpow2.f32 %v5759_v20 }
0x102c   : > { %v6250_v63 = vpop.eup %6249 }
0x102d   : > { %v5773_v36 = vsel %vm5692_vm0, %v6250_v63, 0.0 }
0x102e   : > { %v6252_v59 = vpop.eup %6251  ;;  %v5774_v10 = vrot.slane %v5773_v36, 4 }
0x102f   : > { %v5780_v18 = vsel %vm5692_vm0, %v6252_v59, 0.0 }
0x1030   : > { %v5775_v50 = vadd.f32 %v5774_v10, %v5773_v36  ;;  %v5781_v34 = vrot.slane %v5780_v18, 4 }
0x1032   : > { %v5776_v1 = vrot.slane %v5775_v50, 2  ;;  %v5782_v2 = vadd.f32 %v5781_v34, %v5780_v18 }
0x1034   : > { %v5777_v60 = vadd.f32 %v5776_v1, %v5775_v50  ;;  %v5783_v55 = vrot.slane %v5782_v2, 2 }
0x1036   : > { %v5778_v29 = vrot.slane %v5777_v60, 1  ;;  %v5784_v32 = vadd.f32 %v5783_v55, %v5782_v2  ;;  %v5603_v45 = vpop.f32.mrf.mxu1 }
0x1037   : > { %v5604_v46 = vadd.f32 %v5603_v45, %v9649_v47 }
0x1038   : > { %v5779_v57 = vadd.f32 %v5778_v29, %v5777_v60  ;;  %v5785_v52 = vrot.slane %v5784_v32, 1  ;;  %v5605_v7 = vpop.f32.mrf.mxu1 }
0x1039   : > { %v5707_v62 = vsel %vm5692_vm0, %v5604_v46, -inf  ;;  %v5606_v31 = vadd.f32 %v5605_v7, %v9649_v47 }
0x103a   : > { %6253 = vrcp.f32 %v5779_v57  ;;  %v5786_v8 = vadd.f32 %v5785_v52, %v5784_v32  ;;  %v5708_v38 = vrot.slane %v5707_v62, 4  ;;  %v5607_v14 = vpop.f32.mrf.mxu1 }
0x103b   : > { %v5714_v51 = vsel %vm5692_vm0, %v5606_v31, -inf }
0x103c   : > { %6255 = vrcp.f32 %v5786_v8  ;;  %v5709_v33 = vmax.f32 %v5707_v62, %v5708_v38  ;;  %v5715_v61 = vrot.slane %v5714_v51, 4  ;;  %v5608_v27 = vpop.f32.mrf.mxu1 }
0x103e   : > { %v5710_v16 = vrot.slane %v5709_v33, 2  ;;  %v5716_v43 = vmax.f32 %v5714_v51, %v5715_v61 }
0x1040   : > { %v5711_v39 = vmax.f32 %v5709_v33, %v5710_v16  ;;  %v5717_v25 = vrot.slane %v5716_v43, 2 }
0x1042   : > { %v5712_v26 = vrot.slane %v5711_v39, 1  ;;  %v5718_v19 = vmax.f32 %v5716_v43, %v5717_v25 }
0x1044   : > { %v5713_v37 = vmax.f32 %v5711_v39, %v5712_v26  ;;  %v5719_v28 = vrot.slane %v5718_v19, 1 }
0x1046   : > { %v5751_v41 = vsub.f32 %v5604_v46, %v5713_v37  ;;  %v5720_v44 = vmax.f32 %v5718_v19, %v5719_v28 }
0x1047   : > { %v6254_v12 = vpop.eup %6253 }
0x1048   : > { %v5830_v53 = vmul.f32 %v6254_v12, %v6250_v63  ;;  %v5761_v17 = vmul.f32 1.442695, %v5751_v41  ;;  %v5752_v9 = vsub.f32 %v5606_v31, %v5720_v44 }
0x1049   : > { %v6256_v6 = vpop.eup %6255 }
0x104a   : > { %5845 = vst [vmem:[%s9665_s24] sm:$0x1f] %v5830_v53  ;;  %v5832_v42 = vmul.f32 %v6256_v6, %v6252_v59  ;;  %6257 = vpow2.f32 %v5761_v17  ;;  %v5763_v54 = vmul.f32 1.442695, %v5752_v9 }
0x104c   : > { %5846 = vst [vmem:[%s9665_s24 + $0x8] sm:$0x1f] %v5832_v42  ;;  %6259 = vpow2.f32 %v5763_v54 }
0x1057   : > { %v6258_v24 = vpop.eup %6257 }
0x1058   : > { %v5787_v11 = vsel %vm5692_vm0, %v6258_v24, 0.0 }
0x1059   : > { %v6260_v40 = vpop.eup %6259  ;;  %v5788_v22 = vrot.slane %v5787_v11, 4  ;;  %v5644_v49 = vpop.f32.mrf.mxu0 }
0x105a   : > { %v5794_v15 = vsel %vm5692_vm0, %v6260_v40, 0.0  ;;  %v5645_v4 = vadd.f32 %v5644_v49, %v9649_v47 }
0x105b   : > { %v5789_v13 = vadd.f32 %v5788_v22, %v5787_v11  ;;  %v5795_v35 = vrot.slane %v5794_v15, 4  ;;  %v5646_v0 = vpop.f32.mrf.mxu0 }
0x105c   : > { %v5721_v21 = vsel %vm5692_vm0, %v5645_v4, -inf  ;;  %v5647_v3 = vadd.f32 %v5646_v0, %v9649_v47 }
0x105d   : > { %v5790_v58 = vrot.slane %v5789_v13, 2  ;;  %v5796_v30 = vadd.f32 %v5795_v35, %v5794_v15  ;;  %v5722_v56 = vrot.slane %v5721_v21, 4  ;;  %v5648_v23 = vpop.f32.mrf.mxu0 }
0x105e   : > { %v5728_v5 = vsel %vm5692_vm0, %v5647_v3, -inf }
0x105f   : > { %v5791_v48 = vadd.f32 %v5790_v58, %v5789_v13  ;;  %v5797_v20 = vrot.slane %v5796_v30, 2  ;;  %v5723_v63 = vmax.f32 %v5721_v21, %v5722_v56  ;;  %v5729_v36 = vrot.slane %v5728_v5, 4  ;;  %v5649_v59 = vpop.f32.mrf.mxu0 }
0x1061   : > { %v5792_v10 = vrot.slane %v5791_v48, 1  ;;  %v5798_v18 = vadd.f32 %v5797_v20, %v5796_v30  ;;  %v5724_v50 = vrot.slane %v5723_v63, 2  ;;  %v5730_v34 = vmax.f32 %v5728_v5, %v5729_v36 }
0x1063   : > { %v5793_v1 = vadd.f32 %v5792_v10, %v5791_v48  ;;  %v5799_v2 = vrot.slane %v5798_v18, 1  ;;  %v5725_v60 = vmax.f32 %v5723_v63, %v5724_v50  ;;  %v5731_v55 = vrot.slane %v5730_v34, 2 }
0x1065   : > { %6261 = vrcp.f32 %v5793_v1  ;;  %v5800_v29 = vadd.f32 %v5799_v2, %v5798_v18  ;;  %v5726_v32 = vrot.slane %v5725_v60, 1  ;;  %v5732_v45 = vmax.f32 %v5730_v34, %v5731_v55 }
0x1067   : > { %6263 = vrcp.f32 %v5800_v29  ;;  %v5727_v46 = vmax.f32 %v5725_v60, %v5726_v32  ;;  %v5733_v57 = vrot.slane %v5732_v45, 1 }
0x1069   : > { %v5753_v52 = vsub.f32 %v5645_v4, %v5727_v46  ;;  %v5734_v7 = vmax.f32 %v5732_v45, %v5733_v57 }
0x106b   : > { %v5765_v62 = vmul.f32 1.442695, %v5753_v52  ;;  %v5754_v31 = vsub.f32 %v5647_v3, %v5734_v7 }
0x106d   : > { %6265 = vpow2.f32 %v5765_v62  ;;  %v5767_v8 = vmul.f32 1.442695, %v5754_v31 }
0x106f   : > { %6267 = vpow2.f32 %v5767_v8 }
0x1071   : > { %v5685_v38 = vpop.f32.mrf.mxu1 }
0x1072   : > { %v6262_v14 = vpop.eup %6261  ;;  %v5686_v51 = vadd.f32 %v5685_v38, %v9649_v47 }
0x1073   : > { %v5834_v33 = vmul.f32 %v6262_v14, %v6258_v24  ;;  %v5687_v61 = vpop.f32.mrf.mxu1 }
0x1074   : > { %v6264_v27 = vpop.eup %6263  ;;  %v5735_v16 = vsel %vm5692_vm0, %v5686_v51, -inf  ;;  %v5688_v43 = vadd.f32 %v5687_v61, %v9649_v47 }
0x1075   : > { %5847 = vst [vmem:[%s9665_s24 + $0x10] sm:$0x1f] %v5834_v33  ;;  %v5836_v39 = vmul.f32 %v6264_v27, %v6260_v40  ;;  %v5736_v25 = vrot.slane %v5735_v16, 4  ;;  %v5689_v26 = vpop.f32.mrf.mxu1 }
0x1076   : > { %v5742_v19 = vsel %vm5692_vm0, %v5688_v43, -inf }
0x1077   : > { %5848 = vst [vmem:[%s9665_s24 + $0x18] sm:$0x1f] %v5836_v39  ;;  %v5737_v37 = vmax.f32 %v5735_v16, %v5736_v25  ;;  %v5743_v28 = vrot.slane %v5742_v19, 4  ;;  %v5690_v41 = vpop.f32.mrf.mxu1 }
0x1079   : > { %v5738_v44 = vrot.slane %v5737_v37, 2  ;;  %v5744_v12 = vmax.f32 %v5742_v19, %v5743_v28 }
0x107a   : > { %v6266_v53 = vpop.eup %6265 }
0x107b   : > { %v5801_v17 = vsel %vm5692_vm0, %v6266_v53, 0.0  ;;  %v5739_v9 = vmax.f32 %v5737_v37, %v5738_v44  ;;  %v5745_v6 = vrot.slane %v5744_v12, 2 }
0x107c   : > { %v6268_v42 = vpop.eup %6267  ;;  %v5802_v54 = vrot.slane %v5801_v17, 4 }
0x107d   : > { %v5808_v47 = vsel %vm5692_vm0, %v6268_v42, 0.0  ;;  %v5740_v24 = vrot.slane %v5739_v9, 1  ;;  %v5746_v11 = vmax.f32 %v5744_v12, %v5745_v6 }
0x107e   : > { %v5803_v40 = vadd.f32 %v5802_v54, %v5801_v17  ;;  %v5809_v22 = vrot.slane %v5808_v47, 4 }
0x107f   : > { %v5741_v49 = vmax.f32 %v5739_v9, %v5740_v24  ;;  %v5747_v15 = vrot.slane %v5746_v11, 1 }
0x1080   : > { %v5804_v4 = vrot.slane %v5803_v40, 2  ;;  %v5810_v13 = vadd.f32 %v5809_v22, %v5808_v47 }
0x1081   : > { %v5755_v35 = vsub.f32 %v5686_v51, %v5741_v49  ;;  %v5748_v0 = vmax.f32 %v5746_v11, %v5747_v15 }
0x1082   : > { %v5805_v21 = vadd.f32 %v5804_v4, %v5803_v40  ;;  %v5811_v3 = vrot.slane %v5810_v13, 2 }
0x1083   : > { %v5769_v58 = vmul.f32 1.442695, %v5755_v35  ;;  %v5756_v30 = vsub.f32 %v5688_v43, %v5748_v0 }
0x1084   : > { %v5806_v56 = vrot.slane %v5805_v21, 1  ;;  %v5812_v23 = vadd.f32 %v5811_v3, %v5810_v13 }
0x1085   : > { %6269 = vpow2.f32 %v5769_v58  ;;  %v5771_v5 = vmul.f32 1.442695, %v5756_v30 }
0x1086   : > { %v5807_v48 = vadd.f32 %v5806_v56, %v5805_v21  ;;  %v5813_v20 = vrot.slane %v5812_v23, 1 }
0x1087   : > { %6271 = vpow2.f32 %v5771_v5 }
0x1088   : > { %6273 = vrcp.f32 %v5807_v48  ;;  %v5814_v63 = vadd.f32 %v5813_v20, %v5812_v23 }
0x108a   : > { %6275 = vrcp.f32 %v5814_v63 }
0x1092   : > { %v6270_v36 = vpop.eup %6269 }
0x1093   : > { %v5815_v59 = vsel %vm5692_vm0, %v6270_v36, 0.0 }
0x1094   : > { %v6272_v10 = vpop.eup %6271  ;;  %v5816_v18 = vrot.slane %v5815_v59, 4 }
0x1095   : > { %v6274_v50 = vpop.eup %6273  ;;  %v5822_v34 = vsel %vm5692_vm0, %v6272_v10, 0.0 }
0x1096   : > { %v5838_v1 = vmul.f32 %v6274_v50, %v6266_v53  ;;  %v5817_v2 = vadd.f32 %v5816_v18, %v5815_v59  ;;  %v5823_v60 = vrot.slane %v5822_v34, 4 }
0x1097   : > { %v6276_v55 = vpop.eup %6275 }
0x1098   : > { %5849 = vst [vmem:[%s9665_s24 + $0x20] sm:$0x1f] %v5838_v1  ;;  %v5840_v29 = vmul.f32 %v6276_v55, %v6268_v42  ;;  %v5818_v32 = vrot.slane %v5817_v2, 2  ;;  %v5824_v45 = vadd.f32 %v5823_v60, %v5822_v34 }
0x109a   : > { %5850 = vst [vmem:[%s9665_s24 + $0x28] sm:$0x1f] %v5840_v29  ;;  %v5819_v46 = vadd.f32 %v5818_v32, %v5817_v2  ;;  %v5825_v57 = vrot.slane %v5824_v45, 2 }
0x109c   : > { %v5820_v52 = vrot.slane %v5819_v46, 1  ;;  %v5826_v7 = vadd.f32 %v5825_v57, %v5824_v45 }
0x109e   : > { %v5821_v62 = vadd.f32 %v5820_v52, %v5819_v46  ;;  %v5827_v31 = vrot.slane %v5826_v7, 1 }
0x10a0   : > { %6277 = vrcp.f32 %v5821_v62  ;;  %v5828_v8 = vadd.f32 %v5827_v31, %v5826_v7 }
0x10a2   : > { %6279 = vrcp.f32 %v5828_v8 }
0x10ad   : > { %v6278_v38 = vpop.eup %6277 }
0x10ae   : > { %v5842_v14 = vmul.f32 %v6278_v38, %v6270_v36 }
0x10af   : > { %v6280_v51 = vpop.eup %6279 }
0x10b0   : > { %5851 = vst [vmem:[%s9665_s24 + $0x30] sm:$0x1f] %v5842_v14  ;;  %v5844_v33 = vmul.f32 %v6280_v51, %v6272_v10 }
0x10b2   : > { %5852 = vst [vmem:[%s9665_s24 + $0x38] sm:$0x1f] %v5844_v33 }
0x10b3 PF: > { %s31_s2 = sadd.s32 1, %s6287_s2  }
0x10b4   : > { %p28_p4 = scmp.ge.s32.totalorder %s31_s2, 4  }
0x10b6   :  { %30 = sbr.rel (!%p28_p4) target bundleno = 9 (0x9), region = 143 }

</bundles_post_ra>
